<compile_context>
chip_gen: v6e
topology: v6e:2x2x1
jax: 0.10.0
libtpu: 0.0.40
codegen_flags: <defaults>
</compile_context>

<pallas_src>
import numpy as np
import jax
import jax.numpy as jnp
from jax.experimental import pallas as pl
from jax.experimental.pallas import tpu as pltpu

H = W = 9
HW = H * W                      # 81 spatial positions
LANES = 128                     # per-sample lane width (81 valid + 47 zero pad)
# 3x3 taps, k = ky*3 + kx, linear pixel offset = dy*W + dx  (dy,dx in {-1,0,1})
_TAP_OFFS = tuple((ky - 1) * W + (kx - 1) for ky in range(3) for kx in range(3))


# --------------------------------------------------------------------------
# Kernel 1: fused conv trunk (4 stacked conv stages + 2 attention gates).
# One grid step = TILE_B samples; all activations/weights stay in VMEM.
# --------------------------------------------------------------------------
def _conv_trunk_kernel(x0_ref, masks_ref,
                       w1_ref, b1_ref, w2_ref, b2_ref,
                       w3_ref, b3_ref, w4_ref, b4_ref,
                       a1w_ref, a1b_ref, a2w_ref, a2b_ref,
                       o_ref):
    tb = x0_ref.shape[0]                       # samples stacked on the lane axis
    L = masks_ref.shape[-1]                    # tb * 128
    valid = masks_ref[4]                       # center tap == valid-pixel mask (1, L)

    def conv33(x, w_ref, b_ref):
        # x: (2Cin, L) f32.  3x3 conv (pad=1) of both stacked branches as ONE
        # bf16 MXU matmul with K = 9*2Cin; taps via XLU lane rolls + 0/1 masks
        # (pure data movement stays off the MXU).
        parts = []
        for k, off in enumerate(_TAP_OFFS):
            xs = x if off == 0 else pltpu.roll(x, shift=(-off) % L, axis=1)
            parts.append((xs * masks_ref[k]).astype(jnp.bfloat16))
        xs_cat = jnp.concatenate(parts, axis=0)                   # (9*2Cin, L) bf16
        acc = jnp.dot(w_ref[...], xs_cat,
                      preferred_element_type=jnp.float32)         # (2Cout, L) f32
        return jnp.tanh(acc + b_ref[...])

    def att_gate(x, aw_ref, ab_ref):
        # 1x1 appearance attention conv as a VPU multiply + sublane reduce
        # (no 1-output-lane matmul), Attention_mask normalization per sample,
        # gate only the motion half (first half of the rows).
        rows = x.shape[0]
        g = jax.nn.sigmoid(jnp.sum(x * aw_ref[...], axis=0, keepdims=True)
                           + ab_ref[...]) * valid                 # (1, L)
        pieces = []
        for b in range(tb):
            gb = g[:, b * LANES:(b + 1) * LANES]
            sb = jnp.sum(gb, axis=1, keepdims=True)               # per-sample sum
            pieces.append(gb * (float(HW) * 0.5)
                          * pl.reciprocal(sb, approx=True))
        amask = jnp.concatenate(pieces, axis=1)                   # (1, L)
        row = jax.lax.broadcasted_iota(jnp.int32, (rows, 1), 0)
        sel = (row < rows // 2).astype(jnp.float32)               # 1 on motion rows
        return x * (amask * sel + (1.0 - sel))

    # layer 1: wrapper-side im2col -> single K=54 matmul, no in-kernel rolls.
    x0 = jnp.concatenate([x0_ref[b] for b in range(tb)], axis=1)  # (54, L) bf16
    a1 = jnp.tanh(jnp.dot(w1_ref[...], x0,
                          preferred_element_type=jnp.float32) + b1_ref[...])
    a2 = conv33(a1, w2_ref, b2_ref)                               # (2*nf1, L)
    a2 = att_gate(a2, a1w_ref, a1b_ref)                           # gated1 | r2
    a3 = conv33(a2, w3_ref, b3_ref)                               # (2*nf2, L)
    a4 = conv33(a3, w4_ref, b4_ref)                               # (2*nf2, L)
    a4 = att_gate(a4, a2w_ref, a2b_ref)                           # gated2 | r6
    half = a4.shape[0] // 2                                       # motion half
    for b in range(tb):
        # lane-dense 128-wide bf16 stores (no masked vst)
        o_ref[b] = a4[:half, b * LANES:(b + 1) * LANES].astype(o_ref.dtype)


def conv_trunk(x0s, p):
    n = x0s.shape[0]
    tile_b = p["masks"].shape[-1] // LANES
    assert n % tile_b == 0
    nf2 = p["c4_w"].shape[0] // 2
    consts = (p["masks"], p["c1_w"], p["c1_b"], p["c2_w"], p["c2_b"],
              p["c3_w"], p["c3_b"], p["c4_w"], p["c4_b"],
              p["a1_w"], p["a1_b"], p["a2_w"], p["a2_b"])

    def full(a):  # VMEM-resident constant (weights / masks / biases)
        return pl.BlockSpec(a.shape, lambda i: (0,) * a.ndim)

    return pl.pallas_call(
        _conv_trunk_kernel,
        out_shape=jax.ShapeDtypeStruct((n, nf2, LANES), jnp.bfloat16),
        grid=(n // tile_b,),
        in_specs=[pl.BlockSpec((tile_b, x0s.shape[1], LANES), lambda i: (i, 0, 0))]
                 + [full(a) for a in consts],
        out_specs=pl.BlockSpec((tile_b, nf2, LANES), lambda i: (i, 0, 0)),
        compiler_params=pltpu.CompilerParams(
            dimension_semantics=("parallel",),        # v7x: both TCs share the batch
            vmem_limit_bytes=32 * 1024 * 1024),
    )(x0s, *consts)


# --------------------------------------------------------------------------
# Kernel 2: dense head (final_dense_1 + tanh + dropout(identity) +
# final_dense_2), tiled over N with the bf16 dense1 weight VMEM-resident.
# --------------------------------------------------------------------------
def _dense_head_kernel(x_ref, w1_ref, b1_ref, w2_ref, b2_ref, o_ref):
    h = jnp.dot(x_ref[...], w1_ref[...],
                preferred_element_type=jnp.float32) + b1_ref[...]
    h = jnp.tanh(h)                                    # f32; dropout = identity (eval)
    # final_dense_2 (out_size == 1): VPU multiply + lane reduce, no 1-lane matmul.
    o_ref[...] = jnp.sum(h * w2_ref[...], axis=1, keepdims=True) + b2_ref[...]


def dense_head(flat, p, tile_n=8):
    n, kdim = flat.shape
    tn = min(tile_n, n)
    n_pad = -(-n // tn) * tn
    if n_pad != n:
        flat = jnp.pad(flat, ((0, n_pad - n), (0, 0)))

    def full(a):
        return pl.BlockSpec(a.shape, lambda i: (0,) * a.ndim)

    out = pl.pallas_call(
        _dense_head_kernel,
        out_shape=jax.ShapeDtypeStruct((n_pad, 1), jnp.float32),
        grid=(n_pad // tn,),
        in_specs=[pl.BlockSpec((tn, kdim), lambda i: (i, 0)),
                  full(p["d1_w"]), full(p["d1_b"]),
                  full(p["d2_w"]), full(p["d2_b"])],
        out_specs=pl.BlockSpec((tn, 1), lambda i: (i, 0)),
        compiler_params=pltpu.CompilerParams(
            dimension_semantics=("parallel",),
            vmem_limit_bytes=32 * 1024 * 1024),
    )(flat, p["d1_w"], p["d1_b"], p["d2_w"], p["d2_b"])
    return out[:n]


# --------------------------------------------------------------------------
# Parameters (deterministic synthetic init, shapes from DeepPhys.__init__)
# --------------------------------------------------------------------------
def init_params(key, in_channels=3, nf1=32, nf2=64, nb_dense=128, out_size=1):
    keys = iter(jax.random.split(key, 32))

    def conv_p(co, ci, kh=3, kw=3):
        fan_in = ci * kh * kw
        w = jax.random.normal(next(keys), (co, ci, kh, kw), jnp.float32) / jnp.sqrt(fan_in)
        b = jax.random.normal(next(keys), (co,), jnp.float32) * 0.01
        return w, b

    p = {}
    p["motion_conv1_w"], p["motion_conv1_b"] = conv_p(nf1, in_channels)
    p["motion_conv2_w"], p["motion_conv2_b"] = conv_p(nf1, nf1)
    p["motion_conv3_w"], p["motion_conv3_b"] = conv_p(nf2, nf1)
    p["motion_conv4_w"], p["motion_conv4_b"] = conv_p(nf2, nf2)
    p["apperance_conv1_w"], p["apperance_conv1_b"] = conv_p(nf1, in_channels)
    p["apperance_conv2_w"], p["apperance_conv2_b"] = conv_p(nf1, nf1)
    p["apperance_conv3_w"], p["apperance_conv3_b"] = conv_p(nf2, nf1)
    p["apperance_conv4_w"], p["apperance_conv4_b"] = conv_p(nf2, nf2)
    p["att_conv1_w"], p["att_conv1_b"] = conv_p(1, nf1, 1, 1)
    p["att_conv2_w"], p["att_conv2_b"] = conv_p(1, nf2, 1, 1)
    # final_dense_1: Linear(5184, 128); PyTorch weight is (out, in), in = c*81 + p
    p["dense1_w"] = jax.random.normal(next(keys), (nb_dense, nf2 * HW), jnp.float32) / jnp.sqrt(nf2 * HW)
    p["dense1_b"] = jax.random.normal(next(keys), (nb_dense,), jnp.float32) * 0.01
    p["dense2_w"] = jax.random.normal(next(keys), (out_size, nb_dense), jnp.float32) / jnp.sqrt(nb_dense)
    p["dense2_b"] = jax.random.normal(next(keys), (out_size,), jnp.float32) * 0.01
    return p


# --------------------------------------------------------------------------
# One-time packing of PyTorch-layout params into kernel-ready layouts.
# --------------------------------------------------------------------------
def _tap_masks(tile_b):
    """(9, 1, tile_b*128) 0/1 masks: for tap k, 1 where the shifted source
    pixel lies inside the 9x9 image (zero-padding rows/cols and the 47 pad
    lanes are zeroed).  Also zeroes any cross-sample roll contamination."""
    m = np.zeros((9, 1, LANES), np.float32)
    for ky in range(3):
        for kx in range(3):
            k = ky * 3 + kx
            for y in range(H):
                for x in range(W):
                    sy, sx = y + ky - 1, x + kx - 1
                    if 0 <= sy < H and 0 <= sx < W:
                        m[k, 0, y * W + x] = 1.0
    return jnp.asarray(np.tile(m, (1, 1, tile_b)))


def _pack_conv_pair(wm, bm, wa, ba):
    """PyTorch OIHW motion/appearance 3x3 weights -> block-diagonal, tap-major
    ((2Cout, 9*2Cin) bf16, (2Cout, 1) f32) matching the kernel's xs_cat rows."""
    co, ci = wm.shape[0], wm.shape[1]
    wm_t = jnp.transpose(wm, (0, 2, 3, 1)).reshape(co, 9, ci)   # (co, k, ci)
    wa_t = jnp.transpose(wa, (0, 2, 3, 1)).reshape(co, 9, ci)
    z = jnp.zeros((co, 9, ci), jnp.float32)
    top = jnp.concatenate([wm_t, z], axis=2)                    # motion rows
    bot = jnp.concatenate([z, wa_t], axis=2)                    # appearance rows
    wfull = jnp.concatenate([top, bot], axis=0).reshape(2 * co, 9 * 2 * ci)
    bias = jnp.concatenate([bm, ba]).reshape(2 * co, 1)
    return wfull.astype(jnp.bfloat16), bias.astype(jnp.float32)


def prepare_params(params, tile_b=1):
    nf1 = params["motion_conv1_w"].shape[0]
    nf2 = params["motion_conv4_w"].shape[0]
    nb_dense = params["dense1_w"].shape[0]

    p = {"masks": _tap_masks(tile_b)}
    p["c1_w"], p["c1_b"] = _pack_conv_pair(params["motion_conv1_w"], params["motion_conv1_b"],
                                           params["apperance_conv1_w"], params["apperance_conv1_b"])
    p["c2_w"], p["c2_b"] = _pack_conv_pair(params["motion_conv2_w"], params["motion_conv2_b"],
                                           params["apperance_conv2_w"], params["apperance_conv2_b"])
    p["c3_w"], p["c3_b"] = _pack_conv_pair(params["motion_conv3_w"], params["motion_conv3_b"],
                                           params["apperance_conv3_w"], params["apperance_conv3_b"])
    p["c4_w"], p["c4_b"] = _pack_conv_pair(params["motion_conv4_w"], params["motion_conv4_b"],
                                           params["apperance_conv4_w"], params["apperance_conv4_b"])
    # 1x1 attention convs read the appearance half of the stacked rows; the
    # motion rows get zero weight so the kernel can use one VPU reduce.
    a1 = params["att_conv1_w"].reshape(nf1).astype(jnp.float32)
    a2 = params["att_conv2_w"].reshape(nf2).astype(jnp.float32)
    p["a1_w"] = jnp.concatenate([jnp.zeros_like(a1), a1]).reshape(2 * nf1, 1)
    p["a2_w"] = jnp.concatenate([jnp.zeros_like(a2), a2]).reshape(2 * nf2, 1)
    p["a1_b"] = params["att_conv1_b"].reshape(1, 1).astype(jnp.float32)
    p["a2_b"] = params["att_conv2_b"].reshape(1, 1).astype(jnp.float32)
    # dense1: PyTorch (out, in) with in-index = c*81 + p (NCHW flatten).
    # Re-index to the kernel's lane-padded flatten (c*128 + p) and zero the
    # 47 pad columns so the (N, 64, 128) conv output feeds it with a FREE
    # reshape; store bf16 (MXU operand only; accumulation stays f32).
    w1 = params["dense1_w"].reshape(nb_dense, nf2, HW)
    w1 = jnp.pad(w1, ((0, 0), (0, 0), (0, LANES - HW)))
    p["d1_w"] = jnp.transpose(w1, (1, 2, 0)).reshape(nf2 * LANES, nb_dense).astype(jnp.bfloat16)
    p["d1_b"] = params["dense1_b"].reshape(1, nb_dense).astype(jnp.float32)
    # out_size == 1 (DeepPhys default): dense2 as a broadcast row for a VPU reduce.
    p["d2_w"] = params["dense2_w"].reshape(1, nb_dense).astype(jnp.float32)
    p["d2_b"] = params["dense2_b"].reshape(1, -1).astype(jnp.float32)
    return p


# --------------------------------------------------------------------------
# Wrapper-side layer-1 im2col: (N,3,9,9) diff/raw -> (N, 54, 128) bf16 with
# the 9 taps stacked (tap-major, [diff|raw]-minor) on sublanes and the 81
# pixels (zero-padded to 128) on lanes.
# --------------------------------------------------------------------------
def _im2col_l1(diff, raw):
    n = diff.shape[0]
    x = jnp.concatenate([diff, raw], axis=1).astype(jnp.float32)      # (N, 6, 9, 9)
    xp = jnp.pad(x, ((0, 0), (0, 0), (1, 1), (1, 1)))                 # (N, 6, 11, 11)
    taps = [xp[:, :, ky:ky + H, kx:kx + W] for ky in range(3) for kx in range(3)]
    x0 = jnp.stack(taps, axis=1).reshape(n, 9 * x.shape[1], HW)       # (N, 54, 81)
    x0 = jnp.pad(x0, ((0, 0), (0, 0), (0, LANES - HW)))               # (N, 54, 128)
    return x0.astype(jnp.bfloat16)


# --------------------------------------------------------------------------
# Full forward (mirrors DeepPhys.forward, eval mode)
# --------------------------------------------------------------------------
def deepphys_forward(p, big_nchw, small_nchw):
    n = small_nchw.shape[0]
    tile_b = p["masks"].shape[-1] // LANES

    if big_nchw.shape[2:] != (H, W):
        # TODO(synk): torchvision T.Resize defaults to antialiased bilinear;
        # jax.image.resize bilinear (no antialias) only approximates it.
        raw = jax.image.resize(
            big_nchw, (big_nchw.shape[0], big_nchw.shape[1], H, W), method="bilinear")
    else:
        raw = big_nchw
    diff = small_nchw

    x0s = _im2col_l1(diff, raw)                                   # (N, 54, 128) bf16
    n_pad = -(-n // tile_b) * tile_b
    if n_pad != n:
        x0s = jnp.pad(x0s, ((0, n_pad - n), (0, 0), (0, 0)))

    feats = conv_trunk(x0s, p)            # (n_pad, 64, 128) bf16: gated motion features
    flat = feats.reshape(n_pad, -1)       # free reshape; matches d1_w (c*128 + p) rows
    out = dense_head(flat, p)             # (n_pad, 1) f32
    return out[:n]


# --------------------------------------------------------------------------
if __name__ == "__main__":
    key = jax.random.PRNGKey(0)
    k_big, k_small = jax.random.split(key)
    # img_size implied by final_dense_1 (5184 = 64*9*9): frames are 9x9.
    big = jax.random.normal(k_big, (2, 3, 9, 9), jnp.float32)
    small = jax.random.normal(k_small, (2, 3, 9, 9), jnp.float32)

    params = prepare_params(init_params(jax.random.PRNGKey(1)), tile_b=1)

    fwd = jax.jit(deepphys_forward)
    out = jax.block_until_ready(fwd(params, big, small))

    assert out.shape == (2, 1)
    assert bool(jnp.all(jnp.isfinite(out)))
    print("KERNEL_OK")
</pallas_src>

<mosaic_0001>
module attributes {stable_mosaic.version = 11 : i64} {
  func.func @_dense_head_kernel(%arg0: i32, %arg1: memref<2x8192xbf16, #tpu.memory_space<vmem>>, %arg2: memref<8192x128xbf16, #tpu.memory_space<vmem>>, %arg3: memref<1x128xf32, #tpu.memory_space<vmem>>, %arg4: memref<1x128xf32, #tpu.memory_space<vmem>>, %arg5: memref<1x1xf32, #tpu.memory_space<vmem>>, %arg6: memref<2x1xf32, #tpu.memory_space<vmem>>) attributes {dimension_semantics = [#tpu.dimension_semantics<parallel>], iteration_bounds = array<i64: 1>, scalar_prefetch = 0 : i64, scratch_operands = 0 : i64, tpu.core_type = #tpu.core_type<tc>, window_params = [{transform_indices = @transform_0, window_bounds = array<i64: 2, 8192>}, {pipeline_mode = #tpu.pipeline_mode<synchronous>, transform_indices = @transform_1, window_bounds = array<i64: 8192, 128>}, {pipeline_mode = #tpu.pipeline_mode<synchronous>, transform_indices = @transform_2, window_bounds = array<i64: 1, 128>}, {pipeline_mode = #tpu.pipeline_mode<synchronous>, transform_indices = @transform_3, window_bounds = array<i64: 1, 128>}, {pipeline_mode = #tpu.pipeline_mode<synchronous>, transform_indices = @transform_4, window_bounds = array<i64: 1, 1>}, {transform_indices = @transform_5, window_bounds = array<i64: 2, 1>}]} {
    %c0 = arith.constant 0 : index
    %c0_0 = arith.constant 0 : index
    %0 = vector.load %arg1[%c0, %c0_0] : memref<2x8192xbf16, #tpu.memory_space<vmem>>, vector<2x8192xbf16>
    %c0_1 = arith.constant 0 : index
    %c0_2 = arith.constant 0 : index
    %1 = vector.load %arg2[%c0_1, %c0_2] : memref<8192x128xbf16, #tpu.memory_space<vmem>>, vector<8192x128xbf16>
    %cst = arith.constant dense<0.000000e+00> : vector<2x128xf32>
    %2 = tpu.matmul %0, %1, %cst {dimension_numbers = #tpu.dot_dimension_numbers<[1], [0], [0], [1], [0, 0, 1, 1], [], []>} : vector<2x8192xbf16>, vector<8192x128xbf16>, vector<2x128xf32> -> vector<2x128xf32>
    %c0_3 = arith.constant 0 : index
    %c0_4 = arith.constant 0 : index
    %3 = vector.load %arg3[%c0_3, %c0_4] : memref<1x128xf32, #tpu.memory_space<vmem>>, vector<1x128xf32>
    %4 = vector.broadcast %3 : vector<1x128xf32> to vector<2x128xf32>
    %5 = arith.addf %2, %4 : vector<2x128xf32>
    %6 = math.tanh %5 : vector<2x128xf32>
    %c0_5 = arith.constant 0 : index
    %c0_6 = arith.constant 0 : index
    %7 = vector.load %arg4[%c0_5, %c0_6] : memref<1x128xf32, #tpu.memory_space<vmem>>, vector<1x128xf32>
    %8 = vector.broadcast %7 : vector<1x128xf32> to vector<2x128xf32>
    %9 = arith.mulf %6, %8 : vector<2x128xf32>
    %cst_7 = arith.constant dense<0.000000e+00> : vector<2xf32>
    %10 = vector.multi_reduction <add>, %9, %cst_7 [1] : vector<2x128xf32> to vector<2xf32>
    %11 = vector.shape_cast %10 : vector<2xf32> to vector<2x1xf32>
    %c0_8 = arith.constant 0 : index
    %c0_9 = arith.constant 0 : index
    %12 = vector.load %arg5[%c0_8, %c0_9] : memref<1x1xf32, #tpu.memory_space<vmem>>, vector<1x1xf32>
    %13 = vector.broadcast %12 : vector<1x1xf32> to vector<2x1xf32>
    %14 = arith.addf %11, %13 : vector<2x1xf32>
    %c0_10 = arith.constant 0 : index
    %c0_11 = arith.constant 0 : index
    %15 = vector.load %arg6[%c0_10, %c0_11] : memref<2x1xf32, #tpu.memory_space<vmem>>, vector<2x1xf32>
    tpu.vector_store %arg6[%c0_10, %c0_11], %14 {strides = array<i32>} : memref<2x1xf32, #tpu.memory_space<vmem>>, vector<2x1xf32>,
    return
  }
  func.func @transform_0(%arg0: i32) -> (i32, i32) {
    %c0_i32 = arith.constant 0 : i32
    %c0_i32_0 = arith.constant 0 : i32
    return %arg0, %c0_i32 : i32, i32
  }
  func.func @transform_1(%arg0: i32) -> (i32, i32) {
    %c0_i32 = arith.constant 0 : i32
    %c0_i32_0 = arith.constant 0 : i32
    %c0_i32_1 = arith.constant 0 : i32
    return %c0_i32, %c0_i32_0 : i32, i32
  }
  func.func @transform_2(%arg0: i32) -> (i32, i32) {
    %c0_i32 = arith.constant 0 : i32
    %c0_i32_0 = arith.constant 0 : i32
    %c0_i32_1 = arith.constant 0 : i32
    return %c0_i32, %c0_i32_0 : i32, i32
  }
  func.func @transform_3(%arg0: i32) -> (i32, i32) {
    %c0_i32 = arith.constant 0 : i32
    %c0_i32_0 = arith.constant 0 : i32
    %c0_i32_1 = arith.constant 0 : i32
    return %c0_i32, %c0_i32_0 : i32, i32
  }
  func.func @transform_4(%arg0: i32) -> (i32, i32) {
    %c0_i32 = arith.constant 0 : i32
    %c0_i32_0 = arith.constant 0 : i32
    %c0_i32_1 = arith.constant 0 : i32
    return %c0_i32, %c0_i32_0 : i32, i32
  }
  func.func @transform_5(%arg0: i32) -> (i32, i32) {
    %c0_i32 = arith.constant 0 : i32
    %c0_i32_0 = arith.constant 0 : i32
    return %arg0, %c0_i32 : i32, i32
  }
}

module attributes {stable_mosaic.version = 11 : i64} {
  func.func @_conv_trunk_kernel(%arg0: i32, %arg1: memref<1x54x128xbf16, #tpu.memory_space<vmem>>, %arg2: memref<9x1x128xf32, #tpu.memory_space<vmem>>, %arg3: memref<64x54xbf16, #tpu.memory_space<vmem>>, %arg4: memref<64x1xf32, #tpu.memory_space<vmem>>, %arg5: memref<64x576xbf16, #tpu.memory_space<vmem>>, %arg6: memref<64x1xf32, #tpu.memory_space<vmem>>, %arg7: memref<128x576xbf16, #tpu.memory_space<vmem>>, %arg8: memref<128x1xf32, #tpu.memory_space<vmem>>, %arg9: memref<128x1152xbf16, #tpu.memory_space<vmem>>, %arg10: memref<128x1xf32, #tpu.memory_space<vmem>>, %arg11: memref<64x1xf32, #tpu.memory_space<vmem>>, %arg12: memref<1x1xf32, #tpu.memory_space<vmem>>, %arg13: memref<128x1xf32, #tpu.memory_space<vmem>>, %arg14: memref<1x1xf32, #tpu.memory_space<vmem>>, %arg15: memref<1x64x128xbf16, #tpu.memory_space<vmem>>) attributes {dimension_semantics = [#tpu.dimension_semantics<parallel>], iteration_bounds = array<i64: 2>, scalar_prefetch = 0 : i64, scratch_operands = 0 : i64, tpu.core_type = #tpu.core_type<tc>, window_params = [{transform_indices = @transform_0, window_bounds = array<i64: 1, 54, 128>}, {pipeline_mode = #tpu.pipeline_mode<synchronous>, transform_indices = @transform_1, window_bounds = array<i64: 9, 1, 128>}, {pipeline_mode = #tpu.pipeline_mode<synchronous>, transform_indices = @transform_2, window_bounds = array<i64: 64, 54>}, {pipeline_mode = #tpu.pipeline_mode<synchronous>, transform_indices = @transform_3, window_bounds = array<i64: 64, 1>}, {pipeline_mode = #tpu.pipeline_mode<synchronous>, transform_indices = @transform_4, window_bounds = array<i64: 64, 576>}, {pipeline_mode = #tpu.pipeline_mode<synchronous>, transform_indices = @transform_5, window_bounds = array<i64: 64, 1>}, {pipeline_mode = #tpu.pipeline_mode<synchronous>, transform_indices = @transform_6, window_bounds = array<i64: 128, 576>}, {pipeline_mode = #tpu.pipeline_mode<synchronous>, transform_indices = @transform_7, window_bounds = array<i64: 128, 1>}, {pipeline_mode = #tpu.pipeline_mode<synchronous>, transform_indices = @transform_8, window_bounds = array<i64: 128, 1152>}, {pipeline_mode = #tpu.pipeline_mode<synchronous>, transform_indices = @transform_9, window_bounds = array<i64: 128, 1>}, {pipeline_mode = #tpu.pipeline_mode<synchronous>, transform_indices = @transform_10, window_bounds = array<i64: 64, 1>}, {pipeline_mode = #tpu.pipeline_mode<synchronous>, transform_indices = @transform_11, window_bounds = array<i64: 1, 1>}, {pipeline_mode = #tpu.pipeline_mode<synchronous>, transform_indices = @transform_12, window_bounds = array<i64: 128, 1>}, {pipeline_mode = #tpu.pipeline_mode<synchronous>, transform_indices = @transform_13, window_bounds = array<i64: 1, 1>}, {transform_indices = @transform_14, window_bounds = array<i64: 1, 64, 128>}]} {
    %c4 = arith.constant 4 : index
    %c0 = arith.constant 0 : index
    %c0_0 = arith.constant 0 : index
    %0 = vector.load %arg2[%c4, %c0, %c0_0] : memref<9x1x128xf32, #tpu.memory_space<vmem>>, vector<1x1x128xf32>
    %1 = vector.shape_cast %0 : vector<1x1x128xf32> to vector<1x128xf32>
    %c0_1 = arith.constant 0 : index
    %c0_2 = arith.constant 0 : index
    %c0_3 = arith.constant 0 : index
    %2 = vector.load %arg1[%c0_1, %c0_2, %c0_3] : memref<1x54x128xbf16, #tpu.memory_space<vmem>>, vector<1x54x128xbf16>
    %3 = vector.shape_cast %2 : vector<1x54x128xbf16> to vector<54x128xbf16>
    %c0_4 = arith.constant 0 : index
    %c0_5 = arith.constant 0 : index
    %4 = vector.load %arg3[%c0_4, %c0_5] : memref<64x54xbf16, #tpu.memory_space<vmem>>, vector<64x54xbf16>
    %cst = arith.constant dense<0.000000e+00> : vector<64x128xf32>
    %5 = tpu.matmul %4, %3, %cst {dimension_numbers = #tpu.dot_dimension_numbers<[1], [0], [0], [1], [0, 0, 1, 1], [], []>} : vector<64x54xbf16>, vector<54x128xbf16>, vector<64x128xf32> -> vector<64x128xf32>
    %c0_6 = arith.constant 0 : index
    %c0_7 = arith.constant 0 : index
    %6 = vector.load %arg4[%c0_6, %c0_7] : memref<64x1xf32, #tpu.memory_space<vmem>>, vector<64x1xf32>
    %7 = vector.broadcast %6 : vector<64x1xf32> to vector<64x128xf32>
    %8 = arith.addf %5, %7 : vector<64x128xf32>
    %9 = math.tanh %8 : vector<64x128xf32>
    %c10_i32 = arith.constant 10 : i32
    %10 = tpu.dynamic_rotate %9 by %c10_i32 dim 1 : vector<64x128xf32>, i32 -> vector<64x128xf32>
    %c0_8 = arith.constant 0 : index
    %c0_9 = arith.constant 0 : index
    %c0_10 = arith.constant 0 : index
    %11 = vector.load %arg2[%c0_8, %c0_9, %c0_10] : memref<9x1x128xf32, #tpu.memory_space<vmem>>, vector<1x1x128xf32>
    %12 = vector.shape_cast %11 : vector<1x1x128xf32> to vector<1x128xf32>
    %13 = vector.broadcast %12 : vector<1x128xf32> to vector<64x128xf32>
    %14 = arith.mulf %10, %13 : vector<64x128xf32>
    %15 = arith.truncf %14 : vector<64x128xf32> to vector<64x128xbf16>
    %c9_i32 = arith.constant 9 : i32
    %16 = tpu.dynamic_rotate %9 by %c9_i32 dim 1 : vector<64x128xf32>, i32 -> vector<64x128xf32>
    %c1 = arith.constant 1 : index
    %c0_11 = arith.constant 0 : index
    %c0_12 = arith.constant 0 : index
    %17 = vector.load %arg2[%c1, %c0_11, %c0_12] : memref<9x1x128xf32, #tpu.memory_space<vmem>>, vector<1x1x128xf32>
    %18 = vector.shape_cast %17 : vector<1x1x128xf32> to vector<1x128xf32>
    %19 = vector.broadcast %18 : vector<1x128xf32> to vector<64x128xf32>
    %20 = arith.mulf %16, %19 : vector<64x128xf32>
    %21 = arith.truncf %20 : vector<64x128xf32> to vector<64x128xbf16>
    %c8_i32 = arith.constant 8 : i32
    %22 = tpu.dynamic_rotate %9 by %c8_i32 dim 1 : vector<64x128xf32>, i32 -> vector<64x128xf32>
    %c2 = arith.constant 2 : index
    %c0_13 = arith.constant 0 : index
    %c0_14 = arith.constant 0 : index
    %23 = vector.load %arg2[%c2, %c0_13, %c0_14] : memref<9x1x128xf32, #tpu.memory_space<vmem>>, vector<1x1x128xf32>
    %24 = vector.shape_cast %23 : vector<1x1x128xf32> to vector<1x128xf32>
    %25 = vector.broadcast %24 : vector<1x128xf32> to vector<64x128xf32>
    %26 = arith.mulf %22, %25 : vector<64x128xf32>
    %27 = arith.truncf %26 : vector<64x128xf32> to vector<64x128xbf16>
    %c1_i32 = arith.constant 1 : i32
    %28 = tpu.dynamic_rotate %9 by %c1_i32 dim 1 : vector<64x128xf32>, i32 -> vector<64x128xf32>
    %c3 = arith.constant 3 : index
    %c0_15 = arith.constant 0 : index
    %c0_16 = arith.constant 0 : index
    %29 = vector.load %arg2[%c3, %c0_15, %c0_16] : memref<9x1x128xf32, #tpu.memory_space<vmem>>, vector<1x1x128xf32>
    %30 = vector.shape_cast %29 : vector<1x1x128xf32> to vector<1x128xf32>
    %31 = vector.broadcast %30 : vector<1x128xf32> to vector<64x128xf32>
    %32 = arith.mulf %28, %31 : vector<64x128xf32>
    %33 = arith.truncf %32 : vector<64x128xf32> to vector<64x128xbf16>
    %c4_17 = arith.constant 4 : index
    %c0_18 = arith.constant 0 : index
    %c0_19 = arith.constant 0 : index
    %34 = vector.load %arg2[%c4_17, %c0_18, %c0_19] : memref<9x1x128xf32, #tpu.memory_space<vmem>>, vector<1x1x128xf32>
    %35 = vector.shape_cast %34 : vector<1x1x128xf32> to vector<1x128xf32>
    %36 = vector.broadcast %35 : vector<1x128xf32> to vector<64x128xf32>
    %37 = arith.mulf %9, %36 : vector<64x128xf32>
    %38 = arith.truncf %37 : vector<64x128xf32> to vector<64x128xbf16>
    %c127_i32 = arith.constant 127 : i32
    %39 = tpu.dynamic_rotate %9 by %c127_i32 dim 1 : vector<64x128xf32>, i32 -> vector<64x128xf32>
    %c5 = arith.constant 5 : index
    %c0_20 = arith.constant 0 : index
    %c0_21 = arith.constant 0 : index
    %40 = vector.load %arg2[%c5, %c0_20, %c0_21] : memref<9x1x128xf32, #tpu.memory_space<vmem>>, vector<1x1x128xf32>
    %41 = vector.shape_cast %40 : vector<1x1x128xf32> to vector<1x128xf32>
    %42 = vector.broadcast %41 : vector<1x128xf32> to vector<64x128xf32>
    %43 = arith.mulf %39, %42 : vector<64x128xf32>
    %44 = arith.truncf %43 : vector<64x128xf32> to vector<64x128xbf16>
    %c120_i32 = arith.constant 120 : i32
    %45 = tpu.dynamic_rotate %9 by %c120_i32 dim 1 : vector<64x128xf32>, i32 -> vector<64x128xf32>
    %c6 = arith.constant 6 : index
    %c0_22 = arith.constant 0 : index
    %c0_23 = arith.constant 0 : index
    %46 = vector.load %arg2[%c6, %c0_22, %c0_23] : memref<9x1x128xf32, #tpu.memory_space<vmem>>, vector<1x1x128xf32>
    %47 = vector.shape_cast %46 : vector<1x1x128xf32> to vector<1x128xf32>
    %48 = vector.broadcast %47 : vector<1x128xf32> to vector<64x128xf32>
    %49 = arith.mulf %45, %48 : vector<64x128xf32>
    %50 = arith.truncf %49 : vector<64x128xf32> to vector<64x128xbf16>
    %c119_i32 = arith.constant 119 : i32
    %51 = tpu.dynamic_rotate %9 by %c119_i32 dim 1 : vector<64x128xf32>, i32 -> vector<64x128xf32>
    %c7 = arith.constant 7 : index
    %c0_24 = arith.constant 0 : index
    %c0_25 = arith.constant 0 : index
    %52 = vector.load %arg2[%c7, %c0_24, %c0_25] : memref<9x1x128xf32, #tpu.memory_space<vmem>>, vector<1x1x128xf32>
    %53 = vector.shape_cast %52 : vector<1x1x128xf32> to vector<1x128xf32>
    %54 = vector.broadcast %53 : vector<1x128xf32> to vector<64x128xf32>
    %55 = arith.mulf %51, %54 : vector<64x128xf32>
    %56 = arith.truncf %55 : vector<64x128xf32> to vector<64x128xbf16>
    %c118_i32 = arith.constant 118 : i32
    %57 = tpu.dynamic_rotate %9 by %c118_i32 dim 1 : vector<64x128xf32>, i32 -> vector<64x128xf32>
    %c8 = arith.constant 8 : index
    %c0_26 = arith.constant 0 : index
    %c0_27 = arith.constant 0 : index
    %58 = vector.load %arg2[%c8, %c0_26, %c0_27] : memref<9x1x128xf32, #tpu.memory_space<vmem>>, vector<1x1x128xf32>
    %59 = vector.shape_cast %58 : vector<1x1x128xf32> to vector<1x128xf32>
    %60 = vector.broadcast %59 : vector<1x128xf32> to vector<64x128xf32>
    %61 = arith.mulf %57, %60 : vector<64x128xf32>
    %62 = arith.truncf %61 : vector<64x128xf32> to vector<64x128xbf16>
    %63 = tpu.concatenate %15, %21, %27, %33, %38, %44, %50, %56, %62 in 0 : vector<64x128xbf16>, vector<64x128xbf16>, vector<64x128xbf16>, vector<64x128xbf16>, vector<64x128xbf16>, vector<64x128xbf16>, vector<64x128xbf16>, vector<64x128xbf16>, vector<64x128xbf16> -> vector<576x128xbf16>
    %c0_28 = arith.constant 0 : index
    %c0_29 = arith.constant 0 : index
    %64 = vector.load %arg5[%c0_28, %c0_29] : memref<64x576xbf16, #tpu.memory_space<vmem>>, vector<64x576xbf16>
    %cst_30 = arith.constant dense<0.000000e+00> : vector<64x128xf32>
    %65 = tpu.matmul %64, %63, %cst_30 {dimension_numbers = #tpu.dot_dimension_numbers<[1], [0], [0], [1], [0, 0, 1, 1], [], []>} : vector<64x576xbf16>, vector<576x128xbf16>, vector<64x128xf32> -> vector<64x128xf32>
    %c0_31 = arith.constant 0 : index
    %c0_32 = arith.constant 0 : index
    %66 = vector.load %arg6[%c0_31, %c0_32] : memref<64x1xf32, #tpu.memory_space<vmem>>, vector<64x1xf32>
    %67 = vector.broadcast %66 : vector<64x1xf32> to vector<64x128xf32>
    %68 = arith.addf %65, %67 : vector<64x128xf32>
    %69 = math.tanh %68 : vector<64x128xf32>
    %c0_33 = arith.constant 0 : index
    %c0_34 = arith.constant 0 : index
    %70 = vector.load %arg11[%c0_33, %c0_34] : memref<64x1xf32, #tpu.memory_space<vmem>>, vector<64x1xf32>
    %71 = vector.broadcast %70 : vector<64x1xf32> to vector<64x128xf32>
    %72 = arith.mulf %69, %71 : vector<64x128xf32>
    %cst_35 = arith.constant dense<0.000000e+00> : vector<128xf32>
    %73 = vector.multi_reduction <add>, %72, %cst_35 [0] : vector<64x128xf32> to vector<128xf32>
    %74 = vector.shape_cast %73 : vector<128xf32> to vector<1x128xf32>
    %c0_36 = arith.constant 0 : index
    %c0_37 = arith.constant 0 : index
    %75 = vector.load %arg12[%c0_36, %c0_37] : memref<1x1xf32, #tpu.memory_space<vmem>>, vector<1x1xf32>
    %76 = vector.broadcast %75 : vector<1x1xf32> to vector<1x128xf32>
    %77 = arith.addf %74, %76 : vector<1x128xf32>
    %78 = arith.negf %77 : vector<1x128xf32>
    %79 = math.exp %78 : vector<1x128xf32>
    %cst_38 = arith.constant 1.000000e+00 : f32
    %80 = vector.broadcast %cst_38 : f32 to vector<1x128xf32>
    %81 = arith.addf %80, %79 : vector<1x128xf32>
    %82 = arith.divf %80, %81 : vector<1x128xf32>
    %83 = arith.mulf %82, %1 : vector<1x128xf32>
    %cst_39 = arith.constant dense<0.000000e+00> : vector<1xf32>
    %84 = vector.multi_reduction <add>, %83, %cst_39 [1] : vector<1x128xf32> to vector<1xf32>
    %85 = vector.shape_cast %84 : vector<1xf32> to vector<1x1xf32>
    %cst_40 = arith.constant 4.050000e+01 : f32
    %86 = vector.broadcast %cst_40 : f32 to vector<1x128xf32>
    %87 = arith.mulf %83, %86 : vector<1x128xf32>
    %88 = tpu.reciprocal %85 {approx = true} : vector<1x1xf32> -> vector<1x1xf32>
    %89 = vector.broadcast %88 : vector<1x1xf32> to vector<1x128xf32>
    %90 = arith.mulf %87, %89 : vector<1x128xf32>
    %91 = tpu.iota {dimensions = array<i32: 0>} : vector<64x1xi32>
    %c32_i32 = arith.constant 32 : i32
    %92 = vector.broadcast %c32_i32 : i32 to vector<64x1xi32>
    %93 = arith.cmpi slt, %91, %92 : vector<64x1xi32>
    %94 = arith.extui %93 : vector<64x1xi1> to vector<64x1xi32>
    %95 = arith.sitofp %94 : vector<64x1xi32> to vector<64x1xf32>
    %96 = vector.broadcast %90 : vector<1x128xf32> to vector<64x128xf32>
    %97 = vector.broadcast %95 : vector<64x1xf32> to vector<64x128xf32>
    %98 = arith.mulf %96, %97 : vector<64x128xf32>
    %cst_41 = arith.constant 1.000000e+00 : f32
    %99 = vector.broadcast %cst_41 : f32 to vector<64x1xf32>
    %100 = arith.subf %99, %95 : vector<64x1xf32>
    %101 = vector.broadcast %100 : vector<64x1xf32> to vector<64x128xf32>
    %102 = arith.addf %98, %101 : vector<64x128xf32>
    %103 = arith.mulf %69, %102 : vector<64x128xf32>
    %c10_i32_42 = arith.constant 10 : i32
    %104 = tpu.dynamic_rotate %103 by %c10_i32_42 dim 1 : vector<64x128xf32>, i32 -> vector<64x128xf32>
    %c0_43 = arith.constant 0 : index
    %c0_44 = arith.constant 0 : index
    %c0_45 = arith.constant 0 : index
    %105 = vector.load %arg2[%c0_43, %c0_44, %c0_45] : memref<9x1x128xf32, #tpu.memory_space<vmem>>, vector<1x1x128xf32>
    %106 = vector.shape_cast %105 : vector<1x1x128xf32> to vector<1x128xf32>
    %107 = vector.broadcast %106 : vector<1x128xf32> to vector<64x128xf32>
    %108 = arith.mulf %104, %107 : vector<64x128xf32>
    %109 = arith.truncf %108 : vector<64x128xf32> to vector<64x128xbf16>
    %c9_i32_46 = arith.constant 9 : i32
    %110 = tpu.dynamic_rotate %103 by %c9_i32_46 dim 1 : vector<64x128xf32>, i32 -> vector<64x128xf32>
    %c1_47 = arith.constant 1 : index
    %c0_48 = arith.constant 0 : index
    %c0_49 = arith.constant 0 : index
    %111 = vector.load %arg2[%c1_47, %c0_48, %c0_49] : memref<9x1x128xf32, #tpu.memory_space<vmem>>, vector<1x1x128xf32>
    %112 = vector.shape_cast %111 : vector<1x1x128xf32> to vector<1x128xf32>
    %113 = vector.broadcast %112 : vector<1x128xf32> to vector<64x128xf32>
    %114 = arith.mulf %110, %113 : vector<64x128xf32>
    %115 = arith.truncf %114 : vector<64x128xf32> to vector<64x128xbf16>
    %c8_i32_50 = arith.constant 8 : i32
    %116 = tpu.dynamic_rotate %103 by %c8_i32_50 dim 1 : vector<64x128xf32>, i32 -> vector<64x128xf32>
    %c2_51 = arith.constant 2 : index
    %c0_52 = arith.constant 0 : index
    %c0_53 = arith.constant 0 : index
    %117 = vector.load %arg2[%c2_51, %c0_52, %c0_53] : memref<9x1x128xf32, #tpu.memory_space<vmem>>, vector<1x1x128xf32>
    %118 = vector.shape_cast %117 : vector<1x1x128xf32> to vector<1x128xf32>
    %119 = vector.broadcast %118 : vector<1x128xf32> to vector<64x128xf32>
    %120 = arith.mulf %116, %119 : vector<64x128xf32>
    %121 = arith.truncf %120 : vector<64x128xf32> to vector<64x128xbf16>
    %c1_i32_54 = arith.constant 1 : i32
    %122 = tpu.dynamic_rotate %103 by %c1_i32_54 dim 1 : vector<64x128xf32>, i32 -> vector<64x128xf32>
    %c3_55 = arith.constant 3 : index
    %c0_56 = arith.constant 0 : index
    %c0_57 = arith.constant 0 : index
    %123 = vector.load %arg2[%c3_55, %c0_56, %c0_57] : memref<9x1x128xf32, #tpu.memory_space<vmem>>, vector<1x1x128xf32>
    %124 = vector.shape_cast %123 : vector<1x1x128xf32> to vector<1x128xf32>
    %125 = vector.broadcast %124 : vector<1x128xf32> to vector<64x128xf32>
    %126 = arith.mulf %122, %125 : vector<64x128xf32>
    %127 = arith.truncf %126 : vector<64x128xf32> to vector<64x128xbf16>
    %c4_58 = arith.constant 4 : index
    %c0_59 = arith.constant 0 : index
    %c0_60 = arith.constant 0 : index
    %128 = vector.load %arg2[%c4_58, %c0_59, %c0_60] : memref<9x1x128xf32, #tpu.memory_space<vmem>>, vector<1x1x128xf32>
    %129 = vector.shape_cast %128 : vector<1x1x128xf32> to vector<1x128xf32>
    %130 = vector.broadcast %129 : vector<1x128xf32> to vector<64x128xf32>
    %131 = arith.mulf %103, %130 : vector<64x128xf32>
    %132 = arith.truncf %131 : vector<64x128xf32> to vector<64x128xbf16>
    %c127_i32_61 = arith.constant 127 : i32
    %133 = tpu.dynamic_rotate %103 by %c127_i32_61 dim 1 : vector<64x128xf32>, i32 -> vector<64x128xf32>
    %c5_62 = arith.constant 5 : index
    %c0_63 = arith.constant 0 : index
    %c0_64 = arith.constant 0 : index
    %134 = vector.load %arg2[%c5_62, %c0_63, %c0_64] : memref<9x1x128xf32, #tpu.memory_space<vmem>>, vector<1x1x128xf32>
    %135 = vector.shape_cast %134 : vector<1x1x128xf32> to vector<1x128xf32>
    %136 = vector.broadcast %135 : vector<1x128xf32> to vector<64x128xf32>
    %137 = arith.mulf %133, %136 : vector<64x128xf32>
    %138 = arith.truncf %137 : vector<64x128xf32> to vector<64x128xbf16>
    %c120_i32_65 = arith.constant 120 : i32
    %139 = tpu.dynamic_rotate %103 by %c120_i32_65 dim 1 : vector<64x128xf32>, i32 -> vector<64x128xf32>
    %c6_66 = arith.constant 6 : index
    %c0_67 = arith.constant 0 : index
    %c0_68 = arith.constant 0 : index
    %140 = vector.load %arg2[%c6_66, %c0_67, %c0_68] : memref<9x1x128xf32, #tpu.memory_space<vmem>>, vector<1x1x128xf32>
    %141 = vector.shape_cast %140 : vector<1x1x128xf32> to vector<1x128xf32>
    %142 = vector.broadcast %141 : vector<1x128xf32> to vector<64x128xf32>
    %143 = arith.mulf %139, %142 : vector<64x128xf32>
    %144 = arith.truncf %143 : vector<64x128xf32> to vector<64x128xbf16>
    %c119_i32_69 = arith.constant 119 : i32
    %145 = tpu.dynamic_rotate %103 by %c119_i32_69 dim 1 : vector<64x128xf32>, i32 -> vector<64x128xf32>
    %c7_70 = arith.constant 7 : index
    %c0_71 = arith.constant 0 : index
    %c0_72 = arith.constant 0 : index
    %146 = vector.load %arg2[%c7_70, %c0_71, %c0_72] : memref<9x1x128xf32, #tpu.memory_space<vmem>>, vector<1x1x128xf32>
    %147 = vector.shape_cast %146 : vector<1x1x128xf32> to vector<1x128xf32>
    %148 = vector.broadcast %147 : vector<1x128xf32> to vector<64x128xf32>
    %149 = arith.mulf %145, %148 : vector<64x128xf32>
    %150 = arith.truncf %149 : vector<64x128xf32> to vector<64x128xbf16>
    %c118_i32_73 = arith.constant 118 : i32
    %151 = tpu.dynamic_rotate %103 by %c118_i32_73 dim 1 : vector<64x128xf32>, i32 -> vector<64x128xf32>
    %c8_74 = arith.constant 8 : index
    %c0_75 = arith.constant 0 : index
    %c0_76 = arith.constant 0 : index
    %152 = vector.load %arg2[%c8_74, %c0_75, %c0_76] : memref<9x1x128xf32, #tpu.memory_space<vmem>>, vector<1x1x128xf32>
    %153 = vector.shape_cast %152 : vector<1x1x128xf32> to vector<1x128xf32>
    %154 = vector.broadcast %153 : vector<1x128xf32> to vector<64x128xf32>
    %155 = arith.mulf %151, %154 : vector<64x128xf32>
    %156 = arith.truncf %155 : vector<64x128xf32> to vector<64x128xbf16>
    %157 = tpu.concatenate %109, %115, %121, %127, %132, %138, %144, %150, %156 in 0 : vector<64x128xbf16>, vector<64x128xbf16>, vector<64x128xbf16>, vector<64x128xbf16>, vector<64x128xbf16>, vector<64x128xbf16>, vector<64x128xbf16>, vector<64x128xbf16>, vector<64x128xbf16> -> vector<576x128xbf16>
    %c0_77 = arith.constant 0 : index
    %c0_78 = arith.constant 0 : index
    %158 = vector.load %arg7[%c0_77, %c0_78] : memref<128x576xbf16, #tpu.memory_space<vmem>>, vector<128x576xbf16>
    %cst_79 = arith.constant dense<0.000000e+00> : vector<128x128xf32>
    %159 = tpu.matmul %158, %157, %cst_79 {dimension_numbers = #tpu.dot_dimension_numbers<[1], [0], [0], [1], [0, 0, 1, 1], [], []>} : vector<128x576xbf16>, vector<576x128xbf16>, vector<128x128xf32> -> vector<128x128xf32>
    %c0_80 = arith.constant 0 : index
    %c0_81 = arith.constant 0 : index
    %160 = vector.load %arg8[%c0_80, %c0_81] : memref<128x1xf32, #tpu.memory_space<vmem>>, vector<128x1xf32>
    %161 = vector.broadcast %160 : vector<128x1xf32> to vector<128x128xf32>
    %162 = arith.addf %159, %161 : vector<128x128xf32>
    %163 = math.tanh %162 : vector<128x128xf32>
    %c10_i32_82 = arith.constant 10 : i32
    %164 = tpu.dynamic_rotate %163 by %c10_i32_82 dim 1 : vector<128x128xf32>, i32 -> vector<128x128xf32>
    %c0_83 = arith.constant 0 : index
    %c0_84 = arith.constant 0 : index
    %c0_85 = arith.constant 0 : index
    %165 = vector.load %arg2[%c0_83, %c0_84, %c0_85] : memref<9x1x128xf32, #tpu.memory_space<vmem>>, vector<1x1x128xf32>
    %166 = vector.shape_cast %165 : vector<1x1x128xf32> to vector<1x128xf32>
    %167 = vector.broadcast %166 : vector<1x128xf32> to vector<128x128xf32>
    %168 = arith.mulf %164, %167 : vector<128x128xf32>
    %169 = arith.truncf %168 : vector<128x128xf32> to vector<128x128xbf16>
    %c9_i32_86 = arith.constant 9 : i32
    %170 = tpu.dynamic_rotate %163 by %c9_i32_86 dim 1 : vector<128x128xf32>, i32 -> vector<128x128xf32>
    %c1_87 = arith.constant 1 : index
    %c0_88 = arith.constant 0 : index
    %c0_89 = arith.constant 0 : index
    %171 = vector.load %arg2[%c1_87, %c0_88, %c0_89] : memref<9x1x128xf32, #tpu.memory_space<vmem>>, vector<1x1x128xf32>
    %172 = vector.shape_cast %171 : vector<1x1x128xf32> to vector<1x128xf32>
    %173 = vector.broadcast %172 : vector<1x128xf32> to vector<128x128xf32>
    %174 = arith.mulf %170, %173 : vector<128x128xf32>
    %175 = arith.truncf %174 : vector<128x128xf32> to vector<128x128xbf16>
    %c8_i32_90 = arith.constant 8 : i32
    %176 = tpu.dynamic_rotate %163 by %c8_i32_90 dim 1 : vector<128x128xf32>, i32 -> vector<128x128xf32>
    %c2_91 = arith.constant 2 : index
    %c0_92 = arith.constant 0 : index
    %c0_93 = arith.constant 0 : index
    %177 = vector.load %arg2[%c2_91, %c0_92, %c0_93] : memref<9x1x128xf32, #tpu.memory_space<vmem>>, vector<1x1x128xf32>
    %178 = vector.shape_cast %177 : vector<1x1x128xf32> to vector<1x128xf32>
    %179 = vector.broadcast %178 : vector<1x128xf32> to vector<128x128xf32>
    %180 = arith.mulf %176, %179 : vector<128x128xf32>
    %181 = arith.truncf %180 : vector<128x128xf32> to vector<128x128xbf16>
    %c1_i32_94 = arith.constant 1 : i32
    %182 = tpu.dynamic_rotate %163 by %c1_i32_94 dim 1 : vector<128x128xf32>, i32 -> vector<128x128xf32>
    %c3_95 = arith.constant 3 : index
    %c0_96 = arith.constant 0 : index
    %c0_97 = arith.constant 0 : index
    %183 = vector.load %arg2[%c3_95, %c0_96, %c0_97] : memref<9x1x128xf32, #tpu.memory_space<vmem>>, vector<1x1x128xf32>
    %184 = vector.shape_cast %183 : vector<1x1x128xf32> to vector<1x128xf32>
    %185 = vector.broadcast %184 : vector<1x128xf32> to vector<128x128xf32>
    %186 = arith.mulf %182, %185 : vector<128x128xf32>
    %187 = arith.truncf %186 : vector<128x128xf32> to vector<128x128xbf16>
    %c4_98 = arith.constant 4 : index
    %c0_99 = arith.constant 0 : index
    %c0_100 = arith.constant 0 : index
    %188 = vector.load %arg2[%c4_98, %c0_99, %c0_100] : memref<9x1x128xf32, #tpu.memory_space<vmem>>, vector<1x1x128xf32>
    %189 = vector.shape_cast %188 : vector<1x1x128xf32> to vector<1x128xf32>
    %190 = vector.broadcast %189 : vector<1x128xf32> to vector<128x128xf32>
    %191 = arith.mulf %163, %190 : vector<128x128xf32>
    %192 = arith.truncf %191 : vector<128x128xf32> to vector<128x128xbf16>
    %c127_i32_101 = arith.constant 127 : i32
    %193 = tpu.dynamic_rotate %163 by %c127_i32_101 dim 1 : vector<128x128xf32>, i32 -> vector<128x128xf32>
    %c5_102 = arith.constant 5 : index
    %c0_103 = arith.constant 0 : index
    %c0_104 = arith.constant 0 : index
    %194 = vector.load %arg2[%c5_102, %c0_103, %c0_104] : memref<9x1x128xf32, #tpu.memory_space<vmem>>, vector<1x1x128xf32>
    %195 = vector.shape_cast %194 : vector<1x1x128xf32> to vector<1x128xf32>
    %196 = vector.broadcast %195 : vector<1x128xf32> to vector<128x128xf32>
    %197 = arith.mulf %193, %196 : vector<128x128xf32>
    %198 = arith.truncf %197 : vector<128x128xf32> to vector<128x128xbf16>
    %c120_i32_105 = arith.constant 120 : i32
    %199 = tpu.dynamic_rotate %163 by %c120_i32_105 dim 1 : vector<128x128xf32>, i32 -> vector<128x128xf32>
    %c6_106 = arith.constant 6 : index
    %c0_107 = arith.constant 0 : index
    %c0_108 = arith.constant 0 : index
    %200 = vector.load %arg2[%c6_106, %c0_107, %c0_108] : memref<9x1x128xf32, #tpu.memory_space<vmem>>, vector<1x1x128xf32>
    %201 = vector.shape_cast %200 : vector<1x1x128xf32> to vector<1x128xf32>
    %202 = vector.broadcast %201 : vector<1x128xf32> to vector<128x128xf32>
    %203 = arith.mulf %199, %202 : vector<128x128xf32>
    %204 = arith.truncf %203 : vector<128x128xf32> to vector<128x128xbf16>
    %c119_i32_109 = arith.constant 119 : i32
    %205 = tpu.dynamic_rotate %163 by %c119_i32_109 dim 1 : vector<128x128xf32>, i32 -> vector<128x128xf32>
    %c7_110 = arith.constant 7 : index
    %c0_111 = arith.constant 0 : index
    %c0_112 = arith.constant 0 : index
    %206 = vector.load %arg2[%c7_110, %c0_111, %c0_112] : memref<9x1x128xf32, #tpu.memory_space<vmem>>, vector<1x1x128xf32>
    %207 = vector.shape_cast %206 : vector<1x1x128xf32> to vector<1x128xf32>
    %208 = vector.broadcast %207 : vector<1x128xf32> to vector<128x128xf32>
    %209 = arith.mulf %205, %208 : vector<128x128xf32>
    %210 = arith.truncf %209 : vector<128x128xf32> to vector<128x128xbf16>
    %c118_i32_113 = arith.constant 118 : i32
    %211 = tpu.dynamic_rotate %163 by %c118_i32_113 dim 1 : vector<128x128xf32>, i32 -> vector<128x128xf32>
    %c8_114 = arith.constant 8 : index
    %c0_115 = arith.constant 0 : index
    %c0_116 = arith.constant 0 : index
    %212 = vector.load %arg2[%c8_114, %c0_115, %c0_116] : memref<9x1x128xf32, #tpu.memory_space<vmem>>, vector<1x1x128xf32>
    %213 = vector.shape_cast %212 : vector<1x1x128xf32> to vector<1x128xf32>
    %214 = vector.broadcast %213 : vector<1x128xf32> to vector<128x128xf32>
    %215 = arith.mulf %211, %214 : vector<128x128xf32>
    %216 = arith.truncf %215 : vector<128x128xf32> to vector<128x128xbf16>
    %217 = tpu.concatenate %169, %175, %181, %187, %192, %198, %204, %210, %216 in 0 : vector<128x128xbf16>, vector<128x128xbf16>, vector<128x128xbf16>, vector<128x128xbf16>, vector<128x128xbf16>, vector<128x128xbf16>, vector<128x128xbf16>, vector<128x128xbf16>, vector<128x128xbf16> -> vector<1152x128xbf16>
    %c0_117 = arith.constant 0 : index
    %c0_118 = arith.constant 0 : index
    %218 = vector.load %arg9[%c0_117, %c0_118] : memref<128x1152xbf16, #tpu.memory_space<vmem>>, vector<128x1152xbf16>
    %cst_119 = arith.constant dense<0.000000e+00> : vector<128x128xf32>
    %219 = tpu.matmul %218, %217, %cst_119 {dimension_numbers = #tpu.dot_dimension_numbers<[1], [0], [0], [1], [0, 0, 1, 1], [], []>} : vector<128x1152xbf16>, vector<1152x128xbf16>, vector<128x128xf32> -> vector<128x128xf32>
    %c0_120 = arith.constant 0 : index
    %c0_121 = arith.constant 0 : index
    %220 = vector.load %arg10[%c0_120, %c0_121] : memref<128x1xf32, #tpu.memory_space<vmem>>, vector<128x1xf32>
    %221 = vector.broadcast %220 : vector<128x1xf32> to vector<128x128xf32>
    %222 = arith.addf %219, %221 : vector<128x128xf32>
    %223 = math.tanh %222 : vector<128x128xf32>
    %c0_122 = arith.constant 0 : index
    %c0_123 = arith.constant 0 : index
    %224 = vector.load %arg13[%c0_122, %c0_123] : memref<128x1xf32, #tpu.memory_space<vmem>>, vector<128x1xf32>
    %225 = vector.broadcast %224 : vector<128x1xf32> to vector<128x128xf32>
    %226 = arith.mulf %223, %225 : vector<128x128xf32>
    %cst_124 = arith.constant dense<0.000000e+00> : vector<128xf32>
    %227 = vector.multi_reduction <add>, %226, %cst_124 [0] : vector<128x128xf32> to vector<128xf32>
    %228 = vector.shape_cast %227 : vector<128xf32> to vector<1x128xf32>
    %c0_125 = arith.constant 0 : index
    %c0_126 = arith.constant 0 : index
    %229 = vector.load %arg14[%c0_125, %c0_126] : memref<1x1xf32, #tpu.memory_space<vmem>>, vector<1x1xf32>
    %230 = vector.broadcast %229 : vector<1x1xf32> to vector<1x128xf32>
    %231 = arith.addf %228, %230 : vector<1x128xf32>
    %232 = arith.negf %231 : vector<1x128xf32>
    %233 = math.exp %232 : vector<1x128xf32>
    %cst_127 = arith.constant 1.000000e+00 : f32
    %234 = vector.broadcast %cst_127 : f32 to vector<1x128xf32>
    %235 = arith.addf %234, %233 : vector<1x128xf32>
    %236 = arith.divf %234, %235 : vector<1x128xf32>
    %237 = arith.mulf %236, %1 : vector<1x128xf32>
    %cst_128 = arith.constant dense<0.000000e+00> : vector<1xf32>
    %238 = vector.multi_reduction <add>, %237, %cst_128 [1] : vector<1x128xf32> to vector<1xf32>
    %239 = vector.shape_cast %238 : vector<1xf32> to vector<1x1xf32>
    %cst_129 = arith.constant 4.050000e+01 : f32
    %240 = vector.broadcast %cst_129 : f32 to vector<1x128xf32>
    %241 = arith.mulf %237, %240 : vector<1x128xf32>
    %242 = tpu.reciprocal %239 {approx = true} : vector<1x1xf32> -> vector<1x1xf32>
    %243 = vector.broadcast %242 : vector<1x1xf32> to vector<1x128xf32>
    %244 = arith.mulf %241, %243 : vector<1x128xf32>
    %245 = tpu.iota {dimensions = array<i32: 0>} : vector<128x1xi32>
    %c64_i32 = arith.constant 64 : i32
    %246 = vector.broadcast %c64_i32 : i32 to vector<128x1xi32>
    %247 = arith.cmpi slt, %245, %246 : vector<128x1xi32>
    %248 = arith.extui %247 : vector<128x1xi1> to vector<128x1xi32>
    %249 = arith.sitofp %248 : vector<128x1xi32> to vector<128x1xf32>
    %250 = vector.broadcast %244 : vector<1x128xf32> to vector<128x128xf32>
    %251 = vector.broadcast %249 : vector<128x1xf32> to vector<128x128xf32>
    %252 = arith.mulf %250, %251 : vector<128x128xf32>
    %cst_130 = arith.constant 1.000000e+00 : f32
    %253 = vector.broadcast %cst_130 : f32 to vector<128x1xf32>
    %254 = arith.subf %253, %249 : vector<128x1xf32>
    %255 = vector.broadcast %254 : vector<128x1xf32> to vector<128x128xf32>
    %256 = arith.addf %252, %255 : vector<128x128xf32>
    %257 = arith.mulf %223, %256 : vector<128x128xf32>
    %258 = vector.extract_strided_slice %257 {offsets = [0, 0], sizes = [64, 128], strides = [1, 1]} : vector<128x128xf32> to vector<64x128xf32>
    %259 = arith.truncf %258 : vector<64x128xf32> to vector<64x128xbf16>
    %c0_131 = arith.constant 0 : index
    %c0_132 = arith.constant 0 : index
    %c0_133 = arith.constant 0 : index
    %260 = vector.load %arg15[%c0_131, %c0_132, %c0_133] : memref<1x64x128xbf16, #tpu.memory_space<vmem>>, vector<1x64x128xbf16>
    %261 = vector.shape_cast %260 : vector<1x64x128xbf16> to vector<64x128xbf16>
    %262 = vector.shape_cast %259 : vector<64x128xbf16> to vector<1x64x128xbf16>
    tpu.vector_store %arg15[%c0_131, %c0_132, %c0_133], %262 {strides = array<i32>} : memref<1x64x128xbf16, #tpu.memory_space<vmem>>, vector<1x64x128xbf16>,
    return
  }
  func.func @transform_0(%arg0: i32) -> (i32, i32, i32) {
    %c0_i32 = arith.constant 0 : i32
    %c0_i32_0 = arith.constant 0 : i32
    %c0_i32_1 = arith.constant 0 : i32
    return %arg0, %c0_i32, %c0_i32_0 : i32, i32, i32
  }
  func.func @transform_1(%arg0: i32) -> (i32, i32, i32) {
    %c0_i32 = arith.constant 0 : i32
    %c0_i32_0 = arith.constant 0 : i32
    %c0_i32_1 = arith.constant 0 : i32
    %c0_i32_2 = arith.constant 0 : i32
    return %c0_i32, %c0_i32_0, %c0_i32_1 : i32, i32, i32
  }
  func.func @transform_2(%arg0: i32) -> (i32, i32) {
    %c0_i32 = arith.constant 0 : i32
    %c0_i32_0 = arith.constant 0 : i32
    %c0_i32_1 = arith.constant 0 : i32
    return %c0_i32, %c0_i32_0 : i32, i32
  }
  func.func @transform_3(%arg0: i32) -> (i32, i32) {
    %c0_i32 = arith.constant 0 : i32
    %c0_i32_0 = arith.constant 0 : i32
    %c0_i32_1 = arith.constant 0 : i32
    return %c0_i32, %c0_i32_0 : i32, i32
  }
  func.func @transform_4(%arg0: i32) -> (i32, i32) {
    %c0_i32 = arith.constant 0 : i32
    %c0_i32_0 = arith.constant 0 : i32
    %c0_i32_1 = arith.constant 0 : i32
    return %c0_i32, %c0_i32_0 : i32, i32
  }
  func.func @transform_5(%arg0: i32) -> (i32, i32) {
    %c0_i32 = arith.constant 0 : i32
    %c0_i32_0 = arith.constant 0 : i32
    %c0_i32_1 = arith.constant 0 : i32
    return %c0_i32, %c0_i32_0 : i32, i32
  }
  func.func @transform_6(%arg0: i32) -> (i32, i32) {
    %c0_i32 = arith.constant 0 : i32
    %c0_i32_0 = arith.constant 0 : i32
    %c0_i32_1 = arith.constant 0 : i32
    return %c0_i32, %c0_i32_0 : i32, i32
  }
  func.func @transform_7(%arg0: i32) -> (i32, i32) {
    %c0_i32 = arith.constant 0 : i32
    %c0_i32_0 = arith.constant 0 : i32
    %c0_i32_1 = arith.constant 0 : i32
    return %c0_i32, %c0_i32_0 : i32, i32
  }
  func.func @transform_8(%arg0: i32) -> (i32, i32) {
    %c0_i32 = arith.constant 0 : i32
    %c0_i32_0 = arith.constant 0 : i32
    %c0_i32_1 = arith.constant 0 : i32
    return %c0_i32, %c0_i32_0 : i32, i32
  }
  func.func @transform_9(%arg0: i32) -> (i32, i32) {
    %c0_i32 = arith.constant 0 : i32
    %c0_i32_0 = arith.constant 0 : i32
    %c0_i32_1 = arith.constant 0 : i32
    return %c0_i32, %c0_i32_0 : i32, i32
  }
  func.func @transform_10(%arg0: i32) -> (i32, i32) {
    %c0_i32 = arith.constant 0 : i32
    %c0_i32_0 = arith.constant 0 : i32
    %c0_i32_1 = arith.constant 0 : i32
    return %c0_i32, %c0_i32_0 : i32, i32
  }
  func.func @transform_11(%arg0: i32) -> (i32, i32) {
    %c0_i32 = arith.constant 0 : i32
    %c0_i32_0 = arith.constant 0 : i32
    %c0_i32_1 = arith.constant 0 : i32
    return %c0_i32, %c0_i32_0 : i32, i32
  }
  func.func @transform_12(%arg0: i32) -> (i32, i32) {
    %c0_i32 = arith.constant 0 : i32
    %c0_i32_0 = arith.constant 0 : i32
    %c0_i32_1 = arith.constant 0 : i32
    return %c0_i32, %c0_i32_0 : i32, i32
  }
  func.func @transform_13(%arg0: i32) -> (i32, i32) {
    %c0_i32 = arith.constant 0 : i32
    %c0_i32_0 = arith.constant 0 : i32
    %c0_i32_1 = arith.constant 0 : i32
    return %c0_i32, %c0_i32_0 : i32, i32
  }
  func.func @transform_14(%arg0: i32) -> (i32, i32, i32) {
    %c0_i32 = arith.constant 0 : i32
    %c0_i32_0 = arith.constant 0 : i32
    %c0_i32_1 = arith.constant 0 : i32
    return %arg0, %c0_i32, %c0_i32_0 : i32, i32, i32
  }
}

</mosaic_0001>

<bundles_post_ra>
// kernel: deepphys_forward.2
= control target key start
LH: loop header
LB: loop body
LE: loop exit
PB: predicated region body
PF: predicated region fallthrough
CT: control target
= control target key end

     0   :  { %s5541_s17 = smov 0   ;;  %s7808_s0 = inlined_call_operand.vmem [shape: bf16[2,54,128], index: 0, kind: input, shape index: {}]   ;;  %s7809_s1 = inlined_call_operand.vmem [shape: f32[9,1,128], index: 1, kind: input, shape index: {}]   ;;  %s7810_s2 = inlined_call_operand.vmem [shape: bf16[64,54], index: 2, kind: input, shape index: {}]   ;;  %s7811_s3 = inlined_call_operand.vmem [shape: f32[64,1], index: 3, kind: input, shape index: {}]   ;;  %s7812_s4 = inlined_call_operand.vmem [shape: bf16[64,576], index: 4, kind: input, shape index: {}]   ;;  %s7813_s5 = inlined_call_operand.vmem [shape: f32[64,1], index: 5, kind: input, shape index: {}]   ;;  %s7814_s6 = inlined_call_operand.vmem [shape: bf16[128,576], index: 6, kind: input, shape index: {}]   ;;  %s7815_s7 = inlined_call_operand.vmem [shape: f32[128,1], index: 7, kind: input, shape index: {}]   ;;  %s7816_s8 = inlined_call_operand.vmem [shape: bf16[128,1152], index: 8, kind: input, shape index: {}]   ;;  %s7817_s9 = inlined_call_operand.vmem [shape: f32[128,1], index: 9, kind: input, shape index: {}]   ;;  %s7818_s10 = inlined_call_operand.vmem [shape: f32[64,1], index: 10, kind: input, shape index: {}]   ;;  %s7819_s11 = inlined_call_operand.<no memory space> [shape: f32[1,1], index: 11, kind: input, shape index: {}]   ;;  %s7820_s12 = inlined_call_operand.vmem [shape: f32[128,1], index: 12, kind: input, shape index: {}]   ;;  %s7821_s14 = inlined_call_operand.vmem [shape: bf16[2,64,128], index: 14, kind: output, shape index: {}]   ;;  %s7822_s13 = inlined_call_operand.<no memory space> [shape: f32[1,1], index: 13, kind: input, shape index: {}]  }
   0x1   :  { %v19_v0 = vstv %s7819_s11  ;;  %v21_v1 = vstv %s7822_s13 }
   0x2   :  { %20 = vst [vmem:[#allocation2] sm:$0x1] %v19_v0  ;;  %22 = vst [vmem:[#allocation3] sm:$0x1] %v21_v1 }
   0x3 LB: > { %s4265_s18 = sadd.s32 4294967295, %s5449_s17   ;;  %p4269_p0 = scmp.ge.s32.totalorder %s5449_s17, 1  ;;  %s5449_s17 = sphi %s5541_s17, %s28_s17  }
   0x4   : > { %p416_p1 = scmp.lt.s32.totalorder %s5449_s17, 3 }
   0x6   : > { %p417_p2 = pnand %p4269_p0, %p416_p1 }
   0x8   : > { %420 = sbr.rel (%p417_p2) target bundleno = 2292 (0x8f4), region = 76 }
   0xd   : > { %p462_p3 = scmp.lt.s32.totalorder %s4265_s18, 1  ;;  %v5126_v2 = vld [vmem:[%s7810_s2] sm:$0xff]   ;;  %vm579_vm0 = vcmask 441344   ;;  %v5451_v3 = vmov 0   ;;  %v496_v4 = vld [vmem:[%s7811_s3 + $0x30] sm:$0xff]  ;;  %vm592_vm1 = vcmask 1042432  }
   0xe   : > { %5005 = vmatprep.mubr.msk.bf16.mxu0 %vm579_vm0, %v5126_v2  ;;  %5121 = vset.pattern.permute.xlu1 %v5451_v3  ;;  %v494_v5 = vld [vmem:[%s7811_s3 + $0x20] sm:$0xff]  ;;  %v497_v6 = vld [vmem:[%s7811_s3 + $0x38] sm:$0xff]  ;;  %v495_v7 = vld [vmem:[%s7811_s3 + $0x28] sm:$0xff]  ;;  %s5452_s29 = smov 1   ;;  %s5453_s30 = smov 9   ;;  %vm1146_vm2 = vcmask 523264  }
   0xf   : > { %s7924_s18 = smov (!%p462_p3, %s4265_s18), 1  ;;  %5120 = vset.pattern.permute.xlu0 %v5451_v3  ;;  %520 = vperm.xlu1 %5121, %v494_v5   ;;  %v493_v11 = vld [vmem:[%s7811_s3 + $0x18] sm:$0xff]  ;;  %v492_v12 = vld [vmem:[%s7811_s3 + $0x10] sm:$0xff]  ;;  %v490_v14 = vld [vmem:[%s7811_s3] sm:$0xff]  ;;  %s5454_s15 = smov 8   ;;  %vm1449_vm3 = vcmask 1040384  }
  0x10   : > { %s5102_s19 = smul.u32 28, %s7924_s18  ;;  %530 = vperm.xlu0 %5120, %v496_v4   ;;  %v491_v16 = vld [vmem:[%s7811_s3 + $0x8] sm:$0xff]  ;;  %v5128_v18 = vld [vmem:[%s7810_s2 + $0x10] sm:$0xff]   ;;  %v5129_v19 = vld [vmem:[%s7810_s2 + $0x18] sm:$0xff]   ;;  %s5455_s16 = smov 119  }
  0x11   : > { %v5127_v17 = vld [vmem:[%s7810_s2 + $0x8] sm:$0xff]   ;;  %s5456_s11 = smov 10   ;;  %s7825_s13 = smov 127   ;;  %v5132_v52 = vld [vmem:[%s7812_s4 + $0x4] ss:$20 sps:$4 sm:$0xff]   ;;  %v1000_v63 = vld [vmem:[%s7813_s5 + $0x10] sm:$0xff] }
  0x12   : > { %s466_s26 = scalar_lea.vmem %s7808_s0, %s5102_s19  ;;  %1191 = vmatprep.mubr.bf16.mxu1 %v5132_v52  ;;  %s5458_s21 = smov 120   ;;  %v5140_v53 = vld [vmem:[%s7812_s4 + $0xc] ss:$20 sps:$4 sm:$0xff]   ;;  %v1001_v2 = vld [vmem:[%s7813_s5 + $0x18] sm:$0xff] }
  0x13   : > { %v5122_v8 = vld [vmem:[%s466_s26 + $0x18] ss:$0 sps:$4 sm:$0x77]   ;;  %v5123_v9 = vld [vmem:[%s466_s26 + $0x10] sm:$0xff]   ;;  %v5124_v13 = vld [vmem:[%s466_s26 + $0x8] sm:$0xff]   ;;  %525 = vperm.xlu1 %5121, %v495_v7   ;;  %s7823_s24 = smov 118  }
  0x14   : > { %5101 = vmatprep.subr.msk.bf16.mxu0 %vm592_vm1, %v5122_v8  ;;  %v594_v10 = vsel %vm592_vm1, %v5122_v8, 0  ;;  %535 = vperm.xlu0 %5120, %v497_v6   ;;  %v5125_v15 = vld [vmem:[%s466_s26] sm:$0xff]   ;;  %v999_v62 = vld [vmem:[%s7813_s5 + $0x8] sm:$0xff]  ;;  %v1004_v7 = vld [vmem:[%s7813_s5 + $0x30] sm:$0xff]  ;;  %s7863_s25 = smov 118   ;;  %s4457_s28 = sshll.u32 %s7924_s18, 5 }
  0x15   : > { %4998 = vmatpush3.bf16.msra.mxu0 %v594_v10  ;;  %v998_v59 = vld [vmem:[%s7813_s5] sm:$0xff]  ;;  %v1003_v6 = vld [vmem:[%s7813_s5 + $0x28] sm:$0xff]  ;;  %v1005_v10 = vld [vmem:[%s7813_s5 + $0x38] sm:$0xff] }
  0x16   : > { %4999 = vmatprep.subr.bf16.mxu0 %v5123_v9  ;;  %v1002_v3 = vld [vmem:[%s7813_s5 + $0x20] sm:$0xff] }
  0x17   : > { %515 = vperm.xlu1 %5121, %v493_v11   ;;  %v1362_v11 = vld [vmem:[%s7818_s10] sm:$0xff] }
  0x18   : > { %510 = vperm.xlu0 %5120, %v492_v12  }
  0x19   : > { %5000 = vmatpush3.bf16.msra.mxu0 %v5123_v9 }
  0x1a   : > { %5001 = vmatprep.subr.bf16.mxu0 %v5124_v13 }
  0x1b   : > { %505 = vperm.xlu1 %5121, %v491_v16  }
  0x1c   : > { %500 = vperm.xlu0 %5120, %v490_v14   ;;  %v1363_v14 = vld [vmem:[%s7818_s10 + $0x8] sm:$0xff] }
  0x1d   : > { %5002 = vmatpush3.bf16.msra.mxu0 %v5124_v13 }
  0x1e   : > { %5003 = vmatprep.subr.bf16.mxu0 %v5125_v15 }
  0x21   : > { %5004 = vmatpush3.bf16.msra.mxu0 %v5125_v15  ;;  %v1364_v15 = vld [vmem:[%s7818_s10 + $0x10] sm:$0xff] }
  0x24   : > { %5006 = vmatmul.mubr.msk.bf16.vlgmr.msra.gmra.mxu0 %vm579_vm0, %v5127_v17 }
  0x25   : > { %5009 = vmatprep.mubr.msk.bf16.mxu0 %vm579_vm0, %v5128_v18  ;;  %v1365_v18 = vld [vmem:[%s7818_s10 + $0x18] sm:$0xff] }
  0x2c   : > { %5010 = vmatmul.mubr.msk.bf16.gmra.mxu0 %vm579_vm0, %v5129_v19  ;;  %v1366_v19 = vld [vmem:[%s7818_s10 + $0x20] sm:$0xff] }
  0x2d   : > { %1256 = vmatprep.mubr.bf16.mxu0 %v5140_v53 }
  0x8a   : > { %v521_v21 = vpop.permute.xlu1 %520 }
  0x8b   : > { %v531_v20 = vpop.permute.xlu0 %530 }
  0x8e   : > { %v5595_v23 = vpop.permute.xlu1 %525 }
  0x8f   : > { %v536_v22 = vpop.permute.xlu0 %535 }
  0x92   : > { %v516_v28 = vpop.permute.xlu1 %515 }
  0x93   : > { %v511_v24 = vpop.permute.xlu0 %510 }
  0x96   : > { %v506_v36 = vpop.permute.xlu1 %505 }
  0x97   : > { %v501_v33 = vpop.permute.xlu0 %500 }
  0xe4   : > { %v5007_v25 = vpop.f32.mrf.mxu0 }
  0xe5   : > { %v639_v26 = vadd.f32 %v5007_v25, %v511_v24 }
  0xe6   : > { %v630_v27 = vpop.f32.mrf.mxu0 }
  0xe7   : > { %5318 = vtanh.f32 %v639_v26  ;;  %v631_v34 = vadd.f32 %v630_v27, %v501_v33  ;;  %v1369_v26 = vld [vmem:[%s7818_s10 + $0x38] sm:$0xff]  ;;  %v1431_v27 = vld [vmem:[#allocation2] sm:$0x1] }
  0xe8   : > { %v5008_v29 = vpop.f32.mrf.mxu0 }
  0xe9   : > { %v642_v30 = vadd.f32 %v5008_v29, %v516_v28  ;;  %v4292_v28 = vld [vmem:[%s7809_s1 + $0x3] ss:$0 sm:$0xff] }
  0xea   : > { %v633_v35 = vpop.f32.mrf.mxu0 }
  0xeb   : > { %5320 = vtanh.f32 %v642_v30  ;;  %v634_v37 = vadd.f32 %v633_v35, %v506_v36  ;;  %v4288_v36 = vld [vmem:[%s7809_s1 + $0x1] ss:$0 sm:$0xff] }
  0xec   : > { %5322 = vtanh.f32 %v631_v34  ;;  %v5011_v38 = vpop.f32.mrf.mxu0 }
  0xed   : > { %5324 = vtanh.f32 %v634_v37  ;;  %v655_v40 = vadd.f32 %v5011_v38, %v531_v20 }
  0xee   : > { %v646_v39 = vpop.f32.mrf.mxu0 }
  0xef   : > { %5326 = vtanh.f32 %v655_v40  ;;  %v647_v47 = vadd.f32 %v646_v39, %v521_v21 }
  0xf0   : > { %v5012_v42 = vpop.f32.mrf.mxu0 }
  0xf1   : > { %v658_v43 = vadd.f32 %v5012_v42, %v536_v22  ;;  %v1367_v22 = vld [vmem:[%s7818_s10 + $0x28] sm:$0xff] }
  0xf2   : > { %v649_v48 = vpop.f32.mrf.mxu0 }
  0xf3   : > { %5328 = vtanh.f32 %v658_v43  ;;  %v650_v49 = vadd.f32 %v649_v48, %v5595_v23  ;;  %v1368_v23 = vld [vmem:[%s7818_s10 + $0x30] sm:$0xff]  ;;  %v5845_v48 = vld [vmem:[%s7809_s1 + $0x7] ss:$0 sm:$0xff] }
  0xf4   : > { %v5597_v31 = vpop.eup %5318  ;;  %5330 = vtanh.f32 %v647_v47 }
  0xf5   : > { %780 = vrot.lane.b32.xlu0 %v5597_v31, %s5452_s29  ;;  %5332 = vtanh.f32 %v650_v49 }
  0xf8   : > { %v5601_v32 = vpop.eup %5320 }
  0xf9   : > { %708 = vrot.lane.b32.xlu0 %v5597_v31, %s5453_s30  ;;  %782 = vrot.lane.b32.xlu1 %v5601_v32, %s5452_s29  ;;  %v5623_v41 = vpop.eup %5322 }
  0xfa   : > { %v5629_v44 = vpop.eup %5324 }
  0xfc   : > { %v5643_v45 = vpop.eup %5326 }
  0xfd   : > { %744 = vrot.lane.b32.xlu0 %v5597_v31, %s5454_s15  ;;  %710 = vrot.lane.b32.xlu1 %v5601_v32, %s5453_s30 }
 0x100   : > { %v5649_v46 = vpop.eup %5328 }
 0x101   : > { %906 = vrot.lane.b32.xlu0 %v5597_v31, %s5455_s16  ;;  %746 = vrot.lane.b32.xlu1 %v5601_v32, %s5454_s15  ;;  %v5672_v50 = vpop.eup %5330 }
 0x102   : > { %v5678_v51 = vpop.eup %5332 }
 0x105   : > { %673 = vrot.lane.b32.xlu0 %v5597_v31, %s5456_s11  ;;  %908 = vrot.lane.b32.xlu1 %v5601_v32, %s5455_s16 }
 0x109   : > { %834 = vrot.lane.b32.xlu0 %v5597_v31, %s7825_s13  ;;  %675 = vrot.lane.b32.xlu1 %v5601_v32, %s5456_s11 }
 0x10d   : > { %836 = vrot.lane.b32.xlu1 %v5601_v32, %s7825_s13  ;;  %776 = vrot.lane.b32.xlu0 %v5623_v41, %s5452_s29 }
 0x111   : > { %778 = vrot.lane.b32.xlu1 %v5629_v44, %s5452_s29  ;;  %704 = vrot.lane.b32.xlu0 %v5623_v41, %s5453_s30 }
 0x115   : > { %706 = vrot.lane.b32.xlu1 %v5629_v44, %s5453_s30  ;;  %740 = vrot.lane.b32.xlu0 %v5623_v41, %s5454_s15 }
 0x119   : > { %742 = vrot.lane.b32.xlu1 %v5629_v44, %s5454_s15  ;;  %902 = vrot.lane.b32.xlu0 %v5623_v41, %s5455_s16 }
 0x11d   : > { %904 = vrot.lane.b32.xlu1 %v5629_v44, %s5455_s16  ;;  %788 = vrot.lane.b32.xlu0 %v5643_v45, %s5452_s29 }
 0x121   : > { %790 = vrot.lane.b32.xlu1 %v5649_v46, %s5452_s29  ;;  %716 = vrot.lane.b32.xlu0 %v5643_v45, %s5453_s30 }
 0x125   : > { %718 = vrot.lane.b32.xlu1 %v5649_v46, %s5453_s30  ;;  %752 = vrot.lane.b32.xlu0 %v5643_v45, %s5454_s15 }
 0x129   : > { %754 = vrot.lane.b32.xlu1 %v5649_v46, %s5454_s15  ;;  %914 = vrot.lane.b32.xlu0 %v5643_v45, %s5455_s16 }
 0x12d   : > { %916 = vrot.lane.b32.xlu1 %v5649_v46, %s5455_s16  ;;  %681 = vrot.lane.b32.xlu0 %v5643_v45, %s5456_s11 }
 0x131   : > { %683 = vrot.lane.b32.xlu1 %v5649_v46, %s5456_s11  ;;  %842 = vrot.lane.b32.xlu0 %v5643_v45, %s7825_s13 }
 0x135   : > { %844 = vrot.lane.b32.xlu1 %v5649_v46, %s7825_s13  ;;  %784 = vrot.lane.b32.xlu0 %v5672_v50, %s5452_s29 }
 0x139   : > { %786 = vrot.lane.b32.xlu1 %v5678_v51, %s5452_s29  ;;  %712 = vrot.lane.b32.xlu0 %v5672_v50, %s5453_s30 }
 0x13d   : > { %714 = vrot.lane.b32.xlu1 %v5678_v51, %s5453_s30  ;;  %748 = vrot.lane.b32.xlu0 %v5672_v50, %s5454_s15 }
 0x141   : > { %750 = vrot.lane.b32.xlu1 %v5678_v51, %s5454_s15  ;;  %910 = vrot.lane.b32.xlu0 %v5672_v50, %s5455_s16 }
 0x145   : > { %912 = vrot.lane.b32.xlu1 %v5678_v51, %s5455_s16  ;;  %677 = vrot.lane.b32.xlu0 %v5672_v50, %s5456_s11 }
 0x149   : > { %679 = vrot.lane.b32.xlu1 %v5678_v51, %s5456_s11  ;;  %838 = vrot.lane.b32.xlu0 %v5672_v50, %s7825_s13 }
 0x14d   : > { %840 = vrot.lane.b32.xlu1 %v5678_v51, %s7825_s13  ;;  %669 = vrot.lane.b32.xlu0 %v5623_v41, %s5456_s11 }
 0x151   : > { %671 = vrot.lane.b32.xlu1 %v5629_v44, %s5456_s11  ;;  %830 = vrot.lane.b32.xlu0 %v5623_v41, %s7825_s13 }
 0x155   : > { %832 = vrot.lane.b32.xlu1 %v5629_v44, %s7825_s13  ;;  %878 = vrot.lane.b32.xlu0 %v5643_v45, %s5458_s21 }
 0x159   : > { %880 = vrot.lane.b32.xlu1 %v5649_v46, %s5458_s21  ;;  %874 = vrot.lane.b32.xlu0 %v5672_v50, %s5458_s21 }
 0x15d   : > { %876 = vrot.lane.b32.xlu1 %v5678_v51, %s5458_s21  ;;  %870 = vrot.lane.b32.xlu0 %v5597_v31, %s5458_s21 }
 0x161   : > { %872 = vrot.lane.b32.xlu1 %v5601_v32, %s5458_s21  ;;  %866 = vrot.lane.b32.xlu0 %v5623_v41, %s5458_s21 }
 0x165   : > { %868 = vrot.lane.b32.xlu1 %v5629_v44, %s5458_s21  ;;  %950 = vrot.lane.b32.xlu0 %v5643_v45, %s7823_s24 }
 0x167   : > { %v5734_v54 = vpop.permute.xlu0 %780 }
 0x169   : > { %952 = vrot.lane.b32.xlu1 %v5649_v46, %s7823_s24  ;;  %946 = vrot.lane.b32.xlu0 %v5672_v50, %s7823_s24 }
 0x16b   : > { %v5740_v55 = vpop.permute.xlu0 %708  ;;  %v5742_v56 = vpop.permute.xlu1 %782 }
 0x16d   : > { %948 = vrot.lane.b32.xlu1 %v5678_v51, %s7823_s24  ;;  %942 = vrot.lane.b32.xlu0 %v5597_v31, %s7823_s24 }
 0x16f   : > { %v5748_v57 = vpop.permute.xlu0 %744  ;;  %v5750_v58 = vpop.permute.xlu1 %710 }
 0x171   : > { %944 = vrot.lane.b32.xlu1 %v5601_v32, %s7823_s24  ;;  %938 = vrot.lane.b32.xlu0 %v5623_v41, %s7823_s24 }
 0x173   : > { %v5759_v60 = vpop.permute.xlu0 %906  ;;  %v5761_v61 = vpop.permute.xlu1 %746 }
 0x175   : > { %940 = vrot.lane.b32.xlu1 %v5629_v44, %s7823_s24  ;;  %1008 = vperm.xlu0 %5120, %v998_v59  }
 0x177   : > { %v5771_v0 = vpop.permute.xlu0 %673  ;;  %v5773_v1 = vpop.permute.xlu1 %908 }
 0x179   : > { %1013 = vperm.xlu1 %5121, %v999_v62   ;;  %1018 = vperm.xlu0 %5120, %v1000_v63  }
 0x17b   : > { %v5781_v4 = vpop.permute.xlu0 %834  ;;  %v5783_v5 = vpop.permute.xlu1 %675 }
 0x17d   : > { %1023 = vperm.xlu1 %5121, %v1001_v2   ;;  %1028 = vperm.xlu0 %5120, %v1002_v3   ;;  %v5852_v3 = vld [vmem:[%s7809_s1 + $0x5] ss:$0 sm:$0xff] }
 0x17f   : > { %v5791_v8 = vpop.permute.xlu1 %836  ;;  %v5793_v9 = vpop.permute.xlu0 %776 }
 0x181   : > { %1033 = vperm.xlu1 %5121, %v1003_v6   ;;  %1038 = vperm.xlu0 %5120, %v1004_v7  }
 0x183   : > { %v5801_v12 = vpop.permute.xlu1 %778  ;;  %v5803_v13 = vpop.permute.xlu0 %704 }
 0x185   : > { %1043 = vperm.xlu1 %5121, %v1005_v10   ;;  %1372 = vperm.xlu0 %5120, %v1362_v11  }
 0x187   : > { %v5811_v16 = vpop.permute.xlu1 %706  ;;  %v5813_v17 = vpop.permute.xlu0 %740 }
 0x189   : > { %1377 = vperm.xlu1 %5121, %v1363_v14   ;;  %1382 = vperm.xlu0 %5120, %v1364_v15  }
 0x18b   : > { %v5821_v20 = vpop.permute.xlu1 %742  ;;  %v5823_v21 = vpop.permute.xlu0 %902 }
 0x18d   : > { %1387 = vperm.xlu1 %5121, %v1365_v18   ;;  %1392 = vperm.xlu0 %5120, %v1366_v19  }
 0x18f   : > { %v5831_v24 = vpop.permute.xlu1 %904  ;;  %v789_v25 = vpop.permute.xlu0 %788 }
 0x190   : > { %v806_v33 = vmul.f32 %v4292_v28, %v789_v25  ;;  %v803_v25 = vmul.f32 %v4292_v28, %v5742_v56  ;;  %v800_v56 = vmul.f32 %v4292_v28, %v5793_v9  ;;  %v5872_v9 = vld [vmem:[%s7809_s1] ss:$0 sm:$0xff] }
 0x191   : > { %1397 = vperm.xlu1 %5121, %v1367_v22   ;;  %1402 = vperm.xlu0 %5120, %v1368_v23  }
 0x193   : > { %v791_v29 = vpop.permute.xlu1 %790  ;;  %v717_v30 = vpop.permute.xlu0 %716 }
 0x194   : > { %v807_v34 = vmul.f32 %v4292_v28, %v791_v29  ;;  %v734_v39 = vmul.f32 %v4288_v36, %v717_v30 }
 0x195   : > { %1407 = vperm.xlu1 %5121, %v1369_v26   ;;  %1434 = vperm.xlu0 %5120, %v1431_v27  }
 0x196   : > { %v811_v35 = vpack.c.bf16 %v807_v34, %v806_v33  ;;  %v802_v33 = vmul.f32 %v4292_v28, %v5734_v54  ;;  %v731_v34 = vmul.f32 %v4288_v36, %v5750_v58  ;;  %v729_v54 = vmul.f32 %v4288_v36, %v5811_v16 }
 0x197   : > { %v719_v37 = vpop.permute.xlu1 %718  ;;  %v753_v38 = vpop.permute.xlu0 %752 }
 0x198   : > { %v735_v40 = vmul.f32 %v4288_v36, %v719_v37  ;;  %4497 = vmatprep.subr.bf16.mxu1 %v811_v35  ;;  %v809_v37 = vpack.c.bf16 %v803_v25, %v802_v33  ;;  %v928_v33 = vmul.f32 %v5845_v48, %v5759_v60  ;;  %v694_v60 = vmul.f32 %v5872_v9, %v5771_v0  ;;  %v5906_v0 = vld [vmem:[%s7809_s1 + $0x4] sm:$0x1] }
 0x19a   : > { %v739_v42 = vpack.c.bf16 %v735_v40, %v734_v39  ;;  %v801_v39 = vmul.f32 %v4292_v28, %v5801_v12  ;;  %v728_v12 = vmul.f32 %v4288_v36, %v5803_v13 }
 0x19b   : > { %v755_v43 = vpop.permute.xlu1 %754  ;;  %v915_v47 = vpop.permute.xlu0 %914 }
 0x19c   : > { %4498 = vmatpush3.bf16.msra.mxu1 %v739_v42  ;;  %v932_v53 = vmul.f32 %v5845_v48, %v915_v47  ;;  %v730_v47 = vmul.f32 %v4288_v36, %v5740_v55  ;;  %v808_v58 = vpack.c.bf16 %v801_v39, %v800_v56 }
 0x19f   : > { %v917_v49 = vpop.permute.xlu1 %916  ;;  %v682_v52 = vpop.permute.xlu0 %681 }
 0x1a0   : > { %v933_v59 = vmul.f32 %v5845_v48, %v917_v49  ;;  %v4290_v49 = vld [vmem:[%s7809_s1 + $0x2] ss:$0 sm:$0xff] }
 0x1a2   : > { %v937_v62 = vpack.c.bf16 %v933_v59, %v932_v53  ;;  %v737_v53 = vpack.c.bf16 %v731_v34, %v730_v47  ;;  %v771_v59 = vmul.f32 %v4290_v49, %v755_v43  ;;  %v857_v34 = vmul.f32 %v5852_v3, %v5791_v8 }
 0x1a3   : > { %v684_v63 = vpop.permute.xlu1 %683  ;;  %v843_v2 = vpop.permute.xlu0 %842  ;;  %v764_v8 = vmul.f32 %v4290_v49, %v5813_v17 }
 0x1a4   : > { %4537 = vmatprep.subr.bf16.mxu0 %v937_v62  ;;  %v860_v10 = vmul.f32 %v5852_v3, %v843_v2  ;;  %v699_v16 = vmul.f32 %v5872_v9, %v684_v63  ;;  %v929_v63 = vmul.f32 %v5845_v48, %v5773_v1  ;;  %v695_v1 = vmul.f32 %v5872_v9, %v5783_v5 }
 0x1a5   : > { %v856_v5 = vmul.f32 %v5852_v3, %v5781_v4 }
 0x1a7   : > { %v845_v6 = vpop.permute.xlu1 %844  ;;  %v785_v7 = vpop.permute.xlu0 %784 }
 0x1a8   : > { %v861_v11 = vmul.f32 %v5852_v3, %v845_v6  ;;  %v804_v19 = vmul.f32 %v4292_v28, %v785_v7  ;;  %v736_v7 = vpack.c.bf16 %v729_v54, %v728_v12  ;;  %v863_v54 = vpack.c.bf16 %v857_v34, %v856_v5 }
 0x1aa   : > { %v865_v14 = vpack.c.bf16 %v861_v11, %v860_v10 }
 0x1ab   : > { %v787_v15 = vpop.permute.xlu1 %786  ;;  %v713_v18 = vpop.permute.xlu0 %712 }
 0x1ac   : > { %v805_v22 = vmul.f32 %v4292_v28, %v787_v15  ;;  %4538 = vmatpush3.bf16.msra.mxu0 %v865_v14  ;;  %v732_v29 = vmul.f32 %v4288_v36, %v713_v18  ;;  %v770_v28 = vmul.f32 %v4290_v49, %v753_v38  ;;  %v813_v18 = vlaneseq }
 0x1ad   : > { %v767_v38 = vmul.f32 %v4290_v49, %v5761_v61 }
 0x1ae   : > { %v810_v23 = vpack.c.bf16 %v805_v22, %v804_v19  ;;  %v775_v10 = vpack.c.bf16 %v771_v59, %v770_v28  ;;  %v814_v61 = vshrl.u32 %v813_v18, 7 }
 0x1af   : > { %v715_v26 = vpop.permute.xlu1 %714  ;;  %v749_v27 = vpop.permute.xlu0 %748 }
 0x1b0   : > { %v733_v30 = vmul.f32 %v4288_v36, %v715_v26  ;;  %4499 = vmatprep.subr.bf16.mxu1 %v810_v23  ;;  %v698_v36 = vmul.f32 %v5872_v9, %v682_v52  ;;  %v768_v15 = vmul.f32 %v4290_v49, %v749_v27  ;;  %v766_v27 = vmul.f32 %v4290_v49, %v5748_v57 }
 0x1b1   : > { %v927_v57 = vmul.f32 %v5845_v48, %v5831_v24  ;;  %v701_v24 = vpack.c.bf16 %v695_v1, %v694_v60  ;;  %v5138_v60 = vld [vmem:[%s7812_s4 + $0x8] ss:$20 sps:$4 sm:$0xff]  }
 0x1b2   : > { %v738_v35 = vpack.c.bf16 %v733_v30, %v732_v29  ;;  %v703_v19 = vpack.c.bf16 %v699_v16, %v698_v36  ;;  %v773_v39 = vpack.c.bf16 %v767_v38, %v766_v27 }
 0x1b3   : > { %v751_v40 = vpop.permute.xlu1 %750  ;;  %v911_v42 = vpop.permute.xlu0 %910 }
 0x1b4   : > { %4500 = vmatpush3.bf16.msra.mxu1 %v738_v35  ;;  %v930_v6 = vmul.f32 %v5845_v48, %v911_v42  ;;  %v769_v11 = vmul.f32 %v4290_v49, %v751_v40  ;;  %v935_v40 = vpack.c.bf16 %v929_v63, %v928_v33  ;;  %v765_v42 = vmul.f32 %v4290_v49, %v5821_v20 }
 0x1b5   : > { %4501 = vmatprep.subr.bf16.mxu1 %v809_v37  ;;  %v5900_v20 = vsub.s32 0, %v814_v61 }
 0x1b6   : > { %v774_v23 = vpack.c.bf16 %v769_v11, %v768_v15  ;;  %v772_v4 = vpack.c.bf16 %v765_v42, %v764_v8  ;;  %v5133_v11 = vld [vmem:[%s7812_s4 + $0x2c] ss:$20 sps:$4 sm:$0xff]   ;;  %v5145_v8 = vld [vmem:[%s7812_s4 + $0x34] ss:$20 sps:$4 sm:$0xff]  }
 0x1b7   : > { %v913_v62 = vpop.permute.xlu1 %912  ;;  %v678_v2 = vpop.permute.xlu0 %677  ;;  %7839 = vst [vmem:[#allocation4_spill] sm:$0xff] %v5900_v20  ;;  %v5916_v12 = vrot.slane %v5906_v0, %v5900_v20 }
 0x1b8   : > { %v931_v55 = vmul.f32 %v5845_v48, %v913_v62  ;;  %4502 = vmatpush3.bf16.msra.mxu1 %v737_v53  ;;  %v696_v29 = vmul.f32 %v5872_v9, %v678_v2  ;;  %v926_v53 = vmul.f32 %v5845_v48, %v5823_v21  ;;  %v4296_v2 = vld [vmem:[%s7809_s1 + $0x6] ss:$0 sm:$0xff] }
 0x1b9   : > { %4503 = vmatprep.subr.bf16.mxu1 %v808_v58  ;;  %7840 = vst [vmem:[#allocation5_spill] sm:$0xff] %v5916_v12  ;;  %v825_v16 = vmul.f32 %v5649_v46, %v5916_v12  ;;  %v822_v38 = vmul.f32 %v5672_v50, %v5916_v12  ;;  %v820_v50 = vmul.f32 %v5597_v31, %v5916_v12 }
 0x1ba   : > { %v936_v43 = vpack.c.bf16 %v931_v55, %v930_v6  ;;  %v934_v59 = vpack.c.bf16 %v927_v57, %v926_v53  ;;  %v819_v34 = vmul.f32 %v5629_v44, %v5916_v12  ;;  %v818_v31 = vmul.f32 %v5623_v41, %v5916_v12  ;;  %v5141_v44 = vld [vmem:[%s7812_s4 + $0x50] ss:$20 sps:$4 sm:$0xff]  }
 0x1bb   : > { %v680_v14 = vpop.permute.xlu1 %679  ;;  %v839_v13 = vpop.permute.xlu0 %838  ;;  %v5142_v41 = vld [vmem:[%s7812_s4 + $0x7c] ss:$20 sps:$4 sm:$0xff]  }
 0x1bc   : > { %4504 = vmatpush3.bf16.msra.mxu1 %v736_v7  ;;  %4539 = vmatprep.subr.bf16.mxu0 %v936_v43  ;;  %v697_v22 = vmul.f32 %v5872_v9, %v680_v14  ;;  %v858_v52 = vmul.f32 %v5852_v3, %v839_v13  ;;  %v824_v14 = vmul.f32 %v5643_v45, %v5916_v12 }
 0x1bd   : > { %4505 = vmatprep.subr.bf16.mxu1 %v775_v10  ;;  %v826_v57 = vpack.c.bf16 %v819_v34, %v818_v31 }
 0x1be   : > { %v702_v35 = vpack.c.bf16 %v697_v22, %v696_v29  ;;  %v829_v18 = vpack.c.bf16 %v825_v16, %v824_v14  ;;  %v821_v29 = vmul.f32 %v5601_v32, %v5916_v12  ;;  %v5155_v14 = vld [vmem:[%s7812_s4 + $0x60] ss:$20 sps:$4 sm:$0xff]  }
 0x1bf   : > { %v841_v25 = vpop.permute.xlu1 %840  ;;  %v670_v26 = vpop.permute.xlu0 %669 }
 0x1c0   : > { %v859_v30 = vmul.f32 %v5852_v3, %v841_v25  ;;  %4506 = vmatpush3.bf16.msra.mxu1 %v703_v19  ;;  %v692_v49 = vmul.f32 %v5872_v9, %v670_v26  ;;  %v823_v19 = vmul.f32 %v5678_v51, %v5916_v12  ;;  %v5135_v26 = vld [vmem:[%s7812_s4 + $0x28] ss:$20 sps:$4 sm:$0xff]   ;;  %v827_v1 = vpack.c.bf16 %v821_v29, %v820_v50 }
 0x1c1   : > { %4507 = vmatprep.subr.bf16.mxu1 %v774_v23 }
 0x1c2   : > { %v864_v37 = vpack.c.bf16 %v859_v30, %v858_v52  ;;  %v828_v45 = vpack.c.bf16 %v823_v19, %v822_v38  ;;  %v5136_v30 = vld [vmem:[%s7812_s4 + $0x54] ss:$20 sps:$4 sm:$0xff]  }
 0x1c3   : > { %v672_v47 = vpop.permute.xlu1 %671  ;;  %v831_v56 = vpop.permute.xlu0 %830 }
 0x1c4   : > { %4508 = vmatpush3.bf16.msra.mxu1 %v702_v35  ;;  %4540 = vmatpush3.bf16.msra.mxu0 %v864_v37  ;;  %v693_v58 = vmul.f32 %v5872_v9, %v672_v47  ;;  %v854_v21 = vmul.f32 %v5852_v3, %v831_v56  ;;  %v4300_v37 = vld [vmem:[%s7809_s1 + $0x8] ss:$0 sm:$0xff] }
 0x1c5   : > { %4509 = vmatprep.subr.bf16.mxu1 %v773_v39  ;;  %4541 = vmatprep.subr.bf16.mxu0 %v935_v40 }
 0x1c6   : > { %v700_v6 = vpack.c.bf16 %v693_v58, %v692_v49 }
 0x1c7   : > { %v833_v62 = vpop.permute.xlu1 %832  ;;  %v879_v17 = vpop.permute.xlu0 %878 }
 0x1c8   : > { %v855_v48 = vmul.f32 %v5852_v3, %v833_v62  ;;  %4510 = vmatpush3.bf16.msra.mxu1 %v701_v24  ;;  %4542 = vmatpush3.bf16.msra.mxu0 %v863_v54  ;;  %v5130_v3 = vld [vmem:[%s7812_s4] ss:$20 sps:$4 sm:$0xff]   ;;  %v896_v43 = vmul.f32 %v4296_v2, %v879_v17  ;;  %v5144_v62 = vld [vmem:[%s7812_s4 + $0x78] ss:$20 sps:$4 sm:$0xff]  }
 0x1c9   : > { %4511 = vmatprep.subr.bf16.mxu1 %v772_v4  ;;  %4543 = vmatprep.subr.bf16.mxu0 %v934_v59 }
 0x1ca   : > { %v862_v55 = vpack.c.bf16 %v855_v48, %v854_v21  ;;  %v5147_v21 = vld [vmem:[%s7812_s4 + $0x30] ss:$20 sps:$4 sm:$0xff]  }
 0x1cb   : > { %v881_v28 = vpop.permute.xlu1 %880  ;;  %v875_v7 = vpop.permute.xlu0 %874 }
 0x1cc   : > { %v897_v10 = vmul.f32 %v4296_v2, %v881_v28  ;;  %4512 = vmatpush3.bf16.msra.mxu1 %v700_v6  ;;  %4544 = vmatpush3.bf16.msra.mxu0 %v862_v55  ;;  %v894_v46 = vmul.f32 %v4296_v2, %v875_v7  ;;  %v5150_v55 = vld [vmem:[%s7812_s4 + $0x10] ss:$20 sps:$4 sm:$0xff]  }
 0x1ce   : > { %v901_v13 = vpack.c.bf16 %v897_v10, %v896_v43  ;;  %v5151_v43 = vld [vmem:[%s7812_s4 + $0x38] ss:$20 sps:$4 sm:$0xff]  }
 0x1cf   : > { %v877_v36 = vpop.permute.xlu1 %876  ;;  %1192 = vmatmul.mubr.bf16.vlgmr.msra.gmra.mxu1 %v5130_v3  ;;  %v871_v15 = vpop.permute.xlu0 %870  ;;  %v5152_v10 = vld [vmem:[%s7812_s4 + $0x58] ss:$20 sps:$4 sm:$0xff]  }
 0x1d0   : > { %v895_v22 = vmul.f32 %v4296_v2, %v877_v36  ;;  %4545 = vmatprep.subr.bf16.mxu0 %v901_v13  ;;  %1199 = vmatprep.mubr.bf16.mxu1 %v5133_v11  ;;  %v892_v51 = vmul.f32 %v4296_v2, %v871_v15  ;;  %v5153_v11 = vld [vmem:[%s7812_s4 + $0x84] ss:$20 sps:$4 sm:$0xff]   ;;  %v5156_v13 = vld [vmem:[%s7812_s4 + $0x88] ss:$20 sps:$4 sm:$0xff]   ;;  %v5157_v36 = vld [vmem:[%s7812_s4 + $0x80] ss:$20 sps:$4 sm:$0xff]  }
 0x1d1   : > { %4546 = vmatpush3.bf16.msra.mxu0 %v829_v18 }
 0x1d2   : > { %v900_v63 = vpack.c.bf16 %v895_v22, %v894_v46 }
 0x1d3   : > { %v873_v23 = vpop.permute.xlu1 %872  ;;  %v867_v25 = vpop.permute.xlu0 %866 }
 0x1d4   : > { %v893_v52 = vmul.f32 %v4296_v2, %v873_v23  ;;  %4547 = vmatprep.subr.bf16.mxu0 %v900_v63  ;;  %v890_v32 = vmul.f32 %v4296_v2, %v867_v25 }
 0x1d5   : > { %4548 = vmatpush3.bf16.msra.mxu0 %v828_v45 }
 0x1d6   : > { %v899_v27 = vpack.c.bf16 %v893_v52, %v892_v51 }
 0x1d7   : > { %v869_v33 = vpop.permute.xlu1 %868  ;;  %1200 = vmatmul.mubr.bf16.gmra.mxu1 %v5135_v26  ;;  %v951_v61 = vpop.permute.xlu0 %950 }
 0x1d8   : > { %v891_v35 = vmul.f32 %v4296_v2, %v869_v33  ;;  %4549 = vmatprep.subr.bf16.mxu0 %v899_v27  ;;  %1207 = vmatprep.mubr.bf16.mxu1 %v5136_v30  ;;  %v968_v47 = vmul.f32 %v4300_v37, %v951_v61  ;;  %v5148_v2 = vld [vmem:[%s7812_s4 + $0x5c] ss:$20 sps:$4 sm:$0xff]  }
 0x1d9   : > { %4550 = vmatpush3.bf16.msra.mxu0 %v827_v1 }
 0x1da   : > { %v898_v39 = vpack.c.bf16 %v891_v35, %v890_v32 }
 0x1db   : > { %v953_v40 = vpop.permute.xlu1 %952  ;;  %v947_v42 = vpop.permute.xlu0 %946 }
 0x1dc   : > { %v969_v56 = vmul.f32 %v4300_v37, %v953_v40  ;;  %4551 = vmatprep.subr.bf16.mxu0 %v898_v39  ;;  %v966_v54 = vmul.f32 %v4300_v37, %v947_v42 }
 0x1dd   : > { %4552 = vmatpush3.bf16.msra.mxu0 %v826_v57 }
 0x1de   : > { %v973_v5 = vpack.c.bf16 %v969_v56, %v968_v47 }
 0x1df   : > { %v949_v53 = vpop.permute.xlu1 %948  ;;  %1208 = vmatmul.mubr.bf16.gmra.mxu1 %v5141_v44  ;;  %v943_v24 = vpop.permute.xlu0 %942 }
 0x1e0   : > { %v967_v58 = vmul.f32 %v4300_v37, %v949_v53  ;;  %1257 = vmatmul.mubr.bf16.vlgmr.msra.gmra.mxu0 %v5138_v60  ;;  %5013 = vmatprep.subr.bf16.mxu1 %v973_v5  ;;  %v964_v17 = vmul.f32 %v4300_v37, %v943_v24 }
 0x1e1   : > { %5014 = vmatpush3.bf16.msra.mxu1 %v973_v5  ;;  %1215 = vmatprep.mubr.bf16.mxu1 %v5142_v41 }
 0x1e2   : > { %v972_v4 = vpack.c.bf16 %v967_v58, %v966_v54  ;;  %1264 = vmatprep.mubr.bf16.mxu0 %v5145_v8 }
 0x1e3   : > { %v945_v59 = vpop.permute.xlu1 %944  ;;  %v939_v48 = vpop.permute.xlu0 %938 }
 0x1e4   : > { %v965_v49 = vmul.f32 %v4300_v37, %v945_v59  ;;  %5015 = vmatprep.subr.bf16.mxu1 %v972_v4  ;;  %v962_v7 = vmul.f32 %v4300_v37, %v939_v48 }
 0x1e5   : > { %5016 = vmatpush3.bf16.msra.mxu1 %v972_v4 }
 0x1e6   : > { %v971_v6 = vpack.c.bf16 %v965_v49, %v964_v17 }
 0x1e7   : > { %v941_v28 = vpop.permute.xlu1 %940  ;;  %1216 = vmatmul.mubr.bf16.gmra.mxu1 %v5144_v62 }
 0x1e8   : > { %v963_v3 = vmul.f32 %v4300_v37, %v941_v28  ;;  %1265 = vmatmul.mubr.bf16.gmra.mxu0 %v5147_v21  ;;  %5017 = vmatprep.subr.bf16.mxu1 %v971_v6 }
 0x1e9   : > { %5018 = vmatpush3.bf16.msra.mxu1 %v971_v6  ;;  %1272 = vmatprep.mubr.bf16.mxu0 %v5148_v2 }
 0x1ea   : > { %v970_v16 = vpack.c.bf16 %v963_v3, %v962_v7  ;;  %5021 = vmatprep.mubr.msk.bf16.mxu1 %vm1146_vm2, %v5150_v55 }
 0x1ec   : > { %5019 = vmatprep.subr.bf16.mxu1 %v970_v16 }
 0x1ed   : > { %5020 = vmatpush3.bf16.msra.mxu1 %v970_v16 }
 0x1f0   : > { %5022 = vmatmul.mubr.msk.bf16.vlgmr.msra.gmra.mxu1 %vm1146_vm2, %v5151_v43  ;;  %1273 = vmatmul.mubr.bf16.gmra.mxu0 %v5152_v10  ;;  %v1009_v50 = vpop.permute.xlu0 %1008 }
 0x1f1   : > { %1280 = vmatprep.mubr.bf16.mxu0 %v5153_v11  ;;  %5025 = vmatprep.mubr.msk.bf16.mxu1 %vm1146_vm2, %v5155_v14 }
 0x1f4   : > { %v1014_v33 = vpop.permute.xlu1 %1013  ;;  %v1019_v31 = vpop.permute.xlu0 %1018 }
 0x1f8   : > { %5026 = vmatmul.mubr.msk.bf16.gmra.mxu1 %vm1146_vm2, %v5156_v13  ;;  %1281 = vmatmul.mubr.bf16.gmra.mxu0 %v5157_v36  ;;  %v1024_v42 = vpop.permute.xlu1 %1023  ;;  %v1029_v49 = vpop.permute.xlu0 %1028 }
 0x1fc   : > { %v1034_v21 = vpop.permute.xlu1 %1033 }
 0x28f   : > { %v4513_v15 = vpop.f32.mrf.mxu1 }
 0x291   : > { %v4514_v18 = vpop.f32.mrf.mxu1 }
 0x292   : > { %v4515_v35 = vadd.f32 %v4514_v18, %v4513_v15 }
 0x293   : > { %v4516_v19 = vpop.f32.mrf.mxu1 }
 0x294   : > { %v1194_v60 = vadd.f32 %v4515_v35, %v1009_v50 }
 0x295   : > { %v4517_v46 = vpop.f32.mrf.mxu1 }
 0x296   : > { %v4518_v41 = vadd.f32 %v4517_v46, %v4516_v19 }
 0x297   : > { %v4519_v22 = vpop.f32.mrf.mxu1 }
 0x298   : > { %v1197_v48 = vadd.f32 %v4518_v41, %v1014_v33 }
 0x299   : > { %v4520_v38 = vpop.f32.mrf.mxu1 }
 0x29a   : > { %v4521_v39 = vadd.f32 %v4520_v38, %v4519_v22  ;;  %v1039_v38 = vpop.permute.xlu0 %1038 }
 0x29b   : > { %v4522_v63 = vpop.f32.mrf.mxu1 }
 0x29c   : > { %v1202_v8 = vadd.f32 %v4521_v39, %v1019_v31 }
 0x29d   : > { %v4523_v23 = vpop.f32.mrf.mxu1 }
 0x29e   : > { %v4524_v5 = vadd.f32 %v4523_v23, %v4522_v63  ;;  %v1044_v63 = vpop.permute.xlu1 %1043  ;;  %v1373_v35 = vpop.permute.xlu0 %1372 }
 0x29f   : > { %v4525_v25 = vpop.f32.mrf.mxu1 }
 0x2a0   : > { %v4553_v45 = vpop.f32.mrf.mxu0  ;;  %v1205_v2 = vadd.f32 %v4524_v5, %v1024_v42 }
 0x2a1   : > { %v4526_v26 = vpop.f32.mrf.mxu1 }
 0x2a2   : > { %v4554_v29 = vpop.f32.mrf.mxu0  ;;  %v4527_v6 = vadd.f32 %v4526_v26, %v4525_v25 }
 0x2a3   : > { %v4528_v51 = vpop.f32.mrf.mxu1  ;;  %v4555_v57 = vadd.f32 %v4554_v29, %v4553_v45 }
 0x2a4   : > { %v4556_v52 = vpop.f32.mrf.mxu0  ;;  %v1210_v15 = vadd.f32 %v4527_v6, %v1029_v49 }
 0x2a5   : > { %v4529_v30 = vpop.f32.mrf.mxu1  ;;  %v1259_v4 = vadd.f32 %v4555_v57, %v1194_v60  ;;  %v1378_v57 = vpop.permute.xlu1 %1377 }
 0x2a6   : > { %v4557_v27 = vpop.f32.mrf.mxu0  ;;  %v4530_v11 = vadd.f32 %v4529_v30, %v4528_v51  ;;  %v1383_v60 = vpop.permute.xlu0 %1382 }
 0x2a7   : > { %v4531_v61 = vpop.f32.mrf.mxu1  ;;  %v4558_v54 = vadd.f32 %v4557_v27, %v4556_v52 }
 0x2a8   : > { %v4559_v1 = vpop.f32.mrf.mxu0  ;;  %v1213_v45 = vadd.f32 %v4530_v11, %v1034_v21 }
 0x2a9   : > { %v4532_v34 = vpop.f32.mrf.mxu1  ;;  %v1262_v10 = vadd.f32 %v4558_v54, %v1197_v48  ;;  %v1388_v5 = vpop.permute.xlu1 %1387 }
 0x2aa   : > { %v4560_v32 = vpop.f32.mrf.mxu0  ;;  %v4533_v14 = vadd.f32 %v4532_v34, %v4531_v61 }
 0x2ab   : > { %v4534_v37 = vpop.f32.mrf.mxu1  ;;  %v4561_v47 = vadd.f32 %v4560_v32, %v4559_v1 }
 0x2ac   : > { %v4562_v40 = vpop.f32.mrf.mxu0  ;;  %v1218_v26 = vadd.f32 %v4533_v14, %v1039_v38 }
 0x2ad   : > { %v4535_v44 = vpop.f32.mrf.mxu1  ;;  %v1267_v59 = vadd.f32 %v4561_v47, %v1202_v8  ;;  %v1398_v49 = vpop.permute.xlu1 %1397 }
 0x2ae   : > { %v4563_v56 = vpop.f32.mrf.mxu0  ;;  %v4536_v51 = vadd.f32 %v4535_v44, %v4534_v37 }
 0x2af   : > { %v4564_v58 = vadd.f32 %v4563_v56, %v4562_v40 }
 0x2b0   : > { %v4565_v53 = vpop.f32.mrf.mxu0  ;;  %v5023_v24 = vpop.f32.mrf.mxu1  ;;  %v1221_v31 = vadd.f32 %v4536_v51, %v1044_v63 }
 0x2b1   : > { %v1332_v28 = vadd.f32 %v5023_v24, %v1267_v59  ;;  %v1270_v43 = vadd.f32 %v4564_v58, %v1205_v2  ;;  %v1393_v59 = vpop.permute.xlu0 %1392 }
 0x2b2   : > { %v4566_v62 = vpop.f32.mrf.mxu0  ;;  %v1323_v17 = vpop.f32.mrf.mxu1 }
 0x2b3   : > { %v1324_v55 = vadd.f32 %v1323_v17, %v1259_v4  ;;  %v4567_v16 = vadd.f32 %v4566_v62, %v4565_v53 }
 0x2b4   : > { %v4568_v7 = vpop.f32.mrf.mxu0  ;;  %v5024_v3 = vpop.f32.mrf.mxu1 }
 0x2b5   : > { %5334 = vtanh.f32 %v1324_v55  ;;  %v1335_v18 = vadd.f32 %v5024_v3, %v1270_v43  ;;  %v1275_v25 = vadd.f32 %v4567_v16, %v1210_v15  ;;  %v1408_v16 = vpop.permute.xlu1 %1407 }
 0x2b6   : > { %v4569_v13 = vpop.f32.mrf.mxu0  ;;  %v1326_v36 = vpop.f32.mrf.mxu1  ;;  %5336 = vtanh.f32 %v1332_v28 }
 0x2b7   : > { %v1327_v19 = vadd.f32 %v1326_v36, %v1262_v10  ;;  %v4570_v23 = vadd.f32 %v4569_v13, %v4568_v7  ;;  %v1403_v7 = vpop.permute.xlu0 %1402 }
 0x2b8   : > { %v4571_v46 = vpop.f32.mrf.mxu0  ;;  %v5027_v22 = vpop.f32.mrf.mxu1 }
 0x2b9   : > { %5338 = vtanh.f32 %v1327_v19  ;;  %v1278_v1 = vadd.f32 %v4570_v23, %v1213_v45 }
 0x2ba   : > { %v4572_v29 = vpop.f32.mrf.mxu0  ;;  %v1339_v52 = vpop.f32.mrf.mxu1  ;;  %5340 = vtanh.f32 %v1335_v18 }
 0x2bb   : > { %v4573_v30 = vadd.f32 %v4572_v29, %v4571_v46  ;;  %v1340_v50 = vadd.f32 %v1339_v52, %v1275_v25  ;;  %v1435_v46 = vpop.permute.xlu0 %1434 }
 0x2bc   : > { %v4574_v27 = vpop.f32.mrf.mxu0  ;;  %v5028_v33 = vpop.f32.mrf.mxu1  ;;  %v1440_v38 = vrot.slane %v1435_v46, %v5900_v20 }
 0x2bd   : > { %v1283_v61 = vadd.f32 %v4573_v30, %v1218_v26  ;;  %5342 = vtanh.f32 %v1340_v50 }
 0x2be   : > { %v4575_v34 = vpop.f32.mrf.mxu0  ;;  %v1342_v32 = vpop.f32.mrf.mxu1 }
 0x2bf   : > { %v1348_v39 = vadd.f32 %v5027_v22, %v1283_v61  ;;  %v4576_v40 = vadd.f32 %v4575_v34, %v4574_v27  ;;  %v1343_v42 = vadd.f32 %v1342_v32, %v1278_v1 }
 0x2c1   : > { %5344 = vtanh.f32 %v1348_v39  ;;  %v1286_v47 = vadd.f32 %v4576_v40, %v1221_v31 }
 0x2c2   : > { %5346 = vtanh.f32 %v1343_v42  ;;  %v5335_v44 = vpop.eup %5334 }
 0x2c3   : > { %v1351_v37 = vadd.f32 %v5028_v33, %v1286_v47  ;;  %v5337_v56 = vpop.eup %5336  ;;  %v1410_v8 = vmul.f32 %v5335_v44, %v1373_v35  ;;  %v5160_v47 = vld [vmem:[%s7814_s6 + $0x4] ss:$20 sps:$4 sm:$0xff]  }
 0x2c4   : > { %v1412_v54 = vmul.f32 %v5337_v56, %v1383_v60  ;;  %2161 = vmatprep.mubr.bf16.mxu0 %v5160_v47  ;;  %v1810_v47 = vld [vmem:[%s7815_s7 + $0x8] sm:$0xff] }
 0x2c5   : > { %5348 = vtanh.f32 %v1351_v37  ;;  %v1823_v37 = vld [vmem:[%s7815_s7 + $0x70] sm:$0xff] }
 0x2c6   : > { %v5339_v41 = vpop.eup %5338 }
 0x2c7   : > { %v1411_v53 = vmul.f32 %v5339_v41, %v1378_v57  ;;  %v5341_v24 = vpop.eup %5340 }
 0x2c8   : > { %v1413_v62 = vmul.f32 %v5341_v24, %v1388_v5 }
 0x2c9   : > { %v1418_v58 = vadd.f32 %v1411_v53, %v1410_v8  ;;  %v1815_v53 = vld [vmem:[%s7815_s7 + $0x30] sm:$0xff] }
 0x2ca   : > { %v5995_v4 = vpop.eup %5342 }
 0x2cb   : > { %v1419_v17 = vadd.f32 %v1418_v58, %v1412_v54  ;;  %v1414_v21 = vmul.f32 %v5995_v4, %v1393_v59  ;;  %v1813_v58 = vld [vmem:[%s7815_s7 + $0x20] sm:$0xff] }
 0x2cc   : > { %v5175_v59 = vld [vmem:[%s7814_s6 + $0xc] ss:$20 sps:$4 sm:$0xff]  }
 0x2cd   : > { %v1420_v48 = vadd.f32 %v1419_v17, %v1413_v62  ;;  %v1811_v17 = vld [vmem:[%s7815_s7 + $0x10] sm:$0xff]  ;;  %2258 = vmatprep.mubr.bf16.mxu1 %v5175_v59 }
 0x2ce   : > { %v5345_v2 = vpop.eup %5344 }
 0x2cf   : > { %v5998_v6 = vpop.eup %5346  ;;  %v1421_v55 = vadd.f32 %v1420_v48, %v1414_v21  ;;  %v1416_v43 = vmul.f32 %v5345_v2, %v1403_v7  ;;  %v1809_v48 = vld [vmem:[%s7815_s7] sm:$0xff] }
 0x2d0   : > { %v1415_v28 = vmul.f32 %v5998_v6, %v1398_v49 }
 0x2d2   : > { %v6001_v3 = vpop.eup %5348  ;;  %v1422_v10 = vadd.f32 %v1421_v55, %v1415_v28 }
 0x2d3   : > { %v1417_v11 = vmul.f32 %v6001_v3, %v1408_v16 }
 0x2d4   : > { %v1423_v14 = vadd.f32 %v1422_v10, %v1416_v43  ;;  %v1824_v43 = vld [vmem:[%s7815_s7 + $0x78] sm:$0xff] }
 0x2d6   : > { %v1424_v13 = vadd.f32 %v1423_v14, %v1417_v11  ;;  %v1822_v14 = vld [vmem:[%s7815_s7 + $0x68] sm:$0xff] }
 0x2d8   : > { %v1425_v36 = vrot.slane %v1424_v13, 4 }
 0x2da   : > { %v1426_v15 = vadd.f32 %v1425_v36, %v1424_v13  ;;  %v1820_v36 = vld [vmem:[%s7815_s7 + $0x58] sm:$0xff] }
 0x2dc   : > { %v1427_v18 = vrot.slane %v1426_v15, 2 }
 0x2de   : > { %v1428_v19 = vadd.f32 %v1427_v18, %v1426_v15 }
 0x2e0   : > { %v1429_v22 = vrot.slane %v1428_v19, 1 }
 0x2e2   : > { %v1430_v63 = vadd.f32 %v1429_v22, %v1428_v19  ;;  %v1818_v19 = vld [vmem:[%s7815_s7 + $0x48] sm:$0xff] }
 0x2e4   : > { %v1441_v23 = vadd.f32 %v1440_v38, %v1430_v63  ;;  %v1816_v38 = vld [vmem:[%s7815_s7 + $0x38] sm:$0xff] }
 0x2e6   : > { %v4325_v25 = vmul.f32 -1.442695, %v1441_v23  ;;  %v5426_v23 = vld [vmem:[%s7809_s1 + $0x3] ss:$0 sm:$0xff] }
 0x2e8   : > { %5350 = vpow2.f32 %v4325_v25 }
 0x2f5   : > { %v5351_v45 = vpop.eup %5350 }
 0x2f6   : > { %v1445_v26 = vadd.f32 1.0, %v5351_v45 }
 0x2f8   : > { %5352 = vrcp.f32 %v1445_v26 }
 0x305   : > { %v5353_v29 = vpop.eup %5352 }
 0x306   : > { %v1448_v52 = vmul.f32 %v5353_v29, %v5906_v0  ;;  %v1814_v29 = vld [vmem:[%s7815_s7 + $0x28] sm:$0xff] }
 0x308   : > { %v1450_v51 = vsel %vm1449_vm3, %v1448_v52, 0.0  ;;  %v1453_v50 = vmul.f32 40.5, %v1448_v52 }
 0x309   : > { %1451 = vadd.xlane.f32.xlu1 %v1450_v51 }
 0x392   : > { %v1452_v30 = vpop.xlane.xlu1 %1451 }
 0x393   : > { %5354 = vrcp.f32 %v1452_v30  ;;  %v1812_v30 = vld [vmem:[%s7815_s7 + $0x18] sm:$0xff] }
 0x3a0   : > { %v5355_v27 = vpop.eup %5354 }
 0x3a1   : > { %v1455_v33 = vmul.f32 %v5355_v27, %v1453_v50  ;;  %v5427_v27 = vld [vmem:[%s7809_s1 + $0x1] ss:$0 sm:$0xff] }
 0x3a3   : > { %v1492_v61 = vrot.slane %v1455_v33, %v5900_v20 }
 0x3a5   : > { %v6008_v1 = vmul.f32 %v5337_v56, %v1492_v61  ;;  %v6010_v34 = vmul.f32 %v5341_v24, %v1492_v61  ;;  %v6016_v0 = vmul.f32 %v5335_v44, %v1492_v61  ;;  %v6030_v32 = vmul.f32 %v5339_v41, %v1492_v61  ;;  %v1821_v44 = vld [vmem:[%s7815_s7 + $0x60] sm:$0xff]  ;;  %v1819_v56 = vld [vmem:[%s7815_s7 + $0x50] sm:$0xff] }
 0x3a6   : > { %v1497_v35 = vmul.f32 0.0, %v1492_v61  ;;  %v1817_v41 = vld [vmem:[%s7815_s7 + $0x40] sm:$0xff] }
 0x3a7   : > { %1613 = vrot.lane.b32.xlu0 %v6008_v1, %s5452_s29  ;;  %1615 = vrot.lane.b32.xlu1 %v6010_v34, %s5452_s29 }
 0x3a8   : > { %v1513_v31 = vadd.f32 1.0, %v1497_v35 }
 0x3aa   : > { %v6048_v39 = vmul.f32 %v5345_v2, %v1513_v31  ;;  %v6059_v40 = vmul.f32 %v5995_v4, %v1513_v31  ;;  %v6074_v42 = vmul.f32 %v6001_v3, %v1513_v31  ;;  %v6093_v57 = vmul.f32 %v5998_v6, %v1513_v31 }
 0x3ab   : > { %1557 = vrot.lane.b32.xlu0 %v6008_v1, %s5453_s30  ;;  %1553 = vrot.lane.b32.xlu1 %v6016_v0, %s5453_s30 }
 0x3af   : > { %1559 = vrot.lane.b32.xlu0 %v6010_v34, %s5453_s30  ;;  %1585 = vrot.lane.b32.xlu1 %v6008_v1, %s5454_s15 }
 0x3b3   : > { %1609 = vrot.lane.b32.xlu0 %v6016_v0, %s5452_s29  ;;  %1529 = vrot.lane.b32.xlu1 %v6008_v1, %s5456_s11 }
 0x3b7   : > { %1611 = vrot.lane.b32.xlu0 %v6030_v32, %s5452_s29  ;;  %1581 = vrot.lane.b32.xlu1 %v6016_v0, %s5454_s15 }
 0x3bb   : > { %1555 = vrot.lane.b32.xlu0 %v6030_v32, %s5453_s30  ;;  %1525 = vrot.lane.b32.xlu1 %v6016_v0, %s5456_s11 }
 0x3bf   : > { %1587 = vrot.lane.b32.xlu0 %v6010_v34, %s5454_s15  ;;  %1709 = vrot.lane.b32.xlu1 %v6008_v1, %s5455_s16 }
 0x3c3   : > { %1531 = vrot.lane.b32.xlu0 %v6010_v34, %s5456_s11  ;;  %1653 = vrot.lane.b32.xlu1 %v6008_v1, %s7825_s13 }
 0x3c7   : > { %1583 = vrot.lane.b32.xlu0 %v6030_v32, %s5454_s15  ;;  %1593 = vrot.lane.b32.xlu1 %v6048_v39, %s5454_s15 }
 0x3cb   : > { %1527 = vrot.lane.b32.xlu0 %v6030_v32, %s5456_s11  ;;  %1537 = vrot.lane.b32.xlu1 %v6048_v39, %s5456_s11 }
 0x3cf   : > { %1711 = vrot.lane.b32.xlu0 %v6010_v34, %s5455_s16  ;;  %1589 = vrot.lane.b32.xlu1 %v6059_v40, %s5454_s15 }
 0x3d3   : > { %1655 = vrot.lane.b32.xlu0 %v6010_v34, %s7825_s13  ;;  %1533 = vrot.lane.b32.xlu1 %v6059_v40, %s5456_s11 }
 0x3d7   : > { %1621 = vrot.lane.b32.xlu0 %v6048_v39, %s5452_s29  ;;  %1717 = vrot.lane.b32.xlu1 %v6048_v39, %s5455_s16 }
 0x3db   : > { %1623 = vrot.lane.b32.xlu0 %v6074_v42, %s5452_s29  ;;  %1661 = vrot.lane.b32.xlu1 %v6048_v39, %s7825_s13 }
 0x3df   : > { %1565 = vrot.lane.b32.xlu0 %v6048_v39, %s5453_s30  ;;  %1713 = vrot.lane.b32.xlu1 %v6059_v40, %s5455_s16 }
 0x3e3   : > { %1567 = vrot.lane.b32.xlu0 %v6074_v42, %s5453_s30  ;;  %1657 = vrot.lane.b32.xlu1 %v6059_v40, %s7825_s13 }
 0x3e7   : > { %1617 = vrot.lane.b32.xlu0 %v6059_v40, %s5452_s29  ;;  %1705 = vrot.lane.b32.xlu1 %v6016_v0, %s5455_s16 }
 0x3eb   : > { %1619 = vrot.lane.b32.xlu0 %v6093_v57, %s5452_s29  ;;  %1649 = vrot.lane.b32.xlu1 %v6016_v0, %s7825_s13 }
 0x3ef   : > { %1561 = vrot.lane.b32.xlu0 %v6059_v40, %s5453_s30  ;;  %1689 = vrot.lane.b32.xlu1 %v6048_v39, %s5458_s21 }
 0x3f3   : > { %1563 = vrot.lane.b32.xlu0 %v6093_v57, %s5453_s30  ;;  %1685 = vrot.lane.b32.xlu1 %v6059_v40, %s5458_s21 }
 0x3f7   : > { %1595 = vrot.lane.b32.xlu0 %v6074_v42, %s5454_s15  ;;  %1681 = vrot.lane.b32.xlu1 %v6008_v1, %s5458_s21 }
 0x3fb   : > { %1539 = vrot.lane.b32.xlu0 %v6074_v42, %s5456_s11  ;;  %1677 = vrot.lane.b32.xlu1 %v6016_v0, %s5458_s21 }
 0x3ff   : > { %1591 = vrot.lane.b32.xlu0 %v6093_v57, %s5454_s15  ;;  %1745 = vrot.lane.b32.xlu1 %v6048_v39, %s7823_s24 }
 0x403   : > { %1535 = vrot.lane.b32.xlu0 %v6093_v57, %s5456_s11  ;;  %1741 = vrot.lane.b32.xlu1 %v6059_v40, %s7823_s24 }
 0x407   : > { %1719 = vrot.lane.b32.xlu0 %v6074_v42, %s5455_s16  ;;  %1737 = vrot.lane.b32.xlu1 %v6008_v1, %s7823_s24 }
 0x40b   : > { %1663 = vrot.lane.b32.xlu0 %v6074_v42, %s7825_s13  ;;  %1733 = vrot.lane.b32.xlu1 %v6016_v0, %s7823_s24 }
 0x40f   : > { %1715 = vrot.lane.b32.xlu0 %v6093_v57, %s5455_s16  ;;  %1897 = vperm.xlu1 %5121, %v1823_v37  }
 0x413   : > { %1659 = vrot.lane.b32.xlu0 %v6093_v57, %s7825_s13  ;;  %1887 = vperm.xlu1 %5121, %v1821_v44  }
 0x417   : > { %1707 = vrot.lane.b32.xlu0 %v6030_v32, %s5455_s16  ;;  %1877 = vperm.xlu1 %5121, %v1819_v56  }
 0x419   : > { %v6149_v60 = vpop.permute.xlu0 %1613  ;;  %v6154_v5 = vpop.permute.xlu1 %1615 }
 0x41b   : > { %1651 = vrot.lane.b32.xlu0 %v6030_v32, %s7825_s13  ;;  %1867 = vperm.xlu1 %5121, %v1817_v41  }
 0x41d   : > { %v6158_v8 = vpop.permute.xlu0 %1557  ;;  %v6163_v24 = vpop.permute.xlu1 %1553 }
 0x41f   : > { %1691 = vrot.lane.b32.xlu0 %v6074_v42, %s5458_s21  ;;  %1857 = vperm.xlu1 %5121, %v1815_v53  }
 0x421   : > { %v6167_v54 = vpop.permute.xlu0 %1559  ;;  %v6172_v4 = vpop.permute.xlu1 %1585 }
 0x423   : > { %1687 = vrot.lane.b32.xlu0 %v6093_v57, %s5458_s21  ;;  %1847 = vperm.xlu1 %5121, %v1813_v58  }
 0x425   : > { %v6179_v62 = vpop.permute.xlu0 %1609  ;;  %v6184_v49 = vpop.permute.xlu1 %1529 }
 0x427   : > { %1683 = vrot.lane.b32.xlu0 %v6010_v34, %s5458_s21  ;;  %1837 = vperm.xlu1 %5121, %v1811_v17  }
 0x429   : > { %v6188_v21 = vpop.permute.xlu0 %1611  ;;  %v6195_v2 = vpop.permute.xlu1 %1581 }
 0x42b   : > { %1679 = vrot.lane.b32.xlu0 %v6030_v32, %s5458_s21  ;;  %1827 = vperm.xlu1 %5121, %v1809_v48   ;;  %v1628_v48 = vmul.f32 %v5426_v23, %v6154_v5 }
 0x42d   : > { %v6197_v6 = vpop.permute.xlu0 %1555  ;;  %v6203_v28 = vpop.permute.xlu1 %1525 }
 0x42f   : > { %1747 = vrot.lane.b32.xlu0 %v6074_v42, %s7823_s24 }
 0x431   : > { %v6201_v55 = vpop.permute.xlu0 %1587  ;;  %v6211_v3 = vpop.permute.xlu1 %1709 }
 0x433   : > { %1743 = vrot.lane.b32.xlu0 %v6093_v57, %s7823_s24 }
 0x435   : > { %v6207_v7 = vpop.permute.xlu0 %1531  ;;  %v6222_v11 = vpop.permute.xlu1 %1653 }
 0x437   : > { %1739 = vrot.lane.b32.xlu0 %v6010_v34, %s7823_s24 }
 0x439   : > { %v6213_v16 = vpop.permute.xlu0 %1583  ;;  %v1594_v15 = vpop.permute.xlu1 %1593 }
 0x43b   : > { %1735 = vrot.lane.b32.xlu0 %v6030_v32, %s7823_s24 }
 0x43d   : > { %v6220_v10 = vpop.permute.xlu0 %1527  ;;  %v6237_v22 = vpop.permute.xlu1 %1537 }
 0x43f   : > { %1902 = vperm.xlu0 %5120, %v1824_v43   ;;  %v1627_v43 = vmul.f32 %v5426_v23, %v6149_v60  ;;  %v1570_v60 = vmul.f32 %v5427_v27, %v6197_v6  ;;  %v5429_v6 = vld [vmem:[%s7809_s1] ss:$0 sm:$0xff] }
 0x441   : > { %v6227_v13 = vpop.permute.xlu0 %1711  ;;  %v1590_v52 = vpop.permute.xlu1 %1589 }
 0x443   : > { %1892 = vperm.xlu0 %5120, %v1822_v14  }
 0x445   : > { %v6232_v18 = vpop.permute.xlu0 %1655  ;;  %v1534_v35 = vpop.permute.xlu1 %1533 }
 0x447   : > { %1882 = vperm.xlu0 %5120, %v1820_v36  }
 0x449   : > { %v1622_v46 = vpop.permute.xlu0 %1621  ;;  %v1718_v44 = vpop.permute.xlu1 %1717 }
 0x44a   : > { %v1631_v25 = vmul.f32 %v5426_v23, %v1622_v46  ;;  %v1572_v46 = vmul.f32 %v5427_v27, %v6167_v54  ;;  %v5428_v54 = vld [vmem:[%s7809_s1 + $0x2] ss:$0 sm:$0xff] }
 0x44b   : > { %1872 = vperm.xlu0 %5120, %v1818_v19  }
 0x44d   : > { %v1624_v63 = vpop.permute.xlu0 %1623  ;;  %v6257_v17 = vpop.permute.xlu1 %1661 }
 0x44e   : > { %v1632_v45 = vmul.f32 %v5426_v23, %v1624_v63  ;;  %v1634_v63 = vpack.c.bf16 %v1628_v48, %v1627_v43  ;;  %v1599_v48 = vmul.f32 %v5428_v54, %v6172_v4  ;;  %v1544_v43 = vmul.f32 %v5429_v6, %v6207_v7 }
 0x44f   : > { %1862 = vperm.xlu0 %5120, %v1816_v38   ;;  %v1542_v7 = vmul.f32 %v5429_v6, %v6220_v10  ;;  %v5158_v10 = vld [vmem:[%s7814_s6] ss:$20 sps:$4 sm:$0xff]  }
 0x450   : > { %v1636_v26 = vpack.c.bf16 %v1632_v45, %v1631_v25  ;;  %v1626_v25 = vmul.f32 %v5426_v23, %v6188_v21  ;;  %v1569_v21 = vmul.f32 %v5427_v27, %v6163_v24 }
 0x451   : > { %v1566_v51 = vpop.permute.xlu0 %1565  ;;  %v6263_v45 = vpop.permute.xlu1 %1713 }
 0x452   : > { %4585 = vmatprep.subr.bf16.mxu0 %v1636_v26  ;;  %v1575_v33 = vmul.f32 %v5427_v27, %v1566_v51  ;;  %v1625_v51 = vmul.f32 %v5426_v23, %v6179_v62 }
 0x453   : > { %1852 = vperm.xlu0 %5120, %v1814_v29   ;;  %v1571_v29 = vmul.f32 %v5427_v27, %v6158_v8  ;;  %v1577_v8 = vpack.c.bf16 %v1570_v60, %v1569_v21 }
 0x455   : > { %v1568_v50 = vpop.permute.xlu0 %1567  ;;  %v1578_v5 = vpack.c.bf16 %v1572_v46, %v1571_v29  ;;  %v1541_v29 = vmul.f32 %v5429_v6, %v6203_v28 }
 0x456   : > { %v1576_v61 = vmul.f32 %v5427_v27, %v1568_v50 }
 0x457   : > { %1842 = vperm.xlu0 %5120, %v1812_v30   ;;  %v1633_v30 = vpack.c.bf16 %v1626_v25, %v1625_v51 }
 0x458   : > { %v1580_v31 = vpack.c.bf16 %v1576_v61, %v1575_v33  ;;  %v1603_v61 = vmul.f32 %v5428_v54, %v1594_v15  ;;  %v1600_v15 = vmul.f32 %v5428_v54, %v6201_v55  ;;  %v5430_v55 = vld [vmem:[%s7809_s1 + $0x7] ss:$0 sm:$0xff] }
 0x459   : > { %v1618_v37 = vpop.permute.xlu0 %1617  ;;  %v1727_v46 = vmul.f32 %v5430_v55, %v1718_v44  ;;  %v1725_v28 = vmul.f32 %v5430_v55, %v6263_v45 }
 0x45a   : > { %4586 = vmatpush3.bf16.msra.mxu0 %v1580_v31  ;;  %v1629_v41 = vmul.f32 %v5426_v23, %v1618_v37  ;;  %v1658_v31 = vpop.permute.xlu1 %1657  ;;  %v1547_v37 = vmul.f32 %v5429_v6, %v6237_v22  ;;  %v1606_v22 = vpack.c.bf16 %v1600_v15, %v1599_v48  ;;  %v1643_v48 = vmul.f32 %v6048_v39, %v5916_v12 }
 0x45b   : > { %1832 = vperm.xlu0 %5120, %v1810_v47   ;;  %v1641_v39 = vmul.f32 %v6059_v40, %v5916_v12  ;;  %v1640_v40 = vmul.f32 %v6010_v34, %v5916_v12 }
 0x45d   : > { %v1620_v56 = vpop.permute.xlu0 %1619 }
 0x45e   : > { %v1630_v53 = vmul.f32 %v5426_v23, %v1620_v56  ;;  %v1601_v56 = vmul.f32 %v5428_v54, %v1590_v52  ;;  %v1598_v52 = vmul.f32 %v5428_v54, %v6213_v16 }
 0x460   : > { %v1635_v58 = vpack.c.bf16 %v1630_v53, %v1629_v41  ;;  %v1706_v53 = vpop.permute.xlu1 %1705 }
 0x461   : > { %v1562_v59 = vpop.permute.xlu0 %1561 }
 0x462   : > { %4587 = vmatprep.subr.bf16.mxu0 %v1635_v58  ;;  %v1573_v36 = vmul.f32 %v5427_v27, %v1562_v59  ;;  %v1545_v59 = vmul.f32 %v5429_v6, %v1534_v35 }
 0x464   : > { %v1650_v4 = vpop.permute.xlu1 %1649 }
 0x465   : > { %v1564_v14 = vpop.permute.xlu0 %1563 }
 0x466   : > { %v1574_v19 = vmul.f32 %v5427_v27, %v1564_v14 }
 0x468   : > { %v1579_v38 = vpack.c.bf16 %v1574_v19, %v1573_v36  ;;  %v1543_v19 = vmul.f32 %v5429_v6, %v6184_v49  ;;  %v5431_v49 = vld [vmem:[%s7809_s1 + $0x5] ss:$0 sm:$0xff]  ;;  %v1690_v60 = vpop.permute.xlu1 %1689 }
 0x469   : > { %v1596_v26 = vpop.permute.xlu0 %1595  ;;  %v1671_v44 = vmul.f32 %v5431_v49, %v6257_v17  ;;  %v5161_v17 = vld [vmem:[%s7814_s6 + $0x2c] ss:$20 sps:$4 sm:$0xff]   ;;  %v1668_v45 = vmul.f32 %v5431_v49, %v6232_v18 }
 0x46a   : > { %4588 = vmatpush3.bf16.msra.mxu0 %v1579_v38  ;;  %v1604_v50 = vmul.f32 %v5428_v54, %v1596_v26  ;;  %v1597_v38 = vmul.f32 %v5428_v54, %v6195_v2  ;;  %v1549_v2 = vpack.c.bf16 %v1542_v7, %v1541_v29  ;;  %v1639_v29 = vmul.f32 %v6008_v1, %v5916_v12 }
 0x46b   : > { %4589 = vmatprep.subr.bf16.mxu0 %v1634_v63  ;;  %v1550_v63 = vpack.c.bf16 %v1544_v43, %v1543_v19  ;;  %v1644_v43 = vmul.f32 %v6074_v42, %v5916_v12  ;;  %v1642_v42 = vmul.f32 %v6093_v57, %v5916_v12  ;;  %v1638_v1 = vmul.f32 %v6030_v32, %v5916_v12  ;;  %v5173_v32 = vld [vmem:[%s7814_s6 + $0x8] ss:$20 sps:$4 sm:$0xff]  }
 0x46c   : > { %v1608_v23 = vpack.c.bf16 %v1604_v50, %v1603_v61  ;;  %v1605_v26 = vpack.c.bf16 %v1598_v52, %v1597_v38  ;;  %v1669_v61 = vmul.f32 %v5431_v49, %v1658_v31  ;;  %v5164_v31 = vld [vmem:[%s7814_s6 + $0x54] ss:$20 sps:$4 sm:$0xff]  }
 0x46d   : > { %v1540_v33 = vpop.permute.xlu0 %1539 }
 0x46e   : > { %4590 = vmatpush3.bf16.msra.mxu0 %v1578_v5  ;;  %v1548_v62 = vmul.f32 %v5872_v9, %v1540_v33  ;;  %v1724_v33 = vmul.f32 %v5430_v55, %v6227_v13  ;;  %v1667_v13 = vmul.f32 %v5431_v49, %v6222_v11 }
 0x46f   : > { %4591 = vmatprep.subr.bf16.mxu0 %v1633_v30 }
 0x470   : > { %v1552_v24 = vpack.c.bf16 %v1548_v62, %v1547_v37  ;;  %v1723_v62 = vmul.f32 %v5430_v55, %v6211_v3  ;;  %v1674_v3 = vpack.c.bf16 %v1668_v45, %v1667_v13  ;;  %v5178_v13 = vld [vmem:[%s7814_s6 + $0xc8] ss:$20 sps:$4 sm:$0xff]  }
 0x471   : > { %v1592_v47 = vpop.permute.xlu0 %1591 }
 0x472   : > { %v1602_v41 = vmul.f32 %v5428_v54, %v1592_v47  ;;  %4592 = vmatpush3.bf16.msra.mxu0 %v1577_v8 }
 0x473   : > { %4593 = vmatprep.subr.bf16.mxu0 %v1608_v23  ;;  %v1686_v23 = vpop.permute.xlu1 %1685 }
 0x474   : > { %v1607_v27 = vpack.c.bf16 %v1602_v41, %v1601_v56  ;;  %v5163_v56 = vld [vmem:[%s7814_s6 + $0x28] ss:$20 sps:$4 sm:$0xff]   ;;  %v1721_v41 = vmul.f32 %v5430_v55, %v1706_v53  ;;  %v5166_v53 = vld [vmem:[%s7814_s6 + $0x50] ss:$20 sps:$4 sm:$0xff]  }
 0x475   : > { %v1536_v58 = vpop.permute.xlu0 %1535 }
 0x476   : > { %v1546_v9 = vmul.f32 %v5429_v6, %v1536_v58  ;;  %4594 = vmatpush3.bf16.msra.mxu0 %v1552_v24  ;;  %v1730_v6 = vpack.c.bf16 %v1724_v33, %v1723_v62  ;;  %v1665_v58 = vmul.f32 %v5431_v49, %v1650_v4  ;;  %v5179_v62 = vld [vmem:[%s7814_s6 + $0x34] ss:$20 sps:$4 sm:$0xff]  }
 0x477   : > { %4595 = vmatprep.subr.bf16.mxu0 %v1607_v27  ;;  %v1682_v18 = vpop.permute.xlu1 %1681 }
 0x478   : > { %v1551_v14 = vpack.c.bf16 %v1546_v9, %v1545_v59 }
 0x479   : > { %v1720_v36 = vpop.permute.xlu0 %1719 }
 0x47a   : > { %v1728_v35 = vmul.f32 %v5430_v55, %v1720_v36  ;;  %4596 = vmatpush3.bf16.msra.mxu0 %v1551_v14  ;;  %v5432_v14 = vld [vmem:[%s7809_s1 + $0x6] ss:$0 sm:$0xff]  ;;  %v5167_v36 = vld [vmem:[%s7814_s6 + $0x7c] ss:$20 sps:$4 sm:$0xff]  }
 0x47b   : > { %4597 = vmatprep.subr.bf16.mxu0 %v1606_v22  ;;  %v1699_v22 = vmul.f32 %v5432_v14, %v1690_v60  ;;  %v1678_v19 = vpop.permute.xlu1 %1677  ;;  %v1697_v38 = vmul.f32 %v5432_v14, %v1686_v23  ;;  %v1695_v57 = vmul.f32 %v5432_v14, %v1682_v18  ;;  %v1637_v60 = vmul.f32 %v6016_v0, %v5916_v12  ;;  %v5433_v0 = vld [vmem:[%s7809_s1 + $0x8] ss:$0 sm:$0xff] }
 0x47c   : > { %v1732_v25 = vpack.c.bf16 %v1728_v35, %v1727_v46  ;;  %v1648_v35 = vpack.c.bf16 %v1644_v43, %v1643_v48  ;;  %v5187_v48 = vld [vmem:[%s7814_s6 + $0x58] ss:$20 sps:$4 sm:$0xff]   ;;  %v5188_v43 = vld [vmem:[%s7814_s6 + $0x11c] ss:$20 sps:$4 sm:$0xff]  }
 0x47d   : > { %v1664_v16 = vpop.permute.xlu0 %1663 }
 0x47e   : > { %v1672_v51 = vmul.f32 %v5431_v49, %v1664_v16  ;;  %4598 = vmatpush3.bf16.msra.mxu0 %v1550_v63  ;;  %4649 = vmatprep.subr.bf16.mxu1 %v1732_v25  ;;  %v5169_v16 = vld [vmem:[%s7814_s6 + $0x78] ss:$20 sps:$4 sm:$0xff]  }
 0x47f   : > { %4599 = vmatprep.subr.bf16.mxu0 %v1605_v26  ;;  %v1746_v7 = vpop.permute.xlu1 %1745  ;;  %v1647_v26 = vpack.c.bf16 %v1642_v42, %v1641_v39  ;;  %v5200_v39 = vld [vmem:[%s7814_s6 + $0xd4] ss:$20 sps:$4 sm:$0xff]  }
 0x480   : > { %v1676_v5 = vpack.c.bf16 %v1672_v51, %v1671_v44  ;;  %v5170_v44 = vld [vmem:[%s7814_s6 + $0xa4] ss:$20 sps:$4 sm:$0xff]   ;;  %v1755_v33 = vmul.f32 %v5433_v0, %v1746_v7  ;;  %v5202_v42 = vld [vmem:[%s7814_s6 + $0x88] ss:$20 sps:$4 sm:$0xff]  }
 0x481   : > { %v1716_v30 = vpop.permute.xlu0 %1715  ;;  %v5207_v7 = vld [vmem:[%s7814_s6 + $0xd8] ss:$20 sps:$4 sm:$0xff]  }
 0x482   : > { %v1726_v54 = vmul.f32 %v5430_v55, %v1716_v30  ;;  %4600 = vmatpush3.bf16.msra.mxu0 %v1549_v2  ;;  %4650 = vmatpush3.bf16.msra.mxu1 %v1676_v5  ;;  %v1646_v5 = vpack.c.bf16 %v1640_v40, %v1639_v29  ;;  %v1693_v30 = vmul.f32 %v5432_v14, %v1678_v19  ;;  %v5195_v19 = vld [vmem:[%s7814_s6 + $0xac] ss:$20 sps:$4 sm:$0xff]   ;;  %v5212_v29 = vld [vmem:[%s7814_s6 + $0x128] ss:$20 sps:$4 sm:$0xff]  }
 0x483   : > { %v5213_v40 = vld [vmem:[%s7814_s6 + $0x120] ss:$20 sps:$4 sm:$0xff]  }
 0x484   : > { %v1731_v50 = vpack.c.bf16 %v1726_v54, %v1725_v28 }
 0x485   : > { %2162 = vmatmul.mubr.bf16.vlgmr.msra.gmra.mxu0 %v5158_v10  ;;  %v1660_v21 = vpop.permute.xlu0 %1659  ;;  %v1742_v10 = vpop.permute.xlu1 %1741 }
 0x486   : > { %v1670_v8 = vmul.f32 %v5431_v49, %v1660_v21  ;;  %4651 = vmatprep.subr.bf16.mxu1 %v1731_v50  ;;  %2169 = vmatprep.mubr.bf16.mxu0 %v5161_v17  ;;  %v1645_v17 = vpack.c.bf16 %v1638_v1, %v1637_v60  ;;  %v5172_v50 = vld [vmem:[%s7814_s6 + $0xa0] ss:$20 sps:$4 sm:$0xff]  }
 0x488   : > { %v1675_v47 = vpack.c.bf16 %v1670_v8, %v1669_v61  ;;  %v5176_v61 = vld [vmem:[%s7814_s6 + $0xcc] ss:$20 sps:$4 sm:$0xff]  }
 0x489   : > { %v1708_v37 = vpop.permute.xlu0 %1707  ;;  %v1738_v23 = vpop.permute.xlu1 %1737 }
 0x48a   : > { %v1722_v24 = vmul.f32 %v5430_v55, %v1708_v37  ;;  %4652 = vmatpush3.bf16.msra.mxu1 %v1675_v47  ;;  %v1753_v47 = vmul.f32 %v5433_v0, %v1742_v10 }
 0x48b   : > { %4653 = vmatprep.subr.bf16.mxu1 %v1730_v6 }
 0x48c   : > { %v1729_v27 = vpack.c.bf16 %v1722_v24, %v1721_v41  ;;  %v1751_v41 = vmul.f32 %v5433_v0, %v1738_v23 }
 0x48d   : > { %2170 = vmatmul.mubr.bf16.gmra.mxu0 %v5163_v56  ;;  %v1652_v15 = vpop.permute.xlu0 %1651 }
 0x48e   : > { %v1666_v59 = vmul.f32 %v5431_v49, %v1652_v15  ;;  %4654 = vmatpush3.bf16.msra.mxu1 %v1674_v3  ;;  %2177 = vmatprep.mubr.bf16.mxu0 %v5164_v31  ;;  %v5181_v31 = vld [vmem:[%s7814_s6 + $0x30] ss:$20 sps:$4 sm:$0xff]   ;;  %v1734_v3 = vpop.permute.xlu1 %1733 }
 0x48f   : > { %4655 = vmatprep.subr.bf16.mxu1 %v1729_v27  ;;  %v5182_v27 = vld [vmem:[%s7814_s6 + $0xf4] ss:$20 sps:$4 sm:$0xff]   ;;  %v5185_v15 = vld [vmem:[%s7814_s6 + $0x5c] ss:$20 sps:$4 sm:$0xff]  }
 0x490   : > { %v1673_v9 = vpack.c.bf16 %v1666_v59, %v1665_v58  ;;  %v1749_v59 = vmul.f32 %v5433_v0, %v1734_v3 }
 0x491   : > { %v1692_v11 = vpop.permute.xlu0 %1691 }
 0x492   : > { %v1700_v52 = vmul.f32 %v5432_v14, %v1692_v11  ;;  %4656 = vmatpush3.bf16.msra.mxu1 %v1673_v9 }
 0x494   : > { %v1704_v55 = vpack.c.bf16 %v1700_v52, %v1699_v22  ;;  %v5190_v22 = vld [vmem:[%s7814_s6 + $0x118] ss:$20 sps:$4 sm:$0xff]   ;;  %v5193_v52 = vld [vmem:[%s7814_s6 + $0x80] ss:$20 sps:$4 sm:$0xff]  }
 0x495   : > { %2178 = vmatmul.mubr.bf16.gmra.mxu0 %v5166_v53  ;;  %v1688_v46 = vpop.permute.xlu0 %1687  ;;  %v5184_v53 = vld [vmem:[%s7814_s6 + $0xf0] ss:$20 sps:$4 sm:$0xff]  }
 0x496   : > { %v1698_v4 = vmul.f32 %v5432_v14, %v1688_v46  ;;  %4657 = vmatprep.subr.bf16.mxu1 %v1704_v55  ;;  %2185 = vmatprep.mubr.bf16.mxu0 %v5167_v36  ;;  %v5194_v36 = vld [vmem:[%s7814_s6 + $0x10] ss:$20 sps:$4 sm:$0xff]   ;;  %v5197_v55 = vld [vmem:[%s7814_s6 + $0x38] ss:$20 sps:$4 sm:$0xff]   ;;  %v5198_v46 = vld [vmem:[%s7814_s6 + $0xa8] ss:$20 sps:$4 sm:$0xff]  }
 0x497   : > { %4658 = vmatpush3.bf16.msra.mxu1 %v1648_v35  ;;  %v5199_v35 = vld [vmem:[%s7814_s6 + $0x60] ss:$20 sps:$4 sm:$0xff]  }
 0x498   : > { %v1703_v63 = vpack.c.bf16 %v1698_v4, %v1697_v38  ;;  %v5203_v38 = vld [vmem:[%s7814_s6 + $0xd0] ss:$20 sps:$4 sm:$0xff]  }
 0x499   : > { %v1684_v25 = vpop.permute.xlu0 %1683  ;;  %v5204_v4 = vld [vmem:[%s7814_s6 + $0xb0] ss:$20 sps:$4 sm:$0xff]  }
 0x49a   : > { %v1696_v49 = vmul.f32 %v5432_v14, %v1684_v25  ;;  %4659 = vmatprep.subr.bf16.mxu1 %v1703_v63  ;;  %v5205_v63 = vld [vmem:[%s7814_s6 + $0xfc] ss:$20 sps:$4 sm:$0xff]   ;;  %v5208_v25 = vld [vmem:[%s7814_s6 + $0xf8] ss:$20 sps:$4 sm:$0xff]  }
 0x49b   : > { %4660 = vmatpush3.bf16.msra.mxu1 %v1647_v26  ;;  %v5209_v26 = vld [vmem:[%s7814_s6 + $0x100] ss:$20 sps:$4 sm:$0xff]  }
 0x49c   : > { %v1702_v51 = vpack.c.bf16 %v1696_v49, %v1695_v57 }
 0x49d   : > { %2186 = vmatmul.mubr.bf16.gmra.mxu0 %v5169_v16  ;;  %v1680_v2 = vpop.permute.xlu0 %1679  ;;  %v5210_v16 = vld [vmem:[%s7814_s6 + $0x124] ss:$20 sps:$4 sm:$0xff]  }
 0x49e   : > { %v1694_v34 = vmul.f32 %v5432_v14, %v1680_v2  ;;  %4661 = vmatprep.subr.bf16.mxu1 %v1702_v51  ;;  %2193 = vmatprep.mubr.bf16.mxu0 %v5170_v44  ;;  %v5191_v14 = vld [vmem:[%s7814_s6 + $0x84] ss:$20 sps:$4 sm:$0xff]  }
 0x49f   : > { %4662 = vmatpush3.bf16.msra.mxu1 %v1646_v5 }
 0x4a0   : > { %v1701_v28 = vpack.c.bf16 %v1694_v34, %v1693_v30 }
 0x4a1   : > { %v1748_v54 = vpop.permute.xlu0 %1747 }
 0x4a2   : > { %v1756_v21 = vmul.f32 %v5433_v0, %v1748_v54  ;;  %4663 = vmatprep.subr.bf16.mxu1 %v1701_v28 }
 0x4a3   : > { %4664 = vmatpush3.bf16.msra.mxu1 %v1645_v17 }
 0x4a4   : > { %v1760_v8 = vpack.c.bf16 %v1756_v21, %v1755_v33 }
 0x4a5   : > { %2194 = vmatmul.mubr.bf16.gmra.mxu0 %v5172_v50  ;;  %v1744_v45 = vpop.permute.xlu0 %1743  ;;  %v6449_v50 = vpop.permute.xlu1 %1897 }
 0x4a6   : > { %v1754_v6 = vmul.f32 %v5433_v0, %v1744_v45  ;;  %2259 = vmatmul.mubr.bf16.vlgmr.msra.gmra.mxu1 %v5173_v32  ;;  %5029 = vmatprep.subr.bf16.mxu0 %v1760_v8 }
 0x4a7   : > { %5030 = vmatpush3.bf16.msra.mxu0 %v1760_v8  ;;  %2201 = vmatprep.mubr.bf16.mxu0 %v5176_v61 }
 0x4a8   : > { %v1759_v37 = vpack.c.bf16 %v1754_v6, %v1753_v47  ;;  %2266 = vmatprep.mubr.bf16.mxu1 %v5179_v62 }
 0x4a9   : > { %v1740_v56 = vpop.permute.xlu0 %1739  ;;  %v6457_v62 = vpop.permute.xlu1 %1887 }
 0x4aa   : > { %v1752_v24 = vmul.f32 %v5433_v0, %v1740_v56  ;;  %5031 = vmatprep.subr.bf16.mxu0 %v1759_v37 }
 0x4ab   : > { %5032 = vmatpush3.bf16.msra.mxu0 %v1759_v37 }
 0x4ac   : > { %v1758_v18 = vpack.c.bf16 %v1752_v24, %v1751_v41 }
 0x4ad   : > { %2202 = vmatmul.mubr.bf16.gmra.mxu0 %v5178_v13  ;;  %v1736_v58 = vpop.permute.xlu0 %1735  ;;  %v6463_v13 = vpop.permute.xlu1 %1877 }
 0x4ae   : > { %v1750_v9 = vmul.f32 %v5433_v0, %v1736_v58  ;;  %2267 = vmatmul.mubr.bf16.gmra.mxu1 %v5181_v31  ;;  %5033 = vmatprep.subr.bf16.mxu0 %v1758_v18 }
 0x4af   : > { %5034 = vmatpush3.bf16.msra.mxu0 %v1758_v18  ;;  %2209 = vmatprep.mubr.bf16.mxu0 %v5182_v27 }
 0x4b0   : > { %v1757_v11 = vpack.c.bf16 %v1750_v9, %v1749_v59  ;;  %2274 = vmatprep.mubr.bf16.mxu1 %v5185_v15 }
 0x4b1   : > { %v6471_v9 = vpop.permute.xlu1 %1867 }
 0x4b2   : > { %5035 = vmatprep.subr.bf16.mxu0 %v1757_v11 }
 0x4b3   : > { %5036 = vmatpush3.bf16.msra.mxu0 %v1757_v11 }
 0x4b5   : > { %2210 = vmatmul.mubr.bf16.gmra.mxu0 %v5184_v53 }
 0x4b6   : > { %2275 = vmatmul.mubr.bf16.gmra.mxu1 %v5187_v48  ;;  %2217 = vmatprep.mubr.bf16.mxu0 %v5188_v43 }
 0x4b7   : > { %2282 = vmatprep.mubr.bf16.mxu1 %v5191_v14 }
 0x4ba   : > { %v6453_v32 = vpop.permute.xlu0 %1902 }
 0x4bd   : > { %2218 = vmatmul.mubr.bf16.gmra.mxu0 %v5190_v22 }
 0x4be   : > { %2283 = vmatmul.mubr.bf16.gmra.mxu1 %v5193_v52  ;;  %5037 = vmatprep.mubr.msk.bf16.mxu0 %vm1146_vm2, %v5194_v36  ;;  %v6461_v6 = vpop.permute.xlu0 %1892  ;;  %v6477_v52 = vpop.permute.xlu1 %1857 }
 0x4bf   : > { %2290 = vmatprep.mubr.bf16.mxu1 %v5195_v19 }
 0x4c2   : > { %v6467_v18 = vpop.permute.xlu0 %1882 }
 0x4c5   : > { %5038 = vmatmul.mubr.msk.bf16.vlgmr.msra.gmra.mxu0 %vm1146_vm2, %v5197_v55 }
 0x4c6   : > { %2291 = vmatmul.mubr.bf16.gmra.mxu1 %v5198_v46  ;;  %5041 = vmatprep.mubr.msk.bf16.mxu0 %vm1146_vm2, %v5199_v35  ;;  %v6475_v14 = vpop.permute.xlu0 %1872 }
 0x4c7   : > { %2298 = vmatprep.mubr.bf16.mxu1 %v5200_v39 }
 0x4ca   : > { %v6481_v35 = vpop.permute.xlu0 %1862 }
 0x4cd   : > { %5042 = vmatmul.mubr.msk.bf16.gmra.mxu0 %vm1146_vm2, %v5202_v42 }
 0x4ce   : > { %2299 = vmatmul.mubr.bf16.gmra.mxu1 %v5203_v38  ;;  %5045 = vmatprep.mubr.msk.bf16.mxu0 %vm1146_vm2, %v5204_v4  ;;  %v6485_v4 = vpop.permute.xlu1 %1847 }
 0x4cf   : > { %2306 = vmatprep.mubr.bf16.mxu1 %v5205_v63 }
 0x4d5   : > { %5046 = vmatmul.mubr.msk.bf16.gmra.mxu0 %vm1146_vm2, %v5207_v7 }
 0x4d6   : > { %2307 = vmatmul.mubr.bf16.gmra.mxu1 %v5208_v25  ;;  %5049 = vmatprep.mubr.msk.bf16.mxu0 %vm1146_vm2, %v5209_v26 }
 0x4d7   : > { %2314 = vmatprep.mubr.bf16.mxu1 %v5210_v16  ;;  %v6489_v16 = vpop.permute.xlu0 %1852 }
 0x4dd   : > { %5050 = vmatmul.mubr.msk.bf16.gmra.mxu0 %vm1146_vm2, %v5212_v29 }
 0x4de   : > { %2315 = vmatmul.mubr.bf16.gmra.mxu1 %v5213_v40 }
 0x545   : > { %v4601_v57 = vpop.f32.mrf.mxu0 }
 0x547   : > { %v4602_v49 = vpop.f32.mrf.mxu0 }
 0x548   : > { %v6441_v44 = vadd.f32 %v4602_v49, %v4601_v57  ;;  %v1838_v57 = vpop.permute.xlu1 %1837 }
 0x549   : > { %v6443_v51 = vpop.f32.mrf.mxu0 }
 0x54b   : > { %v6445_v2 = vpop.f32.mrf.mxu0 }
 0x54d   : > { %v4607_v5 = vpop.f32.mrf.mxu0 }
 0x54f   : > { %v4608_v60 = vpop.f32.mrf.mxu0 }
 0x550   : > { %v4609_v29 = vadd.f32 %v4608_v60, %v4607_v5 }
 0x551   : > { %v4610_v1 = vpop.f32.mrf.mxu0 }
 0x553   : > { %v4611_v30 = vpop.f32.mrf.mxu0 }
 0x555   : > { %v4613_v34 = vpop.f32.mrf.mxu0 }
 0x557   : > { %v4614_v10 = vpop.f32.mrf.mxu0 }
 0x558   : > { %v6447_v28 = vadd.f32 %v4614_v10, %v4613_v34 }
 0x559   : > { %v4616_v54 = vpop.f32.mrf.mxu0 }
 0x55b   : > { %v4617_v17 = vpop.f32.mrf.mxu0 }
 0x55c   : > { %v6451_v0 = vadd.f32 %v4617_v17, %v4616_v54  ;;  %v2172_v17 = vadd.f32 %v4609_v29, %v1838_v57 }
 0x55d   : > { %v4619_v33 = vpop.f32.mrf.mxu0 }
 0x55f   : > { %v4620_v21 = vpop.f32.mrf.mxu0 }
 0x560   : > { %v6455_v61 = vadd.f32 %v4620_v21, %v4619_v33  ;;  %v4612_v33 = vadd.f32 %v4611_v30, %v4610_v1  ;;  %v1828_v1 = vpop.permute.xlu1 %1827 }
 0x561   : > { %v4622_v8 = vpop.f32.mrf.mxu0  ;;  %v2164_v30 = vadd.f32 %v6441_v44, %v1828_v1 }
 0x563   : > { %v4623_v23 = vpop.f32.mrf.mxu0 }
 0x564   : > { %v6459_v45 = vadd.f32 %v4623_v23, %v4622_v8  ;;  %v1843_v8 = vpop.permute.xlu0 %1842 }
 0x565   : > { %v4625_v47 = vpop.f32.mrf.mxu0 }
 0x566   : > { %v4665_v37 = vpop.f32.mrf.mxu1 }
 0x567   : > { %v4626_v56 = vpop.f32.mrf.mxu0 }
 0x568   : > { %v6465_v41 = vadd.f32 %v4626_v56, %v4625_v47  ;;  %v4666_v24 = vpop.f32.mrf.mxu1 }
 0x569   : > { %v4628_v31 = vpop.f32.mrf.mxu0 }
 0x56a   : > { %v4668_v3 = vpop.f32.mrf.mxu1 }
 0x56b   : > { %v4629_v27 = vpop.f32.mrf.mxu0 }
 0x56c   : > { %v6469_v15 = vadd.f32 %v4629_v27, %v4628_v31  ;;  %v4669_v58 = vpop.f32.mrf.mxu1 }
 0x56d   : > { %v4631_v59 = vpop.f32.mrf.mxu0 }
 0x56e   : > { %v4671_v48 = vpop.f32.mrf.mxu1 }
 0x56f   : > { %v4632_v11 = vpop.f32.mrf.mxu0 }
 0x570   : > { %v6473_v53 = vadd.f32 %v4632_v11, %v4631_v59  ;;  %v4672_v19 = vpop.f32.mrf.mxu1  ;;  %v2175_v59 = vadd.f32 %v4612_v33, %v1843_v8 }
 0x571   : > { %v4634_v43 = vpop.f32.mrf.mxu0  ;;  %v4673_v49 = vadd.f32 %v4672_v19, %v4671_v48 }
 0x572   : > { %v4674_v42 = vpop.f32.mrf.mxu1 }
 0x573   : > { %v4635_v22 = vpop.f32.mrf.mxu0  ;;  %v2269_v56 = vadd.f32 %v4673_v49, %v2172_v17 }
 0x574   : > { %v6479_v36 = vadd.f32 %v4635_v22, %v4634_v43  ;;  %v4675_v25 = vpop.f32.mrf.mxu1 }
 0x575   : > { %v4637_v55 = vpop.f32.mrf.mxu0  ;;  %v4676_v23 = vadd.f32 %v4675_v25, %v4674_v42  ;;  %v1833_v25 = vpop.permute.xlu0 %1832 }
 0x576   : > { %v6493_v10 = vpop.f32.mrf.mxu1 }
 0x577   : > { %v4638_v46 = vpop.f32.mrf.mxu0  ;;  %v2272_v11 = vadd.f32 %v4676_v23, %v2175_v59  ;;  %v2191_v23 = vadd.f32 %v6459_v45, %v6481_v35 }
 0x578   : > { %v6483_v39 = vadd.f32 %v4638_v46, %v4637_v55  ;;  %v4678_v31 = vpop.f32.mrf.mxu1  ;;  %v4667_v55 = vadd.f32 %v4666_v24, %v4665_v37  ;;  %v4606_v46 = vadd.f32 %v6445_v2, %v6443_v51 }
 0x579   : > { %v4640_v38 = vpop.f32.mrf.mxu0  ;;  %v4679_v35 = vadd.f32 %v4678_v31, %v6493_v10  ;;  %v2183_v10 = vadd.f32 %v6451_v0, %v6489_v16 }
 0x57a   : > { %v4680_v48 = vpop.f32.mrf.mxu1 }
 0x57b   : > { %v4641_v63 = vpop.f32.mrf.mxu0 }
 0x57c   : > { %v6487_v7 = vadd.f32 %v4641_v63, %v4640_v38  ;;  %v4681_v19 = vpop.f32.mrf.mxu1  ;;  %v4670_v38 = vadd.f32 %v4669_v58, %v4668_v3  ;;  %v2261_v63 = vadd.f32 %v4667_v55, %v2164_v30  ;;  %v2188_v58 = vadd.f32 %v6455_v61, %v6477_v52 }
 0x57d   : > { %v4643_v26 = vpop.f32.mrf.mxu0  ;;  %v4682_v55 = vadd.f32 %v4681_v19, %v4680_v48 }
 0x57e   : > { %v4683_v42 = vpop.f32.mrf.mxu1 }
 0x57f   : > { %v4644_v40 = vpop.f32.mrf.mxu0 }
 0x580   : > { %v6491_v34 = vadd.f32 %v4644_v40, %v4643_v26  ;;  %v2167_v26 = vadd.f32 %v4606_v46, %v1833_v25  ;;  %v4684_v57 = vpop.f32.mrf.mxu1 }
 0x581   : > { %v4646_v54 = vpop.f32.mrf.mxu0  ;;  %v4685_v3 = vadd.f32 %v4684_v57, %v4683_v42 }
 0x582   : > { %v4686_v24 = vpop.f32.mrf.mxu1 }
 0x583   : > { %v4647_v21 = vpop.f32.mrf.mxu0  ;;  %v2285_v8 = vadd.f32 %v4685_v3, %v2188_v58  ;;  %v2196_v58 = vadd.f32 %v6465_v41, %v6471_v9 }
 0x584   : > { %v6495_v47 = vadd.f32 %v4647_v21, %v4646_v54  ;;  %v2264_v54 = vadd.f32 %v4670_v38, %v2167_v26  ;;  %v4687_v51 = vpop.f32.mrf.mxu1  ;;  %v2280_v38 = vadd.f32 %v4682_v55, %v2183_v10 }
 0x585   : > { %v5039_v27 = vpop.f32.mrf.mxu0  ;;  %v4688_v21 = vadd.f32 %v4687_v51, %v4686_v24 }
 0x586   : > { %v2366_v5 = vadd.f32 %v5039_v27, %v2269_v56  ;;  %v6516_v17 = vpop.f32.mrf.mxu1 }
 0x587   : > { %v2357_v60 = vpop.f32.mrf.mxu0  ;;  %v2288_v52 = vadd.f32 %v4688_v21, %v2191_v23 }
 0x588   : > { %5356 = vtanh.f32 %v2366_v5  ;;  %v2358_v29 = vadd.f32 %v2357_v60, %v2261_v63  ;;  %v6526_v59 = vpop.f32.mrf.mxu1  ;;  %v2204_v63 = vadd.f32 %v6473_v53, %v6463_v13 }
 0x589   : > { %v5040_v43 = vpop.f32.mrf.mxu0  ;;  %v4691_v3 = vadd.f32 %v6526_v59, %v6516_v17  ;;  %v2199_v17 = vadd.f32 %v6469_v15, %v6475_v14 }
 0x58a   : > { %v2369_v22 = vadd.f32 %v5040_v43, %v2272_v11  ;;  %v4692_v11 = vpop.f32.mrf.mxu1  ;;  %v2180_v43 = vadd.f32 %v6447_v28, %v6485_v4 }
 0x58b   : > { %v2360_v49 = vpop.f32.mrf.mxu0 }
 0x58c   : > { %5358 = vtanh.f32 %v2369_v22  ;;  %v2361_v37 = vadd.f32 %v2360_v49, %v2264_v54  ;;  %v4693_v45 = vpop.f32.mrf.mxu1  ;;  %v2277_v1 = vadd.f32 %v4679_v35, %v2180_v43  ;;  %v2207_v49 = vadd.f32 %v6479_v36, %v6467_v18 }
 0x58d   : > { %5360 = vtanh.f32 %v2358_v29  ;;  %v5043_v2 = vpop.f32.mrf.mxu0  ;;  %v4694_v21 = vadd.f32 %v4693_v45, %v4692_v11  ;;  %v2220_v11 = vadd.f32 %v6491_v34, %v6449_v50 }
 0x58e   : > { %5362 = vtanh.f32 %v2361_v37  ;;  %v2382_v56 = vadd.f32 %v5043_v2, %v2285_v8  ;;  %v4695_v22 = vpop.f32.mrf.mxu1  ;;  %v2293_v8 = vadd.f32 %v4691_v3, %v2196_v58 }
 0x58f   : > { %v2373_v33 = vpop.f32.mrf.mxu0 }
 0x590   : > { %5364 = vtanh.f32 %v2382_v56  ;;  %v2374_v31 = vadd.f32 %v2373_v33, %v2277_v1  ;;  %v4696_v46 = vpop.f32.mrf.mxu1 }
 0x591   : > { %v5044_v61 = vpop.f32.mrf.mxu0  ;;  %v4697_v0 = vadd.f32 %v4696_v46, %v4695_v22  ;;  %v2223_v22 = vadd.f32 %v6495_v47, %v6453_v32 }
 0x592   : > { %v2385_v5 = vadd.f32 %v5044_v61, %v2288_v52  ;;  %v4698_v48 = vpop.f32.mrf.mxu1  ;;  %v2296_v52 = vadd.f32 %v4694_v21, %v2199_v17 }
 0x593   : > { %v2376_v42 = vpop.f32.mrf.mxu0  ;;  %v2301_v26 = vadd.f32 %v4697_v0, %v2204_v63  ;;  %v2215_v0 = vadd.f32 %v6487_v7, %v6461_v6 }
 0x594   : > { %5366 = vtanh.f32 %v2385_v5  ;;  %v2377_v28 = vadd.f32 %v2376_v42, %v2280_v38  ;;  %v4699_v16 = vpop.f32.mrf.mxu1  ;;  %v2212_v42 = vadd.f32 %v6483_v39, %v6457_v62 }
 0x595   : > { %v6500_v40 = vpop.eup %5356  ;;  %5368 = vtanh.f32 %v2374_v31  ;;  %v5047_v19 = vpop.f32.mrf.mxu0  ;;  %v4700_v25 = vadd.f32 %v4699_v16, %v4698_v48 }
 0x596   : > { %2608 = vrot.lane.b32.xlu1 %v6500_v40, %s5452_s29  ;;  %5370 = vtanh.f32 %v2377_v28  ;;  %v6569_v29 = vpop.f32.mrf.mxu1  ;;  %v2398_v13 = vadd.f32 %v5047_v19, %v2301_v26 }
 0x597   : > { %v2389_v57 = vpop.f32.mrf.mxu0  ;;  %v2304_v53 = vadd.f32 %v4700_v25, %v2207_v49 }
 0x598   : > { %v6579_v37 = vpop.f32.mrf.mxu1  ;;  %5372 = vtanh.f32 %v2398_v13  ;;  %v2390_v23 = vadd.f32 %v2389_v57, %v2293_v8 }
 0x599   : > { %v6504_v44 = vpop.eup %5358  ;;  %v5048_v24 = vpop.f32.mrf.mxu0  ;;  %v4703_v46 = vadd.f32 %v6579_v37, %v6569_v29 }
 0x59a   : > { %2610 = vrot.lane.b32.xlu0 %v6504_v44, %s5452_s29  ;;  %2552 = vrot.lane.b32.xlu1 %v6500_v40, %s5454_s15  ;;  %v6524_v27 = vpop.eup %5360  ;;  %v2401_v18 = vadd.f32 %v5048_v24, %v2304_v53  ;;  %v6587_v51 = vpop.f32.mrf.mxu1 }
 0x59b   : > { %v6532_v60 = vpop.eup %5362  ;;  %v2392_v59 = vpop.f32.mrf.mxu0  ;;  %v2309_v48 = vadd.f32 %v4703_v46, %v2212_v42 }
 0x59c   : > { %5374 = vtanh.f32 %v2401_v18  ;;  %v4705_v2 = vpop.f32.mrf.mxu1  ;;  %v2393_v41 = vadd.f32 %v2392_v59, %v2296_v52  ;;  %v5219_v59 = vld [vmem:[%s7816_s8 + $0x4] ss:$36 sps:$4 sm:$0xff]  }
 0x59d   : > { %v6551_v30 = vpop.eup %5364  ;;  %5376 = vtanh.f32 %v2390_v23  ;;  %v5051_v45 = vpop.f32.mrf.mxu0  ;;  %v4706_v28 = vadd.f32 %v4705_v2, %v6587_v51  ;;  %3484 = vmatprep.mubr.bf16.mxu1 %v5219_v59 }
 0x59e   : > { %2554 = vrot.lane.b32.xlu0 %v6504_v44, %s5454_s15  ;;  %2496 = vrot.lane.b32.xlu1 %v6500_v40, %s5453_s30  ;;  %7841 = vst [vmem:[#allocation6_spill] sm:$0xff] %v6551_v30  ;;  %v4707_v33 = vpop.f32.mrf.mxu1  ;;  %5378 = vtanh.f32 %v2393_v41 }
 0x59f   : > { %v2405_v55 = vpop.f32.mrf.mxu0  ;;  %v2312_v63 = vadd.f32 %v4706_v28, %v2215_v0 }
 0x5a0   : > { %v4708_v61 = vpop.f32.mrf.mxu1  ;;  %v2406_v16 = vadd.f32 %v2405_v55, %v2309_v48 }
 0x5a1   : > { %v6557_v4 = vpop.eup %5366  ;;  %v4709_v15 = vadd.f32 %v4708_v61, %v4707_v33  ;;  %v5052_v10 = vpop.f32.mrf.mxu0  ;;  %v5216_v33 = vld [vmem:[%s7816_s8 + $0xc] ss:$36 sps:$4 sm:$0xff]  }
 0x5a2   : > { %2498 = vrot.lane.b32.xlu0 %v6504_v44, %s5453_s30  ;;  %2440 = vrot.lane.b32.xlu1 %v6500_v40, %s5456_s11  ;;  %v6577_v54 = vpop.eup %5368  ;;  %v4710_v5 = vpop.f32.mrf.mxu1 }
 0x5a3   : > { %7842 = vst [vmem:[#allocation7_spill] sm:$0xff] %v6577_v54  ;;  %v6585_v36 = vpop.eup %5370  ;;  %v2317_v35 = vadd.f32 %v4709_v15, %v2220_v11  ;;  %v2408_v19 = vpop.f32.mrf.mxu0  ;;  %3581 = vmatprep.mubr.bf16.mxu0 %v5216_v33 }
 0x5a4   : > { %v4711_v14 = vpop.f32.mrf.mxu1  ;;  %v2409_v62 = vadd.f32 %v2408_v19, %v2312_v63 }
 0x5a5   : > { %v6607_v56 = vpop.eup %5372  ;;  %v4712_v43 = vadd.f32 %v4711_v14, %v4710_v5  ;;  %v2414_v50 = vadd.f32 %v5051_v45, %v2317_v35 }
 0x5a6   : > { %2442 = vrot.lane.b32.xlu0 %v6504_v44, %s5456_s11  ;;  %2604 = vrot.lane.b32.xlu1 %v6524_v27, %s5452_s29  ;;  %7843 = vst [vmem:[#allocation8_spill] sm:$0xff] %v6607_v56 }
 0x5a7   : > { %v2320_v34 = vadd.f32 %v4712_v43, %v2223_v22  ;;  %5380 = vtanh.f32 %v2414_v50 }
 0x5a9   : > { %v6613_v9 = vpop.eup %5374  ;;  %v2417_v32 = vadd.f32 %v5052_v10, %v2320_v34 }
 0x5aa   : > { %2606 = vrot.lane.b32.xlu0 %v6532_v60, %s5452_s29  ;;  %2548 = vrot.lane.b32.xlu1 %v6524_v27, %s5454_s15  ;;  %7844 = vst [vmem:[#allocation9_spill] sm:$0xff] %v6613_v9  ;;  %v6631_v1 = vpop.eup %5376 }
 0x5ab   : > { %7845 = vst [vmem:[#allocation10_spill] sm:$0xff] %v6631_v1  ;;  %v6637_v47 = vpop.eup %5378  ;;  %5382 = vtanh.f32 %v2417_v32 }
 0x5ac   : > { %5384 = vtanh.f32 %v2406_v16 }
 0x5ad   : > { %5386 = vtanh.f32 %v2409_v62 }
 0x5ae   : > { %2550 = vrot.lane.b32.xlu0 %v6532_v60, %s5454_s15  ;;  %2492 = vrot.lane.b32.xlu1 %v6524_v27, %s5453_s30 }
 0x5b2   : > { %2494 = vrot.lane.b32.xlu0 %v6532_v60, %s5453_s30  ;;  %2436 = vrot.lane.b32.xlu1 %v6524_v27, %s5456_s11 }
 0x5b4   : > { %v6651_v31 = vpop.eup %5380 }
 0x5b5   : > { %7846 = vst [vmem:[#allocation11_spill] sm:$0xff] %v6651_v31 }
 0x5b6   : > { %2438 = vrot.lane.b32.xlu0 %v6532_v60, %s5456_s11  ;;  %2616 = vrot.lane.b32.xlu1 %v6551_v30, %s5452_s29 }
 0x5b8   : > { %v6661_v38 = vpop.eup %5382 }
 0x5b9   : > { %v6692_v25 = vpop.eup %5384 }
 0x5ba   : > { %2618 = vrot.lane.b32.xlu0 %v6557_v4, %s5452_s29  ;;  %2560 = vrot.lane.b32.xlu1 %v6551_v30, %s5454_s15  ;;  %7847 = vst [vmem:[#allocation12_spill] sm:$0xff] %v6692_v25  ;;  %v6702_v57 = vpop.eup %5386 }
 0x5bb   : > { %7849 = vst [vmem:[#allocation14_spill] sm:$0xff] %v6702_v57 }
 0x5be   : > { %2562 = vrot.lane.b32.xlu0 %v6557_v4, %s5454_s15  ;;  %2504 = vrot.lane.b32.xlu1 %v6551_v30, %s5453_s30 }
 0x5c2   : > { %2506 = vrot.lane.b32.xlu0 %v6557_v4, %s5453_s30  ;;  %2448 = vrot.lane.b32.xlu1 %v6551_v30, %s5456_s11 }
 0x5c6   : > { %2450 = vrot.lane.b32.xlu0 %v6557_v4, %s5456_s11  ;;  %2612 = vrot.lane.b32.xlu1 %v6577_v54, %s5452_s29 }
 0x5ca   : > { %2614 = vrot.lane.b32.xlu0 %v6585_v36, %s5452_s29  ;;  %2556 = vrot.lane.b32.xlu1 %v6577_v54, %s5454_s15 }
 0x5ce   : > { %2558 = vrot.lane.b32.xlu0 %v6585_v36, %s5454_s15  ;;  %2500 = vrot.lane.b32.xlu1 %v6577_v54, %s5453_s30 }
 0x5d2   : > { %2502 = vrot.lane.b32.xlu0 %v6585_v36, %s5453_s30  ;;  %2444 = vrot.lane.b32.xlu1 %v6577_v54, %s5456_s11 }
 0x5d6   : > { %2446 = vrot.lane.b32.xlu0 %v6585_v36, %s5456_s11  ;;  %2624 = vrot.lane.b32.xlu1 %v6607_v56, %s5452_s29 }
 0x5da   : > { %2626 = vrot.lane.b32.xlu0 %v6613_v9, %s5452_s29  ;;  %2568 = vrot.lane.b32.xlu1 %v6607_v56, %s5454_s15 }
 0x5de   : > { %2570 = vrot.lane.b32.xlu0 %v6613_v9, %s5454_s15  ;;  %2512 = vrot.lane.b32.xlu1 %v6607_v56, %s5453_s30 }
 0x5e2   : > { %2514 = vrot.lane.b32.xlu0 %v6613_v9, %s5453_s30  ;;  %2456 = vrot.lane.b32.xlu1 %v6607_v56, %s5456_s11 }
 0x5e6   : > { %2458 = vrot.lane.b32.xlu0 %v6613_v9, %s5456_s11  ;;  %2620 = vrot.lane.b32.xlu1 %v6631_v1, %s5452_s29 }
 0x5ea   : > { %2622 = vrot.lane.b32.xlu0 %v6637_v47, %s5452_s29  ;;  %2564 = vrot.lane.b32.xlu1 %v6631_v1, %s5454_s15 }
 0x5ee   : > { %2566 = vrot.lane.b32.xlu0 %v6637_v47, %s5454_s15  ;;  %2508 = vrot.lane.b32.xlu1 %v6631_v1, %s5453_s30 }
 0x5f2   : > { %2510 = vrot.lane.b32.xlu0 %v6637_v47, %s5453_s30  ;;  %2452 = vrot.lane.b32.xlu1 %v6631_v1, %s5456_s11 }
 0x5f6   : > { %2454 = vrot.lane.b32.xlu0 %v6637_v47, %s5456_s11  ;;  %2632 = vrot.lane.b32.xlu1 %v6651_v31, %s5452_s29 }
 0x5fa   : > { %2634 = vrot.lane.b32.xlu0 %v6661_v38, %s5452_s29  ;;  %2576 = vrot.lane.b32.xlu1 %v6651_v31, %s5454_s15 }
 0x5fe   : > { %2578 = vrot.lane.b32.xlu0 %v6661_v38, %s5454_s15  ;;  %2520 = vrot.lane.b32.xlu1 %v6651_v31, %s5453_s30 }
 0x602   : > { %2522 = vrot.lane.b32.xlu0 %v6661_v38, %s5453_s30  ;;  %2464 = vrot.lane.b32.xlu1 %v6651_v31, %s5456_s11 }
 0x606   : > { %2466 = vrot.lane.b32.xlu0 %v6661_v38, %s5456_s11  ;;  %2824 = vrot.lane.b32.xlu1 %v6651_v31, %s5455_s16 }
 0x608   : > { %v6682_v6 = vpop.permute.xlu1 %2608 }
 0x60a   : > { %2826 = vrot.lane.b32.xlu0 %v6661_v38, %s5455_s16  ;;  %2768 = vrot.lane.b32.xlu1 %v6651_v31, %s5458_s21 }
 0x60c   : > { %v6688_v39 = vpop.permute.xlu0 %2610  ;;  %v6690_v7 = vpop.permute.xlu1 %2552 }
 0x60e   : > { %2770 = vrot.lane.b32.xlu0 %v6661_v38, %s5458_s21  ;;  %2628 = vrot.lane.b32.xlu1 %v6692_v25, %s5452_s29 }
 0x610   : > { %v6698_v26 = vpop.permute.xlu0 %2554  ;;  %v6700_v29 = vpop.permute.xlu1 %2496 }
 0x611   : > { %7848 = vst [vmem:[#allocation13_spill] sm:$0xff] %v6700_v29 }
 0x612   : > { %2630 = vrot.lane.b32.xlu0 %v6702_v57, %s5452_s29  ;;  %2572 = vrot.lane.b32.xlu1 %v6692_v25, %s5454_s15  ;;  %s7854_s29 = smov 127  }
 0x614   : > { %v6708_v49 = vpop.permute.xlu0 %2498  ;;  %v6710_v13 = vpop.permute.xlu1 %2440 }
 0x615   : > { %7850 = vst [vmem:[#allocation15_spill] sm:$0xff] %v6708_v49  ;;  %7851 = vst [vmem:[#allocation16_spill] sm:$0xff] %v6710_v13  ;;  %v6902_v49 = vld [vmem:[%s7809_s1 + $0x2] ss:$0 sm:$0xff] }
 0x616   : > { %2574 = vrot.lane.b32.xlu0 %v6702_v57, %s5454_s15  ;;  %2516 = vrot.lane.b32.xlu1 %v6692_v25, %s5453_s30 }
 0x618   : > { %v6716_v53 = vpop.permute.xlu0 %2442  ;;  %v6718_v37 = vpop.permute.xlu1 %2604 }
 0x619   : > { %7852 = vst [vmem:[#allocation17_spill] sm:$0xff] %v6716_v53 }
 0x61a   : > { %2518 = vrot.lane.b32.xlu0 %v6702_v57, %s5453_s30  ;;  %2460 = vrot.lane.b32.xlu1 %v6692_v25, %s5456_s11 }
 0x61c   : > { %v6724_v24 = vpop.permute.xlu0 %2606  ;;  %v6726_v18 = vpop.permute.xlu1 %2548 }
 0x61d   : > { %7853 = vst [vmem:[#allocation18_spill] sm:$0xff] %v6726_v18 }
 0x61e   : > { %2462 = vrot.lane.b32.xlu0 %v6702_v57, %s5456_s11  ;;  %2712 = vrot.lane.b32.xlu1 %v6651_v31, %s7854_s29 }
 0x620   : > { %v6732_v51 = vpop.permute.xlu0 %2550  ;;  %v6734_v2 = vpop.permute.xlu1 %2492 }
 0x621   : > { %7855 = vst [vmem:[#allocation19_spill] sm:$0xff] %v6732_v51  ;;  %7856 = vst [vmem:[#allocation20_spill] sm:$0xff] %v6734_v2 }
 0x622   : > { %2714 = vrot.lane.b32.xlu0 %v6661_v38, %s7854_s29  ;;  %2820 = vrot.lane.b32.xlu1 %v6692_v25, %s5455_s16 }
 0x624   : > { %v6740_v3 = vpop.permute.xlu0 %2494  ;;  %v6742_v58 = vpop.permute.xlu1 %2436 }
 0x625   : > { %7857 = vst [vmem:[#allocation21_spill] sm:$0xff] %v6740_v3  ;;  %7858 = vst [vmem:[#allocation22_spill] sm:$0xff] %v6742_v58  ;;  %v6891_v3 = vld [vmem:[%s7809_s1 + $0x3] ss:$0 sm:$0xff] }
 0x626   : > { %2818 = vrot.lane.b32.xlu0 %v6613_v9, %s5455_s16  ;;  %2764 = vrot.lane.b32.xlu1 %v6692_v25, %s5458_s21 }
 0x628   : > { %v6751_v21 = vpop.permute.xlu0 %2438  ;;  %v6753_v8 = vpop.permute.xlu1 %2616 }
 0x629   : > { %7859 = vst [vmem:[#allocation23_spill] sm:$0xff] %v6751_v21 }
 0x62a   : > { %2762 = vrot.lane.b32.xlu0 %v6613_v9, %s5458_s21  ;;  %2816 = vrot.lane.b32.xlu1 %v6607_v56, %s5455_s16 }
 0x62c   : > { %v6759_v17 = vpop.permute.xlu0 %2618  ;;  %v6761_v23 = vpop.permute.xlu1 %2560 }
 0x62e   : > { %2814 = vrot.lane.b32.xlu0 %v6637_v47, %s5455_s16  ;;  %2760 = vrot.lane.b32.xlu1 %v6607_v56, %s5458_s21 }
 0x630   : > { %v6770_v61 = vpop.permute.xlu0 %2562  ;;  %v6772_v52 = vpop.permute.xlu1 %2504 }
 0x632   : > { %2758 = vrot.lane.b32.xlu0 %v6637_v47, %s5458_s21  ;;  %2708 = vrot.lane.b32.xlu1 %v6692_v25, %s7854_s29 }
 0x634   : > { %v6778_v41 = vpop.permute.xlu0 %2506  ;;  %v6780_v5 = vpop.permute.xlu1 %2448 }
 0x636   : > { %2706 = vrot.lane.b32.xlu0 %v6613_v9, %s7854_s29  ;;  %2812 = vrot.lane.b32.xlu1 %v6631_v1, %s5455_s16 }
 0x638   : > { %v6786_v15 = vpop.permute.xlu0 %2450  ;;  %v6788_v14 = vpop.permute.xlu1 %2612 }
 0x63a   : > { %2810 = vrot.lane.b32.xlu0 %v6557_v4, %s5455_s16  ;;  %2756 = vrot.lane.b32.xlu1 %v6631_v1, %s5458_s21 }
 0x63c   : > { %v6794_v11 = vpop.permute.xlu0 %2614  ;;  %v6796_v45 = vpop.permute.xlu1 %2556 }
 0x63e   : > { %2754 = vrot.lane.b32.xlu0 %v6557_v4, %s5458_s21  ;;  %2704 = vrot.lane.b32.xlu1 %v6607_v56, %s7854_s29 }
 0x640   : > { %v6802_v35 = vpop.permute.xlu0 %2558  ;;  %v6804_v43 = vpop.permute.xlu1 %2500 }
 0x641   : > { %7860 = vst [vmem:[#allocation24_spill] sm:$0xff] %v6804_v43  ;;  %v6913_v43 = vld [vmem:[%s7809_s1 + $0x1] ss:$0 sm:$0xff] }
 0x642   : > { %2702 = vrot.lane.b32.xlu0 %v6637_v47, %s7854_s29  ;;  %2808 = vrot.lane.b32.xlu1 %v6551_v30, %s5455_s16 }
 0x644   : > { %v6810_v22 = vpop.permute.xlu0 %2502  ;;  %v6812_v55 = vpop.permute.xlu1 %2444 }
 0x645   : > { %7861 = vst [vmem:[#allocation25_spill] sm:$0xff] %v6812_v55 }
 0x646   : > { %2806 = vrot.lane.b32.xlu0 %v6585_v36, %s5455_s16  ;;  %2752 = vrot.lane.b32.xlu1 %v6551_v30, %s5458_s21 }
 0x648   : > { %v6818_v50 = vpop.permute.xlu0 %2446  ;;  %v6820_v34 = vpop.permute.xlu1 %2624 }
 0x649   : > { %7862 = vst [vmem:[#allocation26_spill] sm:$0xff] %v6818_v50 }
 0x64a   : > { %2750 = vrot.lane.b32.xlu0 %v6585_v36, %s5458_s21  ;;  %2700 = vrot.lane.b32.xlu1 %v6631_v1, %s7854_s29 }
 0x64c   : > { %v6826_v10 = vpop.permute.xlu0 %2626  ;;  %v6828_v32 = vpop.permute.xlu1 %2568 }
 0x64e   : > { %2698 = vrot.lane.b32.xlu0 %v6557_v4, %s7854_s29  ;;  %2804 = vrot.lane.b32.xlu1 %v6577_v54, %s5455_s16 }
 0x650   : > { %v6834_v46 = vpop.permute.xlu0 %2570  ;;  %v6836_v42 = vpop.permute.xlu1 %2512 }
 0x652   : > { %2822 = vrot.lane.b32.xlu0 %v6702_v57, %s5455_s16  ;;  %2748 = vrot.lane.b32.xlu1 %v6577_v54, %s5458_s21 }
 0x654   : > { %v6842_v28 = vpop.permute.xlu0 %2514  ;;  %v6844_v48 = vpop.permute.xlu1 %2456 }
 0x656   : > { %2766 = vrot.lane.b32.xlu0 %v6702_v57, %s5458_s21  ;;  %2696 = vrot.lane.b32.xlu1 %v6551_v30, %s7854_s29 }
 0x658   : > { %v6850_v0 = vpop.permute.xlu0 %2458  ;;  %v6852_v16 = vpop.permute.xlu1 %2620 }
 0x65a   : > { %2802 = vrot.lane.b32.xlu0 %v6504_v44, %s5455_s16  ;;  %2800 = vrot.lane.b32.xlu1 %v6500_v40, %s5455_s16 }
 0x65c   : > { %v6858_v19 = vpop.permute.xlu0 %2622  ;;  %v6860_v63 = vpop.permute.xlu1 %2564 }
 0x65e   : > { %2710 = vrot.lane.b32.xlu0 %v6702_v57, %s7854_s29  ;;  %2744 = vrot.lane.b32.xlu1 %v6500_v40, %s5458_s21 }
 0x660   : > { %v6866_v62 = vpop.permute.xlu0 %2566  ;;  %v6868_v33 = vpop.permute.xlu1 %2508 }
 0x662   : > { %2746 = vrot.lane.b32.xlu0 %v6504_v44, %s5458_s21  ;;  %2692 = vrot.lane.b32.xlu1 %v6577_v54, %s7854_s29 }
 0x664   : > { %v6874_v59 = vpop.permute.xlu0 %2510  ;;  %v6876_v20 = vpop.permute.xlu1 %2452 }
 0x666   : > { %2694 = vrot.lane.b32.xlu0 %v6585_v36, %s7854_s29  ;;  %2796 = vrot.lane.b32.xlu1 %v6524_v27, %s5455_s16 }
 0x668   : > { %v6882_v12 = vpop.permute.xlu0 %2454  ;;  %v2633_v58 = vpop.permute.xlu1 %2632 }
 0x669   : > { %v2650_v13 = vmul.f32 %v6891_v3, %v2633_v58 }
 0x66a   : > { %2798 = vrot.lane.b32.xlu0 %v6532_v60, %s5455_s16  ;;  %2740 = vrot.lane.b32.xlu1 %v6524_v27, %s5458_s21  ;;  %s471_s16 = scalar_lea.vmem %s7821_s14, %s4457_s28 }
 0x66c   : > { %v2635_v21 = vpop.permute.xlu0 %2634  ;;  %v2577_v2 = vpop.permute.xlu1 %2576 }
 0x66d   : > { %v2651_v53 = vmul.f32 %v6891_v3, %v2635_v21  ;;  %v2594_v50 = vmul.f32 %v6902_v49, %v2577_v2 }
 0x66e   : > { %2742 = vrot.lane.b32.xlu0 %v6532_v60, %s5458_s21  ;;  %2688 = vrot.lane.b32.xlu1 %v6500_v40, %s7854_s29 }
 0x66f   : > { %v2659_v29 = vpack.c.bf16 %v2651_v53, %v2650_v13 }
 0x670   : > { %v2579_v55 = vpop.permute.xlu0 %2578  ;;  %v2521_v18 = vpop.permute.xlu1 %2520 }
 0x671   : > { %v2595_v58 = vmul.f32 %v6902_v49, %v2579_v55  ;;  %4789 = vmatprep.subr.bf16.mxu0 %v2659_v29  ;;  %v2538_v51 = vmul.f32 %v6913_v43, %v2521_v18 }
 0x672   : > { %2690 = vrot.lane.b32.xlu0 %v6504_v44, %s7854_s29  ;;  %2684 = vrot.lane.b32.xlu1 %v6524_v27, %s7854_s29 }
 0x673   : > { %v2603_v21 = vpack.c.bf16 %v2595_v58, %v2594_v50  ;;  %v6926_v58 = vld [vmem:[%s7809_s1] ss:$0 sm:$0xff] }
 0x674   : > { %v2523_v13 = vpop.permute.xlu0 %2522  ;;  %v2465_v53 = vpop.permute.xlu1 %2464 }
 0x675   : > { %v2539_v2 = vmul.f32 %v6913_v43, %v2523_v13  ;;  %4790 = vmatpush3.bf16.msra.mxu0 %v2603_v21  ;;  %v2482_v18 = vmul.f32 %v6926_v58, %v2465_v53 }
 0x676   : > { %2686 = vrot.lane.b32.xlu0 %v6532_v60, %s7854_s29  ;;  %2880 = vrot.lane.b32.xlu1 %v6651_v31, %s7863_s25 }
 0x677   : > { %v2547_v29 = vpack.c.bf16 %v2539_v2, %v2538_v51 }
 0x678   : > { %v2467_v55 = vpop.permute.xlu0 %2466  ;;  %v6921_v50 = vpop.permute.xlu1 %2824 }
 0x679   : > { %v2483_v13 = vmul.f32 %v6926_v58, %v2467_v55  ;;  %4725 = vmatprep.subr.bf16.mxu1 %v2547_v29 }
 0x67a   : > { %2882 = vrot.lane.b32.xlu0 %v6661_v38, %s7863_s25  ;;  %2876 = vrot.lane.b32.xlu1 %v6692_v25, %s7863_s25 }
 0x67b   : > { %v2491_v51 = vpack.c.bf16 %v2483_v13, %v2482_v18 }
 0x67c   : > { %v6934_v21 = vpop.permute.xlu0 %2826  ;;  %v6936_v2 = vpop.permute.xlu1 %2768 }
 0x67d   : > { %4726 = vmatpush3.bf16.msra.mxu1 %v2491_v51 }
 0x67e   : > { %2878 = vrot.lane.b32.xlu0 %v6702_v57, %s7863_s25  ;;  %2872 = vrot.lane.b32.xlu1 %v6607_v56, %s7863_s25 }
 0x680   : > { %v6942_v53 = vpop.permute.xlu0 %2770  ;;  %v2629_v29 = vpop.permute.xlu1 %2628 }
 0x681   : > { %v2648_v13 = vmul.f32 %v6891_v3, %v2629_v29  ;;  %v2646_v29 = vmul.f32 %v6891_v3, %v6820_v34 }
 0x682   : > { %2874 = vrot.lane.b32.xlu0 %v6613_v9, %s7863_s25  ;;  %2868 = vrot.lane.b32.xlu1 %v6631_v1, %s7863_s25  ;;  %v2647_v9 = vmul.f32 %v6891_v3, %v6826_v10  ;;  %v2590_v10 = vmul.f32 %v6902_v49, %v6828_v32  ;;  %v2535_v32 = vmul.f32 %v6913_v43, %v6842_v28 }
 0x683   : > { %v2479_v28 = vmul.f32 %v6926_v58, %v6850_v0  ;;  %v2478_v0 = vmul.f32 %v6926_v58, %v6844_v48  ;;  %v2532_v48 = vmul.f32 %v6913_v43, %v6868_v33  ;;  %v2584_v33 = vmul.f32 %v6902_v49, %v6796_v45 }
 0x684   : > { %v2631_v55 = vpop.permute.xlu0 %2630  ;;  %v2573_v18 = vpop.permute.xlu1 %2572  ;;  %v2530_v45 = vmul.f32 %v6913_v43, %v6772_v52  ;;  %v2582_v52 = vmul.f32 %v6902_v49, %v6690_v7  ;;  %v2636_v7 = vmul.f32 %v6891_v3, %v6718_v37  ;;  %v2994_v37 = vld [vmem:[%s7817_s9 + $0x30] sm:$0xff] }
 0x685   : > { %v2649_v51 = vmul.f32 %v6891_v3, %v2631_v55  ;;  %v2592_v1 = vmul.f32 %v6902_v49, %v2573_v18  ;;  %v2591_v55 = vmul.f32 %v6902_v49, %v6834_v46  ;;  %v2588_v46 = vmul.f32 %v6902_v49, %v6860_v63 }
 0x686   : > { %2870 = vrot.lane.b32.xlu0 %v6637_v47, %s7863_s25  ;;  %2864 = vrot.lane.b32.xlu1 %v6551_v30, %s7863_s25 }
 0x687   : > { %v2658_v56 = vpack.c.bf16 %v2649_v51, %v2648_v13 }
 0x688   : > { %v2575_v25 = vpop.permute.xlu0 %2574  ;;  %v2517_v57 = vpop.permute.xlu1 %2516 }
 0x689   : > { %v2593_v31 = vmul.f32 %v6902_v49, %v2575_v25  ;;  %4791 = vmatprep.subr.bf16.mxu0 %v2658_v56  ;;  %v2657_v25 = vpack.c.bf16 %v2647_v9, %v2646_v29  ;;  %v2645_v56 = vmul.f32 %v6891_v3, %v6858_v19  ;;  %v2536_v30 = vmul.f32 %v6913_v43, %v2517_v57 }
 0x68a   : > { %2866 = vrot.lane.b32.xlu0 %v6557_v4, %s7863_s25  ;;  %2860 = vrot.lane.b32.xlu1 %v6577_v54, %s7863_s25  ;;  %v2589_v9 = vmul.f32 %v6902_v49, %v6866_v62  ;;  %v2643_v57 = vmul.f32 %v6891_v3, %v6759_v17  ;;  %v2534_v17 = vmul.f32 %v6913_v43, %v6836_v42 }
 0x68b   : > { %v2602_v13 = vpack.c.bf16 %v2593_v31, %v2592_v1  ;;  %v2601_v1 = vpack.c.bf16 %v2591_v55, %v2590_v10  ;;  %v2644_v31 = vmul.f32 %v6891_v3, %v6852_v16  ;;  %v2586_v10 = vmul.f32 %v6902_v49, %v6761_v23 }
 0x68c   : > { %v2519_v18 = vpop.permute.xlu0 %2518  ;;  %v2461_v51 = vpop.permute.xlu1 %2460  ;;  %v2600_v63 = vpack.c.bf16 %v2589_v9, %v2588_v46  ;;  %v2640_v23 = vmul.f32 %v6891_v3, %v6788_v14  ;;  %v2989_v14 = vld [vmem:[%s7817_s9 + $0x8] sm:$0xff]  ;;  %v2639_v9 = vmul.f32 %v6891_v3, %v6688_v39  ;;  %v2638_v39 = vmul.f32 %v6891_v3, %v6682_v6  ;;  %v2992_v6 = vld [vmem:[%s7817_s9 + $0x20] sm:$0xff] }
 0x68d   : > { %v2537_v54 = vmul.f32 %v6913_v43, %v2519_v18  ;;  %4792 = vmatpush3.bf16.msra.mxu0 %v2602_v13  ;;  %v2656_v55 = vpack.c.bf16 %v2645_v56, %v2644_v31  ;;  %v2480_v16 = vmul.f32 %v6926_v58, %v2461_v51  ;;  %v2641_v18 = vmul.f32 %v6891_v3, %v6794_v11 }
 0x68e   : > { %2862 = vrot.lane.b32.xlu0 %v6585_v36, %s7863_s25  ;;  %2856 = vrot.lane.b32.xlu1 %v6500_v40, %s7863_s25  ;;  %v2533_v56 = vmul.f32 %v6913_v43, %v6874_v59  ;;  %v2585_v11 = vmul.f32 %v6902_v49, %v6802_v35  ;;  %v2489_v31 = vpack.c.bf16 %v2479_v28, %v2478_v0  ;;  %v2990_v35 = vld [vmem:[%s7817_s9 + $0x10] sm:$0xff] }
 0x68f   : > { %v2546_v34 = vpack.c.bf16 %v2537_v54, %v2536_v30  ;;  %4793 = vmatprep.subr.bf16.mxu0 %v2657_v25  ;;  %v2642_v30 = vmul.f32 %v6891_v3, %v6753_v8  ;;  %v2587_v54 = vmul.f32 %v6902_v49, %v6770_v61  ;;  %v2988_v8 = vld [vmem:[%s7817_s9] sm:$0xff]  ;;  %v2545_v25 = vpack.c.bf16 %v2535_v32, %v2534_v17 }
 0x690   : > { %v2463_v19 = vpop.permute.xlu0 %2462  ;;  %v6986_v29 = vpop.permute.xlu1 %2712  ;;  %v2477_v59 = vmul.f32 %v6926_v58, %v6882_v12  ;;  %v2654_v32 = vpack.c.bf16 %v2641_v18, %v2640_v23  ;;  %v2544_v46 = vpack.c.bf16 %v2533_v56, %v2532_v48  ;;  %v2474_v28 = vmul.f32 %v6926_v58, %v6780_v5 }
 0x691   : > { %v2481_v13 = vmul.f32 %v6926_v58, %v2463_v19  ;;  %4727 = vmatprep.subr.bf16.mxu1 %v2546_v34  ;;  %4794 = vmatpush3.bf16.msra.mxu0 %v2601_v1  ;;  %v2655_v61 = vpack.c.bf16 %v2643_v57, %v2642_v30  ;;  %v2599_v1 = vpack.c.bf16 %v2587_v54, %v2586_v10  ;;  %v7865_v10 = vld [vmem:[#allocation24_spill] sm:$0xff] }
 0x692   : > { %2858 = vrot.lane.b32.xlu0 %v6504_v44, %s7863_s25  ;;  %2852 = vrot.lane.b32.xlu1 %v6524_v27, %s7863_s25  ;;  %v2531_v34 = vmul.f32 %v6913_v43, %v6778_v41  ;;  %v2476_v19 = vmul.f32 %v6926_v58, %v6876_v20  ;;  %v2583_v41 = vmul.f32 %v6902_v49, %v6698_v26  ;;  %v2991_v20 = vld [vmem:[%s7817_s9 + $0x18] sm:$0xff] }
 0x693   : > { %v2490_v62 = vpack.c.bf16 %v2481_v13, %v2480_v16  ;;  %4795 = vmatprep.subr.bf16.mxu0 %v2656_v55  ;;  %v2475_v55 = vmul.f32 %v6926_v58, %v6786_v15  ;;  %v2598_v16 = vpack.c.bf16 %v2585_v11, %v2584_v33  ;;  %v2653_v26 = vpack.c.bf16 %v2639_v9, %v2638_v39  ;;  %v7871_v33 = vld [vmem:[#allocation17_spill] sm:$0xff] }
 0x694   : > { %v7009_v51 = vpop.permute.xlu0 %2714  ;;  %v7011_v42 = vpop.permute.xlu1 %2820  ;;  %v2488_v13 = vpack.c.bf16 %v2477_v59, %v2476_v19  ;;  %v2637_v30 = vmul.f32 %v6891_v3, %v6724_v24  ;;  %v2543_v17 = vpack.c.bf16 %v2531_v34, %v2530_v45  ;;  %v2528_v18 = vmul.f32 %v6913_v43, %v7865_v10  ;;  %v7867_v3 = vld [vmem:[#allocation15_spill] sm:$0xff]  ;;  %v7869_v59 = vld [vmem:[#allocation25_spill] sm:$0xff] }
 0x695   : > { %4728 = vmatpush3.bf16.msra.mxu1 %v2490_v62  ;;  %4796 = vmatpush3.bf16.msra.mxu0 %v2600_v63  ;;  %v2529_v63 = vmul.f32 %v6913_v43, %v6810_v22  ;;  %v2597_v62 = vpack.c.bf16 %v2583_v41, %v2582_v52  ;;  %v2993_v22 = vld [vmem:[%s7817_s9 + $0x28] sm:$0xff]  ;;  %v2527_v0 = vmul.f32 %v6913_v43, %v7867_v3  ;;  %v7111_v41 = vld [vmem:[%s7809_s1 + $0x6] ss:$0 sm:$0xff]  ;;  %v2995_v45 = vld [vmem:[%s7817_s9 + $0x38] sm:$0xff] }
 0x696   : > { %2854 = vrot.lane.b32.xlu0 %v6532_v60, %s7863_s25  ;;  %3006 = vperm.xlu1 %5121, %v2988_v8   ;;  %v7864_v8 = vld [vmem:[#allocation19_spill] sm:$0xff]  ;;  %v2652_v56 = vpack.c.bf16 %v2637_v30, %v2636_v7  ;;  %v7870_v34 = vld [vmem:[#allocation13_spill] sm:$0xff] }
 0x697   : > { %4729 = vmatprep.subr.bf16.mxu1 %v2545_v25  ;;  %4797 = vmatprep.subr.bf16.mxu0 %v2655_v61  ;;  %v2581_v24 = vmul.f32 %v6902_v49, %v7864_v8  ;;  %v2487_v61 = vpack.c.bf16 %v2475_v55, %v2474_v28  ;;  %v7866_v25 = vld [vmem:[#allocation26_spill] sm:$0xff]  ;;  %v2542_v48 = vpack.c.bf16 %v2529_v63, %v2528_v18  ;;  %v2996_v55 = vld [vmem:[%s7817_s9 + $0x40] sm:$0xff] }
 0x698   : > { %v7039_v12 = vpop.permute.xlu0 %2818  ;;  %v7041_v57 = vpop.permute.xlu1 %2764  ;;  %v2473_v5 = vmul.f32 %v6926_v58, %v7866_v25  ;;  %v7874_v63 = vld [vmem:[#allocation20_spill] sm:$0xff]  ;;  %v7875_v7 = vld [vmem:[#allocation23_spill] sm:$0xff] }
 0x699   : > { %4730 = vmatpush3.bf16.msra.mxu1 %v2489_v31  ;;  %4798 = vmatpush3.bf16.msra.mxu0 %v2599_v1  ;;  %v7868_v1 = vld [vmem:[#allocation18_spill] sm:$0xff]  ;;  %v2469_v8 = vmul.f32 %v6926_v58, %v7875_v7  ;;  %v3957_v7 = vld [vmem:[%s7820_s12 + $0x20] sm:$0xff] }
 0x69a   : > { %3011 = vperm.xlu0 %5120, %v2989_v14   ;;  %3016 = vperm.xlu1 %5121, %v2990_v35   ;;  %v2580_v23 = vmul.f32 %v6902_v49, %v7868_v1  ;;  %v2472_v14 = vmul.f32 %v6926_v58, %v7869_v59  ;;  %v7098_v35 = vld [vmem:[%s7809_s1 + $0x7] ss:$0 sm:$0xff]  ;;  %v2526_v49 = vmul.f32 %v6913_v43, %v7870_v34  ;;  %v5220_v10 = vld [vmem:[%s7816_s8 + $0x54] ss:$36 sps:$4 sm:$0xff]  }
 0x69b   : > { %4731 = vmatprep.subr.bf16.mxu1 %v2544_v46  ;;  %4799 = vmatprep.subr.bf16.mxu0 %v2654_v32  ;;  %v2843_v9 = vmul.f32 %v7098_v35, %v6934_v21  ;;  %v2471_v32 = vmul.f32 %v6926_v58, %v7871_v33  ;;  %v2842_v39 = vmul.f32 %v7098_v35, %v6921_v50  ;;  %v7872_v50 = vld [vmem:[#allocation16_spill] sm:$0xff]  ;;  %v7878_v34 = vld [vmem:[#allocation11_spill] sm:$0xff] }
 0x69c   : > { %v7063_v15 = vpop.permute.xlu0 %2762  ;;  %v7065_v54 = vpop.permute.xlu1 %2816  ;;  %v2596_v46 = vpack.c.bf16 %v2581_v24, %v2580_v23  ;;  %v2486_v19 = vpack.c.bf16 %v2473_v5, %v2472_v14  ;;  %v2787_v21 = vmul.f32 %v7111_v41, %v6942_v53  ;;  %v5214_v53 = vld [vmem:[%s7816_s8 + $0x8] ss:$36 sps:$4 sm:$0xff]   ;;  %v7876_v5 = vld [vmem:[#allocation22_spill] sm:$0xff]  ;;  %v3000_v1 = vld [vmem:[%s7817_s9 + $0x60] sm:$0xff] }
 0x69d   : > { %4732 = vmatpush3.bf16.msra.mxu1 %v2488_v13  ;;  %4800 = vmatpush3.bf16.msra.mxu0 %v2598_v16  ;;  %v2541_v16 = vpack.c.bf16 %v2527_v0, %v2526_v49  ;;  %v2470_v13 = vmul.f32 %v6926_v58, %v7872_v50  ;;  %v2851_v30 = vpack.c.bf16 %v2843_v9, %v2842_v39  ;;  %v7877_v23 = vld [vmem:[#allocation5_spill] sm:$0xff] }
 0x69e   : > { %3021 = vperm.xlu0 %5120, %v2991_v20   ;;  %3026 = vperm.xlu1 %5121, %v2992_v6   ;;  %v5222_v14 = vld [vmem:[%s7816_s8 + $0x50] ss:$36 sps:$4 sm:$0xff]   ;;  %v2674_v49 = vmul.f32 %v7878_v34, %v7877_v23 }
 0x69f   : > { %4733 = vmatprep.subr.bf16.mxu1 %v2543_v17  ;;  %4801 = vmatprep.subr.bf16.mxu0 %v2653_v26  ;;  %v7873_v26 = vld [vmem:[#allocation21_spill] sm:$0xff]  ;;  %v2786_v17 = vmul.f32 %v7111_v41, %v6936_v2  ;;  %v2485_v28 = vpack.c.bf16 %v2471_v32, %v2470_v13 }
 0x6a0   : > { %v7089_v11 = vpop.permute.xlu0 %2814  ;;  %v7091_v31 = vpop.permute.xlu1 %2760  ;;  %v2525_v52 = vmul.f32 %v6913_v43, %v7873_v26  ;;  %v2998_v2 = vld [vmem:[%s7817_s9 + $0x50] sm:$0xff]  ;;  %v3001_v32 = vld [vmem:[%s7817_s9 + $0x68] sm:$0xff] }
 0x6a1   : > { %4734 = vmatpush3.bf16.msra.mxu1 %v2487_v61  ;;  %4802 = vmatpush3.bf16.msra.mxu0 %v2597_v62  ;;  %v2524_v62 = vmul.f32 %v6913_v43, %v7874_v63  ;;  %v2795_v24 = vpack.c.bf16 %v2787_v21, %v2786_v17  ;;  %v2997_v61 = vld [vmem:[%s7817_s9 + $0x48] sm:$0xff]  ;;  %v5229_v26 = vld [vmem:[%s7816_s8 + $0x94] ss:$36 sps:$4 sm:$0xff]  }
 0x6a2   : > { %3031 = vperm.xlu0 %5120, %v2993_v22   ;;  %3036 = vperm.xlu1 %5121, %v2994_v37   ;;  %v2468_v22 = vmul.f32 %v6926_v58, %v7876_v5  ;;  %v7156_v37 = vld [vmem:[%s7809_s1 + $0x5] ss:$0 sm:$0xff]  ;;  %v2999_v58 = vld [vmem:[%s7817_s9 + $0x58] sm:$0xff]  ;;  %v5227_v13 = vld [vmem:[%s7816_s8 + $0x48] ss:$36 sps:$4 sm:$0xff]  }
 0x6a3   : > { %4735 = vmatprep.subr.bf16.mxu1 %v2542_v48  ;;  %4803 = vmatprep.subr.bf16.mxu0 %v2652_v56  ;;  %v2540_v25 = vpack.c.bf16 %v2525_v52, %v2524_v62  ;;  %v2731_v3 = vmul.f32 %v7156_v37, %v7009_v51  ;;  %v2730_v56 = vmul.f32 %v7156_v37, %v6986_v29  ;;  %v5217_v29 = vld [vmem:[%s7816_s8] ss:$36 sps:$4 sm:$0xff]   ;;  %v3003_v17 = vld [vmem:[%s7817_s9 + $0x78] sm:$0xff]  ;;  %v3958_v5 = vld [vmem:[%s7820_s12 + $0x28] sm:$0xff] }
 0x6a4   : > { %v7123_v20 = vpop.permute.xlu0 %2758  ;;  %v7125_v6 = vpop.permute.xlu1 %2708  ;;  %v2484_v0 = vpack.c.bf16 %v2469_v8, %v2468_v22  ;;  %v2675_v51 = vmul.f32 %v6661_v38, %v7877_v23  ;;  %v5223_v38 = vld [vmem:[%s7816_s8 + $0x4c] ss:$36 sps:$4 sm:$0xff]   ;;  %v5231_v52 = vld [vmem:[%s7816_s8 + $0xe4] ss:$36 sps:$4 sm:$0xff]   ;;  %v3956_v62 = vld [vmem:[%s7820_s12 + $0x18] sm:$0xff] }
 0x6a5   : > { %4736 = vmatpush3.bf16.msra.mxu1 %v2486_v19  ;;  %4804 = vmatpush3.bf16.msra.mxu0 %v2596_v46  ;;  %v2739_v9 = vpack.c.bf16 %v2731_v3, %v2730_v56  ;;  %v3953_v46 = vld [vmem:[%s7820_s12] sm:$0xff]  ;;  %v3959_v22 = vld [vmem:[%s7820_s12 + $0x30] sm:$0xff]  ;;  %v3960_v56 = vld [vmem:[%s7820_s12 + $0x38] sm:$0xff] }
 0x6a6   : > { %3041 = vperm.xlu0 %5120, %v2995_v45   ;;  %3046 = vperm.xlu1 %5121, %v2996_v55   ;;  %v2683_v33 = vpack.c.bf16 %v2675_v51, %v2674_v49  ;;  %v5225_v19 = vld [vmem:[%s7816_s8 + $0x9c] ss:$36 sps:$4 sm:$0xff]   ;;  %v3954_v45 = vld [vmem:[%s7820_s12 + $0x8] sm:$0xff]  ;;  %v3002_v55 = vld [vmem:[%s7817_s9 + $0x70] sm:$0xff] }
 0x6a7   : > { %4737 = vmatprep.subr.bf16.mxu1 %v2541_v16  ;;  %4917 = vmatprep.subr.bf16.mxu0 %v2851_v30  ;;  %v3955_v30 = vld [vmem:[%s7820_s12 + $0x10] sm:$0xff]  ;;  %v5241_v49 = vld [vmem:[%s7816_s8 + $0x124] ss:$36 sps:$4 sm:$0xff]  }
 0x6a8   : > { %v7147_v18 = vpop.permute.xlu0 %2706  ;;  %3582 = vmatmul.mubr.bf16.vlgmr.msra.gmra.mxu0 %v5214_v53  ;;  %v7149_v43 = vpop.permute.xlu1 %2812  ;;  %v5228_v53 = vld [vmem:[%s7816_s8 + $0x98] ss:$36 sps:$4 sm:$0xff]  }
 0x6a9   : > { %4738 = vmatpush3.bf16.msra.mxu1 %v2485_v28  ;;  %4918 = vmatpush3.bf16.msra.mxu0 %v2795_v24 }
 0x6aa   : > { %3051 = vperm.xlu0 %5120, %v2997_v61   ;;  %3056 = vperm.xlu1 %5121, %v2998_v2   ;;  %v5233_v61 = vld [vmem:[%s7816_s8 + $0x90] ss:$36 sps:$4 sm:$0xff]   ;;  %v5234_v2 = vld [vmem:[%s7816_s8 + $0xe0] ss:$36 sps:$4 sm:$0xff]  }
 0x6ab   : > { %4739 = vmatprep.subr.bf16.mxu1 %v2540_v25  ;;  %3589 = vmatprep.mubr.bf16.mxu0 %v5220_v10  ;;  %v5235_v10 = vld [vmem:[%s7816_s8 + $0xdc] ss:$36 sps:$4 sm:$0xff]   ;;  %v5237_v25 = vld [vmem:[%s7816_s8 + $0x12c] ss:$36 sps:$4 sm:$0xff]  }
 0x6ac   : > { %v7170_v48 = vpop.permute.xlu0 %2810  ;;  %v7172_v59 = vpop.permute.xlu1 %2756 }
 0x6ad   : > { %4740 = vmatpush3.bf16.msra.mxu1 %v2484_v0 }
 0x6ae   : > { %3061 = vperm.xlu0 %5120, %v2999_v58   ;;  %3066 = vperm.xlu1 %5121, %v3000_v1   ;;  %v3961_v58 = vld [vmem:[%s7820_s12 + $0x40] sm:$0xff] }
 0x6af   : > { %4853 = vmatprep.subr.bf16.mxu1 %v2739_v9  ;;  %v2840_v9 = vmul.f32 %v7098_v35, %v7011_v42  ;;  %v5243_v42 = vld [vmem:[%s7816_s8 + $0x174] ss:$36 sps:$4 sm:$0xff]  }
 0x6b0   : > { %v7194_v39 = vpop.permute.xlu0 %2754  ;;  %3485 = vmatmul.mubr.bf16.vlgmr.msra.gmra.mxu1 %v5217_v29  ;;  %3590 = vmatmul.mubr.bf16.gmra.mxu0 %v5222_v14  ;;  %v7196_v21 = vpop.permute.xlu1 %2704  ;;  %v5239_v29 = vld [vmem:[%s7816_s8 + $0xd8] ss:$36 sps:$4 sm:$0xff]   ;;  %v5240_v14 = vld [vmem:[%s7816_s8 + $0x128] ss:$36 sps:$4 sm:$0xff]  }
 0x6b1   : > { %4854 = vmatpush3.bf16.msra.mxu1 %v2683_v33  ;;  %3492 = vmatprep.mubr.bf16.mxu1 %v5223_v38  ;;  %v3962_v33 = vld [vmem:[%s7820_s12 + $0x48] sm:$0xff] }
 0x6b2   : > { %3071 = vperm.xlu0 %5120, %v3001_v32   ;;  %3971 = vperm.xlu1 %5121, %v3953_v46   ;;  %v3963_v32 = vld [vmem:[%s7820_s12 + $0x50] sm:$0xff] }
 0x6b3   : > { %3597 = vmatprep.mubr.bf16.mxu0 %v5225_v19 }
 0x6b4   : > { %v7204_v16 = vpop.permute.xlu0 %2702  ;;  %v7206_v50 = vpop.permute.xlu1 %2808 }
 0x6b6   : > { %3976 = vperm.xlu0 %5120, %v3954_v45   ;;  %3076 = vperm.xlu1 %5121, %v3002_v55   ;;  %v2784_v45 = vmul.f32 %v7111_v41, %v7041_v57  ;;  %v2838_v55 = vmul.f32 %v7098_v35, %v7065_v54  ;;  %v3964_v57 = vld [vmem:[%s7820_s12 + $0x58] sm:$0xff]  ;;  %v3965_v54 = vld [vmem:[%s7820_s12 + $0x60] sm:$0xff] }
 0x6b8   : > { %v7226_v28 = vpop.permute.xlu0 %2806  ;;  %3493 = vmatmul.mubr.bf16.gmra.mxu1 %v5227_v13  ;;  %3598 = vmatmul.mubr.bf16.gmra.mxu0 %v5228_v53  ;;  %v7228_v63 = vpop.permute.xlu1 %2752  ;;  %v2839_v53 = vmul.f32 %v7098_v35, %v7039_v12  ;;  %v5245_v12 = vld [vmem:[%s7816_s8 + $0x120] ss:$36 sps:$4 sm:$0xff]  }
 0x6b9   : > { %3500 = vmatprep.mubr.bf16.mxu1 %v5229_v26  ;;  %3605 = vmatprep.mubr.bf16.mxu0 %v5231_v52  ;;  %v2782_v26 = vmul.f32 %v7111_v41, %v7091_v31  ;;  %v5246_v31 = vld [vmem:[%s7816_s8 + $0x170] ss:$36 sps:$4 sm:$0xff]  }
 0x6ba   : > { %3981 = vperm.xlu0 %5120, %v3955_v30   ;;  %3081 = vperm.xlu1 %5121, %v3003_v17  }
 0x6bc   : > { %v7236_v8 = vpop.permute.xlu0 %2750  ;;  %v7238_v24 = vpop.permute.xlu1 %2700 }
 0x6be   : > { %3986 = vperm.xlu0 %5120, %v3956_v62   ;;  %3991 = vperm.xlu1 %5121, %v3957_v7   ;;  %v2783_v62 = vmul.f32 %v7111_v41, %v7063_v15  ;;  %v2849_v7 = vpack.c.bf16 %v2839_v53, %v2838_v55  ;;  %v3966_v15 = vld [vmem:[%s7820_s12 + $0x68] sm:$0xff]  ;;  %v2778_v55 = vmul.f32 %v7111_v41, %v7228_v63  ;;  %v5252_v63 = vld [vmem:[%s7816_s8 + $0x1b8] ss:$36 sps:$4 sm:$0xff]  }
 0x6c0   : > { %v7258_v3 = vpop.permute.xlu0 %2698  ;;  %3501 = vmatmul.mubr.bf16.gmra.mxu1 %v5233_v61  ;;  %3606 = vmatmul.mubr.bf16.gmra.mxu0 %v5234_v2  ;;  %v7260_v0 = vpop.permute.xlu1 %2804  ;;  %v2836_v61 = vmul.f32 %v7098_v35, %v7149_v43  ;;  %v5247_v2 = vld [vmem:[%s7816_s8 + $0x16c] ss:$36 sps:$4 sm:$0xff]  }
 0x6c1   : > { %3508 = vmatprep.mubr.bf16.mxu1 %v5235_v10  ;;  %3613 = vmatprep.mubr.bf16.mxu0 %v5237_v25  ;;  %v2837_v10 = vmul.f32 %v7098_v35, %v7089_v11  ;;  %v2793_v25 = vpack.c.bf16 %v2783_v62, %v2782_v26  ;;  %v3967_v43 = vld [vmem:[%s7820_s12 + $0x70] sm:$0xff]  ;;  %v2781_v11 = vmul.f32 %v7111_v41, %v7123_v20  ;;  %v7882_v26 = vld [vmem:[#allocation8_spill] sm:$0xff] }
 0x6c2   : > { %3996 = vperm.xlu0 %5120, %v3958_v5   ;;  %4001 = vperm.xlu1 %5121, %v3959_v22   ;;  %v2780_v5 = vmul.f32 %v7111_v41, %v7172_v59  ;;  %v5249_v22 = vld [vmem:[%s7816_s8 + $0x1bc] ss:$36 sps:$4 sm:$0xff]   ;;  %v2726_v20 = vmul.f32 %v7156_v37, %v7196_v21  ;;  %v2727_v21 = vmul.f32 %v7156_v37, %v7147_v18 }
 0x6c4   : > { %v2823_v1 = vpop.permute.xlu0 %2822  ;;  %v7268_v51 = vpop.permute.xlu1 %2748  ;;  %v2737_v62 = vpack.c.bf16 %v2727_v21, %v2726_v20 }
 0x6c5   : > { %v2841_v34 = vmul.f32 %v7098_v35, %v2823_v1  ;;  %v7879_v1 = vld [vmem:[#allocation14_spill] sm:$0xff] }
 0x6c6   : > { %4006 = vperm.xlu0 %5120, %v3960_v56   ;;  %4011 = vperm.xlu1 %5121, %v3961_v58   ;;  %v2728_v56 = vmul.f32 %v7156_v37, %v7125_v6  ;;  %v7880_v6 = vld [vmem:[#allocation12_spill] sm:$0xff] }
 0x6c7   : > { %v2850_v38 = vpack.c.bf16 %v2841_v34, %v2840_v9  ;;  %v2834_v9 = vmul.f32 %v7098_v35, %v7206_v50 }
 0x6c8   : > { %v2767_v46 = vpop.permute.xlu0 %2766  ;;  %3509 = vmatmul.mubr.bf16.gmra.mxu1 %v5239_v29  ;;  %3614 = vmatmul.mubr.bf16.gmra.mxu0 %v5240_v14  ;;  %v7291_v19 = vpop.permute.xlu1 %2696  ;;  %v2673_v29 = vmul.f32 %v7879_v1, %v7877_v23  ;;  %v2848_v14 = vpack.c.bf16 %v2837_v10, %v2836_v61  ;;  %v2833_v61 = vmul.f32 %v7098_v35, %v7226_v28 }
 0x6c9   : > { %v2785_v13 = vmul.f32 %v7111_v41, %v2767_v46  ;;  %4919 = vmatprep.subr.bf16.mxu0 %v2850_v38  ;;  %3516 = vmatprep.mubr.bf16.mxu1 %v5241_v49  ;;  %v2672_v49 = vmul.f32 %v7880_v6, %v7877_v23  ;;  %v7881_v38 = vld [vmem:[#allocation9_spill] sm:$0xff]  ;;  %v3968_v46 = vld [vmem:[%s7820_s12 + $0x78] sm:$0xff]  ;;  %v2669_v10 = vmul.f32 %v6637_v47, %v7877_v23 }
 0x6ca   : > { %4016 = vperm.xlu0 %5120, %v3962_v33   ;;  %4021 = vperm.xlu1 %5121, %v3963_v32   ;;  %v2671_v33 = vmul.f32 %v7881_v38, %v7877_v23  ;;  %v2835_v32 = vmul.f32 %v7098_v35, %v7170_v48  ;;  %v5251_v48 = vld [vmem:[%s7816_s8 + $0x168] ss:$36 sps:$4 sm:$0xff]   ;;  %v2777_v47 = vmul.f32 %v7111_v41, %v7236_v8  ;;  %v5259_v6 = vld [vmem:[%s7816_s8 + $0x1fc] ss:$36 sps:$4 sm:$0xff]  }
 0x6cb   : > { %v2794_v52 = vpack.c.bf16 %v2785_v13, %v2784_v45  ;;  %3621 = vmatprep.mubr.bf16.mxu0 %v5243_v42  ;;  %v2792_v42 = vpack.c.bf16 %v2781_v11, %v2780_v5  ;;  %v4086_v45 = vld [vmem:[#allocation3] sm:$0x1]  ;;  %v2682_v18 = vpack.c.bf16 %v2673_v29, %v2672_v49  ;;  %v7883_v11 = vld [vmem:[#allocation10_spill] sm:$0xff]  ;;  %v2667_v29 = vmul.f32 %v6557_v4, %v7877_v23 }
 0x6cc   : > { %v7308_v30 = vpop.permute.xlu0 %2802  ;;  %v7310_v17 = vpop.permute.xlu1 %2800 }
 0x6cd   : > { %4920 = vmatpush3.bf16.msra.mxu0 %v2794_v52  ;;  %v2670_v52 = vmul.f32 %v7882_v26, %v7877_v23  ;;  %v2831_v28 = vmul.f32 %v7098_v35, %v7308_v30  ;;  %v2723_v30 = vmul.f32 %v7156_v37, %v7258_v3  ;;  %v5258_v3 = vld [vmem:[%s7816_s8 + $0x200] ss:$36 sps:$4 sm:$0xff]  }
 0x6ce   : > { %4026 = vperm.xlu0 %5120, %v3964_v57   ;;  %4031 = vperm.xlu1 %5121, %v3965_v54   ;;  %v2847_v57 = vpack.c.bf16 %v2835_v32, %v2834_v9  ;;  %v2832_v54 = vmul.f32 %v7098_v35, %v7260_v0  ;;  %v5255_v0 = vld [vmem:[%s7816_s8 + $0x204] ss:$36 sps:$4 sm:$0xff]  }
 0x6cf   : > { %4921 = vmatprep.subr.bf16.mxu0 %v2849_v7  ;;  %v2724_v7 = vmul.f32 %v7156_v37, %v7238_v24  ;;  %v2776_v24 = vmul.f32 %v7111_v41, %v7268_v51  ;;  %v2722_v51 = vmul.f32 %v7156_v37, %v7291_v19  ;;  %v5257_v19 = vld [vmem:[%s7816_s8 + $0x1b0] ss:$36 sps:$4 sm:$0xff]  }
 0x6d0   : > { %v2711_v59 = vpop.permute.xlu0 %2710  ;;  %3517 = vmatmul.mubr.bf16.gmra.mxu1 %v5245_v12  ;;  %3622 = vmatmul.mubr.bf16.gmra.mxu0 %v5246_v31  ;;  %v7342_v58 = vpop.permute.xlu1 %2744  ;;  %v5253_v12 = vld [vmem:[%s7816_s8 + $0x1b4] ss:$36 sps:$4 sm:$0xff]   ;;  %v2779_v31 = vmul.f32 %v7111_v41, %v7194_v39  ;;  %v2725_v39 = vmul.f32 %v7156_v37, %v7204_v16 }
 0x6d1   : > { %v2729_v34 = vmul.f32 %v7156_v37, %v2711_v59  ;;  %4922 = vmatpush3.bf16.msra.mxu0 %v2793_v25  ;;  %3524 = vmatprep.mubr.bf16.mxu1 %v5247_v2  ;;  %v2681_v2 = vpack.c.bf16 %v2671_v33, %v2670_v52  ;;  %v2735_v49 = vpack.c.bf16 %v2723_v30, %v2722_v51  ;;  %v7884_v33 = vld [vmem:[#allocation6_spill] sm:$0xff]  ;;  %v5274_v30 = vld [vmem:[%s7816_s8 + $0x5c] ss:$36 sps:$4 sm:$0xff]  }
 0x6d2   : > { %4036 = vperm.xlu0 %5120, %v3966_v15   ;;  %4041 = vperm.xlu1 %5121, %v3967_v43   ;;  %v2791_v25 = vpack.c.bf16 %v2779_v31, %v2778_v55  ;;  %v2846_v43 = vpack.c.bf16 %v2833_v61, %v2832_v54  ;;  %v2736_v16 = vpack.c.bf16 %v2725_v39, %v2724_v7 }
 0x6d3   : > { %v2738_v50 = vpack.c.bf16 %v2729_v34, %v2728_v56  ;;  %4923 = vmatprep.subr.bf16.mxu0 %v2848_v14  ;;  %3629 = vmatprep.mubr.bf16.mxu0 %v5249_v22  ;;  %v2830_v22 = vmul.f32 %v7098_v35, %v7310_v17  ;;  %v2668_v56 = vmul.f32 %v7883_v11, %v7877_v23 }
 0x6d4   : > { %v2747_v13 = vpop.permute.xlu0 %2746  ;;  %v7364_v53 = vpop.permute.xlu1 %2692  ;;  %v2790_v17 = vpack.c.bf16 %v2777_v47, %v2776_v24  ;;  %v2774_v38 = vmul.f32 %v7111_v41, %v7342_v58  ;;  %v2666_v32 = vmul.f32 %v7884_v33, %v7877_v23  ;;  %v2662_v7 = vmul.f32 %v6500_v40, %v7877_v23 }
 0x6d5   : > { %4855 = vmatprep.subr.bf16.mxu1 %v2738_v50  ;;  %4924 = vmatpush3.bf16.msra.mxu0 %v2792_v42  ;;  %v2775_v59 = vmul.f32 %v7111_v41, %v2747_v13  ;;  %v2845_v14 = vpack.c.bf16 %v2831_v28, %v2830_v22  ;;  %v2680_v20 = vpack.c.bf16 %v2669_v10, %v2668_v56  ;;  %v7463_v22 = vld [vmem:[%s7809_s1 + $0x8] ss:$0 sm:$0xff]  ;;  %v5273_v56 = vld [vmem:[%s7816_s8 + $0xac] ss:$36 sps:$4 sm:$0xff]  }
 0x6d6   : > { %4046 = vperm.xlu0 %5120, %v3968_v46   ;;  %4089 = vperm.xlu1 %5121, %v4086_v45   ;;  %v2720_v46 = vmul.f32 %v7156_v37, %v7364_v53  ;;  %v2679_v21 = vpack.c.bf16 %v2667_v29, %v2666_v32  ;;  %v7885_v53 = vld [vmem:[#allocation7_spill] sm:$0xff]  ;;  %v2661_v40 = vmul.f32 %v6532_v60, %v7877_v23 }
 0x6d7   : > { %4856 = vmatpush3.bf16.msra.mxu1 %v2682_v18  ;;  %4925 = vmatprep.subr.bf16.mxu0 %v2847_v57  ;;  %v2789_v50 = vpack.c.bf16 %v2775_v59, %v2774_v38  ;;  %v2664_v57 = vmul.f32 %v7885_v53, %v7877_v23  ;;  %v5280_v38 = vld [vmem:[%s7816_s8 + $0xa4] ss:$36 sps:$4 sm:$0xff]  }
 0x6d8   : > { %4857 = vmatprep.subr.bf16.mxu1 %v2737_v62  ;;  %v2695_v5 = vpop.permute.xlu0 %2694  ;;  %3525 = vmatmul.mubr.bf16.gmra.mxu1 %v5251_v48  ;;  %v2797_v15 = vpop.permute.xlu1 %2796  ;;  %v2665_v48 = vmul.f32 %v6585_v36, %v7877_v23  ;;  %v2663_v36 = vmul.f32 %v6504_v44, %v7877_v23  ;;  %v5261_v62 = vld [vmem:[%s7816_s8 + $0x18] ss:$36 sps:$4 sm:$0xff]  }
 0x6d9   : > { %3630 = vmatmul.mubr.bf16.gmra.mxu0 %v5252_v63  ;;  %3532 = vmatprep.mubr.bf16.mxu1 %v5253_v12  ;;  %v2828_v9 = vmul.f32 %v7098_v35, %v2797_v15  ;;  %v2721_v4 = vmul.f32 %v7156_v37, %v2695_v5  ;;  %v5269_v44 = vld [vmem:[%s7816_s8 + $0x14] ss:$36 sps:$4 sm:$0xff]   ;;  %v2660_v15 = vmul.f32 %v6524_v27, %v7877_v23 }
 0x6da   : > { %4926 = vmatpush3.bf16.msra.mxu0 %v2791_v25  ;;  %3637 = vmatprep.mubr.bf16.mxu0 %v5255_v0  ;;  %v2678_v31 = vpack.c.bf16 %v2665_v48, %v2664_v57  ;;  %v5265_v0 = vld [vmem:[%s7816_s8 + $0x64] ss:$36 sps:$4 sm:$0xff]   ;;  %v2677_v39 = vpack.c.bf16 %v2663_v36, %v2662_v7  ;;  %v5267_v27 = vld [vmem:[%s7816_s8 + $0x10] ss:$36 sps:$4 sm:$0xff]   ;;  %v5285_v48 = vld [vmem:[%s7816_s8 + $0x13c] ss:$36 sps:$4 sm:$0xff]  }
 0x6db   : > { %4858 = vmatpush3.bf16.msra.mxu1 %v2681_v2  ;;  %4927 = vmatprep.subr.bf16.mxu0 %v2846_v43  ;;  %v2734_v26 = vpack.c.bf16 %v2721_v4, %v2720_v46  ;;  %v2676_v60 = vpack.c.bf16 %v2661_v40, %v2660_v15  ;;  %v5283_v36 = vld [vmem:[%s7816_s8 + $0x138] ss:$36 sps:$4 sm:$0xff]   ;;  %v5291_v7 = vld [vmem:[%s7816_s8 + $0x184] ss:$36 sps:$4 sm:$0xff]  }
 0x6dc   : > { %4859 = vmatprep.subr.bf16.mxu1 %v2736_v16  ;;  %v2799_v1 = vpop.permute.xlu0 %2798  ;;  %v2741_v8 = vpop.permute.xlu1 %2740  ;;  %v5270_v16 = vld [vmem:[%s7816_s8 + $0x60] ss:$36 sps:$4 sm:$0xff]   ;;  %v5295_v40 = vld [vmem:[%s7816_s8 + $0x1c8] ss:$36 sps:$4 sm:$0xff]   ;;  %v5303_v15 = vld [vmem:[%s7816_s8 + $0x214] ss:$36 sps:$4 sm:$0xff]  }
 0x6dd   : > { %v2829_v34 = vmul.f32 %v7098_v35, %v2799_v1  ;;  %v5263_v35 = vld [vmem:[%s7816_s8 + $0x1c] ss:$36 sps:$4 sm:$0xff]   ;;  %v2772_v55 = vmul.f32 %v7111_v41, %v2741_v8 }
 0x6de   : > { %4928 = vmatpush3.bf16.msra.mxu0 %v2790_v17 }
 0x6df   : > { %v2844_v42 = vpack.c.bf16 %v2829_v34, %v2828_v9  ;;  %4860 = vmatpush3.bf16.msra.mxu1 %v2680_v20  ;;  %4929 = vmatprep.subr.bf16.mxu0 %v2845_v14  ;;  %v5271_v9 = vld [vmem:[%s7816_s8 + $0xa8] ss:$36 sps:$4 sm:$0xff]   ;;  %v5276_v34 = vld [vmem:[%s7816_s8 + $0x58] ss:$36 sps:$4 sm:$0xff]  }
 0x6e0   : > { %4861 = vmatprep.subr.bf16.mxu1 %v2735_v49  ;;  %v2743_v45 = vpop.permute.xlu0 %2742  ;;  %3533 = vmatmul.mubr.bf16.gmra.mxu1 %v5257_v19  ;;  %v2689_v58 = vpop.permute.xlu1 %2688  ;;  %v5279_v49 = vld [vmem:[%s7816_s8 + $0xf4] ss:$36 sps:$4 sm:$0xff]  }
 0x6e1   : > { %v2773_v13 = vmul.f32 %v7111_v41, %v2743_v45  ;;  %3638 = vmatmul.mubr.bf16.gmra.mxu0 %v5258_v3  ;;  %3540 = vmatprep.mubr.bf16.mxu1 %v5259_v6  ;;  %v5264_v41 = vld [vmem:[%s7816_s8 + $0x1f8] ss:$36 sps:$4 sm:$0xff]   ;;  %v2718_v63 = vmul.f32 %v7156_v37, %v2689_v58  ;;  %v5277_v45 = vld [vmem:[%s7816_s8 + $0xf0] ss:$36 sps:$4 sm:$0xff]   ;;  %v5282_v58 = vld [vmem:[%s7816_s8 + $0xa0] ss:$36 sps:$4 sm:$0xff]  }
 0x6e2   : > { %4930 = vmatpush3.bf16.msra.mxu0 %v2789_v50  ;;  %3775 = vmatprep.mubr.bf16.mxu0 %v5263_v35 }
 0x6e3   : > { %v2788_v52 = vpack.c.bf16 %v2773_v13, %v2772_v55  ;;  %4862 = vmatpush3.bf16.msra.mxu1 %v2679_v21  ;;  %4931 = vmatprep.subr.bf16.mxu0 %v2844_v42 }
 0x6e4   : > { %4863 = vmatprep.subr.bf16.mxu1 %v2734_v26  ;;  %v2691_v54 = vpop.permute.xlu0 %2690  ;;  %v2685_v18 = vpop.permute.xlu1 %2684  ;;  %v5286_v26 = vld [vmem:[%s7816_s8 + $0xec] ss:$36 sps:$4 sm:$0xff]  }
 0x6e5   : > { %v2719_v12 = vmul.f32 %v7156_v37, %v2691_v54  ;;  %v2716_v25 = vmul.f32 %v7156_v37, %v2685_v18 }
 0x6e6   : > { %4932 = vmatpush3.bf16.msra.mxu0 %v2788_v52 }
 0x6e7   : > { %v2733_v61 = vpack.c.bf16 %v2719_v12, %v2718_v63  ;;  %4864 = vmatpush3.bf16.msra.mxu1 %v2678_v31  ;;  %v5288_v12 = vld [vmem:[%s7816_s8 + $0xe8] ss:$36 sps:$4 sm:$0xff]  }
 0x6e8   : > { %v2687_v2 = vpop.permute.xlu0 %2686  ;;  %3541 = vmatmul.mubr.bf16.gmra.mxu1 %v5264_v41  ;;  %v2881_v10 = vpop.permute.xlu1 %2880 }
 0x6e9   : > { %v2717_v24 = vmul.f32 %v7156_v37, %v2687_v2  ;;  %3776 = vmatmul.mubr.bf16.vlgmr.msra.gmra.mxu0 %v5261_v62  ;;  %4865 = vmatprep.subr.bf16.mxu1 %v2733_v61  ;;  %v2898_v37 = vmul.f32 %v7463_v22, %v2881_v10  ;;  %v5289_v10 = vld [vmem:[%s7816_s8 + $0x180] ss:$36 sps:$4 sm:$0xff]  }
 0x6ea   : > { %3783 = vmatprep.mubr.bf16.mxu0 %v5265_v0  ;;  %3678 = vmatprep.mubr.bf16.mxu1 %v5269_v44  ;;  %v5292_v0 = vld [vmem:[%s7816_s8 + $0x134] ss:$36 sps:$4 sm:$0xff]  }
 0x6eb   : > { %v2732_v5 = vpack.c.bf16 %v2717_v24, %v2716_v25  ;;  %4866 = vmatpush3.bf16.msra.mxu1 %v2677_v39  ;;  %v5294_v39 = vld [vmem:[%s7816_s8 + $0x130] ss:$36 sps:$4 sm:$0xff]   ;;  %v5298_v24 = vld [vmem:[%s7816_s8 + $0x17c] ss:$36 sps:$4 sm:$0xff]  }
 0x6ec   : > { %v2883_v43 = vpop.permute.xlu0 %2882  ;;  %v2877_v28 = vpop.permute.xlu1 %2876  ;;  %v5297_v25 = vld [vmem:[%s7816_s8 + $0x1cc] ss:$36 sps:$4 sm:$0xff]  }
 0x6ed   : > { %v2899_v47 = vmul.f32 %v7463_v22, %v2883_v43  ;;  %4867 = vmatprep.subr.bf16.mxu1 %v2732_v5  ;;  %v2896_v17 = vmul.f32 %v7463_v22, %v2877_v28  ;;  %v5300_v5 = vld [vmem:[%s7816_s8 + $0x178] ss:$36 sps:$4 sm:$0xff]   ;;  %v5306_v43 = vld [vmem:[%s7816_s8 + $0x1c4] ss:$36 sps:$4 sm:$0xff]   ;;  %v5301_v28 = vld [vmem:[%s7816_s8 + $0x210] ss:$36 sps:$4 sm:$0xff]  }
 0x6ef   : > { %v2907_v23 = vpack.c.bf16 %v2899_v47, %v2898_v37  ;;  %4868 = vmatpush3.bf16.msra.mxu1 %v2676_v60  ;;  %v5307_v37 = vld [vmem:[%s7816_s8 + $0x20] ss:$36 sps:$4 sm:$0xff]   ;;  %v5310_v47 = vld [vmem:[%s7816_s8 + $0x20c] ss:$36 sps:$4 sm:$0xff]  }
 0x6f0   : > { %v2879_v51 = vpop.permute.xlu0 %2878  ;;  %v2873_v11 = vpop.permute.xlu1 %2872  ;;  %v5311_v60 = vld [vmem:[%s7816_s8 + $0x68] ss:$36 sps:$4 sm:$0xff]  }
 0x6f1   : > { %v2897_v59 = vmul.f32 %v7463_v22, %v2879_v51  ;;  %3784 = vmatmul.mubr.bf16.gmra.mxu0 %v5270_v16  ;;  %5053 = vmatprep.subr.bf16.mxu0 %v2907_v23  ;;  %v2894_v29 = vmul.f32 %v7463_v22, %v2873_v11  ;;  %v5308_v16 = vld [vmem:[%s7816_s8 + $0x208] ss:$36 sps:$4 sm:$0xff]   ;;  %v5314_v51 = vld [vmem:[%s7816_s8 + $0x140] ss:$36 sps:$4 sm:$0xff]  }
 0x6f2   : > { %3679 = vmatmul.mubr.bf16.vlgmr.msra.gmra.mxu1 %v5267_v27  ;;  %5085 = vmatprep.subr.bf16.mxu1 %v2907_v23  ;;  %v5312_v27 = vld [vmem:[%s7816_s8 + $0xb0] ss:$36 sps:$4 sm:$0xff]   ;;  %v5315_v11 = vld [vmem:[%s7816_s8 + $0x188] ss:$36 sps:$4 sm:$0xff]  }
 0x6f3   : > { %v2906_v1 = vpack.c.bf16 %v2897_v59, %v2896_v17  ;;  %5054 = vmatpush3.bf16.msra.mxu0 %v2907_v23  ;;  %5093 = vmatpush3.bf16.msra.mxu1 %v2907_v23  ;;  %v5313_v23 = vld [vmem:[%s7816_s8 + $0xf8] ss:$36 sps:$4 sm:$0xff]  }
 0x6f4   : > { %v2875_v8 = vpop.permute.xlu0 %2874  ;;  %v2869_v19 = vpop.permute.xlu1 %2868  ;;  %3791 = vmatprep.mubr.bf16.mxu0 %v5273_v56  ;;  %3686 = vmatprep.mubr.bf16.mxu1 %v5274_v30  ;;  %v5316_v56 = vld [vmem:[%s7816_s8 + $0x1d0] ss:$36 sps:$4 sm:$0xff]   ;;  %v5317_v30 = vld [vmem:[%s7816_s8 + $0x218] ss:$36 sps:$4 sm:$0xff]  }
 0x6f5   : > { %v2895_v14 = vmul.f32 %v7463_v22, %v2875_v8  ;;  %5055 = vmatprep.subr.bf16.mxu0 %v2906_v1  ;;  %5086 = vmatprep.subr.bf16.mxu1 %v2906_v1  ;;  %v2892_v4 = vmul.f32 %v7463_v22, %v2869_v19 }
 0x6f7   : > { %v2905_v20 = vpack.c.bf16 %v2895_v14, %v2894_v29  ;;  %5056 = vmatpush3.bf16.msra.mxu0 %v2906_v1  ;;  %5094 = vmatpush3.bf16.msra.mxu1 %v2906_v1 }
 0x6f8   : > { %v2871_v3 = vpop.permute.xlu0 %2870  ;;  %v2865_v6 = vpop.permute.xlu1 %2864 }
 0x6f9   : > { %v2893_v33 = vmul.f32 %v7463_v22, %v2871_v3  ;;  %3792 = vmatmul.mubr.bf16.gmra.mxu0 %v5271_v9  ;;  %5057 = vmatprep.subr.bf16.mxu0 %v2905_v20  ;;  %v2890_v50 = vmul.f32 %v7463_v22, %v2865_v6 }
 0x6fa   : > { %3687 = vmatmul.mubr.bf16.gmra.mxu1 %v5276_v34  ;;  %5087 = vmatprep.subr.bf16.mxu1 %v2905_v20 }
 0x6fb   : > { %v2904_v32 = vpack.c.bf16 %v2893_v33, %v2892_v4  ;;  %5058 = vmatpush3.bf16.msra.mxu0 %v2905_v20  ;;  %5095 = vmatpush3.bf16.msra.mxu1 %v2905_v20 }
 0x6fc   : > { %v2867_v35 = vpop.permute.xlu0 %2866  ;;  %v2861_v42 = vpop.permute.xlu1 %2860  ;;  %3799 = vmatprep.mubr.bf16.mxu0 %v5279_v49  ;;  %3694 = vmatprep.mubr.bf16.mxu1 %v5280_v38 }
 0x6fd   : > { %v2891_v46 = vmul.f32 %v7463_v22, %v2867_v35  ;;  %5059 = vmatprep.subr.bf16.mxu0 %v2904_v32  ;;  %5088 = vmatprep.subr.bf16.mxu1 %v2904_v32  ;;  %v2888_v52 = vmul.f32 %v7463_v22, %v2861_v42 }
 0x6ff   : > { %v2903_v21 = vpack.c.bf16 %v2891_v46, %v2890_v50  ;;  %5060 = vmatpush3.bf16.msra.mxu0 %v2904_v32  ;;  %5096 = vmatpush3.bf16.msra.mxu1 %v2904_v32 }
 0x700   : > { %v2863_v55 = vpop.permute.xlu0 %2862  ;;  %v2857_v13 = vpop.permute.xlu1 %2856 }
 0x701   : > { %v2889_v53 = vmul.f32 %v7463_v22, %v2863_v55  ;;  %3800 = vmatmul.mubr.bf16.gmra.mxu0 %v5277_v45  ;;  %5061 = vmatprep.subr.bf16.mxu0 %v2903_v21  ;;  %v2886_v18 = vmul.f32 %v7463_v22, %v2857_v13 }
 0x702   : > { %3695 = vmatmul.mubr.bf16.gmra.mxu1 %v5282_v58  ;;  %5089 = vmatprep.subr.bf16.mxu1 %v2903_v21 }
 0x703   : > { %v2902_v57 = vpack.c.bf16 %v2889_v53, %v2888_v52  ;;  %5062 = vmatpush3.bf16.msra.mxu0 %v2903_v21  ;;  %5097 = vmatpush3.bf16.msra.mxu1 %v2903_v21 }
 0x704   : > { %v2859_v54 = vpop.permute.xlu0 %2858  ;;  %3807 = vmatprep.mubr.bf16.mxu0 %v5285_v48  ;;  %3702 = vmatprep.mubr.bf16.mxu1 %v5286_v26  ;;  %v2853_v63 = vpop.permute.xlu1 %2852 }
 0x705   : > { %v2887_v41 = vmul.f32 %v7463_v22, %v2859_v54  ;;  %5063 = vmatprep.subr.bf16.mxu0 %v2902_v57  ;;  %5090 = vmatprep.subr.bf16.mxu1 %v2902_v57  ;;  %v2884_v44 = vmul.f32 %v7463_v22, %v2853_v63 }
 0x707   : > { %v2901_v31 = vpack.c.bf16 %v2887_v41, %v2886_v18  ;;  %5064 = vmatpush3.bf16.msra.mxu0 %v2902_v57  ;;  %5098 = vmatpush3.bf16.msra.mxu1 %v2902_v57 }
 0x708   : > { %v2855_v62 = vpop.permute.xlu0 %2854 }
 0x709   : > { %v2885_v61 = vmul.f32 %v7463_v22, %v2855_v62  ;;  %3808 = vmatmul.mubr.bf16.gmra.mxu0 %v5283_v36  ;;  %5065 = vmatprep.subr.bf16.mxu0 %v2901_v31  ;;  %v5304_v22 = vld [vmem:[%s7816_s8 + $0x1c0] ss:$36 sps:$4 sm:$0xff]  }
 0x70a   : > { %3703 = vmatmul.mubr.bf16.gmra.mxu1 %v5288_v12  ;;  %5091 = vmatprep.subr.bf16.mxu1 %v2901_v31 }
 0x70b   : > { %v2900_v2 = vpack.c.bf16 %v2885_v61, %v2884_v44  ;;  %5066 = vmatpush3.bf16.msra.mxu0 %v2901_v31  ;;  %5099 = vmatpush3.bf16.msra.mxu1 %v2901_v31 }
 0x70c   : > { %3815 = vmatprep.mubr.bf16.mxu0 %v5291_v7  ;;  %3710 = vmatprep.mubr.bf16.mxu1 %v5292_v0 }
 0x70d   : > { %5067 = vmatprep.subr.bf16.mxu0 %v2900_v2  ;;  %5092 = vmatprep.subr.bf16.mxu1 %v2900_v2 }
 0x70f   : > { %5068 = vmatpush3.bf16.msra.mxu0 %v2900_v2  ;;  %5100 = vmatpush3.bf16.msra.mxu1 %v2900_v2 }
 0x711   : > { %3816 = vmatmul.mubr.bf16.gmra.mxu0 %v5289_v10  ;;  %v3007_v3 = vpop.permute.xlu1 %3006 }
 0x712   : > { %3711 = vmatmul.mubr.bf16.gmra.mxu1 %v5294_v39  ;;  %3823 = vmatprep.mubr.bf16.mxu0 %v5297_v25 }
 0x713   : > { %3718 = vmatprep.mubr.bf16.mxu1 %v5298_v24 }
 0x715   : > { %v3012_v42 = vpop.permute.xlu0 %3011  ;;  %v3017_v26 = vpop.permute.xlu1 %3016 }
 0x719   : > { %3824 = vmatmul.mubr.bf16.gmra.mxu0 %v5295_v40  ;;  %v3022_v12 = vpop.permute.xlu0 %3021  ;;  %v3027_v39 = vpop.permute.xlu1 %3026 }
 0x71a   : > { %3719 = vmatmul.mubr.bf16.gmra.mxu1 %v5300_v5  ;;  %3831 = vmatprep.mubr.bf16.mxu0 %v5303_v15 }
 0x71b   : > { %3726 = vmatprep.mubr.bf16.mxu1 %v5306_v43 }
 0x721   : > { %3832 = vmatmul.mubr.bf16.gmra.mxu0 %v5301_v28 }
 0x722   : > { %3727 = vmatmul.mubr.bf16.gmra.mxu1 %v5304_v22  ;;  %5069 = vmatprep.mubr.bf16.mxu0 %v5307_v37  ;;  %v3032_v37 = vpop.permute.xlu0 %3031 }
 0x723   : > { %3734 = vmatprep.mubr.bf16.mxu1 %v5310_v47 }
 0x729   : > { %5070 = vmatmul.mubr.bf16.vlgmr.msra.gmra.mxu0 %v5311_v60 }
 0x72a   : > { %3735 = vmatmul.mubr.bf16.gmra.mxu1 %v5308_v16 }
 0x72b   : > { %5073 = vmatprep.mubr.bf16.mxu1 %v5312_v27 }
 0x732   : > { %5074 = vmatmul.mubr.bf16.vlgmr.msra.gmra.mxu1 %v5313_v23 }
 0x733   : > { %5077 = vmatprep.mubr.bf16.mxu1 %v5314_v51 }
 0x73a   : > { %5078 = vmatmul.mubr.bf16.gmra.mxu1 %v5315_v11 }
 0x73b   : > { %5081 = vmatprep.mubr.bf16.mxu1 %v5316_v56 }
 0x742   : > { %5082 = vmatmul.mubr.bf16.gmra.mxu1 %v5317_v30  ;;  %v3037_v30 = vpop.permute.xlu1 %3036 }
 0x768   : > { %v4805_v17 = vpop.f32.mrf.mxu0 }
 0x76a   : > { %v4806_v59 = vpop.f32.mrf.mxu0 }
 0x76b   : > { %v4807_v1 = vadd.f32 %v4806_v59, %v4805_v17 }
 0x76c   : > { %v4808_v8 = vpop.f32.mrf.mxu0 }
 0x76e   : > { %v4809_v19 = vpop.f32.mrf.mxu0 }
 0x76f   : > { %v4810_v29 = vadd.f32 %v4809_v19, %v4808_v8 }
 0x770   : > { %v4741_v14 = vpop.f32.mrf.mxu1  ;;  %v4811_v9 = vpop.f32.mrf.mxu0 }
 0x772   : > { %v4742_v34 = vpop.f32.mrf.mxu1  ;;  %v4812_v20 = vpop.f32.mrf.mxu0 }
 0x773   : > { %v4743_v6 = vadd.f32 %v4742_v34, %v4741_v14  ;;  %v4813_v49 = vadd.f32 %v4812_v20, %v4811_v9  ;;  %v3042_v34 = vpop.permute.xlu0 %3041 }
 0x774   : > { %v4744_v38 = vpop.f32.mrf.mxu1  ;;  %v4814_v4 = vpop.f32.mrf.mxu0 }
 0x775   : > { %v3487_v33 = vadd.f32 %v4743_v6, %v3007_v3 }
 0x776   : > { %v4745_v32 = vpop.f32.mrf.mxu1  ;;  %v4815_v35 = vpop.f32.mrf.mxu0 }
 0x777   : > { %v4746_v50 = vadd.f32 %v4745_v32, %v4744_v38  ;;  %v4816_v46 = vadd.f32 %v4815_v35, %v4814_v4  ;;  %v7589_v45 = vadd.f32 %v4807_v1, %v3487_v33  ;;  %v3047_v4 = vpop.permute.xlu1 %3046 }
 0x778   : > { %v4747_v58 = vpop.f32.mrf.mxu1  ;;  %v4817_v21 = vpop.f32.mrf.mxu0 }
 0x779   : > { %v3490_v55 = vadd.f32 %v4746_v50, %v3012_v42 }
 0x77a   : > { %v4748_v13 = vpop.f32.mrf.mxu1  ;;  %v4818_v48 = vpop.f32.mrf.mxu0 }
 0x77b   : > { %v4749_v52 = vadd.f32 %v4748_v13, %v4747_v58  ;;  %v4819_v53 = vadd.f32 %v4818_v48, %v4817_v21  ;;  %v7591_v57 = vadd.f32 %v4810_v29, %v3490_v55 }
 0x77c   : > { %v4750_v54 = vpop.f32.mrf.mxu1  ;;  %v4820_v18 = vpop.f32.mrf.mxu0 }
 0x77d   : > { %v3495_v41 = vadd.f32 %v4749_v52, %v3017_v26  ;;  %v3052_v26 = vpop.permute.xlu0 %3051 }
 0x77e   : > { %v4751_v36 = vpop.f32.mrf.mxu1  ;;  %v4821_v63 = vpop.f32.mrf.mxu0 }
 0x77f   : > { %v4752_v31 = vadd.f32 %v4751_v36, %v4750_v54  ;;  %v4822_v62 = vadd.f32 %v4821_v63, %v4820_v18  ;;  %v7593_v7 = vadd.f32 %v4813_v49, %v3495_v41  ;;  %v3057_v18 = vpop.permute.xlu1 %3056 }
 0x780   : > { %v4753_v0 = vpop.f32.mrf.mxu1  ;;  %v4823_v44 = vpop.f32.mrf.mxu0 }
 0x781   : > { %v3498_v61 = vadd.f32 %v4752_v31, %v3022_v12 }
 0x782   : > { %v4754_v2 = vpop.f32.mrf.mxu1  ;;  %v4824_v10 = vpop.f32.mrf.mxu0 }
 0x783   : > { %v4755_v25 = vadd.f32 %v4754_v2, %v4753_v0  ;;  %v4825_v24 = vadd.f32 %v4824_v10, %v4823_v44  ;;  %v7595_v40 = vadd.f32 %v4816_v46, %v3498_v61 }
 0x784   : > { %v4756_v5 = vpop.f32.mrf.mxu1  ;;  %v4826_v15 = vpop.f32.mrf.mxu0 }
 0x785   : > { %v3503_v43 = vadd.f32 %v4755_v25, %v3027_v39  ;;  %v3067_v39 = vpop.permute.xlu1 %3066 }
 0x786   : > { %v4757_v28 = vpop.f32.mrf.mxu1  ;;  %v4827_v22 = vpop.f32.mrf.mxu0 }
 0x787   : > { %v4758_v47 = vadd.f32 %v4757_v28, %v4756_v5  ;;  %v4828_v60 = vadd.f32 %v4827_v22, %v4826_v15  ;;  %v7597_v16 = vadd.f32 %v4819_v53, %v3503_v43  ;;  %v3062_v43 = vpop.permute.xlu0 %3061 }
 0x788   : > { %v4759_v27 = vpop.f32.mrf.mxu1  ;;  %v4829_v23 = vpop.f32.mrf.mxu0 }
 0x789   : > { %v3506_v51 = vadd.f32 %v4758_v47, %v3032_v37 }
 0x78a   : > { %v4760_v11 = vpop.f32.mrf.mxu1  ;;  %v4830_v56 = vpop.f32.mrf.mxu0 }
 0x78b   : > { %v4761_v17 = vadd.f32 %v4760_v11, %v4759_v27  ;;  %v4831_v59 = vadd.f32 %v4830_v56, %v4829_v23  ;;  %v7599_v1 = vadd.f32 %v4822_v62, %v3506_v51  ;;  %v7613_v11 = vpop.permute.xlu1 %3971 }
 0x78c   : > { %v4762_v8 = vpop.f32.mrf.mxu1  ;;  %v4832_v19 = vpop.f32.mrf.mxu0  ;;  %7886 = vst [vmem:[#allocation19_spill] sm:$0xff] %v7613_v11 }
 0x78d   : > { %v3511_v29 = vadd.f32 %v4761_v17, %v3037_v30 }
 0x78e   : > { %v4763_v14 = vpop.f32.mrf.mxu1  ;;  %v4833_v9 = vpop.f32.mrf.mxu0 }
 0x78f   : > { %v4764_v20 = vadd.f32 %v4763_v14, %v4762_v8  ;;  %v4834_v3 = vadd.f32 %v4833_v9, %v4832_v19  ;;  %v7601_v6 = vadd.f32 %v4825_v24, %v3511_v29  ;;  %v3072_v9 = vpop.permute.xlu0 %3071 }
 0x790   : > { %v4765_v49 = vpop.f32.mrf.mxu1  ;;  %v4835_v38 = vpop.f32.mrf.mxu0 }
 0x791   : > { %v3514_v33 = vadd.f32 %v4764_v20, %v3042_v34 }
 0x792   : > { %v4766_v32 = vpop.f32.mrf.mxu1  ;;  %v4836_v35 = vpop.f32.mrf.mxu0 }
 0x793   : > { %v4767_v42 = vadd.f32 %v4766_v32, %v4765_v49  ;;  %v4837_v50 = vadd.f32 %v4836_v35, %v4835_v38  ;;  %v7603_v46 = vadd.f32 %v4828_v60, %v3514_v33  ;;  %v3077_v38 = vpop.permute.xlu1 %3076 }
 0x794   : > { %v4768_v58 = vpop.f32.mrf.mxu1  ;;  %v4838_v21 = vpop.f32.mrf.mxu0 }
 0x795   : > { %v3519_v55 = vadd.f32 %v4767_v42, %v3047_v4 }
 0x796   : > { %v4769_v13 = vpop.f32.mrf.mxu1  ;;  %v4839_v48 = vpop.f32.mrf.mxu0 }
 0x797   : > { %v4770_v52 = vadd.f32 %v4769_v13, %v4768_v58  ;;  %v4840_v53 = vadd.f32 %v4839_v48, %v4838_v21  ;;  %v7605_v54 = vadd.f32 %v4831_v59, %v3519_v55 }
 0x798   : > { %v4771_v41 = vpop.f32.mrf.mxu1 }
 0x799   : > { %v3522_v36 = vadd.f32 %v4770_v52, %v3052_v26  ;;  %v4841_v63 = vpop.f32.mrf.mxu0  ;;  %v3082_v52 = vpop.permute.xlu1 %3081 }
 0x79a   : > { %v4772_v12 = vpop.f32.mrf.mxu1 }
 0x79b   : > { %v4773_v31 = vadd.f32 %v4772_v12, %v4771_v41  ;;  %v4842_v62 = vpop.f32.mrf.mxu0  ;;  %v7607_v0 = vadd.f32 %v4834_v3, %v3522_v36 }
 0x79c   : > { %v4843_v44 = vadd.f32 %v4842_v62, %v4841_v63  ;;  %v4774_v61 = vpop.f32.mrf.mxu1 }
 0x79d   : > { %v3527_v2 = vadd.f32 %v4773_v31, %v3057_v18  ;;  %v4844_v10 = vpop.f32.mrf.mxu0 }
 0x79e   : > { %v4775_v25 = vpop.f32.mrf.mxu1 }
 0x79f   : > { %v4776_v24 = vadd.f32 %v4775_v25, %v4774_v61  ;;  %v4845_v5 = vpop.f32.mrf.mxu0  ;;  %v7609_v15 = vadd.f32 %v4837_v50, %v3527_v2 }
 0x7a0   : > { %v4846_v28 = vadd.f32 %v4845_v5, %v4844_v10  ;;  %v4777_v22 = vpop.f32.mrf.mxu1 }
 0x7a1   : > { %v3530_v37 = vadd.f32 %v4776_v24, %v3062_v43  ;;  %v4847_v47 = vpop.f32.mrf.mxu0 }
 0x7a2   : > { %v4778_v60 = vpop.f32.mrf.mxu1 }
 0x7a3   : > { %v4779_v27 = vadd.f32 %v4778_v60, %v4777_v22  ;;  %v4848_v23 = vpop.f32.mrf.mxu0  ;;  %v7611_v51 = vadd.f32 %v4840_v53, %v3530_v37 }
 0x7a4   : > { %v4849_v56 = vadd.f32 %v4848_v23, %v4847_v47  ;;  %v4780_v30 = vpop.f32.mrf.mxu1 }
 0x7a5   : > { %v3535_v17 = vadd.f32 %v4779_v27, %v3067_v39  ;;  %v4850_v59 = vpop.f32.mrf.mxu0 }
 0x7a6   : > { %v4781_v8 = vpop.f32.mrf.mxu1 }
 0x7a7   : > { %v4782_v19 = vadd.f32 %v4781_v8, %v4780_v30  ;;  %v4851_v29 = vpop.f32.mrf.mxu0  ;;  %v7615_v14 = vadd.f32 %v4843_v44, %v3535_v17 }
 0x7a8   : > { %v4852_v34 = vadd.f32 %v4851_v29, %v4850_v59  ;;  %v4783_v20 = vpop.f32.mrf.mxu1 }
 0x7a9   : > { %7887 = vst [vmem:[#allocation24_spill] sm:$0xff] %v7615_v14  ;;  %v3538_v3 = vadd.f32 %v4782_v19, %v3072_v9  ;;  %v4933_v49 = vpop.f32.mrf.mxu0 }
 0x7aa   : > { %v4784_v4 = vpop.f32.mrf.mxu1 }
 0x7ab   : > { %v4785_v33 = vadd.f32 %v4784_v4, %v4783_v20  ;;  %v4934_v32 = vpop.f32.mrf.mxu0  ;;  %v7617_v35 = vadd.f32 %v4846_v28, %v3538_v3 }
 0x7ac   : > { %v4935_v42 = vadd.f32 %v4934_v32, %v4933_v49  ;;  %v4786_v50 = vpop.f32.mrf.mxu1 }
 0x7ad   : > { %7888 = vst [vmem:[#allocation26_spill] sm:$0xff] %v7617_v35  ;;  %v3543_v58 = vadd.f32 %v4785_v33, %v3077_v38  ;;  %v7619_v21 = vpop.f32.mrf.mxu0 }
 0x7ae   : > { %v4787_v55 = vpop.f32.mrf.mxu1 }
 0x7af   : > { %v4788_v13 = vadd.f32 %v4787_v55, %v4786_v50  ;;  %v7621_v48 = vpop.f32.mrf.mxu0  ;;  %v7623_v26 = vadd.f32 %v4849_v56, %v3543_v58 }
 0x7b1   : > { %7889 = vst [vmem:[#allocation15_spill] sm:$0xff] %v7623_v26  ;;  %v3546_v53 = vadd.f32 %v4788_v13, %v3082_v52  ;;  %v7625_v18 = vpop.f32.mrf.mxu0 }
 0x7b2   : > { %v4869_v41 = vpop.f32.mrf.mxu1 }
 0x7b3   : > { %v4940_v36 = vpop.f32.mrf.mxu0  ;;  %v7627_v63 = vadd.f32 %v4852_v34, %v3546_v53 }
 0x7b4   : > { %v4870_v12 = vpop.f32.mrf.mxu1 }
 0x7b5   : > { %7890 = vst [vmem:[#allocation18_spill] sm:$0xff] %v7627_v63  ;;  %v4871_v31 = vadd.f32 %v4870_v12, %v4869_v41  ;;  %v7629_v62 = vpop.f32.mrf.mxu0 }
 0x7b6   : > { %v4872_v44 = vpop.f32.mrf.mxu1 }
 0x7b7   : > { %v3681_v61 = vadd.f32 %v4871_v31, %v7589_v45  ;;  %v7632_v2 = vpop.f32.mrf.mxu0 }
 0x7b8   : > { %v4873_v10 = vpop.f32.mrf.mxu1 }
 0x7b9   : > { %v7634_v39 = vpop.f32.mrf.mxu0  ;;  %v7636_v25 = vadd.f32 %v4935_v42, %v3681_v61 }
 0x7ba   : > { %v4875_v24 = vpop.f32.mrf.mxu1 }
 0x7bb   : > { %v7638_v5 = vpop.f32.mrf.mxu0 }
 0x7bc   : > { %v4876_v43 = vpop.f32.mrf.mxu1 }
 0x7bd   : > { %v7640_v28 = vpop.f32.mrf.mxu0  ;;  %v4877_v11 = vadd.f32 %v4876_v43, %v4875_v24 }
 0x7be   : > { %v4878_v22 = vpop.f32.mrf.mxu1 }
 0x7bf   : > { %v7642_v37 = vpop.f32.mrf.mxu0 }
 0x7c0   : > { %v4879_v47 = vpop.f32.mrf.mxu1 }
 0x7c1   : > { %v7644_v60 = vpop.f32.mrf.mxu0 }
 0x7c2   : > { %v4881_v45 = vpop.f32.mrf.mxu1 }
 0x7c3   : > { %v7646_v27 = vpop.f32.mrf.mxu0 }
 0x7c4   : > { %v4882_v23 = vpop.f32.mrf.mxu1 }
 0x7c5   : > { %v7648_v56 = vpop.f32.mrf.mxu0 }
 0x7c6   : > { %v4884_v30 = vpop.f32.mrf.mxu1 }
 0x7c7   : > { %v7650_v17 = vpop.f32.mrf.mxu0 }
 0x7c8   : > { %v4885_v59 = vpop.f32.mrf.mxu1 }
 0x7c9   : > { %v7652_v8 = vpop.f32.mrf.mxu0 }
 0x7ca   : > { %v4887_v19 = vpop.f32.mrf.mxu1 }
 0x7cb   : > { %v7654_v29 = vpop.f32.mrf.mxu0 }
 0x7cc   : > { %v4888_v9 = vpop.f32.mrf.mxu1 }
 0x7cd   : > { %v7656_v34 = vpop.f32.mrf.mxu0 }
 0x7ce   : > { %7891 = vst [vmem:[#allocation25_spill] sm:$0xff] %v7656_v34  ;;  %v4890_v20 = vpop.f32.mrf.mxu1 }
 0x7cf   : > { %v7658_v3 = vpop.f32.mrf.mxu0 }
 0x7d0   : > { %7892 = vst [vmem:[#allocation13_spill] sm:$0xff] %v7658_v3  ;;  %v4891_v49 = vpop.f32.mrf.mxu1 }
 0x7d1   : > { %v7660_v38 = vpop.f32.mrf.mxu0 }
 0x7d2   : > { %v7662_v4 = vpop.f32.mrf.mxu1 }
 0x7d3   : > { %v7664_v33 = vpop.f32.mrf.mxu0 }
 0x7d4   : > { %v4894_v32 = vpop.f32.mrf.mxu1 }
 0x7d5   : > { %v7666_v42 = vpop.f32.mrf.mxu0 }
 0x7d6   : > { %7893 = vst [vmem:[#allocation17_spill] sm:$0xff] %v7666_v42  ;;  %v7668_v50 = vpop.f32.mrf.mxu1  ;;  %v4874_v42 = vadd.f32 %v4873_v10, %v4872_v44 }
 0x7d7   : > { %v7670_v58 = vpop.f32.mrf.mxu0 }
 0x7d8   : > { %7894 = vst [vmem:[#allocation16_spill] sm:$0xff] %v7670_v58  ;;  %v7672_v55 = vpop.f32.mrf.mxu1  ;;  %v3684_v24 = vadd.f32 %v4874_v42, %v7591_v57 }
 0x7d9   : > { %v7674_v13 = vpop.f32.mrf.mxu0 }
 0x7da   : > { %7895 = vst [vmem:[#allocation21_spill] sm:$0xff] %v7674_v13  ;;  %v4899_v52 = vpop.f32.mrf.mxu1 }
 0x7db   : > { %v7676_v53 = vpop.f32.mrf.mxu0 }
 0x7dc   : > { %7896 = vst [vmem:[#allocation20_spill] sm:$0xff] %v7676_v53  ;;  %v4900_v41 = vpop.f32.mrf.mxu1  ;;  %v4880_v53 = vadd.f32 %v4879_v47, %v4878_v22  ;;  %v7704_v22 = vpop.permute.xlu0 %3976  ;;  %v4889_v47 = vadd.f32 %v4888_v9, %v4887_v19  ;;  %v4953_v19 = vadd.f32 %v7646_v27, %v7644_v60  ;;  %v4898_v27 = vadd.f32 %v7672_v55, %v7668_v50 }
 0x7dd   : > { %v7678_v12 = vpop.f32.mrf.mxu0 }
 0x7de   : > { %7897 = vst [vmem:[#allocation23_spill] sm:$0xff] %v7678_v12  ;;  %v4902_v31 = vpop.f32.mrf.mxu1  ;;  %v3689_v12 = vadd.f32 %v4877_v11, %v7593_v7  ;;  %v3692_v43 = vadd.f32 %v4880_v53, %v7595_v40  ;;  %v4938_v7 = vadd.f32 %v7621_v48, %v7619_v21  ;;  %v4944_v11 = vadd.f32 %v7632_v2, %v7629_v62 }
 0x7df   : > { %v7680_v61 = vpop.f32.mrf.mxu0  ;;  %v3705_v21 = vadd.f32 %v4889_v47, %v7601_v6  ;;  %v4895_v6 = vadd.f32 %v4894_v32, %v7662_v4 }
 0x7e0   : > { %7898 = vst [vmem:[#allocation22_spill] sm:$0xff] %v7680_v61  ;;  %v4903_v63 = vpop.f32.mrf.mxu1  ;;  %v3789_v40 = vadd.f32 %v4944_v11, %v3692_v43  ;;  %v7908_v11 = vld [vmem:[#allocation16_spill] sm:$0xff] }
 0x7e1   : > { %v7682_v35 = vpop.f32.mrf.mxu0  ;;  %v3713_v4 = vadd.f32 %v4895_v6, %v7605_v54  ;;  %v7912_v6 = vld [vmem:[#allocation21_spill] sm:$0xff] }
 0x7e2   : > { %7899 = vst [vmem:[#allocation5_spill] sm:$0xff] %v7682_v35  ;;  %v7684_v26 = vpop.f32.mrf.mxu1  ;;  %v4941_v35 = vadd.f32 %v4940_v36, %v7625_v18 }
 0x7e3   : > { %7900 = vst [vmem:[#allocation11_spill] sm:$0xff] %v7684_v26  ;;  %v7686_v14 = vpop.f32.mrf.mxu0 }
 0x7e4   : > { %7901 = vst [vmem:[#allocation14_spill] sm:$0xff] %v7686_v14  ;;  %v7688_v58 = vpop.f32.mrf.mxu1  ;;  %v3786_v44 = vadd.f32 %v4941_v35, %v3689_v12  ;;  %v4892_v12 = vadd.f32 %v4891_v49, %v4890_v20  ;;  %v3802_v20 = vadd.f32 %v4953_v19, %v3705_v21 }
 0x7e5   : > { %v7690_v13 = vpop.f32.mrf.mxu0 }
 0x7e6   : > { %7902 = vst [vmem:[#allocation12_spill] sm:$0xff] %v7690_v13  ;;  %v7692_v3 = vpop.f32.mrf.mxu1  ;;  %v4883_v13 = vadd.f32 %v4882_v23, %v4881_v45  ;;  %v3781_v45 = vadd.f32 %v4938_v7, %v3684_v24  ;;  %v4886_v23 = vadd.f32 %v4885_v59, %v4884_v30  ;;  %v3708_v59 = vadd.f32 %v4892_v12, %v7603_v46  ;;  %v7906_v7 = vld [vmem:[#allocation13_spill] sm:$0xff]  ;;  %v7909_v12 = vld [vmem:[#allocation24_spill] sm:$0xff] }
 0x7e7   : > { %v7695_v34 = vpop.f32.mrf.mxu0 }
 0x7e8   : > { %7903 = vst [vmem:[#allocation9_spill] sm:$0xff] %v7695_v34  ;;  %v7697_v61 = vpop.f32.mrf.mxu1  ;;  %v3697_v35 = vadd.f32 %v4883_v13, %v7597_v16  ;;  %v3700_v30 = vadd.f32 %v4886_v23, %v7599_v1  ;;  %v4904_v1 = vadd.f32 %v4903_v63, %v4902_v31  ;;  %v3716_v63 = vadd.f32 %v4898_v27, %v7607_v0  ;;  %v7916_v27 = vld [vmem:[#allocation26_spill] sm:$0xff] }
 0x7e9   : > { %v5071_v26 = vpop.f32.mrf.mxu0 }
 0x7ea   : > { %v7702_v14 = vpop.f32.mrf.mxu1  ;;  %v3883_v57 = vadd.f32 %v5071_v26, %v3786_v44  ;;  %v7717_v26 = vpop.permute.xlu0 %3981  ;;  %v3724_v50 = vadd.f32 %v4904_v1, %v7611_v51  ;;  %v7904_v55 = vld [vmem:[#allocation11_spill] sm:$0xff]  ;;  %v7917_v1 = vld [vmem:[#allocation18_spill] sm:$0xff] }
 0x7eb   : > { %v3874_v10 = vpop.f32.mrf.mxu0  ;;  %v4907_v31 = vadd.f32 %v7688_v58, %v7904_v55  ;;  %v3992_v44 = vpop.permute.xlu1 %3991 }
 0x7ec   : > { %v3875_v18 = vadd.f32 %v3874_v10, %v7636_v25  ;;  %v4912_v36 = vpop.f32.mrf.mxu1  ;;  %v4947_v25 = vadd.f32 %v7638_v5, %v7634_v39  ;;  %v4950_v39 = vadd.f32 %v7642_v37, %v7640_v28  ;;  %v4956_v5 = vadd.f32 %v7650_v17, %v7648_v56  ;;  %v7905_v10 = vld [vmem:[#allocation25_spill] sm:$0xff] }
 0x7ed   : > { %v5072_v42 = vpop.f32.mrf.mxu0  ;;  %v4959_v28 = vadd.f32 %v7654_v29, %v7652_v8  ;;  %v4965_v17 = vadd.f32 %v7664_v33, %v7660_v38  ;;  %v4962_v8 = vadd.f32 %v7906_v7, %v7905_v10  ;;  %v7907_v29 = vld [vmem:[#allocation17_spill] sm:$0xff]  ;;  %v4913_v38 = vadd.f32 %v4912_v36, %v7702_v14 }
 0x7ee   : > { %v7711_v53 = vpop.f32.mrf.mxu1  ;;  %5388 = vtanh.f32 %v3875_v18  ;;  %v3886_v48 = vadd.f32 %v5072_v42, %v3789_v40  ;;  %v3794_v9 = vadd.f32 %v4947_v25, %v3697_v35  ;;  %v3805_v32 = vadd.f32 %v4956_v5, %v3708_v59  ;;  %v7911_v25 = vld [vmem:[#allocation15_spill] sm:$0xff] }
 0x7ef   : > { %v3877_v34 = vpop.f32.mrf.mxu0  ;;  %5390 = vtanh.f32 %v3883_v57  ;;  %v4968_v47 = vadd.f32 %v7908_v11, %v7907_v29  ;;  %v3813_v35 = vadd.f32 %v4962_v8, %v3716_v63  ;;  %v3729_v21 = vadd.f32 %v4907_v31, %v7909_v12  ;;  %v7921_v63 = vld [vmem:[#allocation9_spill] sm:$0xff] }
 0x7f0   : > { %v3878_v62 = vadd.f32 %v3877_v34, %v3781_v45  ;;  %v4915_v2 = vpop.f32.mrf.mxu1  ;;  %v4901_v34 = vadd.f32 %v4900_v41, %v4899_v52  ;;  %v3797_v52 = vadd.f32 %v4950_v39, %v3700_v30  ;;  %v3987_v41 = vpop.permute.xlu0 %3986  ;;  %v4910_v14 = vadd.f32 %v7697_v61, %v7692_v3  ;;  %v7914_v61 = vld [vmem:[#allocation5_spill] sm:$0xff] }
 0x7f1   : > { %v3821_v40 = vadd.f32 %v4968_v47, %v3724_v50  ;;  %v4916_v36 = vadd.f32 %v4915_v2, %v7711_v53  ;;  %v3737_v19 = vadd.f32 %v4913_v38, %v7911_v25  ;;  %v4002_v3 = vpop.permute.xlu1 %4001  ;;  %v7915_v53 = vld [vmem:[#allocation14_spill] sm:$0xff] }
 0x7f2   : > { %5392 = vtanh.f32 %v3878_v62  ;;  %v5075_v16 = vpop.f32.mrf.mxu1  ;;  %v3721_v24 = vadd.f32 %v4901_v34, %v7609_v15  ;;  %v3810_v15 = vadd.f32 %v4959_v28, %v3713_v4  ;;  %v4977_v2 = vadd.f32 %v7915_v53, %v7914_v61 }
 0x7f3   : > { %5394 = vtanh.f32 %v3886_v48  ;;  %v3899_v13 = vadd.f32 %v5075_v16, %v3802_v20  ;;  %v7910_v48 = vld [vmem:[#allocation19_spill] sm:$0xff] }
 0x7f4   : > { %v3890_v49 = vpop.f32.mrf.mxu1  ;;  %v3818_v33 = vadd.f32 %v4965_v17, %v3721_v24  ;;  %v3997_v58 = vpop.permute.xlu0 %3996  ;;  %v7919_v24 = vld [vmem:[#allocation22_spill] sm:$0xff]  ;;  %v7920_v17 = vld [vmem:[#allocation12_spill] sm:$0xff] }
 0x7f5   : > { %v3891_v60 = vadd.f32 %v3890_v49, %v3794_v9  ;;  %v7913_v9 = vld [vmem:[#allocation20_spill] sm:$0xff]  ;;  %v4980_v50 = vadd.f32 %v7921_v63, %v7920_v17 }
 0x7f6   : > { %v5076_v46 = vpop.f32.mrf.mxu1  ;;  %v4971_v34 = vadd.f32 %v7913_v9, %v7912_v6 }
 0x7f7   : > { %5396 = vtanh.f32 %v3891_v60  ;;  %v3902_v37 = vadd.f32 %v5076_v46, %v3805_v32 }
 0x7f8   : > { %v3893_v43 = vpop.f32.mrf.mxu1  ;;  %5398 = vtanh.f32 %v3899_v13  ;;  %v3740_v13 = vadd.f32 %v4916_v36, %v7917_v1  ;;  %v3826_v46 = vadd.f32 %v4971_v34, %v3729_v21  ;;  %v4007_v32 = vpop.permute.xlu0 %4006 }
 0x7f9   : > { %v3894_v56 = vadd.f32 %v3893_v43, %v3797_v52  ;;  %v7918_v52 = vld [vmem:[#allocation23_spill] sm:$0xff] }
 0x7fa   : > { %v5079_v54 = vpop.f32.mrf.mxu1  ;;  %v4974_v43 = vadd.f32 %v7919_v24, %v7918_v52  ;;  %v3837_v8 = vadd.f32 %v4980_v50, %v3740_v13  ;;  %v7922_v50 = vld [vmem:[#allocation4_spill] sm:$0xff] }
 0x7fb   : > { %5400 = vtanh.f32 %v3894_v56  ;;  %v7745_v18 = vpop.eup %5388  ;;  %v3915_v42 = vadd.f32 %v5079_v54, %v3818_v33  ;;  %v3834_v56 = vadd.f32 %v4977_v2, %v3737_v19 }
 0x7fc   : > { %v3906_v0 = vpop.f32.mrf.mxu1  ;;  %5402 = vtanh.f32 %v3902_v37  ;;  %v7747_v57 = vpop.eup %5390  ;;  %v4049_v62 = vmul.f32 %v7745_v18, %v7910_v48 }
 0x7fd   : > { %v3907_v51 = vadd.f32 %v3906_v0, %v3810_v15  ;;  %v4051_v39 = vmul.f32 %v7747_v57, %v7717_v26 }
 0x7fe   : > { %v5080_v45 = vpop.f32.mrf.mxu1 }
 0x7ff   : > { %v7749_v23 = vpop.eup %5392  ;;  %5404 = vtanh.f32 %v3907_v51  ;;  %v3918_v20 = vadd.f32 %v5080_v45, %v3821_v40 }
 0x800   : > { %v4050_v16 = vmul.f32 %v7749_v23, %v7704_v22  ;;  %v3909_v30 = vpop.f32.mrf.mxu1  ;;  %v7760_v59 = vpop.eup %5394  ;;  %5406 = vtanh.f32 %v3915_v42  ;;  %v3732_v22 = vadd.f32 %v4910_v14, %v7916_v27 }
 0x801   : > { %v3910_v49 = vadd.f32 %v3909_v30, %v3813_v35  ;;  %v4052_v28 = vmul.f32 %v7760_v59, %v3987_v41  ;;  %v4012_v41 = vpop.permute.xlu1 %4011  ;;  %v4017_v42 = vpop.permute.xlu0 %4016 }
 0x802   : > { %v4065_v5 = vadd.f32 %v4050_v16, %v4049_v62  ;;  %v5083_v60 = vpop.f32.mrf.mxu1  ;;  %v3829_v29 = vadd.f32 %v4974_v43, %v3732_v22 }
 0x803   : > { %5408 = vtanh.f32 %v3910_v49  ;;  %v3931_v15 = vadd.f32 %v5083_v60, %v3834_v56 }
 0x804   : > { %v7770_v4 = vpop.eup %5396  ;;  %v4066_v37 = vadd.f32 %v4065_v5, %v4051_v39  ;;  %v3922_v26 = vpop.f32.mrf.mxu1  ;;  %5410 = vtanh.f32 %v3918_v20 }
 0x805   : > { %v4053_v54 = vmul.f32 %v7770_v4, %v3992_v44  ;;  %v3923_v55 = vadd.f32 %v3922_v26, %v3826_v46  ;;  %v7778_v7 = vpop.eup %5398  ;;  %v4022_v14 = vpop.permute.xlu1 %4021 }
 0x806   : > { %v4067_v31 = vadd.f32 %v4066_v37, %v4052_v28  ;;  %v5084_v10 = vpop.f32.mrf.mxu1  ;;  %v4055_v40 = vmul.f32 %v7778_v7, %v4002_v3  ;;  %v4027_v25 = vpop.permute.xlu0 %4026 }
 0x807   : > { %5412 = vtanh.f32 %v3923_v55  ;;  %v3934_v0 = vadd.f32 %v5084_v10, %v3837_v8 }
 0x808   : > { %v7780_v11 = vpop.eup %5400  ;;  %v4068_v47 = vadd.f32 %v4067_v31, %v4053_v54  ;;  %v3925_v38 = vpop.f32.mrf.mxu1  ;;  %5414 = vtanh.f32 %v3931_v15 }
 0x809   : > { %v4054_v33 = vmul.f32 %v7780_v11, %v3997_v58  ;;  %v3926_v51 = vadd.f32 %v3925_v38, %v3829_v29  ;;  %v7783_v44 = vpop.eup %5402  ;;  %v4032_v20 = vpop.permute.xlu1 %4031 }
 0x80a   : > { %v4056_v12 = vmul.f32 %v7783_v44, %v4007_v32  ;;  %v4037_v61 = vpop.permute.xlu0 %4036 }
 0x80b   : > { %v4069_v45 = vadd.f32 %v4068_v47, %v4054_v33  ;;  %5416 = vtanh.f32 %v3926_v51 }
 0x80c   : > { %v5405_v35 = vpop.eup %5404  ;;  %5418 = vtanh.f32 %v3934_v0 }
 0x80d   : > { %v4070_v21 = vadd.f32 %v4069_v45, %v4055_v40  ;;  %v5407_v36 = vpop.eup %5406  ;;  %v4057_v48 = vmul.f32 %v5405_v35, %v4012_v41  ;;  %v4042_v1 = vpop.permute.xlu1 %4041  ;;  %v5442_v41 = vld [vmem:[%s7809_s1 + $0x4] sm:$0x1] }
 0x80e   : > { %v4059_v6 = vmul.f32 %v5407_v36, %v4022_v14  ;;  %v4047_v32 = vpop.permute.xlu0 %4046 }
 0x80f   : > { %v4071_v62 = vadd.f32 %v4070_v21, %v4056_v12 }
 0x810   : > { %v5409_v58 = vpop.eup %5408 }
 0x811   : > { %v4072_v19 = vadd.f32 %v4071_v62, %v4057_v48  ;;  %v4058_v16 = vmul.f32 %v5409_v58, %v4017_v42  ;;  %v5411_v30 = vpop.eup %5410  ;;  %v4090_v17 = vpop.permute.xlu1 %4089 }
 0x812   : > { %v4060_v49 = vmul.f32 %v5411_v30, %v4027_v25  ;;  %v4095_v54 = vrot.slane %v4090_v17, %v7922_v50 }
 0x813   : > { %v4073_v9 = vadd.f32 %v4072_v19, %v4058_v16 }
 0x814   : > { %v5413_v34 = vpop.eup %5412 }
 0x815   : > { %v4074_v3 = vadd.f32 %v4073_v9, %v4059_v6  ;;  %v5415_v53 = vpop.eup %5414  ;;  %v4061_v2 = vmul.f32 %v5413_v34, %v4032_v20 }
 0x816   : > { %v4063_v13 = vmul.f32 %v5415_v53, %v4042_v1 }
 0x817   : > { %v4075_v39 = vadd.f32 %v4074_v3, %v4060_v49 }
 0x818   : > { %v5417_v5 = vpop.eup %5416 }
 0x819   : > { %v4076_v60 = vadd.f32 %v4075_v39, %v4061_v2  ;;  %v4062_v27 = vmul.f32 %v5417_v5, %v4037_v61  ;;  %v5419_v22 = vpop.eup %5418 }
 0x81a   : > { %v4064_v52 = vmul.f32 %v5419_v22, %v4047_v32 }
 0x81b   : > { %v4077_v46 = vadd.f32 %v4076_v60, %v4062_v27 }
 0x81d   : > { %v4078_v24 = vadd.f32 %v4077_v46, %v4063_v13 }
 0x81f   : > { %v4079_v43 = vadd.f32 %v4078_v24, %v4064_v52 }
 0x821   : > { %v4080_v28 = vrot.slane %v4079_v43, 4 }
 0x823   : > { %v4081_v37 = vadd.f32 %v4080_v28, %v4079_v43 }
 0x825   : > { %v4082_v56 = vrot.slane %v4081_v37, 2 }
 0x827   : > { %v4083_v26 = vadd.f32 %v4082_v56, %v4081_v37 }
 0x829   : > { %v4084_v63 = vrot.slane %v4083_v26, 1 }
 0x82b   : > { %v4085_v55 = vadd.f32 %v4084_v63, %v4083_v26 }
 0x82d   : > { %v4096_v31 = vadd.f32 %v4095_v54, %v4085_v55 }
 0x82f   : > { %v4446_v15 = vmul.f32 -1.442695, %v4096_v31 }
 0x831   : > { %5420 = vpow2.f32 %v4446_v15 }
 0x83e   : > { %v5421_v10 = vpop.eup %5420 }
 0x83f   : > { %v4100_v8 = vadd.f32 1.0, %v5421_v10 }
 0x841   : > { %5422 = vrcp.f32 %v4100_v8 }
 0x84e   : > { %v5423_v29 = vpop.eup %5422 }
 0x84f   : > { %v4103_v47 = vmul.f32 %v5442_v41, %v5423_v29 }
 0x851   : > { %v4104_v38 = vsel %vm1449_vm3, %v4103_v47, 0.0  ;;  %v4107_v0 = vmul.f32 40.5, %v4103_v47 }
 0x852   : > { %4105 = vadd.xlane.f32.xlu0 %v4104_v38 }
 0x8db   : > { %v4106_v33 = vpop.xlane.xlu0 %4105 }
 0x8dc   : > { %5424 = vrcp.f32 %v4106_v33 }
 0x8e9   : > { %v5425_v51 = vpop.eup %5424 }
 0x8ea   : > { %v4109_v42 = vmul.f32 %v5425_v51, %v4107_v0 }
 0x8ec   : > { %v4137_v40 = vrot.slane %v4109_v42, %v7922_v50 }
 0x8ee   : > { %v4162_v45 = vmul.f32 %v7745_v18, %v4137_v40  ;;  %v4163_v35 = vmul.f32 %v7749_v23, %v4137_v40  ;;  %v4164_v12 = vmul.f32 %v7747_v57, %v4137_v40  ;;  %v4165_v21 = vmul.f32 %v7760_v59, %v4137_v40 }
 0x8ef   : > { %v4166_v14 = vmul.f32 %v7770_v4, %v4137_v40  ;;  %v4167_v36 = vmul.f32 %v7780_v11, %v4137_v40  ;;  %v4168_v48 = vmul.f32 %v7778_v7, %v4137_v40  ;;  %v4169_v62 = vmul.f32 %v7783_v44, %v4137_v40 }
 0x8f0   : > { %v4469_v58 = vpack.c.bf16 %v4163_v35, %v4162_v45  ;;  %v4474_v18 = vpack.c.bf16 %v4165_v21, %v4164_v12 }
 0x8f1   : > { %v4479_v25 = vpack.c.bf16 %v4167_v36, %v4166_v14  ;;  %v4484_v23 = vpack.c.bf16 %v4169_v62, %v4168_v48 }
 0x8f2   : > { %4470 = vst [vmem:[%s471_s16] sm:$0xff] %v4469_v58   ;;  %4486 = vst [vmem:[%s471_s16 + $0x8] sm:$0xff] %v4474_v18  }
 0x8f3   : > { %4487 = vst [vmem:[%s471_s16 + $0x10] sm:$0xff] %v4479_v25   ;;  %4488 = vst [vmem:[%s471_s16 + $0x18] sm:$0xff] %v4484_v23  }
 0x8f4 PF: > { %s28_s17 = sadd.s32 1, %s5449_s17  }
 0x8f5   : > { %p25_p4 = scmp.ge.s32.totalorder %s28_s17, 4  }
 0x8f7   :  { %27 = sbr.rel (!%p25_p4) target bundleno = 3 (0x3), region = 114 }

// kernel: deepphys_forward.3
= control target key start
LH: loop header
LB: loop body
LE: loop exit
PB: predicated region body
PF: predicated region fallthrough
CT: control target
= control target key end

     0   :  { %v7647_v22 = vmov 1966171168   ;;  %v1074_v24 = vlaneseq  ;;  %vm5887_vm0 = vcmask 1041408   ;;  %vm5899_vm1 = vcmask 1024   ;;  %s9364_s1 = inlined_call_operand.vmem [shape: bf16[8192,128], index: 1, kind: input, shape index: {}]   ;;  %s9365_s0 = inlined_call_operand.vmem [shape: bf16[2,8192], index: 0, kind: input, shape index: {}]   ;;  %s9366_s2 = inlined_call_operand.vmem [shape: f32[1,128], index: 2, kind: input, shape index: {}]   ;;  %s9367_s4 = inlined_call_operand.<no memory space> [shape: f32[1,1], index: 4, kind: input, shape index: {}]   ;;  %s9368_s3 = inlined_call_operand.vmem [shape: f32[1,128], index: 3, kind: input, shape index: {}]   ;;  %s9369_s5 = inlined_call_operand.vmem [shape: f32[2,1], index: 5, kind: output, shape index: {}]  }
   0x1   :  { %v7125_v0 = vld [vmem:[%s9364_s1 + $0x78] sm:$0xff]   ;;  %v7129_v4 = vld [vmem:[%s9364_s1 + $0x70] sm:$0xff]   ;;  %v7133_v8 = vld [vmem:[%s9364_s1 + $0x68] sm:$0xff]   ;;  %v1072_v23 = vunpack.c.l.s4 %v7647_v22 }
   0x2   :  { %v7126_v1 = vld [vmem:[%s9364_s1 + $0xf8] sm:$0xff]   ;;  %6420 = vmatprep.subr.bf16.mxu0 %v7125_v0  ;;  %v7130_v5 = vld [vmem:[%s9364_s1 + $0xf0] sm:$0xff]   ;;  %v7134_v9 = vld [vmem:[%s9364_s1 + $0xe8] sm:$0xff]   ;;  %v1075_v30 = vshrl.u32 %v1074_v24, 7 }
   0x3   :  { %v7127_v2 = vld [vmem:[%s9364_s1 + $0x38] sm:$0xff]   ;;  %6442 = vmatprep.subr.bf16.mxu1 %v7126_v1  ;;  %v7131_v6 = vld [vmem:[%s9364_s1 + $0x30] sm:$0xff]   ;;  %v7135_v10 = vld [vmem:[%s9364_s1 + $0x28] sm:$0xff]   ;;  %v1073_v29 = vunpack.c.0.s8 %v1072_v23 }
   0x4   :  { %v7128_v3 = vld [vmem:[%s9364_s1 + $0xb8] sm:$0xff]   ;;  %6421 = vmatpush3.bf16.msra.mxu0 %v7127_v2  ;;  %v7132_v7 = vld [vmem:[%s9364_s1 + $0xb0] sm:$0xff]   ;;  %v7136_v11 = vld [vmem:[%s9364_s1 + $0xa8] sm:$0xff]  }
   0x5   :  { %6443 = vmatpush3.bf16.msra.mxu1 %v7128_v3  ;;  %6422 = vmatprep.subr.bf16.mxu0 %v7129_v4  ;;  %v7137_v12 = vld [vmem:[%s9364_s1 + $0x60] sm:$0xff]   ;;  %v7141_v16 = vld [vmem:[%s9364_s1 + $0x58] sm:$0xff]   ;;  %v7145_v20 = vld [vmem:[%s9364_s1 + $0x50] sm:$0xff]   ;;  %v7768_v35 = vsub.s32 %v1073_v29, %v1075_v30 }
   0x6   :  { %6444 = vmatprep.subr.bf16.mxu1 %v7130_v5  ;;  %v7138_v13 = vld [vmem:[%s9364_s1 + $0xe0] sm:$0xff]   ;;  %v7142_v17 = vld [vmem:[%s9364_s1 + $0xd8] sm:$0xff]   ;;  %v7146_v21 = vld [vmem:[%s9364_s1 + $0xd0] sm:$0xff]  }
   0x7   :  { %v7139_v14 = vld [vmem:[%s9364_s1 + $0x20] sm:$0xff]   ;;  %v7143_v18 = vld [vmem:[%s9364_s1 + $0x18] sm:$0xff]   ;;  %v7147_v25 = vld [vmem:[%s9364_s1 + $0x10] sm:$0xff]  }
   0x8   :  { %6423 = vmatpush3.bf16.msra.mxu0 %v7131_v6  ;;  %v7140_v15 = vld [vmem:[%s9364_s1 + $0xa0] sm:$0xff]   ;;  %v7144_v19 = vld [vmem:[%s9364_s1 + $0x98] sm:$0xff]   ;;  %v7148_v26 = vld [vmem:[%s9364_s1 + $0x90] sm:$0xff]  }
   0x9   :  { %6445 = vmatpush3.bf16.msra.mxu1 %v7132_v7  ;;  %6424 = vmatprep.subr.bf16.mxu0 %v7133_v8  ;;  %v7149_v27 = vld [vmem:[%s9364_s1 + $0x48] sm:$0xff]   ;;  %v7153_v33 = vld [vmem:[%s9364_s1 + $0x40] sm:$0xff]   ;;  %v7158_v41 = vld [vmem:[%s9364_s1 + $0x178] sm:$0xff]  }
   0xa   :  { %6446 = vmatprep.subr.bf16.mxu1 %v7134_v9  ;;  %v7150_v28 = vld [vmem:[%s9364_s1 + $0xc8] sm:$0xff]   ;;  %v7154_v34 = vld [vmem:[%s9364_s1 + $0xc0] sm:$0xff]   ;;  %v7159_v42 = vld [vmem:[%s9364_s1 + $0x1f8] sm:$0xff]  }
   0xb   :  { %v7151_v31 = vld [vmem:[%s9364_s1 + $0x8] sm:$0xff]   ;;  %v7155_v36 = vld [vmem:[%s9364_s1] sm:$0xff]   ;;  %v7160_v46 = vld [vmem:[%s9364_s1 + $0x138] sm:$0xff]  }
   0xc   :  { %6425 = vmatpush3.bf16.msra.mxu0 %v7135_v10  ;;  %v7152_v32 = vld [vmem:[%s9364_s1 + $0x88] sm:$0xff]   ;;  %v7156_v37 = vld [vmem:[%s9364_s1 + $0x80] sm:$0xff]   ;;  %v7161_v48 = vld [vmem:[%s9364_s1 + $0x1b8] sm:$0xff]  }
   0xd   :  { %6447 = vmatpush3.bf16.msra.mxu1 %v7136_v11  ;;  %6426 = vmatprep.subr.bf16.mxu0 %v7137_v12  ;;  %v23_v38 = vld [vmem:[%s9365_s0] sm:$0xff]  ;;  %v7162_v51 = vld [vmem:[%s9364_s1 + $0x170] sm:$0xff]   ;;  %v7166_v58 = vld [vmem:[%s9364_s1 + $0x168] sm:$0xff]  }
   0xe   :  { %6448 = vmatprep.subr.bf16.mxu1 %v7138_v13  ;;  %v1070_v39 = vcombine.high %v23_v38, %v23_v38  ;;  %v1077_v40 = vrot.slane %v23_v38, %v7768_v35  ;;  %v7163_v53 = vld [vmem:[%s9364_s1 + $0x1f0] sm:$0xff]   ;;  %v7167_v59 = vld [vmem:[%s9364_s1 + $0x1e8] sm:$0xff]   ;;  %v7170_v62 = vld [vmem:[%s9364_s1 + $0x160] sm:$0xff]  }
   0xf   :  { %v7164_v55 = vld [vmem:[%s9364_s1 + $0x130] sm:$0xff]   ;;  %v7168_v60 = vld [vmem:[%s9364_s1 + $0x128] sm:$0xff]   ;;  %v7171_v63 = vld [vmem:[%s9364_s1 + $0x1e0] sm:$0xff]  }
  0x10   :  { %6427 = vmatpush3.bf16.msra.mxu0 %v7139_v14  ;;  %v1085_v43 = vcombine.high %v1077_v40, %v1077_v40  ;;  %v1093_v44 = vrot.slane %v1077_v40, %v7768_v35  ;;  %v7788_v45 = vrot.slane %v1070_v39, %v7768_v35  ;;  %v7165_v56 = vld [vmem:[%s9364_s1 + $0x1b0] sm:$0xff]   ;;  %v7169_v61 = vld [vmem:[%s9364_s1 + $0x1a8] sm:$0xff]   ;;  %v7172_v0 = vld [vmem:[%s9364_s1 + $0x120] sm:$0xff]  }
  0x11   :  { %6449 = vmatpush3.bf16.msra.mxu1 %v7140_v15  ;;  %6428 = vmatprep.subr.bf16.mxu0 %v7141_v16  ;;  %v7173_v1 = vld [vmem:[%s9364_s1 + $0x1a0] sm:$0xff]   ;;  %v7174_v2 = vld [vmem:[%s9364_s1 + $0x158] sm:$0xff]   ;;  %v7178_v6 = vld [vmem:[%s9364_s1 + $0x150] sm:$0xff]  }
  0x12   :  { %6450 = vmatprep.subr.bf16.mxu1 %v7142_v17  ;;  %v1107_v47 = vrot.slane %v1085_v43, %v7768_v35  ;;  %v1086_v49 = vcombine.high %v7788_v45, %v7788_v45  ;;  %v1115_v50 = vcombine.high %v1093_v44, %v1093_v44  ;;  %v7175_v3 = vld [vmem:[%s9364_s1 + $0x1d8] sm:$0xff]   ;;  %v7179_v7 = vld [vmem:[%s9364_s1 + $0x1d0] sm:$0xff]   ;;  %v7182_v10 = vld [vmem:[%s9364_s1 + $0x148] sm:$0xff]  }
  0x13   :  { %v7176_v4 = vld [vmem:[%s9364_s1 + $0x118] sm:$0xff]   ;;  %v7180_v8 = vld [vmem:[%s9364_s1 + $0x110] sm:$0xff]   ;;  %v7183_v11 = vld [vmem:[%s9364_s1 + $0x1c8] sm:$0xff]  }
  0x14   :  { %6429 = vmatpush3.bf16.msra.mxu0 %v7143_v18  ;;  %4630 = vmatprep.mubr.bf16.mxu0 %v1107_v47  ;;  %v1117_v52 = vcombine.high %v1107_v47, %v1107_v47  ;;  %v1114_v54 = vrot.slane %v1086_v49, %v7768_v35  ;;  %v7177_v5 = vld [vmem:[%s9364_s1 + $0x198] sm:$0xff]   ;;  %v7181_v9 = vld [vmem:[%s9364_s1 + $0x190] sm:$0xff]   ;;  %v7184_v12 = vld [vmem:[%s9364_s1 + $0x108] sm:$0xff]   ;;  %v1100_v18 = vrot.slane %v7788_v45, %v7768_v35 }
  0x15   :  { %6451 = vmatpush3.bf16.msra.mxu1 %v7144_v19  ;;  %6430 = vmatprep.subr.bf16.mxu0 %v7145_v20  ;;  %v7185_v13 = vld [vmem:[%s9364_s1 + $0x188] sm:$0xff]   ;;  %v7186_v14 = vld [vmem:[%s9364_s1 + $0x140] sm:$0xff]   ;;  %v7190_v19 = vld [vmem:[%s9364_s1 + $0x278] sm:$0xff]  }
  0x16   :  { %6452 = vmatprep.subr.bf16.mxu1 %v7146_v21  ;;  %4670 = vmatprep.mubr.bf16.mxu1 %v1117_v52  ;;  %v1118_v57 = vcombine.high %v1114_v54, %v1114_v54  ;;  %v7187_v15 = vld [vmem:[%s9364_s1 + $0x1c0] sm:$0xff]   ;;  %v7191_v20 = vld [vmem:[%s9364_s1 + $0x2f8] sm:$0xff]   ;;  %v1116_v23 = vcombine.high %v1100_v18, %v1100_v18  ;;  %v7194_v24 = vld [vmem:[%s9364_s1 + $0x270] sm:$0xff]  }
  0x17   :  { %v7188_v16 = vld [vmem:[%s9364_s1 + $0x100] sm:$0xff]   ;;  %v7192_v21 = vld [vmem:[%s9364_s1 + $0x238] sm:$0xff]   ;;  %v7199_v29 = vld [vmem:[%s9364_s1 + $0x2e8] sm:$0xff]  }
  0x18   :  { %6431 = vmatpush3.bf16.msra.mxu0 %v7147_v25  ;;  %v7189_v17 = vld [vmem:[%s9364_s1 + $0x180] sm:$0xff]   ;;  %v7193_v22 = vld [vmem:[%s9364_s1 + $0x2b8] sm:$0xff]   ;;  %v7195_v25 = vld [vmem:[%s9364_s1 + $0x2f0] sm:$0xff]  }
  0x19   :  { %6453 = vmatpush3.bf16.msra.mxu1 %v7148_v26  ;;  %6432 = vmatprep.subr.bf16.mxu0 %v7149_v27  ;;  %v7196_v26 = vld [vmem:[%s9364_s1 + $0x230] sm:$0xff]   ;;  %v7200_v30 = vld [vmem:[%s9364_s1 + $0x228] sm:$0xff]   ;;  %v7207_v38 = vld [vmem:[%s9364_s1 + $0x2d8] sm:$0xff]  }
  0x1a   :  { %6454 = vmatprep.subr.bf16.mxu1 %v7150_v28  ;;  %v7197_v27 = vld [vmem:[%s9364_s1 + $0x2b0] sm:$0xff]   ;;  %v7198_v28 = vld [vmem:[%s9364_s1 + $0x268] sm:$0xff]   ;;  %v7208_v39 = vld [vmem:[%s9364_s1 + $0x218] sm:$0xff]  }
  0x1b   :  { %v7209_v40 = vld [vmem:[%s9364_s1 + $0x298] sm:$0xff]   ;;  %v7212_v43 = vld [vmem:[%s9364_s1 + $0x210] sm:$0xff]   ;;  %v7214_v45 = vld [vmem:[%s9364_s1 + $0x248] sm:$0xff]  }
  0x1c   :  { %6433 = vmatpush3.bf16.msra.mxu0 %v7151_v31  ;;  %v7201_v31 = vld [vmem:[%s9364_s1 + $0x2a8] sm:$0xff]   ;;  %v7218_v49 = vld [vmem:[%s9364_s1 + $0x240] sm:$0xff]  }
  0x1d   :  { %6455 = vmatpush3.bf16.msra.mxu1 %v7152_v32  ;;  %6434 = vmatprep.subr.bf16.mxu0 %v7153_v33  ;;  %v7202_v32 = vld [vmem:[%s9364_s1 + $0x260] sm:$0xff]   ;;  %v7216_v47 = vld [vmem:[%s9364_s1 + $0x208] sm:$0xff]  }
  0x1e   :  { %6456 = vmatprep.subr.bf16.mxu1 %v7154_v34  ;;  %v7203_v33 = vld [vmem:[%s9364_s1 + $0x2e0] sm:$0xff]   ;;  %v24_v52 = vld [vmem:[%s9365_s0 + $0x8] sm:$0xff] }
  0x1f   :  { %v7204_v34 = vld [vmem:[%s9364_s1 + $0x220] sm:$0xff]  }
  0x20   :  { %6435 = vmatpush3.bf16.msra.mxu0 %v7155_v36  ;;  %v7205_v36 = vld [vmem:[%s9364_s1 + $0x2a0] sm:$0xff]  }
  0x21   :  { %6457 = vmatpush3.bf16.msra.mxu1 %v7156_v37  ;;  %6464 = vmatprep.subr.bf16.mxu0 %v7158_v41  ;;  %v7206_v37 = vld [vmem:[%s9364_s1 + $0x258] sm:$0xff]   ;;  %v7210_v41 = vld [vmem:[%s9364_s1 + $0x250] sm:$0xff]  }
  0x22   :  { %6486 = vmatprep.subr.bf16.mxu1 %v7159_v42  ;;  %v7211_v42 = vld [vmem:[%s9364_s1 + $0x2d0] sm:$0xff]  }
  0x23   :  { %4631 = vmatmul.mubr.bf16.vlgmr.msra.gmra.mxu0 %v1093_v44  ;;  %v7213_v44 = vld [vmem:[%s9364_s1 + $0x290] sm:$0xff]  }
  0x24   :  { %6465 = vmatpush3.bf16.msra.mxu0 %v7160_v46  ;;  %4671 = vmatmul.mubr.bf16.vlgmr.msra.gmra.mxu1 %v1115_v50  ;;  %v7215_v46 = vld [vmem:[%s9364_s1 + $0x2c8] sm:$0xff]   ;;  %v7219_v50 = vld [vmem:[%s9364_s1 + $0x2c0] sm:$0xff]  }
  0x25   :  { %6466 = vmatprep.subr.bf16.mxu0 %v7162_v51  ;;  %6487 = vmatpush3.bf16.msra.mxu1 %v7161_v48  ;;  %v7217_v48 = vld [vmem:[%s9364_s1 + $0x288] sm:$0xff]   ;;  %v7220_v51 = vld [vmem:[%s9364_s1 + $0x200] sm:$0xff]  }
  0x26   :  { %4710 = vmatprep.mubr.bf16.mxu0 %v1114_v54  ;;  %6488 = vmatprep.subr.bf16.mxu1 %v7163_v53  ;;  %v7221_v53 = vld [vmem:[%s9364_s1 + $0x280] sm:$0xff]   ;;  %v1126_v54 = vrot.slane %v24_v52, %v7768_v35 }
  0x27   :  { %4750 = vmatprep.mubr.bf16.mxu1 %v1118_v57 }
  0x28   :  { %6467 = vmatpush3.bf16.msra.mxu0 %v7164_v55  ;;  %v1119_v55 = vcombine.high %v24_v52, %v24_v52  ;;  %v1134_v57 = vcombine.high %v1126_v54, %v1126_v54  ;;  %v7271_v52 = vld [vmem:[%s9364_s1 + $0x458] sm:$0xff]  }
  0x29   :  { %6468 = vmatprep.subr.bf16.mxu0 %v7166_v58  ;;  %6489 = vmatpush3.bf16.msra.mxu1 %v7165_v56  ;;  %v7222_v56 = vld [vmem:[%s9364_s1 + $0x378] sm:$0xff]   ;;  %v1142_v58 = vrot.slane %v1126_v54, %v7768_v35 }
  0x2a   :  { %6490 = vmatprep.subr.bf16.mxu1 %v7167_v59  ;;  %v7223_v59 = vld [vmem:[%s9364_s1 + $0x3f8] sm:$0xff]  }
  0x2b   :  { %v7273_v54 = vld [vmem:[%s9364_s1 + $0x418] sm:$0xff]  }
  0x2c   :  { %6469 = vmatpush3.bf16.msra.mxu0 %v7168_v60  ;;  %v7994_v60 = vrot.slane %v1119_v55, %v7768_v35  ;;  %v7274_v55 = vld [vmem:[%s9364_s1 + $0x498] sm:$0xff]  }
  0x2d   :  { %6470 = vmatprep.subr.bf16.mxu0 %v7170_v62  ;;  %6491 = vmatpush3.bf16.msra.mxu1 %v7169_v61  ;;  %v7224_v61 = vld [vmem:[%s9364_s1 + $0x338] sm:$0xff]   ;;  %v1156_v62 = vrot.slane %v1134_v57, %v7768_v35  ;;  %v7276_v57 = vld [vmem:[%s9364_s1 + $0x4d0] sm:$0xff]  }
  0x2e   :  { %6492 = vmatprep.subr.bf16.mxu1 %v7171_v63  ;;  %v7225_v63 = vld [vmem:[%s9364_s1 + $0x3b8] sm:$0xff]  }
  0x30   :  { %6471 = vmatpush3.bf16.msra.mxu0 %v7172_v0  ;;  %v1135_v0 = vcombine.high %v7994_v60, %v7994_v60 }
  0x31   :  { %6472 = vmatprep.subr.bf16.mxu0 %v7174_v2  ;;  %6493 = vmatpush3.bf16.msra.mxu1 %v7173_v1  ;;  %v1164_v1 = vcombine.high %v1142_v58, %v1142_v58  ;;  %v7226_v2 = vld [vmem:[%s9364_s1 + $0x370] sm:$0xff]  }
  0x32   :  { %6494 = vmatprep.subr.bf16.mxu1 %v7175_v3  ;;  %v1166_v3 = vcombine.high %v1156_v62, %v1156_v62 }
  0x34   :  { %6473 = vmatpush3.bf16.msra.mxu0 %v7176_v4  ;;  %v7227_v4 = vld [vmem:[%s9364_s1 + $0x3f0] sm:$0xff]  }
  0x35   :  { %6474 = vmatprep.subr.bf16.mxu0 %v7178_v6  ;;  %6495 = vmatpush3.bf16.msra.mxu1 %v7177_v5  ;;  %v1163_v5 = vrot.slane %v1135_v0, %v7768_v35  ;;  %v7228_v6 = vld [vmem:[%s9364_s1 + $0x330] sm:$0xff]   ;;  %v7283_v0 = vld [vmem:[%s9364_s1 + $0x440] sm:$0xff]  }
  0x36   :  { %6496 = vmatprep.subr.bf16.mxu1 %v7179_v7  ;;  %v7229_v7 = vld [vmem:[%s9364_s1 + $0x3b0] sm:$0xff]  }
  0x38   :  { %6475 = vmatpush3.bf16.msra.mxu0 %v7180_v8  ;;  %v1167_v8 = vcombine.high %v1163_v5, %v1163_v5 }
  0x39   :  { %6476 = vmatprep.subr.bf16.mxu0 %v7182_v10  ;;  %6497 = vmatpush3.bf16.msra.mxu1 %v7181_v9  ;;  %v7230_v9 = vld [vmem:[%s9364_s1 + $0x368] sm:$0xff]  }
  0x3a   :  { %6498 = vmatprep.subr.bf16.mxu1 %v7183_v11  ;;  %v7231_v10 = vld [vmem:[%s9364_s1 + $0x3e8] sm:$0xff]  }
  0x3b   :  { %v7232_v11 = vld [vmem:[%s9364_s1 + $0x328] sm:$0xff]  }
  0x3c   :  { %6477 = vmatpush3.bf16.msra.mxu0 %v7184_v12  ;;  %v7233_v12 = vld [vmem:[%s9364_s1 + $0x3a8] sm:$0xff]  }
  0x3d   :  { %6478 = vmatprep.subr.bf16.mxu0 %v7186_v14  ;;  %6499 = vmatpush3.bf16.msra.mxu1 %v7185_v13  ;;  %v7234_v13 = vld [vmem:[%s9364_s1 + $0x360] sm:$0xff]  }
  0x3e   :  { %6500 = vmatprep.subr.bf16.mxu1 %v7187_v15  ;;  %v7235_v14 = vld [vmem:[%s9364_s1 + $0x3e0] sm:$0xff]  }
  0x3f   :  { %v7236_v15 = vld [vmem:[%s9364_s1 + $0x320] sm:$0xff]  }
  0x40   :  { %6479 = vmatpush3.bf16.msra.mxu0 %v7188_v16  ;;  %v7237_v16 = vld [vmem:[%s9364_s1 + $0x3a0] sm:$0xff]  }
  0x41   :  { %6508 = vmatprep.subr.bf16.mxu0 %v7190_v19  ;;  %6501 = vmatpush3.bf16.msra.mxu1 %v7189_v17  ;;  %v7238_v17 = vld [vmem:[%s9364_s1 + $0x358] sm:$0xff]  }
  0x42   :  { %6530 = vmatprep.subr.bf16.mxu1 %v7191_v20  ;;  %v7240_v19 = vld [vmem:[%s9364_s1 + $0x318] sm:$0xff]  }
  0x43   :  { %4711 = vmatmul.mubr.bf16.vlgmr.msra.gmra.mxu0 %v1100_v18  ;;  %v7239_v18 = vld [vmem:[%s9364_s1 + $0x3d8] sm:$0xff]  }
  0x44   :  { %6509 = vmatpush3.bf16.msra.mxu0 %v7192_v21  ;;  %4751 = vmatmul.mubr.bf16.vlgmr.msra.gmra.mxu1 %v1116_v23  ;;  %v7241_v20 = vld [vmem:[%s9364_s1 + $0x398] sm:$0xff]   ;;  %v7242_v21 = vld [vmem:[%s9364_s1 + $0x350] sm:$0xff]  }
  0x45   :  { %6510 = vmatprep.subr.bf16.mxu0 %v7194_v24  ;;  %6531 = vmatpush3.bf16.msra.mxu1 %v7193_v22  ;;  %v7243_v22 = vld [vmem:[%s9364_s1 + $0x3d0] sm:$0xff]  }
  0x46   :  { %6532 = vmatprep.subr.bf16.mxu1 %v7195_v25  ;;  %4790 = vmatprep.mubr.bf16.mxu0 %v1156_v62  ;;  %v7244_v23 = vld [vmem:[%s9364_s1 + $0x310] sm:$0xff]   ;;  %v7246_v25 = vld [vmem:[%s9364_s1 + $0x348] sm:$0xff]  }
  0x47   :  { %4830 = vmatprep.mubr.bf16.mxu1 %v1166_v3  ;;  %v7245_v24 = vld [vmem:[%s9364_s1 + $0x390] sm:$0xff]   ;;  %v7281_v62 = vld [vmem:[%s9364_s1 + $0x408] sm:$0xff]  }
  0x48   :  { %6511 = vmatpush3.bf16.msra.mxu0 %v7196_v26  ;;  %v7247_v26 = vld [vmem:[%s9364_s1 + $0x3c8] sm:$0xff]   ;;  %v25_v3 = vld [vmem:[%s9365_s0 + $0x10] sm:$0xff] }
  0x49   :  { %6512 = vmatprep.subr.bf16.mxu0 %v7198_v28  ;;  %6533 = vmatpush3.bf16.msra.mxu1 %v7197_v27  ;;  %v7248_v27 = vld [vmem:[%s9364_s1 + $0x308] sm:$0xff]  }
  0x4a   :  { %6534 = vmatprep.subr.bf16.mxu1 %v7199_v29  ;;  %v7249_v28 = vld [vmem:[%s9364_s1 + $0x388] sm:$0xff]   ;;  %v7250_v29 = vld [vmem:[%s9364_s1 + $0x340] sm:$0xff]  }
  0x4c   :  { %6513 = vmatpush3.bf16.msra.mxu0 %v7200_v30  ;;  %v7251_v30 = vld [vmem:[%s9364_s1 + $0x3c0] sm:$0xff]  }
  0x4d   :  { %6514 = vmatprep.subr.bf16.mxu0 %v7202_v32  ;;  %6535 = vmatpush3.bf16.msra.mxu1 %v7201_v31  ;;  %v7252_v31 = vld [vmem:[%s9364_s1 + $0x300] sm:$0xff]  }
  0x4e   :  { %6536 = vmatprep.subr.bf16.mxu1 %v7203_v33  ;;  %v7253_v32 = vld [vmem:[%s9364_s1 + $0x380] sm:$0xff]   ;;  %v1149_v33 = vrot.slane %v7994_v60, %v7768_v35  ;;  %v7279_v60 = vld [vmem:[%s9364_s1 + $0x448] sm:$0xff]  }
  0x50   :  { %6515 = vmatpush3.bf16.msra.mxu0 %v7204_v34  ;;  %v7255_v34 = vld [vmem:[%s9364_s1 + $0x478] sm:$0xff]  }
  0x51   :  { %6516 = vmatprep.subr.bf16.mxu0 %v7206_v37  ;;  %6537 = vmatpush3.bf16.msra.mxu1 %v7205_v36  ;;  %v7256_v36 = vld [vmem:[%s9364_s1 + $0x4f8] sm:$0xff]  }
  0x52   :  { %6538 = vmatprep.subr.bf16.mxu1 %v7207_v38  ;;  %v7257_v37 = vld [vmem:[%s9364_s1 + $0x438] sm:$0xff]  }
  0x53   :  { %v7258_v38 = vld [vmem:[%s9364_s1 + $0x4b8] sm:$0xff]  }
  0x54   :  { %6517 = vmatpush3.bf16.msra.mxu0 %v7208_v39  ;;  %v1165_v39 = vcombine.high %v1149_v33, %v1149_v33 }
  0x55   :  { %6518 = vmatprep.subr.bf16.mxu0 %v7210_v41  ;;  %6539 = vmatpush3.bf16.msra.mxu1 %v7209_v40  ;;  %v7259_v40 = vld [vmem:[%s9364_s1 + $0x470] sm:$0xff]  }
  0x56   :  { %6540 = vmatprep.subr.bf16.mxu1 %v7211_v42  ;;  %v7260_v41 = vld [vmem:[%s9364_s1 + $0x4f0] sm:$0xff]  }
  0x57   :  { %v7261_v42 = vld [vmem:[%s9364_s1 + $0x430] sm:$0xff]  }
  0x58   :  { %6519 = vmatpush3.bf16.msra.mxu0 %v7212_v43  ;;  %v7262_v43 = vld [vmem:[%s9364_s1 + $0x4b0] sm:$0xff]  }
  0x59   :  { %6520 = vmatprep.subr.bf16.mxu0 %v7214_v45  ;;  %6541 = vmatpush3.bf16.msra.mxu1 %v7213_v44  ;;  %v7263_v44 = vld [vmem:[%s9364_s1 + $0x468] sm:$0xff]  }
  0x5a   :  { %6542 = vmatprep.subr.bf16.mxu1 %v7215_v46  ;;  %v7264_v45 = vld [vmem:[%s9364_s1 + $0x4e8] sm:$0xff]  }
  0x5b   :  { %v7265_v46 = vld [vmem:[%s9364_s1 + $0x428] sm:$0xff]  }
  0x5c   :  { %6521 = vmatpush3.bf16.msra.mxu0 %v7216_v47  ;;  %v7266_v47 = vld [vmem:[%s9364_s1 + $0x4a8] sm:$0xff]  }
  0x5d   :  { %6522 = vmatprep.subr.bf16.mxu0 %v7218_v49  ;;  %6543 = vmatpush3.bf16.msra.mxu1 %v7217_v48  ;;  %v7267_v48 = vld [vmem:[%s9364_s1 + $0x460] sm:$0xff]  }
  0x5e   :  { %6544 = vmatprep.subr.bf16.mxu1 %v7219_v50  ;;  %v7268_v49 = vld [vmem:[%s9364_s1 + $0x4e0] sm:$0xff]  }
  0x5f   :  { %v7269_v50 = vld [vmem:[%s9364_s1 + $0x420] sm:$0xff]  }
  0x60   :  { %6523 = vmatpush3.bf16.msra.mxu0 %v7220_v51  ;;  %v7270_v51 = vld [vmem:[%s9364_s1 + $0x4a0] sm:$0xff]  }
  0x61   :  { %6552 = vmatprep.subr.bf16.mxu0 %v7222_v56  ;;  %6545 = vmatpush3.bf16.msra.mxu1 %v7221_v53  ;;  %v7272_v53 = vld [vmem:[%s9364_s1 + $0x4d8] sm:$0xff]   ;;  %v7275_v56 = vld [vmem:[%s9364_s1 + $0x450] sm:$0xff]  }
  0x62   :  { %6574 = vmatprep.subr.bf16.mxu1 %v7223_v59  ;;  %v7278_v59 = vld [vmem:[%s9364_s1 + $0x490] sm:$0xff]  }
  0x63   :  { %4791 = vmatmul.mubr.bf16.vlgmr.msra.gmra.mxu0 %v1142_v58  ;;  %v7277_v58 = vld [vmem:[%s9364_s1 + $0x410] sm:$0xff]  }
  0x64   :  { %6553 = vmatpush3.bf16.msra.mxu0 %v7224_v61  ;;  %4831 = vmatmul.mubr.bf16.vlgmr.msra.gmra.mxu1 %v1164_v1  ;;  %v7280_v61 = vld [vmem:[%s9364_s1 + $0x4c8] sm:$0xff]   ;;  %v7284_v1 = vld [vmem:[%s9364_s1 + $0x4c0] sm:$0xff]  }
  0x65   :  { %6554 = vmatprep.subr.bf16.mxu0 %v7226_v2  ;;  %6575 = vmatpush3.bf16.msra.mxu1 %v7225_v63  ;;  %v7282_v63 = vld [vmem:[%s9364_s1 + $0x488] sm:$0xff]   ;;  %v7285_v2 = vld [vmem:[%s9364_s1 + $0x400] sm:$0xff]  }
  0x66   :  { %4870 = vmatprep.mubr.bf16.mxu0 %v1163_v5  ;;  %6576 = vmatprep.subr.bf16.mxu1 %v7227_v4  ;;  %v7286_v4 = vld [vmem:[%s9364_s1 + $0x480] sm:$0xff]   ;;  %v1175_v5 = vrot.slane %v25_v3, %v7768_v35 }
  0x67   :  { %4910 = vmatprep.mubr.bf16.mxu1 %v1167_v8 }
  0x68   :  { %6555 = vmatpush3.bf16.msra.mxu0 %v7228_v6  ;;  %v1168_v6 = vcombine.high %v25_v3, %v25_v3  ;;  %v1183_v8 = vcombine.high %v1175_v5, %v1175_v5  ;;  %v7336_v3 = vld [vmem:[%s9364_s1 + $0x658] sm:$0xff]  }
  0x69   :  { %6556 = vmatprep.subr.bf16.mxu0 %v7230_v9  ;;  %6577 = vmatpush3.bf16.msra.mxu1 %v7229_v7  ;;  %v7287_v7 = vld [vmem:[%s9364_s1 + $0x578] sm:$0xff]   ;;  %v1191_v9 = vrot.slane %v1175_v5, %v7768_v35 }
  0x6a   :  { %6578 = vmatprep.subr.bf16.mxu1 %v7231_v10  ;;  %v7288_v10 = vld [vmem:[%s9364_s1 + $0x5f8] sm:$0xff]  }
  0x6b   :  { %v7338_v5 = vld [vmem:[%s9364_s1 + $0x618] sm:$0xff]  }
  0x6c   :  { %6557 = vmatpush3.bf16.msra.mxu0 %v7232_v11  ;;  %v8200_v11 = vrot.slane %v1168_v6, %v7768_v35  ;;  %v7339_v6 = vld [vmem:[%s9364_s1 + $0x698] sm:$0xff]  }
  0x6d   :  { %6558 = vmatprep.subr.bf16.mxu0 %v7234_v13  ;;  %6579 = vmatpush3.bf16.msra.mxu1 %v7233_v12  ;;  %v7289_v12 = vld [vmem:[%s9364_s1 + $0x538] sm:$0xff]   ;;  %v1205_v13 = vrot.slane %v1183_v8, %v7768_v35  ;;  %v7341_v8 = vld [vmem:[%s9364_s1 + $0x6d0] sm:$0xff]  }
  0x6e   :  { %6580 = vmatprep.subr.bf16.mxu1 %v7235_v14  ;;  %v7290_v14 = vld [vmem:[%s9364_s1 + $0x5b8] sm:$0xff]  }
  0x70   :  { %6559 = vmatpush3.bf16.msra.mxu0 %v7236_v15  ;;  %v1184_v15 = vcombine.high %v8200_v11, %v8200_v11 }
  0x71   :  { %6560 = vmatprep.subr.bf16.mxu0 %v7238_v17  ;;  %6581 = vmatpush3.bf16.msra.mxu1 %v7237_v16  ;;  %v1213_v16 = vcombine.high %v1191_v9, %v1191_v9  ;;  %v7291_v17 = vld [vmem:[%s9364_s1 + $0x570] sm:$0xff]  }
  0x72   :  { %6582 = vmatprep.subr.bf16.mxu1 %v7239_v18  ;;  %v1215_v18 = vcombine.high %v1205_v13, %v1205_v13 }
  0x74   :  { %6561 = vmatpush3.bf16.msra.mxu0 %v7240_v19  ;;  %v7292_v19 = vld [vmem:[%s9364_s1 + $0x5f0] sm:$0xff]  }
  0x75   :  { %6562 = vmatprep.subr.bf16.mxu0 %v7242_v21  ;;  %6583 = vmatpush3.bf16.msra.mxu1 %v7241_v20  ;;  %v1212_v20 = vrot.slane %v1184_v15, %v7768_v35  ;;  %v7293_v21 = vld [vmem:[%s9364_s1 + $0x530] sm:$0xff]   ;;  %v7348_v15 = vld [vmem:[%s9364_s1 + $0x640] sm:$0xff]  }
  0x76   :  { %6584 = vmatprep.subr.bf16.mxu1 %v7243_v22  ;;  %v7294_v22 = vld [vmem:[%s9364_s1 + $0x5b0] sm:$0xff]  }
  0x78   :  { %6563 = vmatpush3.bf16.msra.mxu0 %v7244_v23  ;;  %v1216_v23 = vcombine.high %v1212_v20, %v1212_v20 }
  0x79   :  { %6564 = vmatprep.subr.bf16.mxu0 %v7246_v25  ;;  %6585 = vmatpush3.bf16.msra.mxu1 %v7245_v24  ;;  %v7295_v24 = vld [vmem:[%s9364_s1 + $0x568] sm:$0xff]  }
  0x7a   :  { %6586 = vmatprep.subr.bf16.mxu1 %v7247_v26  ;;  %v7296_v25 = vld [vmem:[%s9364_s1 + $0x5e8] sm:$0xff]  }
  0x7b   :  { %v7297_v26 = vld [vmem:[%s9364_s1 + $0x528] sm:$0xff]  }
  0x7c   :  { %6565 = vmatpush3.bf16.msra.mxu0 %v7248_v27  ;;  %v7298_v27 = vld [vmem:[%s9364_s1 + $0x5a8] sm:$0xff]  }
  0x7d   :  { %6566 = vmatprep.subr.bf16.mxu0 %v7250_v29  ;;  %6587 = vmatpush3.bf16.msra.mxu1 %v7249_v28  ;;  %v7299_v28 = vld [vmem:[%s9364_s1 + $0x560] sm:$0xff]  }
  0x7e   :  { %6588 = vmatprep.subr.bf16.mxu1 %v7251_v30  ;;  %v7300_v29 = vld [vmem:[%s9364_s1 + $0x5e0] sm:$0xff]  }
  0x7f   :  { %v7301_v30 = vld [vmem:[%s9364_s1 + $0x520] sm:$0xff]  }
  0x80   :  { %6567 = vmatpush3.bf16.msra.mxu0 %v7252_v31  ;;  %v7302_v31 = vld [vmem:[%s9364_s1 + $0x5a0] sm:$0xff]  }
  0x81   :  { %6596 = vmatprep.subr.bf16.mxu0 %v7255_v34  ;;  %6589 = vmatpush3.bf16.msra.mxu1 %v7253_v32  ;;  %v7303_v32 = vld [vmem:[%s9364_s1 + $0x558] sm:$0xff]  }
  0x82   :  { %6618 = vmatprep.subr.bf16.mxu1 %v7256_v36  ;;  %v7305_v34 = vld [vmem:[%s9364_s1 + $0x518] sm:$0xff]  }
  0x83   :  { %4871 = vmatmul.mubr.bf16.vlgmr.msra.gmra.mxu0 %v1149_v33  ;;  %v7304_v33 = vld [vmem:[%s9364_s1 + $0x5d8] sm:$0xff]  }
  0x84   :  { %6597 = vmatpush3.bf16.msra.mxu0 %v7257_v37  ;;  %4911 = vmatmul.mubr.bf16.vlgmr.msra.gmra.mxu1 %v1165_v39  ;;  %v7306_v36 = vld [vmem:[%s9364_s1 + $0x598] sm:$0xff]   ;;  %v7307_v37 = vld [vmem:[%s9364_s1 + $0x550] sm:$0xff]  }
  0x85   :  { %6598 = vmatprep.subr.bf16.mxu0 %v7259_v40  ;;  %6619 = vmatpush3.bf16.msra.mxu1 %v7258_v38  ;;  %v7308_v38 = vld [vmem:[%s9364_s1 + $0x5d0] sm:$0xff]  }
  0x86   :  { %6620 = vmatprep.subr.bf16.mxu1 %v7260_v41  ;;  %4950 = vmatprep.mubr.bf16.mxu0 %v1205_v13  ;;  %v7309_v39 = vld [vmem:[%s9364_s1 + $0x510] sm:$0xff]   ;;  %v7311_v41 = vld [vmem:[%s9364_s1 + $0x548] sm:$0xff]  }
  0x87   :  { %4990 = vmatprep.mubr.bf16.mxu1 %v1215_v18  ;;  %v7310_v40 = vld [vmem:[%s9364_s1 + $0x590] sm:$0xff]   ;;  %v7346_v13 = vld [vmem:[%s9364_s1 + $0x608] sm:$0xff]   ;;  %v26_v18 = vld [vmem:[%s9365_s0 + $0x18] sm:$0xff] }
  0x88   :  { %6599 = vmatpush3.bf16.msra.mxu0 %v7261_v42  ;;  %v7312_v42 = vld [vmem:[%s9364_s1 + $0x5c8] sm:$0xff]  }
  0x89   :  { %6600 = vmatprep.subr.bf16.mxu0 %v7263_v44  ;;  %6621 = vmatpush3.bf16.msra.mxu1 %v7262_v43  ;;  %v7313_v43 = vld [vmem:[%s9364_s1 + $0x508] sm:$0xff]  }
  0x8a   :  { %6622 = vmatprep.subr.bf16.mxu1 %v7264_v45  ;;  %v7314_v44 = vld [vmem:[%s9364_s1 + $0x588] sm:$0xff]   ;;  %v7315_v45 = vld [vmem:[%s9364_s1 + $0x540] sm:$0xff]  }
  0x8c   :  { %6601 = vmatpush3.bf16.msra.mxu0 %v7265_v46  ;;  %v7316_v46 = vld [vmem:[%s9364_s1 + $0x5c0] sm:$0xff]  }
  0x8d   :  { %6602 = vmatprep.subr.bf16.mxu0 %v7267_v48  ;;  %6623 = vmatpush3.bf16.msra.mxu1 %v7266_v47  ;;  %v7317_v47 = vld [vmem:[%s9364_s1 + $0x500] sm:$0xff]  }
  0x8e   :  { %6624 = vmatprep.subr.bf16.mxu1 %v7268_v49  ;;  %v7318_v48 = vld [vmem:[%s9364_s1 + $0x580] sm:$0xff]   ;;  %v1198_v49 = vrot.slane %v8200_v11, %v7768_v35  ;;  %v7344_v11 = vld [vmem:[%s9364_s1 + $0x648] sm:$0xff]  }
  0x90   :  { %6603 = vmatpush3.bf16.msra.mxu0 %v7269_v50  ;;  %v7320_v50 = vld [vmem:[%s9364_s1 + $0x678] sm:$0xff]  }
  0x91   :  { %6604 = vmatprep.subr.bf16.mxu0 %v7271_v52  ;;  %6625 = vmatpush3.bf16.msra.mxu1 %v7270_v51  ;;  %v7321_v51 = vld [vmem:[%s9364_s1 + $0x6f8] sm:$0xff]  }
  0x92   :  { %6626 = vmatprep.subr.bf16.mxu1 %v7272_v53  ;;  %v7322_v52 = vld [vmem:[%s9364_s1 + $0x638] sm:$0xff]  }
  0x93   :  { %v7323_v53 = vld [vmem:[%s9364_s1 + $0x6b8] sm:$0xff]  }
  0x94   :  { %6605 = vmatpush3.bf16.msra.mxu0 %v7273_v54  ;;  %v1214_v54 = vcombine.high %v1198_v49, %v1198_v49 }
  0x95   :  { %6606 = vmatprep.subr.bf16.mxu0 %v7275_v56  ;;  %6627 = vmatpush3.bf16.msra.mxu1 %v7274_v55  ;;  %v7324_v55 = vld [vmem:[%s9364_s1 + $0x670] sm:$0xff]  }
  0x96   :  { %6628 = vmatprep.subr.bf16.mxu1 %v7276_v57  ;;  %v7325_v56 = vld [vmem:[%s9364_s1 + $0x6f0] sm:$0xff]  }
  0x97   :  { %v7326_v57 = vld [vmem:[%s9364_s1 + $0x630] sm:$0xff]  }
  0x98   :  { %6607 = vmatpush3.bf16.msra.mxu0 %v7277_v58  ;;  %v7327_v58 = vld [vmem:[%s9364_s1 + $0x6b0] sm:$0xff]  }
  0x99   :  { %6608 = vmatprep.subr.bf16.mxu0 %v7279_v60  ;;  %6629 = vmatpush3.bf16.msra.mxu1 %v7278_v59  ;;  %v7328_v59 = vld [vmem:[%s9364_s1 + $0x668] sm:$0xff]  }
  0x9a   :  { %6630 = vmatprep.subr.bf16.mxu1 %v7280_v61  ;;  %v7329_v60 = vld [vmem:[%s9364_s1 + $0x6e8] sm:$0xff]  }
  0x9b   :  { %v7330_v61 = vld [vmem:[%s9364_s1 + $0x628] sm:$0xff]  }
  0x9c   :  { %6609 = vmatpush3.bf16.msra.mxu0 %v7281_v62  ;;  %v7331_v62 = vld [vmem:[%s9364_s1 + $0x6a8] sm:$0xff]  }
  0x9d   :  { %6610 = vmatprep.subr.bf16.mxu0 %v7283_v0  ;;  %6631 = vmatpush3.bf16.msra.mxu1 %v7282_v63  ;;  %v7332_v63 = vld [vmem:[%s9364_s1 + $0x660] sm:$0xff]  }
  0x9e   :  { %6632 = vmatprep.subr.bf16.mxu1 %v7284_v1  ;;  %v7333_v0 = vld [vmem:[%s9364_s1 + $0x6e0] sm:$0xff]  }
  0x9f   :  { %v7334_v1 = vld [vmem:[%s9364_s1 + $0x620] sm:$0xff]  }
  0xa0   :  { %6611 = vmatpush3.bf16.msra.mxu0 %v7285_v2  ;;  %v7335_v2 = vld [vmem:[%s9364_s1 + $0x6a0] sm:$0xff]  }
  0xa1   :  { %6640 = vmatprep.subr.bf16.mxu0 %v7287_v7  ;;  %6633 = vmatpush3.bf16.msra.mxu1 %v7286_v4  ;;  %v7337_v4 = vld [vmem:[%s9364_s1 + $0x6d8] sm:$0xff]   ;;  %v7340_v7 = vld [vmem:[%s9364_s1 + $0x650] sm:$0xff]  }
  0xa2   :  { %6662 = vmatprep.subr.bf16.mxu1 %v7288_v10  ;;  %v7343_v10 = vld [vmem:[%s9364_s1 + $0x690] sm:$0xff]  }
  0xa3   :  { %4951 = vmatmul.mubr.bf16.vlgmr.msra.gmra.mxu0 %v1191_v9  ;;  %v7342_v9 = vld [vmem:[%s9364_s1 + $0x610] sm:$0xff]  }
  0xa4   :  { %6641 = vmatpush3.bf16.msra.mxu0 %v7289_v12  ;;  %4991 = vmatmul.mubr.bf16.vlgmr.msra.gmra.mxu1 %v1213_v16  ;;  %v7345_v12 = vld [vmem:[%s9364_s1 + $0x6c8] sm:$0xff]   ;;  %v7349_v16 = vld [vmem:[%s9364_s1 + $0x6c0] sm:$0xff]  }
  0xa5   :  { %6642 = vmatprep.subr.bf16.mxu0 %v7291_v17  ;;  %6663 = vmatpush3.bf16.msra.mxu1 %v7290_v14  ;;  %v7347_v14 = vld [vmem:[%s9364_s1 + $0x688] sm:$0xff]   ;;  %v7350_v17 = vld [vmem:[%s9364_s1 + $0x600] sm:$0xff]  }
  0xa6   :  { %5030 = vmatprep.mubr.bf16.mxu0 %v1212_v20  ;;  %6664 = vmatprep.subr.bf16.mxu1 %v7292_v19  ;;  %v1224_v19 = vrot.slane %v26_v18, %v7768_v35  ;;  %v7352_v20 = vld [vmem:[%s9364_s1 + $0x778] sm:$0xff]  }
  0xa7   :  { %5070 = vmatprep.mubr.bf16.mxu1 %v1216_v23 }
  0xa8   :  { %6643 = vmatpush3.bf16.msra.mxu0 %v7293_v21  ;;  %v1217_v21 = vcombine.high %v26_v18, %v26_v18  ;;  %v1232_v23 = vcombine.high %v1224_v19, %v1224_v19 }
  0xa9   :  { %6644 = vmatprep.subr.bf16.mxu0 %v7295_v24  ;;  %6665 = vmatpush3.bf16.msra.mxu1 %v7294_v22  ;;  %v7351_v22 = vld [vmem:[%s9364_s1 + $0x680] sm:$0xff]   ;;  %v1240_v24 = vrot.slane %v1224_v19, %v7768_v35  ;;  %v7389_v19 = vld [vmem:[%s9364_s1 + $0x870] sm:$0xff]  }
  0xaa   :  { %6666 = vmatprep.subr.bf16.mxu1 %v7296_v25  ;;  %v7353_v25 = vld [vmem:[%s9364_s1 + $0x7f8] sm:$0xff]  }
  0xac   :  { %6645 = vmatpush3.bf16.msra.mxu0 %v7297_v26  ;;  %v8406_v26 = vrot.slane %v1217_v21, %v7768_v35  ;;  %v7390_v21 = vld [vmem:[%s9364_s1 + $0x8f0] sm:$0xff]  }
  0xad   :  { %6646 = vmatprep.subr.bf16.mxu0 %v7299_v28  ;;  %6667 = vmatpush3.bf16.msra.mxu1 %v7298_v27  ;;  %v7354_v27 = vld [vmem:[%s9364_s1 + $0x738] sm:$0xff]   ;;  %v1254_v28 = vrot.slane %v1232_v23, %v7768_v35 }
  0xae   :  { %6668 = vmatprep.subr.bf16.mxu1 %v7300_v29  ;;  %v7355_v29 = vld [vmem:[%s9364_s1 + $0x7b8] sm:$0xff]  }
  0xb0   :  { %6647 = vmatpush3.bf16.msra.mxu0 %v7301_v30  ;;  %v1233_v30 = vcombine.high %v8406_v26, %v8406_v26 }
  0xb1   :  { %6648 = vmatprep.subr.bf16.mxu0 %v7303_v32  ;;  %6669 = vmatpush3.bf16.msra.mxu1 %v7302_v31  ;;  %v1262_v31 = vcombine.high %v1240_v24, %v1240_v24  ;;  %v7356_v32 = vld [vmem:[%s9364_s1 + $0x770] sm:$0xff]  }
  0xb2   :  { %6670 = vmatprep.subr.bf16.mxu1 %v7304_v33  ;;  %v1264_v33 = vcombine.high %v1254_v28, %v1254_v28 }
  0xb4   :  { %6649 = vmatpush3.bf16.msra.mxu0 %v7305_v34 }
  0xb5   :  { %6650 = vmatprep.subr.bf16.mxu0 %v7307_v37  ;;  %6671 = vmatpush3.bf16.msra.mxu1 %v7306_v36  ;;  %v5905_v36 = vld [vmem:[%s9366_s2] ss:$0 sm:$0xff]  ;;  %v7357_v37 = vld [vmem:[%s9364_s1 + $0x7f0] sm:$0xff]  }
  0xb6   :  { %6672 = vmatprep.subr.bf16.mxu1 %v7308_v38  ;;  %v1261_v38 = vrot.slane %v1233_v30, %v7768_v35  ;;  %v7394_v30 = vld [vmem:[%s9364_s1 + $0x8e8] sm:$0xff]  }
  0xb8   :  { %6651 = vmatpush3.bf16.msra.mxu0 %v7309_v39  ;;  %v7358_v39 = vld [vmem:[%s9364_s1 + $0x730] sm:$0xff]  }
  0xb9   :  { %6652 = vmatprep.subr.bf16.mxu0 %v7311_v41  ;;  %6673 = vmatpush3.bf16.msra.mxu1 %v7310_v40 }
  0xba   :  { %6674 = vmatprep.subr.bf16.mxu1 %v7312_v42  ;;  %v7359_v42 = vld [vmem:[%s9364_s1 + $0x7b0] sm:$0xff]  }
  0xbc   :  { %6653 = vmatpush3.bf16.msra.mxu0 %v7313_v43  ;;  %v1265_v43 = vcombine.high %v1261_v38, %v1261_v38 }
  0xbd   :  { %6654 = vmatprep.subr.bf16.mxu0 %v7315_v45  ;;  %6675 = vmatpush3.bf16.msra.mxu1 %v7314_v44  ;;  %v7360_v45 = vld [vmem:[%s9364_s1 + $0x768] sm:$0xff]  }
  0xbe   :  { %6676 = vmatprep.subr.bf16.mxu1 %v7316_v46 }
  0xc0   :  { %6655 = vmatpush3.bf16.msra.mxu0 %v7317_v47 }
  0xc1   :  { %6684 = vmatprep.subr.bf16.mxu0 %v7320_v50  ;;  %6677 = vmatpush3.bf16.msra.mxu1 %v7318_v48  ;;  %v7361_v48 = vld [vmem:[%s9364_s1 + $0x7e8] sm:$0xff]  }
  0xc2   :  { %6706 = vmatprep.subr.bf16.mxu1 %v7321_v51  ;;  %v7362_v51 = vld [vmem:[%s9364_s1 + $0x728] sm:$0xff]  }
  0xc3   :  { %5031 = vmatmul.mubr.bf16.vlgmr.msra.gmra.mxu0 %v1198_v49 }
  0xc4   :  { %6685 = vmatpush3.bf16.msra.mxu0 %v7322_v52  ;;  %5071 = vmatmul.mubr.bf16.vlgmr.msra.gmra.mxu1 %v1214_v54  ;;  %v7363_v54 = vld [vmem:[%s9364_s1 + $0x7a8] sm:$0xff]  }
  0xc5   :  { %6686 = vmatprep.subr.bf16.mxu0 %v7324_v55  ;;  %6707 = vmatpush3.bf16.msra.mxu1 %v7323_v53 }
  0xc6   :  { %6708 = vmatprep.subr.bf16.mxu1 %v7325_v56  ;;  %5110 = vmatprep.mubr.bf16.mxu0 %v1254_v28  ;;  %v7364_v56 = vld [vmem:[%s9364_s1 + $0x760] sm:$0xff]  }
  0xc7   :  { %5150 = vmatprep.mubr.bf16.mxu1 %v1264_v33  ;;  %v7395_v33 = vld [vmem:[%s9364_s1 + $0x828] sm:$0xff]  }
  0xc8   :  { %6687 = vmatpush3.bf16.msra.mxu0 %v7326_v57 }
  0xc9   :  { %6688 = vmatprep.subr.bf16.mxu0 %v7328_v59  ;;  %6709 = vmatpush3.bf16.msra.mxu1 %v7327_v58  ;;  %v7365_v58 = vld [vmem:[%s9364_s1 + $0x7e0] sm:$0xff]  }
  0xca   :  { %6710 = vmatprep.subr.bf16.mxu1 %v7329_v60  ;;  %v7366_v59 = vld [vmem:[%s9364_s1 + $0x720] sm:$0xff]  }
  0xcb   :  { %v7367_v60 = vld [vmem:[%s9364_s1 + $0x7a0] sm:$0xff]  }
  0xcc   :  { %6689 = vmatpush3.bf16.msra.mxu0 %v7330_v61  ;;  %v7368_v61 = vld [vmem:[%s9364_s1 + $0x758] sm:$0xff]  }
  0xcd   :  { %6690 = vmatprep.subr.bf16.mxu0 %v7332_v63  ;;  %6711 = vmatpush3.bf16.msra.mxu1 %v7331_v62  ;;  %v7369_v62 = vld [vmem:[%s9364_s1 + $0x7d8] sm:$0xff]  }
  0xce   :  { %6712 = vmatprep.subr.bf16.mxu1 %v7333_v0  ;;  %v7370_v63 = vld [vmem:[%s9364_s1 + $0x718] sm:$0xff]  }
  0xcf   :  { %v7371_v0 = vld [vmem:[%s9364_s1 + $0x798] sm:$0xff]  }
  0xd0   :  { %6691 = vmatpush3.bf16.msra.mxu0 %v7334_v1  ;;  %v7372_v1 = vld [vmem:[%s9364_s1 + $0x750] sm:$0xff]  }
  0xd1   :  { %6692 = vmatprep.subr.bf16.mxu0 %v7336_v3  ;;  %6713 = vmatpush3.bf16.msra.mxu1 %v7335_v2  ;;  %v7373_v2 = vld [vmem:[%s9364_s1 + $0x7d0] sm:$0xff]  }
  0xd2   :  { %6714 = vmatprep.subr.bf16.mxu1 %v7337_v4  ;;  %v7374_v3 = vld [vmem:[%s9364_s1 + $0x710] sm:$0xff]  }
  0xd3   :  { %v7375_v4 = vld [vmem:[%s9364_s1 + $0x790] sm:$0xff]  }
  0xd4   :  { %6693 = vmatpush3.bf16.msra.mxu0 %v7338_v5  ;;  %v7376_v5 = vld [vmem:[%s9364_s1 + $0x748] sm:$0xff]  }
  0xd5   :  { %6694 = vmatprep.subr.bf16.mxu0 %v7340_v7  ;;  %6715 = vmatpush3.bf16.msra.mxu1 %v7339_v6  ;;  %v7377_v6 = vld [vmem:[%s9364_s1 + $0x7c8] sm:$0xff]  }
  0xd6   :  { %6716 = vmatprep.subr.bf16.mxu1 %v7341_v8  ;;  %v7378_v7 = vld [vmem:[%s9364_s1 + $0x708] sm:$0xff]  }
  0xd7   :  { %v7379_v8 = vld [vmem:[%s9364_s1 + $0x788] sm:$0xff]  }
  0xd8   :  { %6695 = vmatpush3.bf16.msra.mxu0 %v7342_v9  ;;  %v7380_v9 = vld [vmem:[%s9364_s1 + $0x740] sm:$0xff]  }
  0xd9   :  { %6696 = vmatprep.subr.bf16.mxu0 %v7344_v11  ;;  %6717 = vmatpush3.bf16.msra.mxu1 %v7343_v10  ;;  %v7381_v10 = vld [vmem:[%s9364_s1 + $0x7c0] sm:$0xff]  }
  0xda   :  { %6718 = vmatprep.subr.bf16.mxu1 %v7345_v12  ;;  %v7382_v11 = vld [vmem:[%s9364_s1 + $0x700] sm:$0xff]  }
  0xdb   :  { %v7383_v12 = vld [vmem:[%s9364_s1 + $0x780] sm:$0xff]  }
  0xdc   :  { %6697 = vmatpush3.bf16.msra.mxu0 %v7346_v13  ;;  %v1247_v13 = vrot.slane %v8406_v26, %v7768_v35 }
  0xdd   :  { %6698 = vmatprep.subr.bf16.mxu0 %v7348_v15  ;;  %6719 = vmatpush3.bf16.msra.mxu1 %v7347_v14  ;;  %v7385_v14 = vld [vmem:[%s9364_s1 + $0x878] sm:$0xff]  }
  0xde   :  { %6720 = vmatprep.subr.bf16.mxu1 %v7349_v16  ;;  %v7386_v15 = vld [vmem:[%s9364_s1 + $0x8f8] sm:$0xff]   ;;  %v1263_v18 = vcombine.high %v1247_v13, %v1247_v13 }
  0xdf   :  { %v7387_v16 = vld [vmem:[%s9364_s1 + $0x838] sm:$0xff]  }
  0xe0   :  { %6699 = vmatpush3.bf16.msra.mxu0 %v7350_v17  ;;  %v7388_v17 = vld [vmem:[%s9364_s1 + $0x8b8] sm:$0xff]  }
  0xe1   :  { %6728 = vmatprep.subr.bf16.mxu0 %v7352_v20  ;;  %6721 = vmatpush3.bf16.msra.mxu1 %v7351_v22  ;;  %v7391_v22 = vld [vmem:[%s9364_s1 + $0x830] sm:$0xff]  }
  0xe2   :  { %6750 = vmatprep.subr.bf16.mxu1 %v7353_v25  ;;  %v7392_v25 = vld [vmem:[%s9364_s1 + $0x8b0] sm:$0xff]  }
  0xe3   :  { %v6436_v34 = vpop.f32.mrf.mxu0  ;;  %5111 = vmatmul.mubr.bf16.vlgmr.msra.gmra.mxu0 %v1240_v24 }
  0xe4   :  { %v6458_v40 = vpop.f32.mrf.mxu1  ;;  %6729 = vmatpush3.bf16.msra.mxu0 %v7354_v27  ;;  %5151 = vmatmul.mubr.bf16.vlgmr.msra.gmra.mxu1 %v1262_v31  ;;  %v7393_v27 = vld [vmem:[%s9364_s1 + $0x868] sm:$0xff]  }
  0xe5   :  { %v6437_v41 = vpop.f32.mrf.mxu0  ;;  %6730 = vmatprep.subr.bf16.mxu0 %v7356_v32  ;;  %6751 = vmatpush3.bf16.msra.mxu1 %v7355_v29 }
  0xe6   :  { %v6438_v44 = vadd.f32 %v6437_v41, %v6436_v34  ;;  %v6459_v46 = vpop.f32.mrf.mxu1  ;;  %5190 = vmatprep.mubr.bf16.mxu0 %v1261_v38  ;;  %6752 = vmatprep.subr.bf16.mxu1 %v7357_v37  ;;  %v7396_v37 = vld [vmem:[%s9364_s1 + $0x8a8] sm:$0xff]   ;;  %v7398_v41 = vld [vmem:[%s9364_s1 + $0x8e0] sm:$0xff]  }
  0xe7   :  { %v6439_v47 = vpop.f32.mrf.mxu0  ;;  %v6460_v50 = vadd.f32 %v6459_v46, %v6458_v40  ;;  %5230 = vmatprep.mubr.bf16.mxu1 %v1265_v43  ;;  %v7400_v43 = vld [vmem:[%s9364_s1 + $0x8a0] sm:$0xff]   ;;  %v7403_v46 = vld [vmem:[%s9364_s1 + $0x818] sm:$0xff]  }
  0xe8   :  { %v4633_v49 = vadd.f32 %v6438_v44, %v5905_v36  ;;  %v6461_v52 = vpop.f32.mrf.mxu1  ;;  %6731 = vmatpush3.bf16.msra.mxu0 %v7358_v39  ;;  %v7397_v39 = vld [vmem:[%s9364_s1 + $0x860] sm:$0xff]   ;;  %v7401_v44 = vld [vmem:[%s9364_s1 + $0x858] sm:$0xff]  }
  0xe9   :  { %v6440_v53 = vpop.f32.mrf.mxu0  ;;  %6732 = vmatprep.subr.bf16.mxu0 %v7360_v45  ;;  %6753 = vmatpush3.bf16.msra.mxu1 %v7359_v42  ;;  %v7399_v42 = vld [vmem:[%s9364_s1 + $0x820] sm:$0xff]   ;;  %v7402_v45 = vld [vmem:[%s9364_s1 + $0x8d8] sm:$0xff]   ;;  %v7409_v52 = vld [vmem:[%s9364_s1 + $0x848] sm:$0xff]  }
  0xea   :  { %v8445_v55 = vadd.f32 %v6460_v50, %v4633_v49  ;;  %v6462_v57 = vpop.f32.mrf.mxu1  ;;  %6754 = vmatprep.subr.bf16.mxu1 %v7361_v48  ;;  %v7404_v47 = vld [vmem:[%s9364_s1 + $0x898] sm:$0xff]   ;;  %v7405_v48 = vld [vmem:[%s9364_s1 + $0x850] sm:$0xff]   ;;  %v7410_v53 = vld [vmem:[%s9364_s1 + $0x8c8] sm:$0xff]  }
  0xeb   :  { %v7406_v49 = vld [vmem:[%s9364_s1 + $0x8d0] sm:$0xff]   ;;  %v7414_v57 = vld [vmem:[%s9364_s1 + $0x8c0] sm:$0xff]  }
  0xec   :  { %6733 = vmatpush3.bf16.msra.mxu0 %v7362_v51  ;;  %v7407_v50 = vld [vmem:[%s9364_s1 + $0x810] sm:$0xff]  }
  0xed   :  { %6734 = vmatprep.subr.bf16.mxu0 %v7364_v56  ;;  %6755 = vmatpush3.bf16.msra.mxu1 %v7363_v54  ;;  %v7408_v51 = vld [vmem:[%s9364_s1 + $0x890] sm:$0xff]   ;;  %v7411_v54 = vld [vmem:[%s9364_s1 + $0x808] sm:$0xff]   ;;  %v7413_v56 = vld [vmem:[%s9364_s1 + $0x840] sm:$0xff]  }
  0xee   :  { %6756 = vmatprep.subr.bf16.mxu1 %v7365_v58  ;;  %v7415_v58 = vld [vmem:[%s9364_s1 + $0x800] sm:$0xff]  }
  0xf0   :  { %6735 = vmatpush3.bf16.msra.mxu0 %v7366_v59  ;;  %v27_v59 = vld [vmem:[%s9365_s0 + $0x20] sm:$0xff] }
  0xf1   :  { %6736 = vmatprep.subr.bf16.mxu0 %v7368_v61  ;;  %6757 = vmatpush3.bf16.msra.mxu1 %v7367_v60  ;;  %v7416_v60 = vld [vmem:[%s9364_s1 + $0x880] sm:$0xff]   ;;  %v1273_v61 = vrot.slane %v27_v59, %v7768_v35 }
  0xf2   :  { %6758 = vmatprep.subr.bf16.mxu1 %v7369_v62  ;;  %v1266_v62 = vcombine.high %v27_v59, %v27_v59  ;;  %v7454_v59 = vld [vmem:[%s9364_s1 + $0xa70] sm:$0xff]  }
  0xf4   :  { %6737 = vmatpush3.bf16.msra.mxu0 %v7370_v63  ;;  %v7417_v63 = vld [vmem:[%s9364_s1 + $0x978] sm:$0xff]  }
  0xf5   :  { %6738 = vmatprep.subr.bf16.mxu0 %v7372_v1  ;;  %6759 = vmatpush3.bf16.msra.mxu1 %v7371_v0  ;;  %v1281_v0 = vcombine.high %v1273_v61, %v1273_v61  ;;  %v1289_v1 = vrot.slane %v1273_v61, %v7768_v35  ;;  %v7455_v61 = vld [vmem:[%s9364_s1 + $0xaf0] sm:$0xff]  }
  0xf6   :  { %6760 = vmatprep.subr.bf16.mxu1 %v7373_v2  ;;  %v7418_v2 = vld [vmem:[%s9364_s1 + $0x9f8] sm:$0xff]  }
  0xf8   :  { %6739 = vmatpush3.bf16.msra.mxu0 %v7374_v3  ;;  %v8620_v3 = vrot.slane %v1266_v62, %v7768_v35  ;;  %v7456_v62 = vld [vmem:[%s9364_s1 + $0xa30] sm:$0xff]  }
  0xf9   :  { %6740 = vmatprep.subr.bf16.mxu0 %v7376_v5  ;;  %6761 = vmatpush3.bf16.msra.mxu1 %v7375_v4  ;;  %v7419_v4 = vld [vmem:[%s9364_s1 + $0x938] sm:$0xff]   ;;  %v1303_v5 = vrot.slane %v1281_v0, %v7768_v35 }
  0xfa   :  { %6762 = vmatprep.subr.bf16.mxu1 %v7377_v6  ;;  %v7420_v6 = vld [vmem:[%s9364_s1 + $0x9b8] sm:$0xff]  }
  0xfc   :  { %6741 = vmatpush3.bf16.msra.mxu0 %v7378_v7  ;;  %v1282_v7 = vcombine.high %v8620_v3, %v8620_v3 }
  0xfd   :  { %6742 = vmatprep.subr.bf16.mxu0 %v7380_v9  ;;  %6763 = vmatpush3.bf16.msra.mxu1 %v7379_v8  ;;  %v1311_v8 = vcombine.high %v1289_v1, %v1289_v1  ;;  %v7421_v9 = vld [vmem:[%s9364_s1 + $0x970] sm:$0xff]  }
  0xfe   :  { %6764 = vmatprep.subr.bf16.mxu1 %v7381_v10  ;;  %v1313_v10 = vcombine.high %v1303_v5, %v1303_v5 }
 0x100   :  { %6743 = vmatpush3.bf16.msra.mxu0 %v7382_v11 }
 0x101   :  { %6772 = vmatprep.subr.bf16.mxu0 %v7385_v14  ;;  %6765 = vmatpush3.bf16.msra.mxu1 %v7383_v12  ;;  %v7422_v12 = vld [vmem:[%s9364_s1 + $0x9f0] sm:$0xff]  }
 0x102   :  { %6794 = vmatprep.subr.bf16.mxu1 %v7386_v15  ;;  %v7423_v14 = vld [vmem:[%s9364_s1 + $0x930] sm:$0xff]  }
 0x103   :  { %v6480_v20 = vpop.f32.mrf.mxu0  ;;  %5191 = vmatmul.mubr.bf16.vlgmr.msra.gmra.mxu0 %v1247_v13  ;;  %v1310_v13 = vrot.slane %v1282_v7, %v7768_v35 }
 0x104   :  { %v6502_v23 = vpop.f32.mrf.mxu1  ;;  %6773 = vmatpush3.bf16.msra.mxu0 %v7387_v16  ;;  %5231 = vmatmul.mubr.bf16.vlgmr.msra.gmra.mxu1 %v1263_v18 }
 0x105   :  { %v6481_v24 = vpop.f32.mrf.mxu0  ;;  %6774 = vmatprep.subr.bf16.mxu0 %v7389_v19  ;;  %6795 = vmatpush3.bf16.msra.mxu1 %v7388_v17  ;;  %v7424_v17 = vld [vmem:[%s9364_s1 + $0x9b0] sm:$0xff]   ;;  %v1314_v18 = vcombine.high %v1310_v13, %v1310_v13 }
 0x106   :  { %v6482_v26 = vadd.f32 %v6481_v24, %v6480_v20  ;;  %v6503_v28 = vpop.f32.mrf.mxu1  ;;  %6796 = vmatprep.subr.bf16.mxu1 %v7390_v21  ;;  %5270 = vmatprep.mubr.bf16.mxu0 %v1303_v5  ;;  %v7425_v20 = vld [vmem:[%s9364_s1 + $0x968] sm:$0xff]  }
 0x107   :  { %v6483_v29 = vpop.f32.mrf.mxu0  ;;  %v6504_v32 = vadd.f32 %v6503_v28, %v6502_v23  ;;  %5310 = vmatprep.mubr.bf16.mxu1 %v1313_v10  ;;  %v7426_v23 = vld [vmem:[%s9364_s1 + $0x9e8] sm:$0xff]  }
 0x108   :  { %v4713_v31 = vadd.f32 %v6482_v26, %v8445_v55  ;;  %v6505_v34 = vpop.f32.mrf.mxu1  ;;  %6775 = vmatpush3.bf16.msra.mxu0 %v7391_v22  ;;  %v7412_v55 = vld [vmem:[%s9364_s1 + $0x888] sm:$0xff]  }
 0x109   :  { %v6484_v36 = vpop.f32.mrf.mxu0  ;;  %6776 = vmatprep.subr.bf16.mxu0 %v7393_v27  ;;  %6797 = vmatpush3.bf16.msra.mxu1 %v7392_v25  ;;  %v7427_v26 = vld [vmem:[%s9364_s1 + $0x928] sm:$0xff]   ;;  %v7431_v34 = vld [vmem:[%s9364_s1 + $0x920] sm:$0xff]  }
 0x10a   :  { %v8546_v38 = vadd.f32 %v6504_v32, %v4713_v31  ;;  %v6506_v40 = vpop.f32.mrf.mxu1  ;;  %6798 = vmatprep.subr.bf16.mxu1 %v7394_v30  ;;  %v7428_v29 = vld [vmem:[%s9364_s1 + $0x9a8] sm:$0xff]   ;;  %v7429_v31 = vld [vmem:[%s9364_s1 + $0x960] sm:$0xff]  }
 0x10b   :  { %v7432_v36 = vld [vmem:[%s9364_s1 + $0x9a0] sm:$0xff]   ;;  %v7436_v40 = vld [vmem:[%s9364_s1 + $0x998] sm:$0xff]  }
 0x10c   :  { %6777 = vmatpush3.bf16.msra.mxu0 %v7395_v33  ;;  %v7430_v33 = vld [vmem:[%s9364_s1 + $0x9e0] sm:$0xff]  }
 0x10d   :  { %6778 = vmatprep.subr.bf16.mxu0 %v7397_v39  ;;  %6799 = vmatpush3.bf16.msra.mxu1 %v7396_v37  ;;  %v7433_v37 = vld [vmem:[%s9364_s1 + $0x958] sm:$0xff]  }
 0x10e   :  { %6800 = vmatprep.subr.bf16.mxu1 %v7398_v41  ;;  %v7435_v39 = vld [vmem:[%s9364_s1 + $0x918] sm:$0xff]   ;;  %v7437_v41 = vld [vmem:[%s9364_s1 + $0x950] sm:$0xff]  }
 0x110   :  { %6779 = vmatpush3.bf16.msra.mxu0 %v7399_v42  ;;  %v7438_v42 = vld [vmem:[%s9364_s1 + $0x9d0] sm:$0xff]  }
 0x111   :  { %6780 = vmatprep.subr.bf16.mxu0 %v7401_v44  ;;  %6801 = vmatpush3.bf16.msra.mxu1 %v7400_v43  ;;  %v7439_v43 = vld [vmem:[%s9364_s1 + $0x910] sm:$0xff]  }
 0x112   :  { %6802 = vmatprep.subr.bf16.mxu1 %v7402_v45  ;;  %v7440_v44 = vld [vmem:[%s9364_s1 + $0x990] sm:$0xff]   ;;  %v7441_v45 = vld [vmem:[%s9364_s1 + $0x948] sm:$0xff]  }
 0x114   :  { %6781 = vmatpush3.bf16.msra.mxu0 %v7403_v46  ;;  %v7442_v46 = vld [vmem:[%s9364_s1 + $0x9c8] sm:$0xff]  }
 0x115   :  { %6782 = vmatprep.subr.bf16.mxu0 %v7405_v48  ;;  %6803 = vmatpush3.bf16.msra.mxu1 %v7404_v47  ;;  %v7443_v47 = vld [vmem:[%s9364_s1 + $0x908] sm:$0xff]  }
 0x116   :  { %6804 = vmatprep.subr.bf16.mxu1 %v7406_v49  ;;  %v7444_v48 = vld [vmem:[%s9364_s1 + $0x988] sm:$0xff]   ;;  %v7445_v49 = vld [vmem:[%s9364_s1 + $0x940] sm:$0xff]  }
 0x118   :  { %6783 = vmatpush3.bf16.msra.mxu0 %v7407_v50  ;;  %v7446_v50 = vld [vmem:[%s9364_s1 + $0x9c0] sm:$0xff]  }
 0x119   :  { %6784 = vmatprep.subr.bf16.mxu0 %v7409_v52  ;;  %6805 = vmatpush3.bf16.msra.mxu1 %v7408_v51  ;;  %v7447_v51 = vld [vmem:[%s9364_s1 + $0x900] sm:$0xff]  }
 0x11a   :  { %6806 = vmatprep.subr.bf16.mxu1 %v7410_v53  ;;  %v7448_v52 = vld [vmem:[%s9364_s1 + $0x980] sm:$0xff]   ;;  %v1296_v53 = vrot.slane %v8620_v3, %v7768_v35  ;;  %v7458_v3 = vld [vmem:[%s9364_s1 + $0xa68] sm:$0xff]  }
 0x11c   :  { %6785 = vmatpush3.bf16.msra.mxu0 %v7411_v54  ;;  %v7450_v54 = vld [vmem:[%s9364_s1 + $0xa78] sm:$0xff]  }
 0x11d   :  { %6786 = vmatprep.subr.bf16.mxu0 %v7413_v56  ;;  %6807 = vmatpush3.bf16.msra.mxu1 %v7412_v55  ;;  %v7451_v55 = vld [vmem:[%s9364_s1 + $0xaf8] sm:$0xff]  }
 0x11e   :  { %6808 = vmatprep.subr.bf16.mxu1 %v7414_v57  ;;  %v7452_v56 = vld [vmem:[%s9364_s1 + $0xa38] sm:$0xff]  }
 0x11f   :  { %v7453_v57 = vld [vmem:[%s9364_s1 + $0xab8] sm:$0xff]  }
 0x120   :  { %6787 = vmatpush3.bf16.msra.mxu0 %v7415_v58  ;;  %v1312_v58 = vcombine.high %v1296_v53, %v1296_v53 }
 0x121   :  { %6816 = vmatprep.subr.bf16.mxu0 %v7417_v63  ;;  %6809 = vmatpush3.bf16.msra.mxu1 %v7416_v60 }
 0x122   :  { %6838 = vmatprep.subr.bf16.mxu1 %v7418_v2 }
 0x123   :  { %v6524_v11 = vpop.f32.mrf.mxu0  ;;  %5271 = vmatmul.mubr.bf16.vlgmr.msra.gmra.mxu0 %v1289_v1  ;;  %v7457_v1 = vld [vmem:[%s9364_s1 + $0xab0] sm:$0xff]  }
 0x124   :  { %v6546_v15 = vpop.f32.mrf.mxu1  ;;  %6817 = vmatpush3.bf16.msra.mxu0 %v7419_v4  ;;  %5311 = vmatmul.mubr.bf16.vlgmr.msra.gmra.mxu1 %v1311_v8 }
 0x125   :  { %v6525_v16 = vpop.f32.mrf.mxu0  ;;  %6818 = vmatprep.subr.bf16.mxu0 %v7421_v9  ;;  %6839 = vmatpush3.bf16.msra.mxu1 %v7420_v6  ;;  %v7459_v6 = vld [vmem:[%s9364_s1 + $0xae8] sm:$0xff]  }
 0x126   :  { %v6526_v19 = vadd.f32 %v6525_v16, %v6524_v11  ;;  %v6547_v21 = vpop.f32.mrf.mxu1  ;;  %5350 = vmatprep.mubr.bf16.mxu0 %v1310_v13  ;;  %6840 = vmatprep.subr.bf16.mxu1 %v7422_v12  ;;  %v7460_v9 = vld [vmem:[%s9364_s1 + $0xa28] sm:$0xff]   ;;  %v7463_v16 = vld [vmem:[%s9364_s1 + $0xae0] sm:$0xff]  }
 0x127   :  { %v6527_v22 = vpop.f32.mrf.mxu0  ;;  %v6548_v25 = vadd.f32 %v6547_v21, %v6546_v15  ;;  %5390 = vmatprep.mubr.bf16.mxu1 %v1314_v18  ;;  %v7461_v12 = vld [vmem:[%s9364_s1 + $0xaa8] sm:$0xff]   ;;  %v7465_v18 = vld [vmem:[%s9364_s1 + $0xaa0] sm:$0xff]   ;;  %v7468_v21 = vld [vmem:[%s9364_s1 + $0xa18] sm:$0xff]  }
 0x128   :  { %v4793_v24 = vadd.f32 %v6526_v19, %v8546_v38  ;;  %v6549_v27 = vpop.f32.mrf.mxu1  ;;  %6819 = vmatpush3.bf16.msra.mxu0 %v7423_v14  ;;  %v7434_v38 = vld [vmem:[%s9364_s1 + $0x9d8] sm:$0xff]   ;;  %v7462_v14 = vld [vmem:[%s9364_s1 + $0xa60] sm:$0xff]  }
 0x129   :  { %v6528_v28 = vpop.f32.mrf.mxu0  ;;  %6820 = vmatprep.subr.bf16.mxu0 %v7425_v20  ;;  %6841 = vmatpush3.bf16.msra.mxu1 %v7424_v17  ;;  %v7464_v17 = vld [vmem:[%s9364_s1 + $0xa20] sm:$0xff]   ;;  %v7466_v19 = vld [vmem:[%s9364_s1 + $0xa58] sm:$0xff]   ;;  %v7474_v27 = vld [vmem:[%s9364_s1 + $0xa48] sm:$0xff]  }
 0x12a   :  { %v8657_v30 = vadd.f32 %v6548_v25, %v4793_v24  ;;  %v6550_v32 = vpop.f32.mrf.mxu1  ;;  %6842 = vmatprep.subr.bf16.mxu1 %v7426_v23  ;;  %v7467_v20 = vld [vmem:[%s9364_s1 + $0xad8] sm:$0xff]   ;;  %v7470_v23 = vld [vmem:[%s9364_s1 + $0xa50] sm:$0xff]   ;;  %v7475_v28 = vld [vmem:[%s9364_s1 + $0xac8] sm:$0xff]  }
 0x12b   :  { %v7469_v22 = vld [vmem:[%s9364_s1 + $0xa98] sm:$0xff]   ;;  %v7471_v24 = vld [vmem:[%s9364_s1 + $0xad0] sm:$0xff]   ;;  %v7479_v32 = vld [vmem:[%s9364_s1 + $0xac0] sm:$0xff]  }
 0x12c   :  { %6821 = vmatpush3.bf16.msra.mxu0 %v7427_v26  ;;  %v7472_v25 = vld [vmem:[%s9364_s1 + $0xa10] sm:$0xff]  }
 0x12d   :  { %6822 = vmatprep.subr.bf16.mxu0 %v7429_v31  ;;  %6843 = vmatpush3.bf16.msra.mxu1 %v7428_v29  ;;  %v7473_v26 = vld [vmem:[%s9364_s1 + $0xa90] sm:$0xff]   ;;  %v7476_v29 = vld [vmem:[%s9364_s1 + $0xa08] sm:$0xff]   ;;  %v7478_v31 = vld [vmem:[%s9364_s1 + $0xa40] sm:$0xff]  }
 0x12e   :  { %6844 = vmatprep.subr.bf16.mxu1 %v7430_v33  ;;  %v7480_v33 = vld [vmem:[%s9364_s1 + $0xa00] sm:$0xff]  }
 0x130   :  { %6823 = vmatpush3.bf16.msra.mxu0 %v7431_v34  ;;  %v28_v34 = vld [vmem:[%s9365_s0 + $0x28] sm:$0xff] }
 0x131   :  { %6824 = vmatprep.subr.bf16.mxu0 %v7433_v37  ;;  %6845 = vmatpush3.bf16.msra.mxu1 %v7432_v36  ;;  %v1322_v36 = vrot.slane %v28_v34, %v7768_v35  ;;  %v7482_v37 = vld [vmem:[%s9364_s1 + $0xb78] sm:$0xff]  }
 0x132   :  { %6846 = vmatprep.subr.bf16.mxu1 %v7434_v38  ;;  %v1315_v38 = vcombine.high %v28_v34, %v28_v34  ;;  %v7519_v34 = vld [vmem:[%s9364_s1 + $0xc70] sm:$0xff]  }
 0x134   :  { %6825 = vmatpush3.bf16.msra.mxu0 %v7435_v39  ;;  %v7481_v39 = vld [vmem:[%s9364_s1 + $0xa80] sm:$0xff]  }
 0x135   :  { %6826 = vmatprep.subr.bf16.mxu0 %v7437_v41  ;;  %6847 = vmatpush3.bf16.msra.mxu1 %v7436_v40  ;;  %v1330_v40 = vcombine.high %v1322_v36, %v1322_v36  ;;  %v1338_v41 = vrot.slane %v1322_v36, %v7768_v35  ;;  %v7518_v36 = vld [vmem:[%s9364_s1 + $0xcb8] sm:$0xff]  }
 0x136   :  { %6848 = vmatprep.subr.bf16.mxu1 %v7438_v42  ;;  %v7483_v42 = vld [vmem:[%s9364_s1 + $0xbf8] sm:$0xff]  }
 0x138   :  { %6827 = vmatpush3.bf16.msra.mxu0 %v7439_v43  ;;  %v8832_v43 = vrot.slane %v1315_v38, %v7768_v35 }
 0x139   :  { %6828 = vmatprep.subr.bf16.mxu0 %v7441_v45  ;;  %6849 = vmatpush3.bf16.msra.mxu1 %v7440_v44  ;;  %v1352_v44 = vrot.slane %v1330_v40, %v7768_v35  ;;  %v7484_v45 = vld [vmem:[%s9364_s1 + $0xb38] sm:$0xff]  }
 0x13a   :  { %6850 = vmatprep.subr.bf16.mxu1 %v7442_v46  ;;  %v1331_v46 = vcombine.high %v8832_v43, %v8832_v43 }
 0x13c   :  { %6829 = vmatpush3.bf16.msra.mxu0 %v7443_v47 }
 0x13d   :  { %6830 = vmatprep.subr.bf16.mxu0 %v7445_v49  ;;  %6851 = vmatpush3.bf16.msra.mxu1 %v7444_v48  ;;  %v1360_v48 = vcombine.high %v1338_v41, %v1338_v41  ;;  %v7486_v49 = vld [vmem:[%s9364_s1 + $0xb70] sm:$0xff]  }
 0x13e   :  { %6852 = vmatprep.subr.bf16.mxu1 %v7446_v50  ;;  %v1362_v50 = vcombine.high %v1352_v44, %v1352_v44 }
 0x140   :  { %6831 = vmatpush3.bf16.msra.mxu0 %v7447_v51  ;;  %v7485_v51 = vld [vmem:[%s9364_s1 + $0xbb8] sm:$0xff]  }
 0x141   :  { %6860 = vmatprep.subr.bf16.mxu0 %v7450_v54  ;;  %6853 = vmatpush3.bf16.msra.mxu1 %v7448_v52  ;;  %v1359_v52 = vrot.slane %v1331_v46, %v7768_v35 }
 0x142   :  { %6882 = vmatprep.subr.bf16.mxu1 %v7451_v55  ;;  %v7487_v55 = vld [vmem:[%s9364_s1 + $0xbf0] sm:$0xff]  }
 0x143   :  { %v6568_v60 = vpop.f32.mrf.mxu0  ;;  %5351 = vmatmul.mubr.bf16.vlgmr.msra.gmra.mxu0 %v1296_v53 }
 0x144   :  { %v6590_v63 = vpop.f32.mrf.mxu1  ;;  %6861 = vmatpush3.bf16.msra.mxu0 %v7452_v56  ;;  %5391 = vmatmul.mubr.bf16.vlgmr.msra.gmra.mxu1 %v1312_v58  ;;  %v1363_v58 = vcombine.high %v1359_v52, %v1359_v52 }
 0x145   :  { %v6569_v0 = vpop.f32.mrf.mxu0  ;;  %6862 = vmatprep.subr.bf16.mxu0 %v7454_v59  ;;  %6883 = vmatpush3.bf16.msra.mxu1 %v7453_v57  ;;  %v7488_v57 = vld [vmem:[%s9364_s1 + $0xb30] sm:$0xff]  }
 0x146   :  { %v6570_v2 = vadd.f32 %v6569_v0, %v6568_v60  ;;  %v6591_v4 = vpop.f32.mrf.mxu1  ;;  %6884 = vmatprep.subr.bf16.mxu1 %v7455_v61  ;;  %5430 = vmatprep.mubr.bf16.mxu0 %v1352_v44  ;;  %v7490_v61 = vld [vmem:[%s9364_s1 + $0xb68] sm:$0xff]   ;;  %v7489_v0 = vld [vmem:[%s9364_s1 + $0xbb0] sm:$0xff]  }
 0x147   :  { %v6571_v5 = vpop.f32.mrf.mxu0  ;;  %v6592_v8 = vadd.f32 %v6591_v4, %v6590_v63  ;;  %5470 = vmatprep.mubr.bf16.mxu1 %v1362_v50  ;;  %v7523_v44 = vld [vmem:[%s9364_s1 + $0xc68] sm:$0xff]  }
 0x148   :  { %v4873_v7 = vadd.f32 %v6570_v2, %v8657_v30  ;;  %v6593_v10 = vpop.f32.mrf.mxu1  ;;  %6863 = vmatpush3.bf16.msra.mxu0 %v7456_v62  ;;  %v7477_v30 = vld [vmem:[%s9364_s1 + $0xa88] sm:$0xff]  }
 0x149   :  { %v6572_v11 = vpop.f32.mrf.mxu0  ;;  %6864 = vmatprep.subr.bf16.mxu0 %v7458_v3  ;;  %6885 = vmatpush3.bf16.msra.mxu1 %v7457_v1  ;;  %v7491_v3 = vld [vmem:[%s9364_s1 + $0xbe8] sm:$0xff]   ;;  %v7496_v10 = vld [vmem:[%s9364_s1 + $0xb20] sm:$0xff]  }
 0x14a   :  { %v8758_v13 = vadd.f32 %v6592_v8, %v4873_v7  ;;  %v6594_v15 = vpop.f32.mrf.mxu1  ;;  %6886 = vmatprep.subr.bf16.mxu1 %v7459_v6  ;;  %v7492_v5 = vld [vmem:[%s9364_s1 + $0xb28] sm:$0xff]   ;;  %v7494_v7 = vld [vmem:[%s9364_s1 + $0xb60] sm:$0xff]   ;;  %v7498_v11 = vld [vmem:[%s9364_s1 + $0xb58] sm:$0xff]  }
 0x14b   :  { %v7493_v8 = vld [vmem:[%s9364_s1 + $0xba8] sm:$0xff]   ;;  %v7502_v15 = vld [vmem:[%s9364_s1 + $0xb50] sm:$0xff]  }
 0x14c   :  { %6865 = vmatpush3.bf16.msra.mxu0 %v7460_v9  ;;  %v7495_v9 = vld [vmem:[%s9364_s1 + $0xbe0] sm:$0xff]   ;;  %v7524_v50 = vld [vmem:[%s9364_s1 + $0xce8] sm:$0xff]  }
 0x14d   :  { %6866 = vmatprep.subr.bf16.mxu0 %v7462_v14  ;;  %6887 = vmatpush3.bf16.msra.mxu1 %v7461_v12  ;;  %v7497_v12 = vld [vmem:[%s9364_s1 + $0xba0] sm:$0xff]   ;;  %v7500_v14 = vld [vmem:[%s9364_s1 + $0xb18] sm:$0xff]  }
 0x14e   :  { %6888 = vmatprep.subr.bf16.mxu1 %v7463_v16  ;;  %v7501_v16 = vld [vmem:[%s9364_s1 + $0xb98] sm:$0xff]  }
 0x150   :  { %6867 = vmatpush3.bf16.msra.mxu0 %v7464_v17  ;;  %v7503_v17 = vld [vmem:[%s9364_s1 + $0xbd0] sm:$0xff]  }
 0x151   :  { %6868 = vmatprep.subr.bf16.mxu0 %v7466_v19  ;;  %6889 = vmatpush3.bf16.msra.mxu1 %v7465_v18  ;;  %v7504_v18 = vld [vmem:[%s9364_s1 + $0xb10] sm:$0xff]   ;;  %v7506_v19 = vld [vmem:[%s9364_s1 + $0xb48] sm:$0xff]  }
 0x152   :  { %6890 = vmatprep.subr.bf16.mxu1 %v7467_v20  ;;  %v7505_v20 = vld [vmem:[%s9364_s1 + $0xb90] sm:$0xff]  }
 0x154   :  { %6869 = vmatpush3.bf16.msra.mxu0 %v7468_v21  ;;  %v7507_v21 = vld [vmem:[%s9364_s1 + $0xbc8] sm:$0xff]  }
 0x155   :  { %6870 = vmatprep.subr.bf16.mxu0 %v7470_v23  ;;  %6891 = vmatpush3.bf16.msra.mxu1 %v7469_v22  ;;  %v7508_v22 = vld [vmem:[%s9364_s1 + $0xb08] sm:$0xff]   ;;  %v7510_v23 = vld [vmem:[%s9364_s1 + $0xb40] sm:$0xff]  }
 0x156   :  { %6892 = vmatprep.subr.bf16.mxu1 %v7471_v24  ;;  %v7509_v24 = vld [vmem:[%s9364_s1 + $0xb88] sm:$0xff]  }
 0x158   :  { %6871 = vmatpush3.bf16.msra.mxu0 %v7472_v25  ;;  %v7511_v25 = vld [vmem:[%s9364_s1 + $0xbc0] sm:$0xff]  }
 0x159   :  { %6872 = vmatprep.subr.bf16.mxu0 %v7474_v27  ;;  %6893 = vmatpush3.bf16.msra.mxu1 %v7473_v26  ;;  %v7512_v26 = vld [vmem:[%s9364_s1 + $0xb00] sm:$0xff]   ;;  %v1345_v27 = vrot.slane %v8832_v43, %v7768_v35 }
 0x15a   :  { %6894 = vmatprep.subr.bf16.mxu1 %v7475_v28  ;;  %v7515_v28 = vld [vmem:[%s9364_s1 + $0xc78] sm:$0xff]  }
 0x15c   :  { %6873 = vmatpush3.bf16.msra.mxu0 %v7476_v29  ;;  %v7513_v29 = vld [vmem:[%s9364_s1 + $0xb80] sm:$0xff]  }
 0x15d   :  { %6874 = vmatprep.subr.bf16.mxu0 %v7478_v31  ;;  %6895 = vmatpush3.bf16.msra.mxu1 %v7477_v30  ;;  %v7516_v30 = vld [vmem:[%s9364_s1 + $0xcf8] sm:$0xff]  }
 0x15e   :  { %6896 = vmatprep.subr.bf16.mxu1 %v7479_v32  ;;  %v7517_v31 = vld [vmem:[%s9364_s1 + $0xc38] sm:$0xff]  }
 0x160   :  { %6875 = vmatpush3.bf16.msra.mxu0 %v7480_v33  ;;  %v1361_v33 = vcombine.high %v1345_v27, %v1345_v27 }
 0x161   :  { %6904 = vmatprep.subr.bf16.mxu0 %v7482_v37  ;;  %6897 = vmatpush3.bf16.msra.mxu1 %v7481_v39  ;;  %v7520_v39 = vld [vmem:[%s9364_s1 + $0xcf0] sm:$0xff]  }
 0x162   :  { %6926 = vmatprep.subr.bf16.mxu1 %v7483_v42 }
 0x163   :  { %v6612_v47 = vpop.f32.mrf.mxu0  ;;  %5431 = vmatmul.mubr.bf16.vlgmr.msra.gmra.mxu0 %v1338_v41  ;;  %v7521_v41 = vld [vmem:[%s9364_s1 + $0xc30] sm:$0xff]  }
 0x164   :  { %v6634_v53 = vpop.f32.mrf.mxu1  ;;  %6905 = vmatpush3.bf16.msra.mxu0 %v7484_v45  ;;  %5471 = vmatmul.mubr.bf16.vlgmr.msra.gmra.mxu1 %v1360_v48 }
 0x165   :  { %v6613_v54 = vpop.f32.mrf.mxu0  ;;  %6906 = vmatprep.subr.bf16.mxu0 %v7486_v49  ;;  %6927 = vmatpush3.bf16.msra.mxu1 %v7485_v51 }
 0x166   :  { %v6614_v56 = vadd.f32 %v6613_v54, %v6612_v47  ;;  %v6635_v59 = vpop.f32.mrf.mxu1  ;;  %5510 = vmatprep.mubr.bf16.mxu0 %v1359_v52  ;;  %6928 = vmatprep.subr.bf16.mxu1 %v7487_v55  ;;  %v7522_v47 = vld [vmem:[%s9364_s1 + $0xcb0] sm:$0xff]   ;;  %v7525_v52 = vld [vmem:[%s9364_s1 + $0xc28] sm:$0xff]   ;;  %v7527_v54 = vld [vmem:[%s9364_s1 + $0xc60] sm:$0xff]  }
 0x167   :  { %v6615_v60 = vpop.f32.mrf.mxu0  ;;  %v6636_v63 = vadd.f32 %v6635_v59, %v6634_v53  ;;  %5550 = vmatprep.mubr.bf16.mxu1 %v1363_v58  ;;  %v7526_v55 = vld [vmem:[%s9364_s1 + $0xca8] sm:$0xff]   ;;  %v7531_v58 = vld [vmem:[%s9364_s1 + $0xc58] sm:$0xff]   ;;  %v7530_v59 = vld [vmem:[%s9364_s1 + $0xca0] sm:$0xff]  }
 0x168   :  { %v4953_v62 = vadd.f32 %v6614_v56, %v8758_v13  ;;  %v6637_v1 = vpop.f32.mrf.mxu1  ;;  %6907 = vmatpush3.bf16.msra.mxu0 %v7488_v57  ;;  %v7499_v13 = vld [vmem:[%s9364_s1 + $0xbd8] sm:$0xff]   ;;  %v7528_v56 = vld [vmem:[%s9364_s1 + $0xce0] sm:$0xff]  }
 0x169   :  { %v6616_v2 = vpop.f32.mrf.mxu0  ;;  %6908 = vmatprep.subr.bf16.mxu0 %v7490_v61  ;;  %6929 = vmatpush3.bf16.msra.mxu1 %v7489_v0  ;;  %v7529_v57 = vld [vmem:[%s9364_s1 + $0xc20] sm:$0xff]   ;;  %v7532_v60 = vld [vmem:[%s9364_s1 + $0xcd8] sm:$0xff]   ;;  %v7536_v0 = vld [vmem:[%s9364_s1 + $0xcd0] sm:$0xff]  }
 0x16a   :  { %v8863_v4 = vadd.f32 %v6636_v63, %v4953_v62  ;;  %v6638_v6 = vpop.f32.mrf.mxu1  ;;  %6930 = vmatprep.subr.bf16.mxu1 %v7491_v3  ;;  %v7533_v61 = vld [vmem:[%s9364_s1 + $0xc18] sm:$0xff]   ;;  %v7535_v62 = vld [vmem:[%s9364_s1 + $0xc50] sm:$0xff]   ;;  %v7539_v2 = vld [vmem:[%s9364_s1 + $0xc48] sm:$0xff]  }
 0x16b   :  { %v7534_v63 = vld [vmem:[%s9364_s1 + $0xc98] sm:$0xff]   ;;  %v7537_v1 = vld [vmem:[%s9364_s1 + $0xc10] sm:$0xff]   ;;  %v7543_v6 = vld [vmem:[%s9364_s1 + $0xc40] sm:$0xff]  }
 0x16c   :  { %6909 = vmatpush3.bf16.msra.mxu0 %v7492_v5  ;;  %v7538_v3 = vld [vmem:[%s9364_s1 + $0xc90] sm:$0xff]   ;;  %v7541_v5 = vld [vmem:[%s9364_s1 + $0xc08] sm:$0xff]  }
 0x16d   :  { %6910 = vmatprep.subr.bf16.mxu0 %v7494_v7  ;;  %6931 = vmatpush3.bf16.msra.mxu1 %v7493_v8  ;;  %v7542_v7 = vld [vmem:[%s9364_s1 + $0xc88] sm:$0xff]   ;;  %v7544_v8 = vld [vmem:[%s9364_s1 + $0xcc0] sm:$0xff]  }
 0x16e   :  { %6932 = vmatprep.subr.bf16.mxu1 %v7495_v9  ;;  %v29_v9 = vld [vmem:[%s9365_s0 + $0x30] sm:$0xff] }
 0x170   :  { %6911 = vmatpush3.bf16.msra.mxu0 %v7496_v10  ;;  %v7545_v10 = vld [vmem:[%s9364_s1 + $0xc00] sm:$0xff]  }
 0x171   :  { %6912 = vmatprep.subr.bf16.mxu0 %v7498_v11  ;;  %6933 = vmatpush3.bf16.msra.mxu1 %v7497_v12  ;;  %v1371_v11 = vrot.slane %v29_v9, %v7768_v35  ;;  %v1364_v12 = vcombine.high %v29_v9, %v29_v9  ;;  %v7584_v9 = vld [vmem:[%s9364_s1 + $0xe70] sm:$0xff]  }
 0x172   :  { %6934 = vmatprep.subr.bf16.mxu1 %v7499_v13  ;;  %v7547_v13 = vld [vmem:[%s9364_s1 + $0xd78] sm:$0xff]  }
 0x174   :  { %6913 = vmatpush3.bf16.msra.mxu0 %v7500_v14  ;;  %v7546_v14 = vld [vmem:[%s9364_s1 + $0xc80] sm:$0xff]  }
 0x175   :  { %6914 = vmatprep.subr.bf16.mxu0 %v7502_v15  ;;  %6935 = vmatpush3.bf16.msra.mxu1 %v7501_v16  ;;  %v1379_v15 = vcombine.high %v1371_v11, %v1371_v11  ;;  %v1387_v16 = vrot.slane %v1371_v11, %v7768_v35  ;;  %v7583_v11 = vld [vmem:[%s9364_s1 + $0xeb8] sm:$0xff]  }
 0x176   :  { %6936 = vmatprep.subr.bf16.mxu1 %v7503_v17  ;;  %v9041_v17 = vrot.slane %v1364_v12, %v7768_v35  ;;  %v7585_v12 = vld [vmem:[%s9364_s1 + $0xef0] sm:$0xff]  }
 0x178   :  { %6915 = vmatpush3.bf16.msra.mxu0 %v7504_v18  ;;  %v7548_v18 = vld [vmem:[%s9364_s1 + $0xdf8] sm:$0xff]  }
 0x179   :  { %6916 = vmatprep.subr.bf16.mxu0 %v7506_v19  ;;  %6937 = vmatpush3.bf16.msra.mxu1 %v7505_v20  ;;  %v1401_v19 = vrot.slane %v1379_v15, %v7768_v35  ;;  %v7549_v20 = vld [vmem:[%s9364_s1 + $0xd38] sm:$0xff]   ;;  %v7586_v15 = vld [vmem:[%s9364_s1 + $0xe30] sm:$0xff]  }
 0x17a   :  { %6938 = vmatprep.subr.bf16.mxu1 %v7507_v21  ;;  %v1380_v21 = vcombine.high %v9041_v17, %v9041_v17 }
 0x17c   :  { %6917 = vmatpush3.bf16.msra.mxu0 %v7508_v22  ;;  %v1409_v22 = vcombine.high %v1387_v16, %v1387_v16 }
 0x17d   :  { %6918 = vmatprep.subr.bf16.mxu0 %v7510_v23  ;;  %6939 = vmatpush3.bf16.msra.mxu1 %v7509_v24  ;;  %v7551_v23 = vld [vmem:[%s9364_s1 + $0xd70] sm:$0xff]   ;;  %v1411_v24 = vcombine.high %v1401_v19, %v1401_v19 }
 0x17e   :  { %6940 = vmatprep.subr.bf16.mxu1 %v7511_v25 }
 0x180   :  { %6919 = vmatpush3.bf16.msra.mxu0 %v7512_v26  ;;  %v7550_v26 = vld [vmem:[%s9364_s1 + $0xdb8] sm:$0xff]  }
 0x181   :  { %6948 = vmatprep.subr.bf16.mxu0 %v7515_v28  ;;  %6941 = vmatpush3.bf16.msra.mxu1 %v7513_v29  ;;  %v7552_v28 = vld [vmem:[%s9364_s1 + $0xdf0] sm:$0xff]  }
 0x182   :  { %6970 = vmatprep.subr.bf16.mxu1 %v7516_v30 }
 0x183   :  { %v6656_v32 = vpop.f32.mrf.mxu0  ;;  %5511 = vmatmul.mubr.bf16.vlgmr.msra.gmra.mxu0 %v1345_v27  ;;  %v1408_v27 = vrot.slane %v1380_v21, %v7768_v35 }
 0x184   :  { %v6678_v37 = vpop.f32.mrf.mxu1  ;;  %6949 = vmatpush3.bf16.msra.mxu0 %v7517_v31  ;;  %5551 = vmatmul.mubr.bf16.vlgmr.msra.gmra.mxu1 %v1361_v33  ;;  %v7553_v31 = vld [vmem:[%s9364_s1 + $0xd30] sm:$0xff]  }
 0x185   :  { %v6657_v38 = vpop.f32.mrf.mxu0  ;;  %6950 = vmatprep.subr.bf16.mxu0 %v7519_v34  ;;  %6971 = vmatpush3.bf16.msra.mxu1 %v7518_v36  ;;  %v7555_v34 = vld [vmem:[%s9364_s1 + $0xd68] sm:$0xff]  }
 0x186   :  { %v6658_v40 = vadd.f32 %v6657_v38, %v6656_v32  ;;  %v6679_v42 = vpop.f32.mrf.mxu1  ;;  %6972 = vmatprep.subr.bf16.mxu1 %v7520_v39  ;;  %5590 = vmatprep.mubr.bf16.mxu0 %v1401_v19  ;;  %v1412_v32 = vcombine.high %v1408_v27, %v1408_v27  ;;  %v7554_v38 = vld [vmem:[%s9364_s1 + $0xdb0] sm:$0xff]  }
 0x187   :  { %v6659_v43 = vpop.f32.mrf.mxu0  ;;  %v6680_v46 = vadd.f32 %v6679_v42, %v6678_v37  ;;  %5630 = vmatprep.mubr.bf16.mxu1 %v1411_v24 }
 0x188   :  { %v5033_v45 = vadd.f32 %v6658_v40, %v8863_v4  ;;  %v6681_v48 = vpop.f32.mrf.mxu1  ;;  %6951 = vmatpush3.bf16.msra.mxu0 %v7521_v41  ;;  %v7540_v4 = vld [vmem:[%s9364_s1 + $0xcc8] sm:$0xff]  }
 0x189   :  { %v6660_v49 = vpop.f32.mrf.mxu0  ;;  %6952 = vmatprep.subr.bf16.mxu0 %v7523_v44  ;;  %6973 = vmatpush3.bf16.msra.mxu1 %v7522_v47  ;;  %v7556_v41 = vld [vmem:[%s9364_s1 + $0xde8] sm:$0xff]  }
 0x18a   :  { %v8964_v51 = vadd.f32 %v6680_v46, %v5033_v45  ;;  %v6682_v53 = vpop.f32.mrf.mxu1  ;;  %6974 = vmatprep.subr.bf16.mxu1 %v7524_v50  ;;  %v7557_v44 = vld [vmem:[%s9364_s1 + $0xd28] sm:$0xff]   ;;  %v7559_v46 = vld [vmem:[%s9364_s1 + $0xd60] sm:$0xff]  }
 0x18b   :  { %v7558_v48 = vld [vmem:[%s9364_s1 + $0xda8] sm:$0xff]   ;;  %v7560_v49 = vld [vmem:[%s9364_s1 + $0xde0] sm:$0xff]   ;;  %v7564_v53 = vld [vmem:[%s9364_s1 + $0xdd8] sm:$0xff]  }
 0x18c   :  { %6953 = vmatpush3.bf16.msra.mxu0 %v7525_v52  ;;  %v7561_v50 = vld [vmem:[%s9364_s1 + $0xd20] sm:$0xff]  }
 0x18d   :  { %6954 = vmatprep.subr.bf16.mxu0 %v7527_v54  ;;  %6975 = vmatpush3.bf16.msra.mxu1 %v7526_v55  ;;  %v7562_v52 = vld [vmem:[%s9364_s1 + $0xda0] sm:$0xff]   ;;  %v7565_v54 = vld [vmem:[%s9364_s1 + $0xd18] sm:$0xff]   ;;  %v7567_v55 = vld [vmem:[%s9364_s1 + $0xd50] sm:$0xff]  }
 0x18e   :  { %6976 = vmatprep.subr.bf16.mxu1 %v7528_v56  ;;  %v7566_v56 = vld [vmem:[%s9364_s1 + $0xd98] sm:$0xff]  }
 0x190   :  { %6955 = vmatpush3.bf16.msra.mxu0 %v7529_v57  ;;  %v7568_v57 = vld [vmem:[%s9364_s1 + $0xdd0] sm:$0xff]  }
 0x191   :  { %6956 = vmatprep.subr.bf16.mxu0 %v7531_v58  ;;  %6977 = vmatpush3.bf16.msra.mxu1 %v7530_v59  ;;  %v7569_v58 = vld [vmem:[%s9364_s1 + $0xd10] sm:$0xff]   ;;  %v7571_v59 = vld [vmem:[%s9364_s1 + $0xd48] sm:$0xff]  }
 0x192   :  { %6978 = vmatprep.subr.bf16.mxu1 %v7532_v60  ;;  %v7570_v60 = vld [vmem:[%s9364_s1 + $0xd90] sm:$0xff]  }
 0x194   :  { %6957 = vmatpush3.bf16.msra.mxu0 %v7533_v61  ;;  %v7572_v61 = vld [vmem:[%s9364_s1 + $0xdc8] sm:$0xff]  }
 0x195   :  { %6958 = vmatprep.subr.bf16.mxu0 %v7535_v62  ;;  %6979 = vmatpush3.bf16.msra.mxu1 %v7534_v63  ;;  %v7573_v62 = vld [vmem:[%s9364_s1 + $0xd08] sm:$0xff]   ;;  %v7575_v63 = vld [vmem:[%s9364_s1 + $0xd40] sm:$0xff]  }
 0x196   :  { %6980 = vmatprep.subr.bf16.mxu1 %v7536_v0  ;;  %v7574_v0 = vld [vmem:[%s9364_s1 + $0xd88] sm:$0xff]  }
 0x198   :  { %6959 = vmatpush3.bf16.msra.mxu0 %v7537_v1  ;;  %v7576_v1 = vld [vmem:[%s9364_s1 + $0xdc0] sm:$0xff]  }
 0x199   :  { %6960 = vmatprep.subr.bf16.mxu0 %v7539_v2  ;;  %6981 = vmatpush3.bf16.msra.mxu1 %v7538_v3  ;;  %v7577_v2 = vld [vmem:[%s9364_s1 + $0xd00] sm:$0xff]   ;;  %v1394_v3 = vrot.slane %v9041_v17, %v7768_v35  ;;  %v7588_v17 = vld [vmem:[%s9364_s1 + $0xe68] sm:$0xff]  }
 0x19a   :  { %6982 = vmatprep.subr.bf16.mxu1 %v7540_v4  ;;  %v7580_v4 = vld [vmem:[%s9364_s1 + $0xe78] sm:$0xff]  }
 0x19c   :  { %6961 = vmatpush3.bf16.msra.mxu0 %v7541_v5  ;;  %v7578_v5 = vld [vmem:[%s9364_s1 + $0xd80] sm:$0xff]  }
 0x19d   :  { %6962 = vmatprep.subr.bf16.mxu0 %v7543_v6  ;;  %6983 = vmatpush3.bf16.msra.mxu1 %v7542_v7  ;;  %v7581_v6 = vld [vmem:[%s9364_s1 + $0xef8] sm:$0xff]  }
 0x19e   :  { %6984 = vmatprep.subr.bf16.mxu1 %v7544_v8  ;;  %v7582_v7 = vld [vmem:[%s9364_s1 + $0xe38] sm:$0xff]   ;;  %v1410_v8 = vcombine.high %v1394_v3, %v1394_v3 }
 0x1a0   :  { %6963 = vmatpush3.bf16.msra.mxu0 %v7545_v10 }
 0x1a1   :  { %6992 = vmatprep.subr.bf16.mxu0 %v7547_v13  ;;  %6985 = vmatpush3.bf16.msra.mxu1 %v7546_v14 }
 0x1a2   :  { %7014 = vmatprep.subr.bf16.mxu1 %v7548_v18 }
 0x1a3   :  { %v6700_v25 = vpop.f32.mrf.mxu0  ;;  %5591 = vmatmul.mubr.bf16.vlgmr.msra.gmra.mxu0 %v1387_v16 }
 0x1a4   :  { %v6722_v29 = vpop.f32.mrf.mxu1  ;;  %6993 = vmatpush3.bf16.msra.mxu0 %v7549_v20  ;;  %5631 = vmatmul.mubr.bf16.vlgmr.msra.gmra.mxu1 %v1409_v22  ;;  %v7587_v20 = vld [vmem:[%s9364_s1 + $0xeb0] sm:$0xff]  }
 0x1a5   :  { %v6701_v30 = vpop.f32.mrf.mxu0  ;;  %6994 = vmatprep.subr.bf16.mxu0 %v7551_v23  ;;  %7015 = vmatpush3.bf16.msra.mxu1 %v7550_v26  ;;  %v7589_v23 = vld [vmem:[%s9364_s1 + $0xee8] sm:$0xff]  }
 0x1a6   :  { %v6702_v33 = vadd.f32 %v6701_v30, %v6700_v25  ;;  %v6723_v36 = vpop.f32.mrf.mxu1  ;;  %5670 = vmatprep.mubr.bf16.mxu0 %v1408_v27  ;;  %7016 = vmatprep.subr.bf16.mxu1 %v7552_v28  ;;  %v7590_v26 = vld [vmem:[%s9364_s1 + $0xe28] sm:$0xff]   ;;  %v7592_v28 = vld [vmem:[%s9364_s1 + $0xe60] sm:$0xff]  }
 0x1a7   :  { %v6703_v37 = vpop.f32.mrf.mxu0  ;;  %v6724_v40 = vadd.f32 %v6723_v36, %v6722_v29  ;;  %5710 = vmatprep.mubr.bf16.mxu1 %v1412_v32  ;;  %v7591_v30 = vld [vmem:[%s9364_s1 + $0xea8] sm:$0xff]   ;;  %v7594_v32 = vld [vmem:[%s9364_s1 + $0xe20] sm:$0xff]   ;;  %v7597_v36 = vld [vmem:[%s9364_s1 + $0xed8] sm:$0xff]  }
 0x1a8   :  { %v5113_v39 = vadd.f32 %v6702_v33, %v8964_v51  ;;  %v6725_v42 = vpop.f32.mrf.mxu1  ;;  %6995 = vmatpush3.bf16.msra.mxu0 %v7553_v31  ;;  %v7563_v51 = vld [vmem:[%s9364_s1 + $0xd58] sm:$0xff]   ;;  %v7593_v31 = vld [vmem:[%s9364_s1 + $0xee0] sm:$0xff]  }
 0x1a9   :  { %v6704_v43 = vpop.f32.mrf.mxu0  ;;  %6996 = vmatprep.subr.bf16.mxu0 %v7555_v34  ;;  %7017 = vmatpush3.bf16.msra.mxu1 %v7554_v38  ;;  %v7596_v33 = vld [vmem:[%s9364_s1 + $0xe58] sm:$0xff]   ;;  %v7595_v34 = vld [vmem:[%s9364_s1 + $0xea0] sm:$0xff]   ;;  %v7600_v38 = vld [vmem:[%s9364_s1 + $0xe50] sm:$0xff]  }
 0x1aa   :  { %v9078_v45 = vadd.f32 %v6724_v40, %v5113_v39  ;;  %v6726_v47 = vpop.f32.mrf.mxu1  ;;  %7018 = vmatprep.subr.bf16.mxu1 %v7556_v41  ;;  %v7598_v37 = vld [vmem:[%s9364_s1 + $0xe18] sm:$0xff]   ;;  %v7601_v40 = vld [vmem:[%s9364_s1 + $0xed0] sm:$0xff]   ;;  %v7604_v42 = vld [vmem:[%s9364_s1 + $0xe48] sm:$0xff]  }
 0x1ab   :  { %v7599_v39 = vld [vmem:[%s9364_s1 + $0xe98] sm:$0xff]   ;;  %v7602_v41 = vld [vmem:[%s9364_s1 + $0xe10] sm:$0xff]   ;;  %v7607_v47 = vld [vmem:[%s9364_s1 + $0xe88] sm:$0xff]  }
 0x1ac   :  { %6997 = vmatpush3.bf16.msra.mxu0 %v7557_v44  ;;  %v7603_v43 = vld [vmem:[%s9364_s1 + $0xe90] sm:$0xff]   ;;  %v7605_v44 = vld [vmem:[%s9364_s1 + $0xec8] sm:$0xff]  }
 0x1ad   :  { %6998 = vmatprep.subr.bf16.mxu0 %v7559_v46  ;;  %7019 = vmatpush3.bf16.msra.mxu1 %v7558_v48  ;;  %v7608_v46 = vld [vmem:[%s9364_s1 + $0xe40] sm:$0xff]  }
 0x1ae   :  { %7020 = vmatprep.subr.bf16.mxu1 %v7560_v49  ;;  %v7609_v48 = vld [vmem:[%s9364_s1 + $0xec0] sm:$0xff]   ;;  %v30_v49 = vld [vmem:[%s9365_s0 + $0x38] sm:$0xff] }
 0x1b0   :  { %6999 = vmatpush3.bf16.msra.mxu0 %v7561_v50  ;;  %v7610_v50 = vld [vmem:[%s9364_s1 + $0xe00] sm:$0xff]  }
 0x1b1   :  { %7000 = vmatprep.subr.bf16.mxu0 %v7563_v51  ;;  %7021 = vmatpush3.bf16.msra.mxu1 %v7562_v52  ;;  %v1420_v51 = vrot.slane %v30_v49, %v7768_v35  ;;  %v1413_v52 = vcombine.high %v30_v49, %v30_v49 }
 0x1b2   :  { %7022 = vmatprep.subr.bf16.mxu1 %v7564_v53  ;;  %v7612_v53 = vld [vmem:[%s9364_s1 + $0xf78] sm:$0xff]  }
 0x1b4   :  { %7001 = vmatpush3.bf16.msra.mxu0 %v7565_v54  ;;  %v7611_v54 = vld [vmem:[%s9364_s1 + $0xe80] sm:$0xff]  }
 0x1b5   :  { %7002 = vmatprep.subr.bf16.mxu0 %v7567_v55  ;;  %7023 = vmatpush3.bf16.msra.mxu1 %v7566_v56  ;;  %v1428_v55 = vcombine.high %v1420_v51, %v1420_v51  ;;  %v1436_v56 = vrot.slane %v1420_v51, %v7768_v35 }
 0x1b6   :  { %7024 = vmatprep.subr.bf16.mxu1 %v7568_v57  ;;  %v9253_v57 = vrot.slane %v1413_v52, %v7768_v35 }
 0x1b8   :  { %7003 = vmatpush3.bf16.msra.mxu0 %v7569_v58  ;;  %v7613_v58 = vld [vmem:[%s9364_s1 + $0xff8] sm:$0xff]  }
 0x1b9   :  { %7004 = vmatprep.subr.bf16.mxu0 %v7571_v59  ;;  %7025 = vmatpush3.bf16.msra.mxu1 %v7570_v60  ;;  %v1450_v59 = vrot.slane %v1428_v55, %v7768_v35  ;;  %v7614_v60 = vld [vmem:[%s9364_s1 + $0xf38] sm:$0xff]  }
 0x1ba   :  { %7026 = vmatprep.subr.bf16.mxu1 %v7572_v61  ;;  %v1429_v61 = vcombine.high %v9253_v57, %v9253_v57 }
 0x1bc   :  { %7005 = vmatpush3.bf16.msra.mxu0 %v7573_v62  ;;  %v1458_v62 = vcombine.high %v1436_v56, %v1436_v56 }
 0x1bd   :  { %7006 = vmatprep.subr.bf16.mxu0 %v7575_v63  ;;  %7027 = vmatpush3.bf16.msra.mxu1 %v7574_v0  ;;  %v7616_v63 = vld [vmem:[%s9364_s1 + $0xf70] sm:$0xff]   ;;  %v1460_v0 = vcombine.high %v1450_v59, %v1450_v59 }
 0x1be   :  { %7028 = vmatprep.subr.bf16.mxu1 %v7576_v1 }
 0x1c0   :  { %7007 = vmatpush3.bf16.msra.mxu0 %v7577_v2  ;;  %v7615_v2 = vld [vmem:[%s9364_s1 + $0xfb8] sm:$0xff]  }
 0x1c1   :  { %7036 = vmatprep.subr.bf16.mxu0 %v7580_v4  ;;  %7029 = vmatpush3.bf16.msra.mxu1 %v7578_v5  ;;  %v7617_v4 = vld [vmem:[%s9364_s1 + $0xff0] sm:$0xff]  }
 0x1c2   :  { %7058 = vmatprep.subr.bf16.mxu1 %v7581_v6 }
 0x1c3   :  { %v6744_v10 = vpop.f32.mrf.mxu0  ;;  %5671 = vmatmul.mubr.bf16.vlgmr.msra.gmra.mxu0 %v1394_v3  ;;  %v1457_v3 = vrot.slane %v1429_v61, %v7768_v35 }
 0x1c4   :  { %v6766_v13 = vpop.f32.mrf.mxu1  ;;  %7037 = vmatpush3.bf16.msra.mxu0 %v7582_v7  ;;  %5711 = vmatmul.mubr.bf16.vlgmr.msra.gmra.mxu1 %v1410_v8  ;;  %v7618_v7 = vld [vmem:[%s9364_s1 + $0xf30] sm:$0xff]  }
 0x1c5   :  { %v6745_v14 = vpop.f32.mrf.mxu0  ;;  %7038 = vmatprep.subr.bf16.mxu0 %v7584_v9  ;;  %7059 = vmatpush3.bf16.msra.mxu1 %v7583_v11  ;;  %v1461_v8 = vcombine.high %v1457_v3, %v1457_v3 }
 0x1c6   :  { %v6746_v16 = vadd.f32 %v6745_v14, %v6744_v10  ;;  %v6767_v18 = vpop.f32.mrf.mxu1  ;;  %7060 = vmatprep.subr.bf16.mxu1 %v7585_v12  ;;  %5750 = vmatprep.mubr.bf16.mxu0 %v1450_v59  ;;  %v7620_v10 = vld [vmem:[%s9364_s1 + $0xf68] sm:$0xff]  }
 0x1c7   :  { %v6747_v19 = vpop.f32.mrf.mxu0  ;;  %v6768_v22 = vadd.f32 %v6767_v18, %v6766_v13  ;;  %5790 = vmatprep.mubr.bf16.mxu1 %v1460_v0  ;;  %v7619_v13 = vld [vmem:[%s9364_s1 + $0xfb0] sm:$0xff]  }
 0x1c8   :  { %v5193_v21 = vadd.f32 %v6746_v16, %v9078_v45  ;;  %v6769_v24 = vpop.f32.mrf.mxu1  ;;  %7039 = vmatpush3.bf16.msra.mxu0 %v7586_v15  ;;  %v7606_v45 = vld [vmem:[%s9364_s1 + $0xe08] sm:$0xff]  }
 0x1c9   :  { %v6748_v25 = vpop.f32.mrf.mxu0  ;;  %7040 = vmatprep.subr.bf16.mxu0 %v7588_v17  ;;  %7061 = vmatpush3.bf16.msra.mxu1 %v7587_v20  ;;  %v7621_v16 = vld [vmem:[%s9364_s1 + $0xfe8] sm:$0xff]   ;;  %v7625_v24 = vld [vmem:[%s9364_s1 + $0xfe0] sm:$0xff]  }
 0x1ca   :  { %v9179_v27 = vadd.f32 %v6768_v22, %v5193_v21  ;;  %v6770_v29 = vpop.f32.mrf.mxu1  ;;  %7062 = vmatprep.subr.bf16.mxu1 %v7589_v23  ;;  %v7622_v19 = vld [vmem:[%s9364_s1 + $0xf28] sm:$0xff]   ;;  %v7624_v21 = vld [vmem:[%s9364_s1 + $0xf60] sm:$0xff]  }
 0x1cb   :  { %v7623_v23 = vld [vmem:[%s9364_s1 + $0xfa8] sm:$0xff]   ;;  %v7626_v25 = vld [vmem:[%s9364_s1 + $0xf20] sm:$0xff]   ;;  %v7630_v29 = vld [vmem:[%s9364_s1 + $0xf18] sm:$0xff]  }
 0x1cc   :  { %7041 = vmatpush3.bf16.msra.mxu0 %v7590_v26  ;;  %v7628_v26 = vld [vmem:[%s9364_s1 + $0xf58] sm:$0xff]  }
 0x1cd   :  { %7042 = vmatprep.subr.bf16.mxu0 %v7592_v28  ;;  %7063 = vmatpush3.bf16.msra.mxu1 %v7591_v30  ;;  %v7629_v28 = vld [vmem:[%s9364_s1 + $0xfd8] sm:$0xff]   ;;  %v7632_v30 = vld [vmem:[%s9364_s1 + $0xf50] sm:$0xff]  }
 0x1ce   :  { %7064 = vmatprep.subr.bf16.mxu1 %v7593_v31  ;;  %v7631_v31 = vld [vmem:[%s9364_s1 + $0xf98] sm:$0xff]  }
 0x1d0   :  { %7043 = vmatpush3.bf16.msra.mxu0 %v7594_v32  ;;  %v7633_v32 = vld [vmem:[%s9364_s1 + $0xfd0] sm:$0xff]  }
 0x1d1   :  { %7044 = vmatprep.subr.bf16.mxu0 %v7596_v33  ;;  %7065 = vmatpush3.bf16.msra.mxu1 %v7595_v34  ;;  %v7634_v33 = vld [vmem:[%s9364_s1 + $0xf10] sm:$0xff]   ;;  %v7636_v34 = vld [vmem:[%s9364_s1 + $0xf48] sm:$0xff]  }
 0x1d2   :  { %7066 = vmatprep.subr.bf16.mxu1 %v7597_v36  ;;  %v7635_v36 = vld [vmem:[%s9364_s1 + $0xf90] sm:$0xff]  }
 0x1d4   :  { %7045 = vmatpush3.bf16.msra.mxu0 %v7598_v37  ;;  %v7637_v37 = vld [vmem:[%s9364_s1 + $0xfc8] sm:$0xff]  }
 0x1d5   :  { %7046 = vmatprep.subr.bf16.mxu0 %v7600_v38  ;;  %7067 = vmatpush3.bf16.msra.mxu1 %v7599_v39  ;;  %v7638_v38 = vld [vmem:[%s9364_s1 + $0xf08] sm:$0xff]   ;;  %v7640_v39 = vld [vmem:[%s9364_s1 + $0xf40] sm:$0xff]  }
 0x1d6   :  { %7068 = vmatprep.subr.bf16.mxu1 %v7601_v40  ;;  %v7639_v40 = vld [vmem:[%s9364_s1 + $0xf88] sm:$0xff]  }
 0x1d8   :  { %7047 = vmatpush3.bf16.msra.mxu0 %v7602_v41  ;;  %v7641_v41 = vld [vmem:[%s9364_s1 + $0xfc0] sm:$0xff]  }
 0x1d9   :  { %7048 = vmatprep.subr.bf16.mxu0 %v7604_v42  ;;  %7069 = vmatpush3.bf16.msra.mxu1 %v7603_v43  ;;  %v7642_v42 = vld [vmem:[%s9364_s1 + $0xf00] sm:$0xff]   ;;  %v1443_v43 = vrot.slane %v9253_v57, %v7768_v35 }
 0x1da   :  { %7070 = vmatprep.subr.bf16.mxu1 %v7605_v44  ;;  %v7643_v44 = vld [vmem:[%s9364_s1 + $0xf80] sm:$0xff]  }
 0x1dc   :  { %7049 = vmatpush3.bf16.msra.mxu0 %v7606_v45  ;;  %v1459_v45 = vcombine.high %v1443_v43, %v1443_v43 }
 0x1dd   :  { %7050 = vmatprep.subr.bf16.mxu0 %v7608_v46  ;;  %7071 = vmatpush3.bf16.msra.mxu1 %v7607_v47 }
 0x1de   :  { %7072 = vmatprep.subr.bf16.mxu1 %v7609_v48 }
 0x1e0   :  { %7051 = vmatpush3.bf16.msra.mxu0 %v7610_v50 }
 0x1e1   :  { %7080 = vmatprep.subr.bf16.mxu0 %v7612_v53  ;;  %7073 = vmatpush3.bf16.msra.mxu1 %v7611_v54 }
 0x1e2   :  { %7102 = vmatprep.subr.bf16.mxu1 %v7613_v58 }
 0x1e3   :  { %v6788_v1 = vpop.f32.mrf.mxu0  ;;  %5751 = vmatmul.mubr.bf16.vlgmr.msra.gmra.mxu0 %v1436_v56 }
 0x1e4   :  { %v6810_v5 = vpop.f32.mrf.mxu1  ;;  %7081 = vmatpush3.bf16.msra.mxu0 %v7614_v60  ;;  %5791 = vmatmul.mubr.bf16.vlgmr.msra.gmra.mxu1 %v1458_v62 }
 0x1e5   :  { %v6789_v6 = vpop.f32.mrf.mxu0  ;;  %7082 = vmatprep.subr.bf16.mxu0 %v7616_v63  ;;  %7103 = vmatpush3.bf16.msra.mxu1 %v7615_v2 }
 0x1e6   :  { %v6790_v9 = vadd.f32 %v6789_v6, %v6788_v1  ;;  %v6811_v11 = vpop.f32.mrf.mxu1  ;;  %5830 = vmatprep.mubr.bf16.mxu0 %v1457_v3  ;;  %7104 = vmatprep.subr.bf16.mxu1 %v7617_v4 }
 0x1e7   :  { %v6791_v12 = vpop.f32.mrf.mxu0  ;;  %v6812_v15 = vadd.f32 %v6811_v11, %v6810_v5  ;;  %5870 = vmatprep.mubr.bf16.mxu1 %v1461_v8 }
 0x1e8   :  { %v5273_v14 = vadd.f32 %v6790_v9, %v9179_v27  ;;  %v6813_v17 = vpop.f32.mrf.mxu1  ;;  %7083 = vmatpush3.bf16.msra.mxu0 %v7618_v7  ;;  %v7627_v27 = vld [vmem:[%s9364_s1 + $0xfa0] sm:$0xff]  }
 0x1e9   :  { %v6792_v18 = vpop.f32.mrf.mxu0  ;;  %7084 = vmatprep.subr.bf16.mxu0 %v7620_v10  ;;  %7105 = vmatpush3.bf16.msra.mxu1 %v7619_v13  ;;  %v10_v17 = vstv %s9367_s4 }
 0x1ea   :  { %v5313_v20 = vadd.f32 %v6812_v15, %v5273_v14  ;;  %v6814_v22 = vpop.f32.mrf.mxu1  ;;  %7106 = vmatprep.subr.bf16.mxu1 %v7621_v16  ;;  %11 = vst [vmem:[#allocation2] sm:$0x1] %v10_v17 }
 0x1ec   :  { %7085 = vmatpush3.bf16.msra.mxu0 %v7622_v19 }
 0x1ed   :  { %7086 = vmatprep.subr.bf16.mxu0 %v7624_v21  ;;  %7107 = vmatpush3.bf16.msra.mxu1 %v7623_v23 }
 0x1ee   :  { %7108 = vmatprep.subr.bf16.mxu1 %v7625_v24 }
 0x1f0   :  { %7087 = vmatpush3.bf16.msra.mxu0 %v7626_v25 }
 0x1f1   :  { %7088 = vmatprep.subr.bf16.mxu0 %v7628_v26  ;;  %7109 = vmatpush3.bf16.msra.mxu1 %v7627_v27 }
 0x1f2   :  { %7110 = vmatprep.subr.bf16.mxu1 %v7629_v28 }
 0x1f4   :  { %7089 = vmatpush3.bf16.msra.mxu0 %v7630_v29 }
 0x1f5   :  { %7090 = vmatprep.subr.bf16.mxu0 %v7632_v30  ;;  %7111 = vmatpush3.bf16.msra.mxu1 %v7631_v31 }
 0x1f6   :  { %7112 = vmatprep.subr.bf16.mxu1 %v7633_v32 }
 0x1f8   :  { %7091 = vmatpush3.bf16.msra.mxu0 %v7634_v33 }
 0x1f9   :  { %7092 = vmatprep.subr.bf16.mxu0 %v7636_v34  ;;  %7113 = vmatpush3.bf16.msra.mxu1 %v7635_v36 }
 0x1fa   :  { %7114 = vmatprep.subr.bf16.mxu1 %v7637_v37 }
 0x1fc   :  { %7093 = vmatpush3.bf16.msra.mxu0 %v7638_v38 }
 0x1fd   :  { %7094 = vmatprep.subr.bf16.mxu0 %v7640_v39  ;;  %7115 = vmatpush3.bf16.msra.mxu1 %v7639_v40 }
 0x1fe   :  { %7116 = vmatprep.subr.bf16.mxu1 %v7641_v41 }
 0x200   :  { %7095 = vmatpush3.bf16.msra.mxu0 %v7642_v42 }
 0x201   :  { %7117 = vmatpush3.bf16.msra.mxu1 %v7643_v44 }
 0x203   :  { %v6832_v46 = vpop.f32.mrf.mxu0  ;;  %5831 = vmatmul.mubr.bf16.vlgmr.msra.gmra.mxu0 %v1443_v43 }
 0x204   :  { %v6854_v47 = vpop.f32.mrf.mxu1  ;;  %5871 = vmatmul.mubr.bf16.vlgmr.msra.gmra.mxu1 %v1459_v45 }
 0x205   :  { %v6833_v48 = vpop.f32.mrf.mxu0 }
 0x206   :  { %v6834_v49 = vadd.f32 %v6833_v48, %v6832_v46  ;;  %v6855_v50 = vpop.f32.mrf.mxu1 }
 0x207   :  { %v6835_v51 = vpop.f32.mrf.mxu0  ;;  %v6856_v53 = vadd.f32 %v6855_v50, %v6854_v47 }
 0x208   :  { %v5353_v52 = vadd.f32 %v6834_v49, %v5313_v20  ;;  %v6857_v35 = vpop.f32.mrf.mxu1 }
 0x209   :  { %v6836_v54 = vpop.f32.mrf.mxu0 }
 0x20a   :  { %v5393_v55 = vadd.f32 %v6856_v53, %v5353_v52  ;;  %v6858_v56 = vpop.f32.mrf.mxu1 }
 0x223   :  { %v6876_v57 = vpop.f32.mrf.mxu0 }
 0x224   :  { %v6898_v58 = vpop.f32.mrf.mxu1 }
 0x225   :  { %v6877_v59 = vpop.f32.mrf.mxu0 }
 0x226   :  { %v6878_v60 = vadd.f32 %v6877_v59, %v6876_v57  ;;  %v6899_v61 = vpop.f32.mrf.mxu1 }
 0x227   :  { %v6879_v62 = vpop.f32.mrf.mxu0  ;;  %v6900_v0 = vadd.f32 %v6899_v61, %v6898_v58 }
 0x228   :  { %v5433_v63 = vadd.f32 %v6878_v60, %v5393_v55  ;;  %v6901_v1 = vpop.f32.mrf.mxu1 }
 0x229   :  { %v6880_v2 = vpop.f32.mrf.mxu0 }
 0x22a   :  { %v5473_v3 = vadd.f32 %v6900_v0, %v5433_v63  ;;  %v6902_v4 = vpop.f32.mrf.mxu1  ;;  %v6418_v2 = vld [vmem:[%s9368_s3] ss:$0 sm:$0xff] }
 0x243   :  { %v6920_v5 = vpop.f32.mrf.mxu0 }
 0x244   :  { %v6942_v6 = vpop.f32.mrf.mxu1 }
 0x245   :  { %v6921_v7 = vpop.f32.mrf.mxu0 }
 0x246   :  { %v6922_v8 = vadd.f32 %v6921_v7, %v6920_v5  ;;  %v6943_v9 = vpop.f32.mrf.mxu1 }
 0x247   :  { %v6923_v10 = vpop.f32.mrf.mxu0  ;;  %v6944_v12 = vadd.f32 %v6943_v9, %v6942_v6  ;;  %v6419_v6 = vld [vmem:[#allocation2] ss:$0 sm:$0xff] }
 0x248   :  { %v5513_v11 = vadd.f32 %v6922_v8, %v5473_v3  ;;  %v6945_v13 = vpop.f32.mrf.mxu1 }
 0x249   :  { %v6924_v14 = vpop.f32.mrf.mxu0 }
 0x24a   :  { %v5553_v15 = vadd.f32 %v6944_v12, %v5513_v11  ;;  %v6946_v16 = vpop.f32.mrf.mxu1 }
 0x263   :  { %v6964_v18 = vpop.f32.mrf.mxu0 }
 0x264   :  { %v6986_v19 = vpop.f32.mrf.mxu1 }
 0x265   :  { %v6965_v20 = vpop.f32.mrf.mxu0 }
 0x266   :  { %v6966_v21 = vadd.f32 %v6965_v20, %v6964_v18  ;;  %v6987_v22 = vpop.f32.mrf.mxu1 }
 0x267   :  { %v6967_v23 = vpop.f32.mrf.mxu0  ;;  %v6988_v25 = vadd.f32 %v6987_v22, %v6986_v19 }
 0x268   :  { %v5593_v24 = vadd.f32 %v6966_v21, %v5553_v15  ;;  %v6989_v26 = vpop.f32.mrf.mxu1 }
 0x269   :  { %v6968_v27 = vpop.f32.mrf.mxu0 }
 0x26a   :  { %v5633_v28 = vadd.f32 %v6988_v25, %v5593_v24  ;;  %v6990_v29 = vpop.f32.mrf.mxu1 }
 0x283   :  { %v7008_v30 = vpop.f32.mrf.mxu0 }
 0x284   :  { %v7030_v31 = vpop.f32.mrf.mxu1 }
 0x285   :  { %v7009_v32 = vpop.f32.mrf.mxu0 }
 0x286   :  { %v7031_v33 = vpop.f32.mrf.mxu1  ;;  %v7010_v47 = vadd.f32 %v7009_v32, %v7008_v30 }
 0x287   :  { %v7011_v34 = vpop.f32.mrf.mxu0  ;;  %v7032_v49 = vadd.f32 %v7031_v33, %v7030_v31 }
 0x288   :  { %v7033_v36 = vpop.f32.mrf.mxu1  ;;  %v5673_v48 = vadd.f32 %v7010_v47, %v5633_v28 }
 0x289   :  { %v7012_v37 = vpop.f32.mrf.mxu0 }
 0x28a   :  { %v7034_v38 = vpop.f32.mrf.mxu1  ;;  %v5713_v51 = vadd.f32 %v7032_v49, %v5673_v48 }
 0x2a3   :  { %v7052_v39 = vpop.f32.mrf.mxu0 }
 0x2a4   :  { %v7074_v40 = vpop.f32.mrf.mxu1 }
 0x2a5   :  { %v7053_v41 = vpop.f32.mrf.mxu0 }
 0x2a6   :  { %v7075_v42 = vpop.f32.mrf.mxu1  ;;  %v7054_v50 = vadd.f32 %v7053_v41, %v7052_v39 }
 0x2a7   :  { %v7055_v43 = vpop.f32.mrf.mxu0  ;;  %v7076_v53 = vadd.f32 %v7075_v42, %v7074_v40 }
 0x2a8   :  { %v7077_v44 = vpop.f32.mrf.mxu1  ;;  %v5753_v52 = vadd.f32 %v7054_v50, %v5713_v51 }
 0x2a9   :  { %v7056_v45 = vpop.f32.mrf.mxu0 }
 0x2aa   :  { %v7078_v46 = vpop.f32.mrf.mxu1  ;;  %v5793_v56 = vadd.f32 %v7076_v53, %v5753_v52 }
 0x2c3   :  { %v7096_v35 = vpop.f32.mrf.mxu0 }
 0x2c4   :  { %v7118_v54 = vpop.f32.mrf.mxu1 }
 0x2c5   :  { %v7097_v55 = vpop.f32.mrf.mxu0 }
 0x2c6   :  { %v7098_v57 = vadd.f32 %v7097_v55, %v7096_v35  ;;  %v7119_v58 = vpop.f32.mrf.mxu1 }
 0x2c7   :  { %v7099_v59 = vpop.f32.mrf.mxu0  ;;  %v7120_v61 = vadd.f32 %v7119_v58, %v7118_v54 }
 0x2c8   :  { %v5833_v60 = vadd.f32 %v7098_v57, %v5793_v56  ;;  %v7121_v62 = vpop.f32.mrf.mxu1 }
 0x2c9   :  { %v7100_v63 = vpop.f32.mrf.mxu0 }
 0x2ca   :  { %v5873_v0 = vadd.f32 %v7120_v61, %v5833_v60  ;;  %v7122_v1 = vpop.f32.mrf.mxu1 }
 0x2cc   :  { %7645 = vtanh.f32 %v5873_v0 }
 0x2d9   :  { %v7646_v3 = vpop.eup %7645 }
 0x2da   :  { %v5886_v4 = vmul.f32 %v7646_v3, %v6418_v2 }
 0x2dc   :  { %v5888_v5 = vsel %vm5887_vm0, %v5886_v4, 0.0 }
 0x2dd   :  { %5889 = vadd.xlane.f32.xlu0 %v5888_v5 }
 0x366   :  { %v5890_v7 = vpop.xlane.xlu0 %5889 }
 0x367   :  { %v5898_v8 = vadd.f32 %v6419_v6, %v5890_v7 }
 0x369   :  { %5900 = vst.msk [vmem:[%s9369_s5] sm:$0x3] %vm5899_vm1, %v5898_v8 }

</bundles_post_ra>
